<compile_context>
chip_gen: v6e
topology: v6e:2x2x1
jax: 0.10.0
libtpu: 0.0.40
codegen_flags: <defaults>
</compile_context>

<pallas_src>
import functools

import jax
import jax.numpy as jnp
import numpy as np
from jax.experimental import pallas as pl
from jax.experimental.pallas import tpu as pltpu

LEAKY_SLOPE = 0.2
EPS = 1e-5          # torch.nn.InstanceNorm2d default
K_TILE = 2048       # reduction-axis tile for the fused conv matmul


def _round_up(v, m):
    return (v + m - 1) // m * m


# ---------------------------------------------------------------------------
# Pallas kernel: conv-as-matmul with fused bias / InstanceNorm / LeakyReLU
# ---------------------------------------------------------------------------
def _conv_fused_kernel(x_ref, w_ref, b_ref, o_ref, acc_ref, *,
                       apply_norm, apply_leaky):
    """One (sample, K-block) grid step.

    x_ref  : (1, HW, tk)   bf16  im2col patches of one sample / one K block
    w_ref  : (tk, Np)      bf16  weight slice for this K block
    b_ref  : (1, Np)       f32   bias
    o_ref  : (1, HW, Np)   f32   output tile (resident across the K axis)
    acc_ref: (HW, Np)      f32   VMEM accumulator
    """
    k = pl.program_id(1)

    @pl.when(k == 0)
    def _init():
        acc_ref[...] = jnp.zeros_like(acc_ref)

    # bf16 x bf16 on the MXU, f32 accumulation.
    acc_ref[...] += jnp.dot(x_ref[0], w_ref[...],
                            preferred_element_type=jnp.float32)

    @pl.when(k == pl.num_programs(1) - 1)
    def _epilogue():
        y = acc_ref[...] + b_ref[...]                      # (HW, Np) f32
        if apply_norm:
            # Per-sample InstanceNorm over the spatial (sublane) axis,
            # single-pass moments: var = E[x^2] - mean^2 (biased, torch default).
            inv_hw = 1.0 / y.shape[0]
            s = jnp.sum(y, axis=0, keepdims=True)
            ss = jnp.sum(y * y, axis=0, keepdims=True)
            mean = s * inv_hw
            var = ss * inv_hw - mean * mean
            y = (y - mean) * jax.lax.rsqrt(var + EPS)
        if apply_leaky:
            y = jnp.where(y >= 0, y, LEAKY_SLOPE * y)
        o_ref[...] = y[None].astype(o_ref.dtype)


# ---------------------------------------------------------------------------
# Per-layer wrapper: im2col (plain-JAX glue) + fused Pallas conv kernel
# ---------------------------------------------------------------------------
def conv_block(x, w, b, *, stride, apply_norm, apply_leaky):
    """Conv2d(k=4, pad=1) [+ InstanceNorm] [+ LeakyReLU(0.2)].

    x: (N,H,W,Cin) f32 NHWC;  w: (Cout,Cin,4,4) PyTorch layout;  b: (Cout,)
    Returns (N,Hout,Wout,Cout) f32.
    """
    N, H, W, Cin = x.shape
    Cout, _, KH, KW = w.shape
    pad = 1
    Hout = (H + 2 * pad - KH) // stride + 1
    Wout = (W + 2 * pad - KW) // stride + 1
    HW = Hout * Wout
    K = KH * KW * Cin

    # --- im2col in bf16 (data-movement glue; MXU operands are bf16) ---------
    xp = jnp.pad(x.astype(jnp.bfloat16),
                 ((0, 0), (pad, pad), (pad, pad), (0, 0)))
    cols = [xp[:, kh:kh + stride * Hout:stride,
               kw:kw + stride * Wout:stride, :]
            for kh in range(KH) for kw in range(KW)]
    patches = jnp.stack(cols, axis=3).reshape(N, HW, K)      # (N, HW, K) bf16

    # Weights -> (K, Cout) matching the (kh, kw, cin) ordering of the patches.
    Np = _round_up(Cout, 128)                                # lane-dense out
    wm = jnp.transpose(w, (2, 3, 1, 0)).reshape(K, Cout)
    bp = b
    if Np != Cout:
        wm = jnp.pad(wm, ((0, 0), (0, Np - Cout)))
        bp = jnp.pad(b, (0, Np - Cout))
    wm = wm.astype(jnp.bfloat16)
    bm = bp.reshape(1, Np).astype(jnp.float32)

    # K tiling: use K_TILE when it divides K, otherwise a single K block.
    tk = K_TILE if (K % K_TILE == 0) else K
    nk = K // tk

    out = pl.pallas_call(
        functools.partial(_conv_fused_kernel,
                          apply_norm=apply_norm, apply_leaky=apply_leaky),
        out_shape=jax.ShapeDtypeStruct((N, HW, Np), jnp.float32),
        grid=(N, nk),
        in_specs=[
            pl.BlockSpec((1, HW, tk), lambda n, k: (n, 0, k)),
            pl.BlockSpec((tk, Np), lambda n, k: (k, 0)),
            pl.BlockSpec((1, Np), lambda n, k: (0, 0)),
        ],
        out_specs=pl.BlockSpec((1, HW, Np), lambda n, k: (n, 0, 0)),
        scratch_shapes=[pltpu.VMEM((HW, Np), jnp.float32)],
        compiler_params=pltpu.CompilerParams(
            # samples shard across TensorCores (v7x megacore); K is the
            # innermost reduction axis (accumulator pattern).
            dimension_semantics=("parallel", "arbitrary")),
    )(patches, wm, bm)

    return out[:, :, :Cout].reshape(N, Hout, Wout, Cout)


# ---------------------------------------------------------------------------
# Model
# ---------------------------------------------------------------------------
def init_params(key):
    """Deterministic synthetic params (PyTorch-style uniform(-1/sqrt(fan_in)))."""
    specs = [(3, 64), (64, 128), (128, 256), (256, 512), (512, 1)]
    params = []
    for cin, cout in specs:
        key, kw, kb = jax.random.split(key, 3)
        bound = 1.0 / np.sqrt(cin * 16)
        w = jax.random.uniform(kw, (cout, cin, 4, 4), jnp.float32, -bound, bound)
        b = jax.random.uniform(kb, (cout,), jnp.float32, -bound, bound)
        params.append((w, b))
    return params


def discriminator_forward(x_nchw, params):
    x = jnp.transpose(x_nchw, (0, 2, 3, 1))  # NCHW -> NHWC
    (w1, b1), (w2, b2), (w3, b3), (w4, b4), (w5, b5) = params
    x = conv_block(x, w1, b1, stride=2, apply_norm=False, apply_leaky=True)
    x = conv_block(x, w2, b2, stride=2, apply_norm=True, apply_leaky=True)
    x = conv_block(x, w3, b3, stride=2, apply_norm=True, apply_leaky=True)
    x = conv_block(x, w4, b4, stride=2, apply_norm=True, apply_leaky=True)
    x = conv_block(x, w5, b5, stride=1, apply_norm=False, apply_leaky=False)
    return jnp.transpose(x, (0, 3, 1, 2))    # NHWC -> NCHW


# ---------------------------------------------------------------------------
# Pure-JAX reference (correctness check).  Mirrors the kernel's precision
# choice: bf16 conv operands, f32 accumulation / bias / IN / LeakyReLU.
# ---------------------------------------------------------------------------
def _ref_forward(x_nchw, params):
    def conv(x, w, b, stride):
        y = jax.lax.conv_general_dilated(
            x.astype(jnp.bfloat16),
            jnp.transpose(w, (2, 3, 1, 0)).astype(jnp.bfloat16),
            window_strides=(stride, stride), padding=((1, 1), (1, 1)),
            dimension_numbers=("NHWC", "HWIO", "NHWC"),
            preferred_element_type=jnp.float32)
        return y + b

    def inorm(x):
        mean = jnp.mean(x, axis=(1, 2), keepdims=True)
        var = jnp.mean((x - mean) ** 2, axis=(1, 2), keepdims=True)
        return (x - mean) * jax.lax.rsqrt(var + EPS)

    def lrelu(x):
        return jnp.where(x >= 0, x, LEAKY_SLOPE * x)

    x = jnp.transpose(x_nchw, (0, 2, 3, 1))
    (w1, b1), (w2, b2), (w3, b3), (w4, b4), (w5, b5) = params
    x = lrelu(conv(x, w1, b1, 2))
    x = lrelu(inorm(conv(x, w2, b2, 2)))
    x = lrelu(inorm(conv(x, w3, b3, 2)))
    x = lrelu(inorm(conv(x, w4, b4, 2)))
    x = conv(x, w5, b5, 1)
    return jnp.transpose(x, (0, 3, 1, 2))


if __name__ == "__main__":
    key = jax.random.PRNGKey(0)
    kx, kp = jax.random.split(key)
    x = jax.random.normal(kx, (2, 3, 64, 64), jnp.float32)  # NCHW, RGB
    params = init_params(kp)

    fwd = jax.jit(discriminator_forward)
    out = jax.block_until_ready(fwd(x, params))
    assert out.shape == (2, 1, 3, 3), out.shape

    ref = jax.block_until_ready(jax.jit(_ref_forward)(x, params))
    np.testing.assert_allclose(np.asarray(out), np.asarray(ref),
                               rtol=5e-3, atol=5e-3)
    print("KERNEL_OK")
</pallas_src>

<mosaic_0001>
module attributes {stable_mosaic.version = 11 : i64} {
  func.func @_conv_fused_kernel(%arg0: i32, %arg1: i32, %arg2: memref<1x1024x48xbf16, #tpu.memory_space<vmem>>, %arg3: memref<48x128xbf16, #tpu.memory_space<vmem>>, %arg4: memref<1x128xf32, #tpu.memory_space<vmem>>, %arg5: memref<1x1024x128xf32, #tpu.memory_space<vmem>>, %arg6: memref<1024x128xf32, #tpu.memory_space<vmem>>) attributes {dimension_semantics = [#tpu.dimension_semantics<parallel>, #tpu.dimension_semantics<arbitrary>], iteration_bounds = array<i64: 2, 1>, scalar_prefetch = 0 : i64, scratch_operands = 1 : i64, tpu.core_type = #tpu.core_type<tc>, window_params = [{transform_indices = @transform_0, window_bounds = array<i64: 1, 1024, 48>}, {transform_indices = @transform_1, window_bounds = array<i64: 48, 128>}, {pipeline_mode = #tpu.pipeline_mode<synchronous>, transform_indices = @transform_2, window_bounds = array<i64: 1, 128>}, {transform_indices = @transform_3, window_bounds = array<i64: 1, 1024, 128>}]} {
    %c0_i32 = arith.constant 0 : i32
    %0 = arith.cmpi eq, %arg1, %c0_i32 : i32
    %1 = arith.extui %0 : i1 to i32
    %c0_i32_0 = arith.constant 0 : i32
    %2 = arith.cmpi ne, %1, %c0_i32_0 : i32
    scf.if %2 {
      %cst_11 = arith.constant 0.000000e+00 : f32
      %13 = vector.broadcast %cst_11 : f32 to vector<1024x128xf32>
      %c0_12 = arith.constant 0 : index
      %c0_13 = arith.constant 0 : index
      %14 = vector.load %arg6[%c0_12, %c0_13] : memref<1024x128xf32, #tpu.memory_space<vmem>>, vector<1024x128xf32>
      tpu.vector_store %arg6[%c0_12, %c0_13], %13 {strides = array<i32>} : memref<1024x128xf32, #tpu.memory_space<vmem>>, vector<1024x128xf32>,
    } else {
    }
    %c0 = arith.constant 0 : index
    %c0_1 = arith.constant 0 : index
    %3 = vector.load %arg6[%c0, %c0_1] : memref<1024x128xf32, #tpu.memory_space<vmem>>, vector<1024x128xf32>
    %c0_2 = arith.constant 0 : index
    %c0_3 = arith.constant 0 : index
    %c0_4 = arith.constant 0 : index
    %4 = vector.load %arg2[%c0_2, %c0_3, %c0_4] : memref<1x1024x48xbf16, #tpu.memory_space<vmem>>, vector<1x1024x48xbf16>
    %5 = vector.shape_cast %4 : vector<1x1024x48xbf16> to vector<1024x48xbf16>
    %c0_5 = arith.constant 0 : index
    %c0_6 = arith.constant 0 : index
    %6 = vector.load %arg3[%c0_5, %c0_6] : memref<48x128xbf16, #tpu.memory_space<vmem>>, vector<48x128xbf16>
    %cst = arith.constant dense<0.000000e+00> : vector<1024x128xf32>
    %7 = tpu.matmul %5, %6, %cst {dimension_numbers = #tpu.dot_dimension_numbers<[1], [0], [0], [1], [0, 0, 1, 1], [], []>} : vector<1024x48xbf16>, vector<48x128xbf16>, vector<1024x128xf32> -> vector<1024x128xf32>
    %8 = arith.addf %3, %7 : vector<1024x128xf32>
    %c0_7 = arith.constant 0 : index
    %c0_8 = arith.constant 0 : index
    %9 = vector.load %arg6[%c0_7, %c0_8] : memref<1024x128xf32, #tpu.memory_space<vmem>>, vector<1024x128xf32>
    tpu.vector_store %arg6[%c0_7, %c0_8], %8 {strides = array<i32>} : memref<1024x128xf32, #tpu.memory_space<vmem>>, vector<1024x128xf32>,
    %c0_i32_9 = arith.constant 0 : i32
    %10 = arith.cmpi eq, %arg1, %c0_i32_9 : i32
    %11 = arith.extui %10 : i1 to i32
    %c0_i32_10 = arith.constant 0 : i32
    %12 = arith.cmpi ne, %11, %c0_i32_10 : i32
    scf.if %12 {
      %c0_11 = arith.constant 0 : index
      %c0_12 = arith.constant 0 : index
      %13 = vector.load %arg6[%c0_11, %c0_12] : memref<1024x128xf32, #tpu.memory_space<vmem>>, vector<1024x128xf32>
      %c0_13 = arith.constant 0 : index
      %c0_14 = arith.constant 0 : index
      %14 = vector.load %arg4[%c0_13, %c0_14] : memref<1x128xf32, #tpu.memory_space<vmem>>, vector<1x128xf32>
      %15 = vector.broadcast %14 : vector<1x128xf32> to vector<1024x128xf32>
      %16 = arith.addf %13, %15 : vector<1024x128xf32>
      %cst_15 = arith.constant 0.000000e+00 : f32
      %17 = vector.broadcast %cst_15 : f32 to vector<1024x128xf32>
      %18 = arith.cmpf oge, %16, %17 : vector<1024x128xf32>
      %cst_16 = arith.constant 2.000000e-01 : f32
      %19 = vector.broadcast %cst_16 : f32 to vector<1024x128xf32>
      %20 = arith.mulf %19, %16 : vector<1024x128xf32>
      %21 = arith.select %18, %16, %20 : vector<1024x128xi1>, vector<1024x128xf32>
      %22 = vector.shape_cast %21 : vector<1024x128xf32> to vector<1x1024x128xf32>
      %c0_17 = arith.constant 0 : index
      %c0_18 = arith.constant 0 : index
      %c0_19 = arith.constant 0 : index
      %23 = vector.load %arg5[%c0_17, %c0_18, %c0_19] : memref<1x1024x128xf32, #tpu.memory_space<vmem>>, vector<1x1024x128xf32>
      tpu.vector_store %arg5[%c0_17, %c0_18, %c0_19], %22 {strides = array<i32>} : memref<1x1024x128xf32, #tpu.memory_space<vmem>>, vector<1x1024x128xf32>,
    } else {
    }
    return
  }
  func.func @transform_0(%arg0: i32, %arg1: i32) -> (i32, i32, i32) {
    %c0_i32 = arith.constant 0 : i32
    %c0_i32_0 = arith.constant 0 : i32
    return %arg0, %c0_i32, %arg1 : i32, i32, i32
  }
  func.func @transform_1(%arg0: i32, %arg1: i32) -> (i32, i32) {
    %c0_i32 = arith.constant 0 : i32
    %c0_i32_0 = arith.constant 0 : i32
    return %arg1, %c0_i32 : i32, i32
  }
  func.func @transform_2(%arg0: i32, %arg1: i32) -> (i32, i32) {
    %c0_i32 = arith.constant 0 : i32
    %c0_i32_0 = arith.constant 0 : i32
    %c0_i32_1 = arith.constant 0 : i32
    return %c0_i32, %c0_i32_0 : i32, i32
  }
  func.func @transform_3(%arg0: i32, %arg1: i32) -> (i32, i32, i32) {
    %c0_i32 = arith.constant 0 : i32
    %c0_i32_0 = arith.constant 0 : i32
    %c0_i32_1 = arith.constant 0 : i32
    return %arg0, %c0_i32, %c0_i32_0 : i32, i32, i32
  }
}

module attributes {stable_mosaic.version = 11 : i64} {
  func.func @_conv_fused_kernel(%arg0: i32, %arg1: i32, %arg2: memref<1x256x1024xbf16, #tpu.memory_space<vmem>>, %arg3: memref<1024x128xbf16, #tpu.memory_space<vmem>>, %arg4: memref<1x128xf32, #tpu.memory_space<vmem>>, %arg5: memref<1x256x128xf32, #tpu.memory_space<vmem>>, %arg6: memref<256x128xf32, #tpu.memory_space<vmem>>) attributes {dimension_semantics = [#tpu.dimension_semantics<parallel>, #tpu.dimension_semantics<arbitrary>], iteration_bounds = array<i64: 2, 1>, scalar_prefetch = 0 : i64, scratch_operands = 1 : i64, tpu.core_type = #tpu.core_type<tc>, window_params = [{transform_indices = @transform_0, window_bounds = array<i64: 1, 256, 1024>}, {transform_indices = @transform_1, window_bounds = array<i64: 1024, 128>}, {pipeline_mode = #tpu.pipeline_mode<synchronous>, transform_indices = @transform_2, window_bounds = array<i64: 1, 128>}, {transform_indices = @transform_3, window_bounds = array<i64: 1, 256, 128>}]} {
    %c0_i32 = arith.constant 0 : i32
    %0 = arith.cmpi eq, %arg1, %c0_i32 : i32
    %1 = arith.extui %0 : i1 to i32
    %c0_i32_0 = arith.constant 0 : i32
    %2 = arith.cmpi ne, %1, %c0_i32_0 : i32
    scf.if %2 {
      %cst_11 = arith.constant 0.000000e+00 : f32
      %13 = vector.broadcast %cst_11 : f32 to vector<256x128xf32>
      %c0_12 = arith.constant 0 : index
      %c0_13 = arith.constant 0 : index
      %14 = vector.load %arg6[%c0_12, %c0_13] : memref<256x128xf32, #tpu.memory_space<vmem>>, vector<256x128xf32>
      tpu.vector_store %arg6[%c0_12, %c0_13], %13 {strides = array<i32>} : memref<256x128xf32, #tpu.memory_space<vmem>>, vector<256x128xf32>,
    } else {
    }
    %c0 = arith.constant 0 : index
    %c0_1 = arith.constant 0 : index
    %3 = vector.load %arg6[%c0, %c0_1] : memref<256x128xf32, #tpu.memory_space<vmem>>, vector<256x128xf32>
    %c0_2 = arith.constant 0 : index
    %c0_3 = arith.constant 0 : index
    %c0_4 = arith.constant 0 : index
    %4 = vector.load %arg2[%c0_2, %c0_3, %c0_4] : memref<1x256x1024xbf16, #tpu.memory_space<vmem>>, vector<1x256x1024xbf16>
    %5 = vector.shape_cast %4 : vector<1x256x1024xbf16> to vector<256x1024xbf16>
    %c0_5 = arith.constant 0 : index
    %c0_6 = arith.constant 0 : index
    %6 = vector.load %arg3[%c0_5, %c0_6] : memref<1024x128xbf16, #tpu.memory_space<vmem>>, vector<1024x128xbf16>
    %cst = arith.constant dense<0.000000e+00> : vector<256x128xf32>
    %7 = tpu.matmul %5, %6, %cst {dimension_numbers = #tpu.dot_dimension_numbers<[1], [0], [0], [1], [0, 0, 1, 1], [], []>} : vector<256x1024xbf16>, vector<1024x128xbf16>, vector<256x128xf32> -> vector<256x128xf32>
    %8 = arith.addf %3, %7 : vector<256x128xf32>
    %c0_7 = arith.constant 0 : index
    %c0_8 = arith.constant 0 : index
    %9 = vector.load %arg6[%c0_7, %c0_8] : memref<256x128xf32, #tpu.memory_space<vmem>>, vector<256x128xf32>
    tpu.vector_store %arg6[%c0_7, %c0_8], %8 {strides = array<i32>} : memref<256x128xf32, #tpu.memory_space<vmem>>, vector<256x128xf32>,
    %c0_i32_9 = arith.constant 0 : i32
    %10 = arith.cmpi eq, %arg1, %c0_i32_9 : i32
    %11 = arith.extui %10 : i1 to i32
    %c0_i32_10 = arith.constant 0 : i32
    %12 = arith.cmpi ne, %11, %c0_i32_10 : i32
    scf.if %12 {
      %c0_11 = arith.constant 0 : index
      %c0_12 = arith.constant 0 : index
      %13 = vector.load %arg6[%c0_11, %c0_12] : memref<256x128xf32, #tpu.memory_space<vmem>>, vector<256x128xf32>
      %c0_13 = arith.constant 0 : index
      %c0_14 = arith.constant 0 : index
      %14 = vector.load %arg4[%c0_13, %c0_14] : memref<1x128xf32, #tpu.memory_space<vmem>>, vector<1x128xf32>
      %15 = vector.broadcast %14 : vector<1x128xf32> to vector<256x128xf32>
      %16 = arith.addf %13, %15 : vector<256x128xf32>
      %cst_15 = arith.constant dense<0.000000e+00> : vector<128xf32>
      %17 = vector.multi_reduction <add>, %16, %cst_15 [0] : vector<256x128xf32> to vector<128xf32>
      %18 = vector.shape_cast %17 : vector<128xf32> to vector<1x128xf32>
      %19 = arith.mulf %16, %16 : vector<256x128xf32>
      %cst_16 = arith.constant dense<0.000000e+00> : vector<128xf32>
      %20 = vector.multi_reduction <add>, %19, %cst_16 [0] : vector<256x128xf32> to vector<128xf32>
      %21 = vector.shape_cast %20 : vector<128xf32> to vector<1x128xf32>
      %cst_17 = arith.constant 3.906250e-03 : f32
      %22 = vector.broadcast %cst_17 : f32 to vector<1x128xf32>
      %23 = arith.mulf %18, %22 : vector<1x128xf32>
      %cst_18 = arith.constant 3.906250e-03 : f32
      %24 = vector.broadcast %cst_18 : f32 to vector<1x128xf32>
      %25 = arith.mulf %21, %24 : vector<1x128xf32>
      %26 = arith.mulf %23, %23 : vector<1x128xf32>
      %27 = arith.subf %25, %26 : vector<1x128xf32>
      %28 = vector.broadcast %23 : vector<1x128xf32> to vector<256x128xf32>
      %29 = arith.subf %16, %28 : vector<256x128xf32>
      %cst_19 = arith.constant 9.99999974E-6 : f32
      %30 = vector.broadcast %cst_19 : f32 to vector<1x128xf32>
      %31 = arith.addf %27, %30 : vector<1x128xf32>
      %32 = math.rsqrt %31 : vector<1x128xf32>
      %33 = vector.broadcast %32 : vector<1x128xf32> to vector<256x128xf32>
      %34 = arith.mulf %29, %33 : vector<256x128xf32>
      %cst_20 = arith.constant 0.000000e+00 : f32
      %35 = vector.broadcast %cst_20 : f32 to vector<256x128xf32>
      %36 = arith.cmpf oge, %34, %35 : vector<256x128xf32>
      %cst_21 = arith.constant 2.000000e-01 : f32
      %37 = vector.broadcast %cst_21 : f32 to vector<256x128xf32>
      %38 = arith.mulf %37, %34 : vector<256x128xf32>
      %39 = arith.select %36, %34, %38 : vector<256x128xi1>, vector<256x128xf32>
      %40 = vector.shape_cast %39 : vector<256x128xf32> to vector<1x256x128xf32>
      %c0_22 = arith.constant 0 : index
      %c0_23 = arith.constant 0 : index
      %c0_24 = arith.constant 0 : index
      %41 = vector.load %arg5[%c0_22, %c0_23, %c0_24] : memref<1x256x128xf32, #tpu.memory_space<vmem>>, vector<1x256x128xf32>
      tpu.vector_store %arg5[%c0_22, %c0_23, %c0_24], %40 {strides = array<i32>} : memref<1x256x128xf32, #tpu.memory_space<vmem>>, vector<1x256x128xf32>,
    } else {
    }
    return
  }
  func.func @transform_0(%arg0: i32, %arg1: i32) -> (i32, i32, i32) {
    %c0_i32 = arith.constant 0 : i32
    %c0_i32_0 = arith.constant 0 : i32
    return %arg0, %c0_i32, %arg1 : i32, i32, i32
  }
  func.func @transform_1(%arg0: i32, %arg1: i32) -> (i32, i32) {
    %c0_i32 = arith.constant 0 : i32
    %c0_i32_0 = arith.constant 0 : i32
    return %arg1, %c0_i32 : i32, i32
  }
  func.func @transform_2(%arg0: i32, %arg1: i32) -> (i32, i32) {
    %c0_i32 = arith.constant 0 : i32
    %c0_i32_0 = arith.constant 0 : i32
    %c0_i32_1 = arith.constant 0 : i32
    return %c0_i32, %c0_i32_0 : i32, i32
  }
  func.func @transform_3(%arg0: i32, %arg1: i32) -> (i32, i32, i32) {
    %c0_i32 = arith.constant 0 : i32
    %c0_i32_0 = arith.constant 0 : i32
    %c0_i32_1 = arith.constant 0 : i32
    return %arg0, %c0_i32, %c0_i32_0 : i32, i32, i32
  }
}

module attributes {stable_mosaic.version = 11 : i64} {
  func.func @_conv_fused_kernel(%arg0: i32, %arg1: i32, %arg2: memref<1x64x2048xbf16, #tpu.memory_space<vmem>>, %arg3: memref<2048x256xbf16, #tpu.memory_space<vmem>>, %arg4: memref<1x256xf32, #tpu.memory_space<vmem>>, %arg5: memref<1x64x256xf32, #tpu.memory_space<vmem>>, %arg6: memref<64x256xf32, #tpu.memory_space<vmem>>) attributes {dimension_semantics = [#tpu.dimension_semantics<parallel>, #tpu.dimension_semantics<arbitrary>], iteration_bounds = array<i64: 2, 1>, scalar_prefetch = 0 : i64, scratch_operands = 1 : i64, tpu.core_type = #tpu.core_type<tc>, window_params = [{transform_indices = @transform_0, window_bounds = array<i64: 1, 64, 2048>}, {transform_indices = @transform_1, window_bounds = array<i64: 2048, 256>}, {pipeline_mode = #tpu.pipeline_mode<synchronous>, transform_indices = @transform_2, window_bounds = array<i64: 1, 256>}, {transform_indices = @transform_3, window_bounds = array<i64: 1, 64, 256>}]} {
    %c0_i32 = arith.constant 0 : i32
    %0 = arith.cmpi eq, %arg1, %c0_i32 : i32
    %1 = arith.extui %0 : i1 to i32
    %c0_i32_0 = arith.constant 0 : i32
    %2 = arith.cmpi ne, %1, %c0_i32_0 : i32
    scf.if %2 {
      %cst_11 = arith.constant 0.000000e+00 : f32
      %13 = vector.broadcast %cst_11 : f32 to vector<64x256xf32>
      %c0_12 = arith.constant 0 : index
      %c0_13 = arith.constant 0 : index
      %14 = vector.load %arg6[%c0_12, %c0_13] : memref<64x256xf32, #tpu.memory_space<vmem>>, vector<64x256xf32>
      tpu.vector_store %arg6[%c0_12, %c0_13], %13 {strides = array<i32>} : memref<64x256xf32, #tpu.memory_space<vmem>>, vector<64x256xf32>,
    } else {
    }
    %c0 = arith.constant 0 : index
    %c0_1 = arith.constant 0 : index
    %3 = vector.load %arg6[%c0, %c0_1] : memref<64x256xf32, #tpu.memory_space<vmem>>, vector<64x256xf32>
    %c0_2 = arith.constant 0 : index
    %c0_3 = arith.constant 0 : index
    %c0_4 = arith.constant 0 : index
    %4 = vector.load %arg2[%c0_2, %c0_3, %c0_4] : memref<1x64x2048xbf16, #tpu.memory_space<vmem>>, vector<1x64x2048xbf16>
    %5 = vector.shape_cast %4 : vector<1x64x2048xbf16> to vector<64x2048xbf16>
    %c0_5 = arith.constant 0 : index
    %c0_6 = arith.constant 0 : index
    %6 = vector.load %arg3[%c0_5, %c0_6] : memref<2048x256xbf16, #tpu.memory_space<vmem>>, vector<2048x256xbf16>
    %cst = arith.constant dense<0.000000e+00> : vector<64x256xf32>
    %7 = tpu.matmul %5, %6, %cst {dimension_numbers = #tpu.dot_dimension_numbers<[1], [0], [0], [1], [0, 0, 1, 1], [], []>} : vector<64x2048xbf16>, vector<2048x256xbf16>, vector<64x256xf32> -> vector<64x256xf32>
    %8 = arith.addf %3, %7 : vector<64x256xf32>
    %c0_7 = arith.constant 0 : index
    %c0_8 = arith.constant 0 : index
    %9 = vector.load %arg6[%c0_7, %c0_8] : memref<64x256xf32, #tpu.memory_space<vmem>>, vector<64x256xf32>
    tpu.vector_store %arg6[%c0_7, %c0_8], %8 {strides = array<i32>} : memref<64x256xf32, #tpu.memory_space<vmem>>, vector<64x256xf32>,
    %c0_i32_9 = arith.constant 0 : i32
    %10 = arith.cmpi eq, %arg1, %c0_i32_9 : i32
    %11 = arith.extui %10 : i1 to i32
    %c0_i32_10 = arith.constant 0 : i32
    %12 = arith.cmpi ne, %11, %c0_i32_10 : i32
    scf.if %12 {
      %c0_11 = arith.constant 0 : index
      %c0_12 = arith.constant 0 : index
      %13 = vector.load %arg6[%c0_11, %c0_12] : memref<64x256xf32, #tpu.memory_space<vmem>>, vector<64x256xf32>
      %c0_13 = arith.constant 0 : index
      %c0_14 = arith.constant 0 : index
      %14 = vector.load %arg4[%c0_13, %c0_14] : memref<1x256xf32, #tpu.memory_space<vmem>>, vector<1x256xf32>
      %15 = vector.broadcast %14 : vector<1x256xf32> to vector<64x256xf32>
      %16 = arith.addf %13, %15 : vector<64x256xf32>
      %cst_15 = arith.constant dense<0.000000e+00> : vector<256xf32>
      %17 = vector.multi_reduction <add>, %16, %cst_15 [0] : vector<64x256xf32> to vector<256xf32>
      %18 = vector.shape_cast %17 : vector<256xf32> to vector<1x256xf32>
      %19 = arith.mulf %16, %16 : vector<64x256xf32>
      %cst_16 = arith.constant dense<0.000000e+00> : vector<256xf32>
      %20 = vector.multi_reduction <add>, %19, %cst_16 [0] : vector<64x256xf32> to vector<256xf32>
      %21 = vector.shape_cast %20 : vector<256xf32> to vector<1x256xf32>
      %cst_17 = arith.constant 1.562500e-02 : f32
      %22 = vector.broadcast %cst_17 : f32 to vector<1x256xf32>
      %23 = arith.mulf %18, %22 : vector<1x256xf32>
      %cst_18 = arith.constant 1.562500e-02 : f32
      %24 = vector.broadcast %cst_18 : f32 to vector<1x256xf32>
      %25 = arith.mulf %21, %24 : vector<1x256xf32>
      %26 = arith.mulf %23, %23 : vector<1x256xf32>
      %27 = arith.subf %25, %26 : vector<1x256xf32>
      %28 = vector.broadcast %23 : vector<1x256xf32> to vector<64x256xf32>
      %29 = arith.subf %16, %28 : vector<64x256xf32>
      %cst_19 = arith.constant 9.99999974E-6 : f32
      %30 = vector.broadcast %cst_19 : f32 to vector<1x256xf32>
      %31 = arith.addf %27, %30 : vector<1x256xf32>
      %32 = math.rsqrt %31 : vector<1x256xf32>
      %33 = vector.broadcast %32 : vector<1x256xf32> to vector<64x256xf32>
      %34 = arith.mulf %29, %33 : vector<64x256xf32>
      %cst_20 = arith.constant 0.000000e+00 : f32
      %35 = vector.broadcast %cst_20 : f32 to vector<64x256xf32>
      %36 = arith.cmpf oge, %34, %35 : vector<64x256xf32>
      %cst_21 = arith.constant 2.000000e-01 : f32
      %37 = vector.broadcast %cst_21 : f32 to vector<64x256xf32>
      %38 = arith.mulf %37, %34 : vector<64x256xf32>
      %39 = arith.select %36, %34, %38 : vector<64x256xi1>, vector<64x256xf32>
      %40 = vector.shape_cast %39 : vector<64x256xf32> to vector<1x64x256xf32>
      %c0_22 = arith.constant 0 : index
      %c0_23 = arith.constant 0 : index
      %c0_24 = arith.constant 0 : index
      %41 = vector.load %arg5[%c0_22, %c0_23, %c0_24] : memref<1x64x256xf32, #tpu.memory_space<vmem>>, vector<1x64x256xf32>
      tpu.vector_store %arg5[%c0_22, %c0_23, %c0_24], %40 {strides = array<i32>} : memref<1x64x256xf32, #tpu.memory_space<vmem>>, vector<1x64x256xf32>,
    } else {
    }
    return
  }
  func.func @transform_0(%arg0: i32, %arg1: i32) -> (i32, i32, i32) {
    %c0_i32 = arith.constant 0 : i32
    %c0_i32_0 = arith.constant 0 : i32
    return %arg0, %c0_i32, %arg1 : i32, i32, i32
  }
  func.func @transform_1(%arg0: i32, %arg1: i32) -> (i32, i32) {
    %c0_i32 = arith.constant 0 : i32
    %c0_i32_0 = arith.constant 0 : i32
    return %arg1, %c0_i32 : i32, i32
  }
  func.func @transform_2(%arg0: i32, %arg1: i32) -> (i32, i32) {
    %c0_i32 = arith.constant 0 : i32
    %c0_i32_0 = arith.constant 0 : i32
    %c0_i32_1 = arith.constant 0 : i32
    return %c0_i32, %c0_i32_0 : i32, i32
  }
  func.func @transform_3(%arg0: i32, %arg1: i32) -> (i32, i32, i32) {
    %c0_i32 = arith.constant 0 : i32
    %c0_i32_0 = arith.constant 0 : i32
    %c0_i32_1 = arith.constant 0 : i32
    return %arg0, %c0_i32, %c0_i32_0 : i32, i32, i32
  }
}

module attributes {stable_mosaic.version = 11 : i64} {
  func.func @_conv_fused_kernel(%arg0: i32, %arg1: i32, %arg2: memref<1x16x2048xbf16, #tpu.memory_space<vmem>>, %arg3: memref<2048x512xbf16, #tpu.memory_space<vmem>>, %arg4: memref<1x512xf32, #tpu.memory_space<vmem>>, %arg5: memref<1x16x512xf32, #tpu.memory_space<vmem>>, %arg6: memref<16x512xf32, #tpu.memory_space<vmem>>) attributes {dimension_semantics = [#tpu.dimension_semantics<parallel>, #tpu.dimension_semantics<arbitrary>], iteration_bounds = array<i64: 2, 2>, scalar_prefetch = 0 : i64, scratch_operands = 1 : i64, tpu.core_type = #tpu.core_type<tc>, window_params = [{transform_indices = @transform_0, window_bounds = array<i64: 1, 16, 2048>}, {transform_indices = @transform_1, window_bounds = array<i64: 2048, 512>}, {pipeline_mode = #tpu.pipeline_mode<synchronous>, transform_indices = @transform_2, window_bounds = array<i64: 1, 512>}, {transform_indices = @transform_3, window_bounds = array<i64: 1, 16, 512>}]} {
    %c0_i32 = arith.constant 0 : i32
    %0 = arith.cmpi eq, %arg1, %c0_i32 : i32
    %1 = arith.extui %0 : i1 to i32
    %c0_i32_0 = arith.constant 0 : i32
    %2 = arith.cmpi ne, %1, %c0_i32_0 : i32
    scf.if %2 {
      %cst_10 = arith.constant 0.000000e+00 : f32
      %13 = vector.broadcast %cst_10 : f32 to vector<16x512xf32>
      %c0_11 = arith.constant 0 : index
      %c0_12 = arith.constant 0 : index
      %14 = vector.load %arg6[%c0_11, %c0_12] : memref<16x512xf32, #tpu.memory_space<vmem>>, vector<16x512xf32>
      tpu.vector_store %arg6[%c0_11, %c0_12], %13 {strides = array<i32>} : memref<16x512xf32, #tpu.memory_space<vmem>>, vector<16x512xf32>,
    } else {
    }
    %c0 = arith.constant 0 : index
    %c0_1 = arith.constant 0 : index
    %3 = vector.load %arg6[%c0, %c0_1] : memref<16x512xf32, #tpu.memory_space<vmem>>, vector<16x512xf32>
    %c0_2 = arith.constant 0 : index
    %c0_3 = arith.constant 0 : index
    %c0_4 = arith.constant 0 : index
    %4 = vector.load %arg2[%c0_2, %c0_3, %c0_4] : memref<1x16x2048xbf16, #tpu.memory_space<vmem>>, vector<1x16x2048xbf16>
    %5 = vector.shape_cast %4 : vector<1x16x2048xbf16> to vector<16x2048xbf16>
    %c0_5 = arith.constant 0 : index
    %c0_6 = arith.constant 0 : index
    %6 = vector.load %arg3[%c0_5, %c0_6] : memref<2048x512xbf16, #tpu.memory_space<vmem>>, vector<2048x512xbf16>
    %cst = arith.constant dense<0.000000e+00> : vector<16x512xf32>
    %7 = tpu.matmul %5, %6, %cst {dimension_numbers = #tpu.dot_dimension_numbers<[1], [0], [0], [1], [0, 0, 1, 1], [], []>} : vector<16x2048xbf16>, vector<2048x512xbf16>, vector<16x512xf32> -> vector<16x512xf32>
    %8 = arith.addf %3, %7 : vector<16x512xf32>
    %c0_7 = arith.constant 0 : index
    %c0_8 = arith.constant 0 : index
    %9 = vector.load %arg6[%c0_7, %c0_8] : memref<16x512xf32, #tpu.memory_space<vmem>>, vector<16x512xf32>
    tpu.vector_store %arg6[%c0_7, %c0_8], %8 {strides = array<i32>} : memref<16x512xf32, #tpu.memory_space<vmem>>, vector<16x512xf32>,
    %c1_i32 = arith.constant 1 : i32
    %10 = arith.cmpi eq, %arg1, %c1_i32 : i32
    %11 = arith.extui %10 : i1 to i32
    %c0_i32_9 = arith.constant 0 : i32
    %12 = arith.cmpi ne, %11, %c0_i32_9 : i32
    scf.if %12 {
      %c0_10 = arith.constant 0 : index
      %c0_11 = arith.constant 0 : index
      %13 = vector.load %arg6[%c0_10, %c0_11] : memref<16x512xf32, #tpu.memory_space<vmem>>, vector<16x512xf32>
      %c0_12 = arith.constant 0 : index
      %c0_13 = arith.constant 0 : index
      %14 = vector.load %arg4[%c0_12, %c0_13] : memref<1x512xf32, #tpu.memory_space<vmem>>, vector<1x512xf32>
      %15 = vector.broadcast %14 : vector<1x512xf32> to vector<16x512xf32>
      %16 = arith.addf %13, %15 : vector<16x512xf32>
      %cst_14 = arith.constant dense<0.000000e+00> : vector<512xf32>
      %17 = vector.multi_reduction <add>, %16, %cst_14 [0] : vector<16x512xf32> to vector<512xf32>
      %18 = vector.shape_cast %17 : vector<512xf32> to vector<1x512xf32>
      %19 = arith.mulf %16, %16 : vector<16x512xf32>
      %cst_15 = arith.constant dense<0.000000e+00> : vector<512xf32>
      %20 = vector.multi_reduction <add>, %19, %cst_15 [0] : vector<16x512xf32> to vector<512xf32>
      %21 = vector.shape_cast %20 : vector<512xf32> to vector<1x512xf32>
      %cst_16 = arith.constant 6.250000e-02 : f32
      %22 = vector.broadcast %cst_16 : f32 to vector<1x512xf32>
      %23 = arith.mulf %18, %22 : vector<1x512xf32>
      %cst_17 = arith.constant 6.250000e-02 : f32
      %24 = vector.broadcast %cst_17 : f32 to vector<1x512xf32>
      %25 = arith.mulf %21, %24 : vector<1x512xf32>
      %26 = arith.mulf %23, %23 : vector<1x512xf32>
      %27 = arith.subf %25, %26 : vector<1x512xf32>
      %28 = vector.broadcast %23 : vector<1x512xf32> to vector<16x512xf32>
      %29 = arith.subf %16, %28 : vector<16x512xf32>
      %cst_18 = arith.constant 9.99999974E-6 : f32
      %30 = vector.broadcast %cst_18 : f32 to vector<1x512xf32>
      %31 = arith.addf %27, %30 : vector<1x512xf32>
      %32 = math.rsqrt %31 : vector<1x512xf32>
      %33 = vector.broadcast %32 : vector<1x512xf32> to vector<16x512xf32>
      %34 = arith.mulf %29, %33 : vector<16x512xf32>
      %cst_19 = arith.constant 0.000000e+00 : f32
      %35 = vector.broadcast %cst_19 : f32 to vector<16x512xf32>
      %36 = arith.cmpf oge, %34, %35 : vector<16x512xf32>
      %cst_20 = arith.constant 2.000000e-01 : f32
      %37 = vector.broadcast %cst_20 : f32 to vector<16x512xf32>
      %38 = arith.mulf %37, %34 : vector<16x512xf32>
      %39 = arith.select %36, %34, %38 : vector<16x512xi1>, vector<16x512xf32>
      %40 = vector.shape_cast %39 : vector<16x512xf32> to vector<1x16x512xf32>
      %c0_21 = arith.constant 0 : index
      %c0_22 = arith.constant 0 : index
      %c0_23 = arith.constant 0 : index
      %41 = vector.load %arg5[%c0_21, %c0_22, %c0_23] : memref<1x16x512xf32, #tpu.memory_space<vmem>>, vector<1x16x512xf32>
      tpu.vector_store %arg5[%c0_21, %c0_22, %c0_23], %40 {strides = array<i32>} : memref<1x16x512xf32, #tpu.memory_space<vmem>>, vector<1x16x512xf32>,
    } else {
    }
    return
  }
  func.func @transform_0(%arg0: i32, %arg1: i32) -> (i32, i32, i32) {
    %c0_i32 = arith.constant 0 : i32
    %c0_i32_0 = arith.constant 0 : i32
    return %arg0, %c0_i32, %arg1 : i32, i32, i32
  }
  func.func @transform_1(%arg0: i32, %arg1: i32) -> (i32, i32) {
    %c0_i32 = arith.constant 0 : i32
    %c0_i32_0 = arith.constant 0 : i32
    return %arg1, %c0_i32 : i32, i32
  }
  func.func @transform_2(%arg0: i32, %arg1: i32) -> (i32, i32) {
    %c0_i32 = arith.constant 0 : i32
    %c0_i32_0 = arith.constant 0 : i32
    %c0_i32_1 = arith.constant 0 : i32
    return %c0_i32, %c0_i32_0 : i32, i32
  }
  func.func @transform_3(%arg0: i32, %arg1: i32) -> (i32, i32, i32) {
    %c0_i32 = arith.constant 0 : i32
    %c0_i32_0 = arith.constant 0 : i32
    %c0_i32_1 = arith.constant 0 : i32
    return %arg0, %c0_i32, %c0_i32_0 : i32, i32, i32
  }
}

module attributes {stable_mosaic.version = 11 : i64} {
  func.func @_conv_fused_kernel(%arg0: i32, %arg1: i32, %arg2: memref<1x9x2048xbf16, #tpu.memory_space<vmem>>, %arg3: memref<2048x128xbf16, #tpu.memory_space<vmem>>, %arg4: memref<1x128xf32, #tpu.memory_space<vmem>>, %arg5: memref<1x9x128xf32, #tpu.memory_space<vmem>>, %arg6: memref<9x128xf32, #tpu.memory_space<vmem>>) attributes {dimension_semantics = [#tpu.dimension_semantics<parallel>, #tpu.dimension_semantics<arbitrary>], iteration_bounds = array<i64: 2, 4>, scalar_prefetch = 0 : i64, scratch_operands = 1 : i64, tpu.core_type = #tpu.core_type<tc>, window_params = [{transform_indices = @transform_0, window_bounds = array<i64: 1, 9, 2048>}, {transform_indices = @transform_1, window_bounds = array<i64: 2048, 128>}, {pipeline_mode = #tpu.pipeline_mode<synchronous>, transform_indices = @transform_2, window_bounds = array<i64: 1, 128>}, {transform_indices = @transform_3, window_bounds = array<i64: 1, 9, 128>}]} {
    %c0_i32 = arith.constant 0 : i32
    %0 = arith.cmpi eq, %arg1, %c0_i32 : i32
    %1 = arith.extui %0 : i1 to i32
    %c0_i32_0 = arith.constant 0 : i32
    %2 = arith.cmpi ne, %1, %c0_i32_0 : i32
    scf.if %2 {
      %cst_10 = arith.constant 0.000000e+00 : f32
      %13 = vector.broadcast %cst_10 : f32 to vector<9x128xf32>
      %c0_11 = arith.constant 0 : index
      %c0_12 = arith.constant 0 : index
      %14 = vector.load %arg6[%c0_11, %c0_12] : memref<9x128xf32, #tpu.memory_space<vmem>>, vector<9x128xf32>
      tpu.vector_store %arg6[%c0_11, %c0_12], %13 {strides = array<i32>} : memref<9x128xf32, #tpu.memory_space<vmem>>, vector<9x128xf32>,
    } else {
    }
    %c0 = arith.constant 0 : index
    %c0_1 = arith.constant 0 : index
    %3 = vector.load %arg6[%c0, %c0_1] : memref<9x128xf32, #tpu.memory_space<vmem>>, vector<9x128xf32>
    %c0_2 = arith.constant 0 : index
    %c0_3 = arith.constant 0 : index
    %c0_4 = arith.constant 0 : index
    %4 = vector.load %arg2[%c0_2, %c0_3, %c0_4] : memref<1x9x2048xbf16, #tpu.memory_space<vmem>>, vector<1x9x2048xbf16>
    %5 = vector.shape_cast %4 : vector<1x9x2048xbf16> to vector<9x2048xbf16>
    %c0_5 = arith.constant 0 : index
    %c0_6 = arith.constant 0 : index
    %6 = vector.load %arg3[%c0_5, %c0_6] : memref<2048x128xbf16, #tpu.memory_space<vmem>>, vector<2048x128xbf16>
    %cst = arith.constant dense<0.000000e+00> : vector<9x128xf32>
    %7 = tpu.matmul %5, %6, %cst {dimension_numbers = #tpu.dot_dimension_numbers<[1], [0], [0], [1], [0, 0, 1, 1], [], []>} : vector<9x2048xbf16>, vector<2048x128xbf16>, vector<9x128xf32> -> vector<9x128xf32>
    %8 = arith.addf %3, %7 : vector<9x128xf32>
    %c0_7 = arith.constant 0 : index
    %c0_8 = arith.constant 0 : index
    %9 = vector.load %arg6[%c0_7, %c0_8] : memref<9x128xf32, #tpu.memory_space<vmem>>, vector<9x128xf32>
    tpu.vector_store %arg6[%c0_7, %c0_8], %8 {strides = array<i32>} : memref<9x128xf32, #tpu.memory_space<vmem>>, vector<9x128xf32>,
    %c3_i32 = arith.constant 3 : i32
    %10 = arith.cmpi eq, %arg1, %c3_i32 : i32
    %11 = arith.extui %10 : i1 to i32
    %c0_i32_9 = arith.constant 0 : i32
    %12 = arith.cmpi ne, %11, %c0_i32_9 : i32
    scf.if %12 {
      %c0_10 = arith.constant 0 : index
      %c0_11 = arith.constant 0 : index
      %13 = vector.load %arg6[%c0_10, %c0_11] : memref<9x128xf32, #tpu.memory_space<vmem>>, vector<9x128xf32>
      %c0_12 = arith.constant 0 : index
      %c0_13 = arith.constant 0 : index
      %14 = vector.load %arg4[%c0_12, %c0_13] : memref<1x128xf32, #tpu.memory_space<vmem>>, vector<1x128xf32>
      %15 = vector.broadcast %14 : vector<1x128xf32> to vector<9x128xf32>
      %16 = arith.addf %13, %15 : vector<9x128xf32>
      %17 = vector.shape_cast %16 : vector<9x128xf32> to vector<1x9x128xf32>
      %c0_14 = arith.constant 0 : index
      %c0_15 = arith.constant 0 : index
      %c0_16 = arith.constant 0 : index
      %18 = vector.load %arg5[%c0_14, %c0_15, %c0_16] : memref<1x9x128xf32, #tpu.memory_space<vmem>>, vector<1x9x128xf32>
      tpu.vector_store %arg5[%c0_14, %c0_15, %c0_16], %17 {strides = array<i32>} : memref<1x9x128xf32, #tpu.memory_space<vmem>>, vector<1x9x128xf32>,
    } else {
    }
    return
  }
  func.func @transform_0(%arg0: i32, %arg1: i32) -> (i32, i32, i32) {
    %c0_i32 = arith.constant 0 : i32
    %c0_i32_0 = arith.constant 0 : i32
    return %arg0, %c0_i32, %arg1 : i32, i32, i32
  }
  func.func @transform_1(%arg0: i32, %arg1: i32) -> (i32, i32) {
    %c0_i32 = arith.constant 0 : i32
    %c0_i32_0 = arith.constant 0 : i32
    return %arg1, %c0_i32 : i32, i32
  }
  func.func @transform_2(%arg0: i32, %arg1: i32) -> (i32, i32) {
    %c0_i32 = arith.constant 0 : i32
    %c0_i32_0 = arith.constant 0 : i32
    %c0_i32_1 = arith.constant 0 : i32
    return %c0_i32, %c0_i32_0 : i32, i32
  }
  func.func @transform_3(%arg0: i32, %arg1: i32) -> (i32, i32, i32) {
    %c0_i32 = arith.constant 0 : i32
    %c0_i32_0 = arith.constant 0 : i32
    %c0_i32_1 = arith.constant 0 : i32
    return %arg0, %c0_i32, %c0_i32_0 : i32, i32, i32
  }
}

</mosaic_0001>

<bundles_post_ra>
// kernel: discriminator_forward.5
= control target key start
LH: loop header
LB: loop body
LE: loop exit
PB: predicated region body
PF: predicated region fallthrough
CT: control target
= control target key end

     0   :  { %s3295_s12 = smov 0   ;;  %s3297_s13 = smov 0   ;;  %s3739_s0 = inlined_call_operand.vmem [shape: bf16[2,1024,48], index: 0, kind: input, shape index: {}]   ;;  %s3740_s1 = inlined_call_operand.vmem [shape: bf16[48,128], index: 1, kind: input, shape index: {}]   ;;  %s3741_s2 = inlined_call_operand.vmem [shape: f32[1,128], index: 2, kind: input, shape index: {}]   ;;  %s3742_s3 = inlined_call_operand.vmem [shape: f32[2,1024,128], index: 3, kind: output, shape index: {}]  }
   0x1   :  { %s3299_s14 = smov 0  }
   0x2 LB: > { %s25_s15 = sadd.s32 1, %s3269_s13  ;;  %p2811_p0 = scmp.ge.s32.totalorder %s3273_s14, 1  ;;  %s3273_s14 = sphi %s3299_s14, %s13_s14   ;;  %s3269_s13 = sphi %s3297_s13, %s3744_s13   ;;  %s3265_s12 = sphi %s3295_s12, %s3743_s12  }
   0x3   : > { %p27_p1 = scmp.ge.s32.totalorder %s25_s15, 2  ;;  %p165_p2 = scmp.lt.s32.totalorder %s3273_s14, 3 }
   0x5   : > { %s3746_s15 = smov (%p27_p1, %s25_s15), 0  ;;  %p166_p3 = pnand %p2811_p0, %p165_p2 }
   0x6   : > { %p197_p4 = scmp.lt.s32.totalorder (!%p166_p3), %s3265_s12, 1 }
   0x7   : > { %169 = sbr.rel (%p166_p3) target bundleno = 351 (0x15f), region = 32 }
   0xc   : > { %v3183_v0 = vld [vmem:[%s3740_s1 + $0x10] sm:$0xff]   ;;  %v3184_v1 = vld [vmem:[%s3740_s1 + $0x8] sm:$0xff]   ;;  %s3748_s12 = smov (!%p197_p4, %s3265_s12), 1  ;;  %v3185_v2 = vld [vmem:[%s3740_s1] sm:$0xff]   ;;  %vm949_vm0 = vcmask 392192  }
   0xd   : > { %3019 = vmatprep.subr.bf16.mxu0 %v3183_v0  ;;  %3153 = vmatprep.subr.bf16.mxu1 %v3183_v0  ;;  %s2950_s22 = sshll.u32 %s3748_s12, 9  ;;  %s2951_s28 = sshll.u32 %s3748_s12, 10 }
   0xe   : > { %3020 = vmatpush3.bf16.msra.mxu0 %v3183_v0  ;;  %3156 = vmatpush3.bf16.msra.mxu1 %v3183_v0  ;;  %s3328_s25 = scalar_lea.vmem %s3739_s0, %s2950_s22  ;;  %s3469_s4 = scalar_lea.vmem %s3742_s3, %s2951_s28 }
   0xf   : > { %3021 = vmatprep.subr.bf16.mxu0 %v3184_v1  ;;  %3154 = vmatprep.subr.bf16.mxu1 %v3184_v1  ;;  %v3186_v3 = vld [vmem:[%s3328_s25] sm:$0xff]   ;;  %v3188_v5 = vld [vmem:[%s3328_s25 + $0x8] sm:$0xff]   ;;  %v3190_v7 = vld [vmem:[%s3328_s25 + $0x10] sm:$0xff]  }
  0x10   : > { %v3187_v4 = vld [vmem:[%s3328_s25 + $0x100] sm:$0xff]   ;;  %3025 = vmatprep.mubr.msk.bf16.mxu0 %vm949_vm0, %v3186_v3  ;;  %v3189_v6 = vld [vmem:[%s3328_s25 + $0x108] sm:$0xff]   ;;  %v3191_v8 = vld [vmem:[%s3328_s25 + $0x110] sm:$0xff]  }
  0x11   : > { %3089 = vmatprep.mubr.msk.bf16.mxu1 %vm949_vm0, %v3187_v4  ;;  %v3192_v9 = vld [vmem:[%s3328_s25 + $0x18] sm:$0xff]   ;;  %v3194_v11 = vld [vmem:[%s3328_s25 + $0x20] sm:$0xff]   ;;  %v3196_v13 = vld [vmem:[%s3328_s25 + $0x28] sm:$0xff]  }
  0x12   : > { %3022 = vmatpush3.bf16.msra.mxu0 %v3184_v1  ;;  %3157 = vmatpush3.bf16.msra.mxu1 %v3184_v1  ;;  %v3193_v10 = vld [vmem:[%s3328_s25 + $0x118] sm:$0xff]   ;;  %v3195_v12 = vld [vmem:[%s3328_s25 + $0x120] sm:$0xff]   ;;  %v3197_v14 = vld [vmem:[%s3328_s25 + $0x128] sm:$0xff]  }
  0x13   : > { %3023 = vmatprep.subr.bf16.mxu0 %v3185_v2  ;;  %3155 = vmatprep.subr.bf16.mxu1 %v3185_v2  ;;  %v3198_v15 = vld [vmem:[%s3328_s25 + $0x30] sm:$0xff]   ;;  %v3200_v17 = vld [vmem:[%s3328_s25 + $0x38] sm:$0xff]   ;;  %v3202_v19 = vld [vmem:[%s3328_s25 + $0x40] sm:$0xff]  }
  0x14   : > { %v3199_v16 = vld [vmem:[%s3328_s25 + $0x130] sm:$0xff]   ;;  %v3201_v18 = vld [vmem:[%s3328_s25 + $0x138] sm:$0xff]   ;;  %v3203_v20 = vld [vmem:[%s3328_s25 + $0x140] sm:$0xff]  }
  0x15   : > { %v3204_v21 = vld [vmem:[%s3328_s25 + $0x48] sm:$0xff]   ;;  %v3206_v23 = vld [vmem:[%s3328_s25 + $0x50] sm:$0xff]   ;;  %v3208_v25 = vld [vmem:[%s3328_s25 + $0x58] sm:$0xff]  }
  0x16   : > { %3024 = vmatpush3.bf16.msra.mxu0 %v3185_v2  ;;  %3158 = vmatpush3.bf16.msra.mxu1 %v3185_v2  ;;  %v3205_v22 = vld [vmem:[%s3328_s25 + $0x148] sm:$0xff]   ;;  %v3207_v24 = vld [vmem:[%s3328_s25 + $0x150] sm:$0xff]   ;;  %v3209_v26 = vld [vmem:[%s3328_s25 + $0x158] sm:$0xff]  }
  0x17   : > { %v3210_v27 = vld [vmem:[%s3328_s25 + $0x60] sm:$0xff]   ;;  %v3212_v29 = vld [vmem:[%s3328_s25 + $0x68] sm:$0xff]   ;;  %v3214_v31 = vld [vmem:[%s3328_s25 + $0x70] sm:$0xff]  }
  0x18   : > { %v3211_v28 = vld [vmem:[%s3328_s25 + $0x160] sm:$0xff]   ;;  %v3213_v30 = vld [vmem:[%s3328_s25 + $0x168] sm:$0xff]   ;;  %v3215_v32 = vld [vmem:[%s3328_s25 + $0x170] sm:$0xff]  }
  0x19   : > { %3026 = vmatmul.mubr.msk.bf16.vlgmr.msra.gmra.mxu0 %vm949_vm0, %v3188_v5  ;;  %3090 = vmatmul.mubr.msk.bf16.vlgmr.msra.gmra.mxu1 %vm949_vm0, %v3189_v6  ;;  %v3216_v33 = vld [vmem:[%s3328_s25 + $0x78] sm:$0xff]   ;;  %v3218_v35 = vld [vmem:[%s3328_s25 + $0x80] sm:$0xff]   ;;  %v3220_v37 = vld [vmem:[%s3328_s25 + $0x88] sm:$0xff]  }
  0x1a   : > { %3029 = vmatprep.mubr.msk.bf16.mxu0 %vm949_vm0, %v3190_v7  ;;  %3093 = vmatprep.mubr.msk.bf16.mxu1 %vm949_vm0, %v3191_v8  ;;  %v3217_v34 = vld [vmem:[%s3328_s25 + $0x178] sm:$0xff]   ;;  %v3219_v36 = vld [vmem:[%s3328_s25 + $0x180] sm:$0xff]   ;;  %v3221_v38 = vld [vmem:[%s3328_s25 + $0x188] sm:$0xff]  }
  0x1b   : > { %v3222_v39 = vld [vmem:[%s3328_s25 + $0x90] sm:$0xff]   ;;  %v3224_v41 = vld [vmem:[%s3328_s25 + $0x98] sm:$0xff]   ;;  %v3226_v43 = vld [vmem:[%s3328_s25 + $0xa0] sm:$0xff]  }
  0x1c   : > { %v3223_v40 = vld [vmem:[%s3328_s25 + $0x190] sm:$0xff]   ;;  %v3225_v42 = vld [vmem:[%s3328_s25 + $0x198] sm:$0xff]   ;;  %v3227_v44 = vld [vmem:[%s3328_s25 + $0x1a0] sm:$0xff]  }
  0x1d   : > { %v3228_v45 = vld [vmem:[%s3328_s25 + $0xa8] sm:$0xff]   ;;  %v3230_v47 = vld [vmem:[%s3328_s25 + $0xb0] sm:$0xff]   ;;  %v3232_v49 = vld [vmem:[%s3328_s25 + $0xb8] sm:$0xff]  }
  0x1e   : > { %v3229_v46 = vld [vmem:[%s3328_s25 + $0x1a8] sm:$0xff]   ;;  %v3231_v48 = vld [vmem:[%s3328_s25 + $0x1b0] sm:$0xff]   ;;  %v3233_v50 = vld [vmem:[%s3328_s25 + $0x1b8] sm:$0xff]  }
  0x1f   : > { %v3234_v51 = vld [vmem:[%s3328_s25 + $0xc0] sm:$0xff]   ;;  %v3236_v53 = vld [vmem:[%s3328_s25 + $0xc8] sm:$0xff]   ;;  %v3238_v55 = vld [vmem:[%s3328_s25 + $0xd0] sm:$0xff]  }
  0x20   : > { %v3235_v52 = vld [vmem:[%s3328_s25 + $0x1c0] sm:$0xff]   ;;  %v3237_v54 = vld [vmem:[%s3328_s25 + $0x1c8] sm:$0xff]   ;;  %v3239_v56 = vld [vmem:[%s3328_s25 + $0x1d0] sm:$0xff]  }
  0x21   : > { %3030 = vmatmul.mubr.msk.bf16.gmra.mxu0 %vm949_vm0, %v3192_v9  ;;  %3094 = vmatmul.mubr.msk.bf16.gmra.mxu1 %vm949_vm0, %v3193_v10  ;;  %v3240_v57 = vld [vmem:[%s3328_s25 + $0xd8] sm:$0xff]   ;;  %v3242_v59 = vld [vmem:[%s3328_s25 + $0xe0] sm:$0xff]   ;;  %v3244_v61 = vld [vmem:[%s3328_s25 + $0xe8] sm:$0xff]  }
  0x22   : > { %3033 = vmatprep.mubr.msk.bf16.mxu0 %vm949_vm0, %v3194_v11  ;;  %3097 = vmatprep.mubr.msk.bf16.mxu1 %vm949_vm0, %v3195_v12  ;;  %v3241_v58 = vld [vmem:[%s3328_s25 + $0x1d8] sm:$0xff]   ;;  %v3243_v60 = vld [vmem:[%s3328_s25 + $0x1e0] sm:$0xff]   ;;  %v3245_v62 = vld [vmem:[%s3328_s25 + $0x1e8] sm:$0xff]  }
  0x23   : > { %v3246_v63 = vld [vmem:[%s3328_s25 + $0xf0] sm:$0xff]   ;;  %v3248_v1 = vld [vmem:[%s3328_s25 + $0xf8] sm:$0xff]   ;;  %v3461_v3 = vld [vmem:[%s3741_s2] ss:$0 sm:$0xff] }
  0x24   : > { %v3247_v0 = vld [vmem:[%s3328_s25 + $0x1f0] sm:$0xff]   ;;  %v3249_v2 = vld [vmem:[%s3328_s25 + $0x1f8] sm:$0xff]  }
  0x29   : > { %3034 = vmatmul.mubr.msk.bf16.gmra.mxu0 %vm949_vm0, %v3196_v13  ;;  %3098 = vmatmul.mubr.msk.bf16.gmra.mxu1 %vm949_vm0, %v3197_v14 }
  0x2a   : > { %3037 = vmatprep.mubr.msk.bf16.mxu0 %vm949_vm0, %v3198_v15  ;;  %3101 = vmatprep.mubr.msk.bf16.mxu1 %vm949_vm0, %v3199_v16 }
  0x31   : > { %3038 = vmatmul.mubr.msk.bf16.gmra.mxu0 %vm949_vm0, %v3200_v17  ;;  %3102 = vmatmul.mubr.msk.bf16.gmra.mxu1 %vm949_vm0, %v3201_v18 }
  0x32   : > { %3041 = vmatprep.mubr.msk.bf16.mxu0 %vm949_vm0, %v3202_v19  ;;  %3105 = vmatprep.mubr.msk.bf16.mxu1 %vm949_vm0, %v3203_v20 }
  0x39   : > { %3042 = vmatmul.mubr.msk.bf16.gmra.mxu0 %vm949_vm0, %v3204_v21  ;;  %3106 = vmatmul.mubr.msk.bf16.gmra.mxu1 %vm949_vm0, %v3205_v22 }
  0x3a   : > { %3045 = vmatprep.mubr.msk.bf16.mxu0 %vm949_vm0, %v3206_v23  ;;  %3109 = vmatprep.mubr.msk.bf16.mxu1 %vm949_vm0, %v3207_v24 }
  0x41   : > { %3046 = vmatmul.mubr.msk.bf16.gmra.mxu0 %vm949_vm0, %v3208_v25  ;;  %3110 = vmatmul.mubr.msk.bf16.gmra.mxu1 %vm949_vm0, %v3209_v26 }
  0x42   : > { %3049 = vmatprep.mubr.msk.bf16.mxu0 %vm949_vm0, %v3210_v27  ;;  %3113 = vmatprep.mubr.msk.bf16.mxu1 %vm949_vm0, %v3211_v28 }
  0x49   : > { %3050 = vmatmul.mubr.msk.bf16.gmra.mxu0 %vm949_vm0, %v3212_v29  ;;  %3114 = vmatmul.mubr.msk.bf16.gmra.mxu1 %vm949_vm0, %v3213_v30 }
  0x4a   : > { %3053 = vmatprep.mubr.msk.bf16.mxu0 %vm949_vm0, %v3214_v31  ;;  %3117 = vmatprep.mubr.msk.bf16.mxu1 %vm949_vm0, %v3215_v32 }
  0x51   : > { %3054 = vmatmul.mubr.msk.bf16.gmra.mxu0 %vm949_vm0, %v3216_v33  ;;  %3118 = vmatmul.mubr.msk.bf16.gmra.mxu1 %vm949_vm0, %v3217_v34 }
  0x52   : > { %3057 = vmatprep.mubr.msk.bf16.mxu0 %vm949_vm0, %v3218_v35  ;;  %3121 = vmatprep.mubr.msk.bf16.mxu1 %vm949_vm0, %v3219_v36 }
  0x59   : > { %3058 = vmatmul.mubr.msk.bf16.gmra.mxu0 %vm949_vm0, %v3220_v37  ;;  %3122 = vmatmul.mubr.msk.bf16.gmra.mxu1 %vm949_vm0, %v3221_v38 }
  0x5a   : > { %3061 = vmatprep.mubr.msk.bf16.mxu0 %vm949_vm0, %v3222_v39  ;;  %3125 = vmatprep.mubr.msk.bf16.mxu1 %vm949_vm0, %v3223_v40 }
  0x61   : > { %3062 = vmatmul.mubr.msk.bf16.gmra.mxu0 %vm949_vm0, %v3224_v41  ;;  %3126 = vmatmul.mubr.msk.bf16.gmra.mxu1 %vm949_vm0, %v3225_v42 }
  0x62   : > { %3065 = vmatprep.mubr.msk.bf16.mxu0 %vm949_vm0, %v3226_v43  ;;  %3129 = vmatprep.mubr.msk.bf16.mxu1 %vm949_vm0, %v3227_v44 }
  0x69   : > { %3066 = vmatmul.mubr.msk.bf16.gmra.mxu0 %vm949_vm0, %v3228_v45  ;;  %3130 = vmatmul.mubr.msk.bf16.gmra.mxu1 %vm949_vm0, %v3229_v46 }
  0x6a   : > { %3069 = vmatprep.mubr.msk.bf16.mxu0 %vm949_vm0, %v3230_v47  ;;  %3133 = vmatprep.mubr.msk.bf16.mxu1 %vm949_vm0, %v3231_v48 }
  0x71   : > { %3070 = vmatmul.mubr.msk.bf16.gmra.mxu0 %vm949_vm0, %v3232_v49  ;;  %3134 = vmatmul.mubr.msk.bf16.gmra.mxu1 %vm949_vm0, %v3233_v50 }
  0x72   : > { %3073 = vmatprep.mubr.msk.bf16.mxu0 %vm949_vm0, %v3234_v51  ;;  %3137 = vmatprep.mubr.msk.bf16.mxu1 %vm949_vm0, %v3235_v52 }
  0x79   : > { %3074 = vmatmul.mubr.msk.bf16.gmra.mxu0 %vm949_vm0, %v3236_v53  ;;  %3138 = vmatmul.mubr.msk.bf16.gmra.mxu1 %vm949_vm0, %v3237_v54 }
  0x7a   : > { %3077 = vmatprep.mubr.msk.bf16.mxu0 %vm949_vm0, %v3238_v55  ;;  %3141 = vmatprep.mubr.msk.bf16.mxu1 %vm949_vm0, %v3239_v56 }
  0x81   : > { %3078 = vmatmul.mubr.msk.bf16.gmra.mxu0 %vm949_vm0, %v3240_v57  ;;  %3142 = vmatmul.mubr.msk.bf16.gmra.mxu1 %vm949_vm0, %v3241_v58 }
  0x82   : > { %3081 = vmatprep.mubr.msk.bf16.mxu0 %vm949_vm0, %v3242_v59  ;;  %3145 = vmatprep.mubr.msk.bf16.mxu1 %vm949_vm0, %v3243_v60 }
  0x89   : > { %3082 = vmatmul.mubr.msk.bf16.gmra.mxu0 %vm949_vm0, %v3244_v61  ;;  %3146 = vmatmul.mubr.msk.bf16.gmra.mxu1 %vm949_vm0, %v3245_v62 }
  0x8a   : > { %3085 = vmatprep.mubr.msk.bf16.mxu0 %vm949_vm0, %v3246_v63  ;;  %3149 = vmatprep.mubr.msk.bf16.mxu1 %vm949_vm0, %v3247_v0 }
  0x91   : > { %3086 = vmatmul.mubr.msk.bf16.gmra.mxu0 %vm949_vm0, %v3248_v1  ;;  %3150 = vmatmul.mubr.msk.bf16.gmra.mxu1 %vm949_vm0, %v3249_v2 }
  0xd9   : > { %v3027_v4 = vpop.f32.mrf.mxu0  ;;  %v3091_v5 = vpop.f32.mrf.mxu1 }
  0xda   : > { %v2083_v6 = vadd.f32 %v3027_v4, %v3461_v3  ;;  %v2147_v7 = vadd.f32 %v3091_v5, %v3461_v3 }
  0xdb   : > { %v1176_v8 = vpop.f32.mrf.mxu0  ;;  %v1432_v9 = vpop.f32.mrf.mxu1 }
  0xdc   : > { %vm2211_vm1 = vcmp.ge.f32.partialorder %v2083_v6, 0.0  ;;  %v2339_v10 = vmul.f32 0.2, %v2083_v6  ;;  %vm2275_vm2 = vcmp.ge.f32.partialorder %v2147_v7, 0.0  ;;  %v2403_v11 = vmul.f32 0.2, %v2147_v7 }
  0xdd   : > { %v2081_v12 = vadd.f32 %v3461_v3, %v1176_v8  ;;  %v2145_v13 = vadd.f32 %v3461_v3, %v1432_v9  ;;  %v3028_v14 = vpop.f32.mrf.mxu0  ;;  %v3092_v15 = vpop.f32.mrf.mxu1 }
  0xde   : > { %v2467_v16 = vsel %vm2211_vm1, %v2083_v6, %v2339_v10  ;;  %v2531_v17 = vsel %vm2275_vm2, %v2147_v7, %v2403_v11  ;;  %v2084_v18 = vadd.f32 %v3028_v14, %v3461_v3  ;;  %v2148_v19 = vadd.f32 %v3092_v15, %v3461_v3 }
  0xdf   : > { %2595 = vst [vmem:[%s3469_s4 + $0x10] sm:$0xff] %v2467_v16  ;;  %2659 = vst [vmem:[%s3469_s4 + $0x210] sm:$0xff] %v2531_v17  ;;  %vm2209_vm3 = vcmp.ge.f32.partialorder %v2081_v12, 0.0  ;;  %v2337_v20 = vmul.f32 0.2, %v2081_v12  ;;  %vm2273_vm4 = vcmp.ge.f32.partialorder %v2145_v13, 0.0  ;;  %v1179_v22 = vpop.f32.mrf.mxu0  ;;  %v1435_v23 = vpop.f32.mrf.mxu1 }
  0xe0   : > { %v2401_v21 = vmul.f32 0.2, %v2145_v13  ;;  %vm2212_vm5 = vcmp.ge.f32.partialorder %v2084_v18, 0.0  ;;  %v2340_v24 = vmul.f32 0.2, %v2084_v18  ;;  %vm2276_vm6 = vcmp.ge.f32.partialorder %v2148_v19, 0.0 }
  0xe1   : > { %v2404_v25 = vmul.f32 0.2, %v2148_v19  ;;  %v2465_v26 = vsel %vm2209_vm3, %v2081_v12, %v2337_v20  ;;  %v2082_v28 = vadd.f32 %v3461_v3, %v1179_v22  ;;  %v2146_v29 = vadd.f32 %v3461_v3, %v1435_v23  ;;  %v3031_v30 = vpop.f32.mrf.mxu0  ;;  %v3095_v31 = vpop.f32.mrf.mxu1 }
  0xe2   : > { %v2529_v27 = vsel %vm2273_vm4, %v2145_v13, %v2401_v21  ;;  %2593 = vst [vmem:[%s3469_s4] sm:$0xff] %v2465_v26  ;;  %v2468_v32 = vsel %vm2212_vm5, %v2084_v18, %v2340_v24  ;;  %v2087_v34 = vadd.f32 %v3031_v30, %v3461_v3  ;;  %v2151_v35 = vadd.f32 %v3095_v31, %v3461_v3 }
  0xe3   : > { %2657 = vst [vmem:[%s3469_s4 + $0x200] sm:$0xff] %v2529_v27  ;;  %v2532_v33 = vsel %vm2276_vm6, %v2148_v19, %v2404_v25  ;;  %2596 = vst [vmem:[%s3469_s4 + $0x18] sm:$0xff] %v2468_v32  ;;  %vm2210_vm7 = vcmp.ge.f32.partialorder %v2082_v28, 0.0  ;;  %v2338_v36 = vmul.f32 0.2, %v2082_v28  ;;  %vm2274_vm8 = vcmp.ge.f32.partialorder %v2146_v29, 0.0  ;;  %v1192_v38 = vpop.f32.mrf.mxu0  ;;  %v1448_v39 = vpop.f32.mrf.mxu1 }
  0xe4   : > { %2660 = vst [vmem:[%s3469_s4 + $0x218] sm:$0xff] %v2532_v33  ;;  %v2402_v37 = vmul.f32 0.2, %v2146_v29  ;;  %vm2215_vm9 = vcmp.ge.f32.partialorder %v2087_v34, 0.0  ;;  %v2343_v40 = vmul.f32 0.2, %v2087_v34  ;;  %v2085_v44 = vadd.f32 %v3461_v3, %v1192_v38 }
  0xe5   : > { %vm2279_vm10 = vcmp.ge.f32.partialorder %v2151_v35, 0.0  ;;  %v2407_v41 = vmul.f32 0.2, %v2151_v35  ;;  %v2466_v42 = vsel %vm2210_vm7, %v2082_v28, %v2338_v36  ;;  %v2149_v45 = vadd.f32 %v3461_v3, %v1448_v39  ;;  %v3032_v46 = vpop.f32.mrf.mxu0  ;;  %v3096_v47 = vpop.f32.mrf.mxu1 }
  0xe6   : > { %v2530_v43 = vsel %vm2274_vm8, %v2146_v29, %v2402_v37  ;;  %2594 = vst [vmem:[%s3469_s4 + $0x8] sm:$0xff] %v2466_v42  ;;  %v2471_v48 = vsel %vm2215_vm9, %v2087_v34, %v2343_v40  ;;  %v2088_v50 = vadd.f32 %v3032_v46, %v3461_v3  ;;  %v2152_v51 = vadd.f32 %v3096_v47, %v3461_v3 }
  0xe7   : > { %2658 = vst [vmem:[%s3469_s4 + $0x208] sm:$0xff] %v2530_v43  ;;  %v2535_v49 = vsel %vm2279_vm10, %v2151_v35, %v2407_v41  ;;  %2599 = vst [vmem:[%s3469_s4 + $0x30] sm:$0xff] %v2471_v48  ;;  %vm2213_vm11 = vcmp.ge.f32.partialorder %v2085_v44, 0.0  ;;  %v2341_v52 = vmul.f32 0.2, %v2085_v44  ;;  %vm2277_vm12 = vcmp.ge.f32.partialorder %v2149_v45, 0.0  ;;  %v1195_v54 = vpop.f32.mrf.mxu0  ;;  %v1451_v55 = vpop.f32.mrf.mxu1 }
  0xe8   : > { %2663 = vst [vmem:[%s3469_s4 + $0x230] sm:$0xff] %v2535_v49  ;;  %v2405_v53 = vmul.f32 0.2, %v2149_v45  ;;  %vm2216_vm13 = vcmp.ge.f32.partialorder %v2088_v50, 0.0  ;;  %v2344_v56 = vmul.f32 0.2, %v2088_v50  ;;  %v2086_v60 = vadd.f32 %v3461_v3, %v1195_v54 }
  0xe9   : > { %vm2280_vm14 = vcmp.ge.f32.partialorder %v2152_v51, 0.0  ;;  %v2408_v57 = vmul.f32 0.2, %v2152_v51  ;;  %v2469_v58 = vsel %vm2213_vm11, %v2085_v44, %v2341_v52  ;;  %v2150_v61 = vadd.f32 %v3461_v3, %v1451_v55  ;;  %v3035_v62 = vpop.f32.mrf.mxu0  ;;  %v3099_v63 = vpop.f32.mrf.mxu1 }
  0xea   : > { %v2533_v59 = vsel %vm2277_vm12, %v2149_v45, %v2405_v53  ;;  %2597 = vst [vmem:[%s3469_s4 + $0x20] sm:$0xff] %v2469_v58  ;;  %v2472_v0 = vsel %vm2216_vm13, %v2088_v50, %v2344_v56  ;;  %v2091_v2 = vadd.f32 %v3035_v62, %v3461_v3  ;;  %v2155_v4 = vadd.f32 %v3099_v63, %v3461_v3 }
  0xeb   : > { %2661 = vst [vmem:[%s3469_s4 + $0x220] sm:$0xff] %v2533_v59  ;;  %v2536_v1 = vsel %vm2280_vm14, %v2152_v51, %v2408_v57  ;;  %2600 = vst [vmem:[%s3469_s4 + $0x38] sm:$0xff] %v2472_v0  ;;  %vm2214_vm15 = vcmp.ge.f32.partialorder %v2086_v60, 0.0  ;;  %v2342_v5 = vmul.f32 0.2, %v2086_v60  ;;  %vm2278_vm0 = vcmp.ge.f32.partialorder %v2150_v61, 0.0  ;;  %v1208_v7 = vpop.f32.mrf.mxu0  ;;  %v1464_v8 = vpop.f32.mrf.mxu1 }
  0xec   : > { %2664 = vst [vmem:[%s3469_s4 + $0x238] sm:$0xff] %v2536_v1  ;;  %v2406_v6 = vmul.f32 0.2, %v2150_v61  ;;  %vm2219_vm1 = vcmp.ge.f32.partialorder %v2091_v2, 0.0  ;;  %v2347_v9 = vmul.f32 0.2, %v2091_v2  ;;  %v2089_v13 = vadd.f32 %v3461_v3, %v1208_v7 }
  0xed   : > { %vm2283_vm2 = vcmp.ge.f32.partialorder %v2155_v4, 0.0  ;;  %v2411_v10 = vmul.f32 0.2, %v2155_v4  ;;  %v2470_v11 = vsel %vm2214_vm15, %v2086_v60, %v2342_v5  ;;  %v2153_v14 = vadd.f32 %v3461_v3, %v1464_v8  ;;  %v3036_v15 = vpop.f32.mrf.mxu0  ;;  %v3100_v16 = vpop.f32.mrf.mxu1 }
  0xee   : > { %v2534_v12 = vsel %vm2278_vm0, %v2150_v61, %v2406_v6  ;;  %2598 = vst [vmem:[%s3469_s4 + $0x28] sm:$0xff] %v2470_v11  ;;  %v2475_v17 = vsel %vm2219_vm1, %v2091_v2, %v2347_v9  ;;  %v2092_v19 = vadd.f32 %v3036_v15, %v3461_v3  ;;  %v2156_v20 = vadd.f32 %v3100_v16, %v3461_v3 }
  0xef   : > { %2662 = vst [vmem:[%s3469_s4 + $0x228] sm:$0xff] %v2534_v12  ;;  %v2539_v18 = vsel %vm2283_vm2, %v2155_v4, %v2411_v10  ;;  %2603 = vst [vmem:[%s3469_s4 + $0x50] sm:$0xff] %v2475_v17  ;;  %vm2217_vm3 = vcmp.ge.f32.partialorder %v2089_v13, 0.0  ;;  %v2345_v21 = vmul.f32 0.2, %v2089_v13  ;;  %vm2281_vm4 = vcmp.ge.f32.partialorder %v2153_v14, 0.0  ;;  %v1211_v23 = vpop.f32.mrf.mxu0  ;;  %v1467_v24 = vpop.f32.mrf.mxu1 }
  0xf0   : > { %2667 = vst [vmem:[%s3469_s4 + $0x250] sm:$0xff] %v2539_v18  ;;  %v2409_v22 = vmul.f32 0.2, %v2153_v14  ;;  %vm2220_vm5 = vcmp.ge.f32.partialorder %v2092_v19, 0.0  ;;  %v2348_v25 = vmul.f32 0.2, %v2092_v19  ;;  %v2090_v29 = vadd.f32 %v3461_v3, %v1211_v23 }
  0xf1   : > { %vm2284_vm6 = vcmp.ge.f32.partialorder %v2156_v20, 0.0  ;;  %v2412_v26 = vmul.f32 0.2, %v2156_v20  ;;  %v2473_v27 = vsel %vm2217_vm3, %v2089_v13, %v2345_v21  ;;  %v2154_v30 = vadd.f32 %v3461_v3, %v1467_v24  ;;  %v3039_v31 = vpop.f32.mrf.mxu0  ;;  %v3103_v32 = vpop.f32.mrf.mxu1 }
  0xf2   : > { %v2537_v28 = vsel %vm2281_vm4, %v2153_v14, %v2409_v22  ;;  %2601 = vst [vmem:[%s3469_s4 + $0x40] sm:$0xff] %v2473_v27  ;;  %v2476_v33 = vsel %vm2220_vm5, %v2092_v19, %v2348_v25  ;;  %v2095_v35 = vadd.f32 %v3039_v31, %v3461_v3  ;;  %v2159_v36 = vadd.f32 %v3103_v32, %v3461_v3 }
  0xf3   : > { %2665 = vst [vmem:[%s3469_s4 + $0x240] sm:$0xff] %v2537_v28  ;;  %v2540_v34 = vsel %vm2284_vm6, %v2156_v20, %v2412_v26  ;;  %2604 = vst [vmem:[%s3469_s4 + $0x58] sm:$0xff] %v2476_v33  ;;  %vm2218_vm7 = vcmp.ge.f32.partialorder %v2090_v29, 0.0  ;;  %v2346_v37 = vmul.f32 0.2, %v2090_v29  ;;  %vm2282_vm8 = vcmp.ge.f32.partialorder %v2154_v30, 0.0  ;;  %v1224_v39 = vpop.f32.mrf.mxu0  ;;  %v1480_v40 = vpop.f32.mrf.mxu1 }
  0xf4   : > { %2668 = vst [vmem:[%s3469_s4 + $0x258] sm:$0xff] %v2540_v34  ;;  %v2410_v38 = vmul.f32 0.2, %v2154_v30  ;;  %vm2223_vm9 = vcmp.ge.f32.partialorder %v2095_v35, 0.0  ;;  %v2351_v41 = vmul.f32 0.2, %v2095_v35  ;;  %v2093_v45 = vadd.f32 %v3461_v3, %v1224_v39 }
  0xf5   : > { %vm2287_vm10 = vcmp.ge.f32.partialorder %v2159_v36, 0.0  ;;  %v2415_v42 = vmul.f32 0.2, %v2159_v36  ;;  %v2474_v43 = vsel %vm2218_vm7, %v2090_v29, %v2346_v37  ;;  %v2157_v46 = vadd.f32 %v3461_v3, %v1480_v40  ;;  %v3040_v47 = vpop.f32.mrf.mxu0  ;;  %v3104_v48 = vpop.f32.mrf.mxu1 }
  0xf6   : > { %v2538_v44 = vsel %vm2282_vm8, %v2154_v30, %v2410_v38  ;;  %2602 = vst [vmem:[%s3469_s4 + $0x48] sm:$0xff] %v2474_v43  ;;  %v2479_v49 = vsel %vm2223_vm9, %v2095_v35, %v2351_v41  ;;  %v2096_v51 = vadd.f32 %v3040_v47, %v3461_v3  ;;  %v2160_v52 = vadd.f32 %v3104_v48, %v3461_v3 }
  0xf7   : > { %2666 = vst [vmem:[%s3469_s4 + $0x248] sm:$0xff] %v2538_v44  ;;  %v2543_v50 = vsel %vm2287_vm10, %v2159_v36, %v2415_v42  ;;  %2607 = vst [vmem:[%s3469_s4 + $0x70] sm:$0xff] %v2479_v49  ;;  %vm2221_vm11 = vcmp.ge.f32.partialorder %v2093_v45, 0.0  ;;  %v2349_v53 = vmul.f32 0.2, %v2093_v45  ;;  %vm2285_vm12 = vcmp.ge.f32.partialorder %v2157_v46, 0.0  ;;  %v1227_v55 = vpop.f32.mrf.mxu0  ;;  %v1483_v56 = vpop.f32.mrf.mxu1 }
  0xf8   : > { %2671 = vst [vmem:[%s3469_s4 + $0x270] sm:$0xff] %v2543_v50  ;;  %v2413_v54 = vmul.f32 0.2, %v2157_v46  ;;  %vm2224_vm13 = vcmp.ge.f32.partialorder %v2096_v51, 0.0  ;;  %v2352_v57 = vmul.f32 0.2, %v2096_v51  ;;  %v2094_v61 = vadd.f32 %v3461_v3, %v1227_v55 }
  0xf9   : > { %vm2288_vm14 = vcmp.ge.f32.partialorder %v2160_v52, 0.0  ;;  %v2416_v58 = vmul.f32 0.2, %v2160_v52  ;;  %v2477_v59 = vsel %vm2221_vm11, %v2093_v45, %v2349_v53  ;;  %v2158_v62 = vadd.f32 %v3461_v3, %v1483_v56  ;;  %v3043_v63 = vpop.f32.mrf.mxu0  ;;  %v3107_v0 = vpop.f32.mrf.mxu1 }
  0xfa   : > { %v2541_v60 = vsel %vm2285_vm12, %v2157_v46, %v2413_v54  ;;  %2605 = vst [vmem:[%s3469_s4 + $0x60] sm:$0xff] %v2477_v59  ;;  %v2480_v1 = vsel %vm2224_vm13, %v2096_v51, %v2352_v57  ;;  %v2099_v4 = vadd.f32 %v3043_v63, %v3461_v3  ;;  %v2163_v5 = vadd.f32 %v3107_v0, %v3461_v3 }
  0xfb   : > { %2669 = vst [vmem:[%s3469_s4 + $0x260] sm:$0xff] %v2541_v60  ;;  %v2544_v2 = vsel %vm2288_vm14, %v2160_v52, %v2416_v58  ;;  %2608 = vst [vmem:[%s3469_s4 + $0x78] sm:$0xff] %v2480_v1  ;;  %vm2222_vm15 = vcmp.ge.f32.partialorder %v2094_v61, 0.0  ;;  %v2350_v6 = vmul.f32 0.2, %v2094_v61  ;;  %vm2286_vm0 = vcmp.ge.f32.partialorder %v2158_v62, 0.0  ;;  %v1240_v8 = vpop.f32.mrf.mxu0  ;;  %v1496_v9 = vpop.f32.mrf.mxu1 }
  0xfc   : > { %2672 = vst [vmem:[%s3469_s4 + $0x278] sm:$0xff] %v2544_v2  ;;  %v2414_v7 = vmul.f32 0.2, %v2158_v62  ;;  %vm2227_vm1 = vcmp.ge.f32.partialorder %v2099_v4, 0.0  ;;  %v2355_v10 = vmul.f32 0.2, %v2099_v4  ;;  %v2097_v14 = vadd.f32 %v3461_v3, %v1240_v8 }
  0xfd   : > { %vm2291_vm2 = vcmp.ge.f32.partialorder %v2163_v5, 0.0  ;;  %v2419_v11 = vmul.f32 0.2, %v2163_v5  ;;  %v2478_v12 = vsel %vm2222_vm15, %v2094_v61, %v2350_v6  ;;  %v2161_v15 = vadd.f32 %v3461_v3, %v1496_v9  ;;  %v3044_v16 = vpop.f32.mrf.mxu0  ;;  %v3108_v17 = vpop.f32.mrf.mxu1 }
  0xfe   : > { %v2542_v13 = vsel %vm2286_vm0, %v2158_v62, %v2414_v7  ;;  %2606 = vst [vmem:[%s3469_s4 + $0x68] sm:$0xff] %v2478_v12  ;;  %v2483_v18 = vsel %vm2227_vm1, %v2099_v4, %v2355_v10  ;;  %v2100_v20 = vadd.f32 %v3044_v16, %v3461_v3  ;;  %v2164_v21 = vadd.f32 %v3108_v17, %v3461_v3 }
  0xff   : > { %2670 = vst [vmem:[%s3469_s4 + $0x268] sm:$0xff] %v2542_v13  ;;  %v2547_v19 = vsel %vm2291_vm2, %v2163_v5, %v2419_v11  ;;  %2611 = vst [vmem:[%s3469_s4 + $0x90] sm:$0xff] %v2483_v18  ;;  %vm2225_vm3 = vcmp.ge.f32.partialorder %v2097_v14, 0.0  ;;  %v2353_v22 = vmul.f32 0.2, %v2097_v14  ;;  %vm2289_vm4 = vcmp.ge.f32.partialorder %v2161_v15, 0.0  ;;  %v1243_v24 = vpop.f32.mrf.mxu0  ;;  %v1499_v25 = vpop.f32.mrf.mxu1 }
 0x100   : > { %2675 = vst [vmem:[%s3469_s4 + $0x290] sm:$0xff] %v2547_v19  ;;  %v2417_v23 = vmul.f32 0.2, %v2161_v15  ;;  %vm2228_vm5 = vcmp.ge.f32.partialorder %v2100_v20, 0.0  ;;  %v2356_v26 = vmul.f32 0.2, %v2100_v20  ;;  %v2098_v30 = vadd.f32 %v3461_v3, %v1243_v24 }
 0x101   : > { %vm2292_vm6 = vcmp.ge.f32.partialorder %v2164_v21, 0.0  ;;  %v2420_v27 = vmul.f32 0.2, %v2164_v21  ;;  %v2481_v28 = vsel %vm2225_vm3, %v2097_v14, %v2353_v22  ;;  %v2162_v31 = vadd.f32 %v3461_v3, %v1499_v25  ;;  %v3047_v32 = vpop.f32.mrf.mxu0  ;;  %v3111_v33 = vpop.f32.mrf.mxu1 }
 0x102   : > { %v2545_v29 = vsel %vm2289_vm4, %v2161_v15, %v2417_v23  ;;  %2609 = vst [vmem:[%s3469_s4 + $0x80] sm:$0xff] %v2481_v28  ;;  %v2484_v34 = vsel %vm2228_vm5, %v2100_v20, %v2356_v26  ;;  %v2103_v36 = vadd.f32 %v3047_v32, %v3461_v3  ;;  %v2167_v37 = vadd.f32 %v3111_v33, %v3461_v3 }
 0x103   : > { %2673 = vst [vmem:[%s3469_s4 + $0x280] sm:$0xff] %v2545_v29  ;;  %v2548_v35 = vsel %vm2292_vm6, %v2164_v21, %v2420_v27  ;;  %2612 = vst [vmem:[%s3469_s4 + $0x98] sm:$0xff] %v2484_v34  ;;  %vm2226_vm7 = vcmp.ge.f32.partialorder %v2098_v30, 0.0  ;;  %v2354_v38 = vmul.f32 0.2, %v2098_v30  ;;  %vm2290_vm8 = vcmp.ge.f32.partialorder %v2162_v31, 0.0  ;;  %v1256_v40 = vpop.f32.mrf.mxu0  ;;  %v1512_v41 = vpop.f32.mrf.mxu1 }
 0x104   : > { %2676 = vst [vmem:[%s3469_s4 + $0x298] sm:$0xff] %v2548_v35  ;;  %v2418_v39 = vmul.f32 0.2, %v2162_v31  ;;  %vm2231_vm9 = vcmp.ge.f32.partialorder %v2103_v36, 0.0  ;;  %v2359_v42 = vmul.f32 0.2, %v2103_v36  ;;  %v2101_v46 = vadd.f32 %v3461_v3, %v1256_v40 }
 0x105   : > { %vm2295_vm10 = vcmp.ge.f32.partialorder %v2167_v37, 0.0  ;;  %v2423_v43 = vmul.f32 0.2, %v2167_v37  ;;  %v2482_v44 = vsel %vm2226_vm7, %v2098_v30, %v2354_v38  ;;  %v2165_v47 = vadd.f32 %v3461_v3, %v1512_v41  ;;  %v3048_v48 = vpop.f32.mrf.mxu0  ;;  %v3112_v49 = vpop.f32.mrf.mxu1 }
 0x106   : > { %v2546_v45 = vsel %vm2290_vm8, %v2162_v31, %v2418_v39  ;;  %2610 = vst [vmem:[%s3469_s4 + $0x88] sm:$0xff] %v2482_v44  ;;  %v2487_v50 = vsel %vm2231_vm9, %v2103_v36, %v2359_v42  ;;  %v2104_v52 = vadd.f32 %v3048_v48, %v3461_v3  ;;  %v2168_v53 = vadd.f32 %v3112_v49, %v3461_v3 }
 0x107   : > { %2674 = vst [vmem:[%s3469_s4 + $0x288] sm:$0xff] %v2546_v45  ;;  %v2551_v51 = vsel %vm2295_vm10, %v2167_v37, %v2423_v43  ;;  %2615 = vst [vmem:[%s3469_s4 + $0xb0] sm:$0xff] %v2487_v50  ;;  %vm2229_vm11 = vcmp.ge.f32.partialorder %v2101_v46, 0.0  ;;  %v2357_v54 = vmul.f32 0.2, %v2101_v46  ;;  %vm2293_vm12 = vcmp.ge.f32.partialorder %v2165_v47, 0.0  ;;  %v1259_v56 = vpop.f32.mrf.mxu0  ;;  %v1515_v57 = vpop.f32.mrf.mxu1 }
 0x108   : > { %2679 = vst [vmem:[%s3469_s4 + $0x2b0] sm:$0xff] %v2551_v51  ;;  %v2421_v55 = vmul.f32 0.2, %v2165_v47  ;;  %vm2232_vm13 = vcmp.ge.f32.partialorder %v2104_v52, 0.0  ;;  %v2360_v58 = vmul.f32 0.2, %v2104_v52  ;;  %v2102_v62 = vadd.f32 %v3461_v3, %v1259_v56 }
 0x109   : > { %vm2296_vm14 = vcmp.ge.f32.partialorder %v2168_v53, 0.0  ;;  %v2424_v59 = vmul.f32 0.2, %v2168_v53  ;;  %v2485_v60 = vsel %vm2229_vm11, %v2101_v46, %v2357_v54  ;;  %v2166_v63 = vadd.f32 %v3461_v3, %v1515_v57  ;;  %v3051_v0 = vpop.f32.mrf.mxu0  ;;  %v3115_v1 = vpop.f32.mrf.mxu1 }
 0x10a   : > { %v2549_v61 = vsel %vm2293_vm12, %v2165_v47, %v2421_v55  ;;  %2613 = vst [vmem:[%s3469_s4 + $0xa0] sm:$0xff] %v2485_v60  ;;  %v2488_v2 = vsel %vm2232_vm13, %v2104_v52, %v2360_v58  ;;  %v2107_v5 = vadd.f32 %v3051_v0, %v3461_v3  ;;  %v2171_v6 = vadd.f32 %v3115_v1, %v3461_v3 }
 0x10b   : > { %2677 = vst [vmem:[%s3469_s4 + $0x2a0] sm:$0xff] %v2549_v61  ;;  %v2552_v4 = vsel %vm2296_vm14, %v2168_v53, %v2424_v59  ;;  %2616 = vst [vmem:[%s3469_s4 + $0xb8] sm:$0xff] %v2488_v2  ;;  %vm2230_vm15 = vcmp.ge.f32.partialorder %v2102_v62, 0.0  ;;  %v2358_v7 = vmul.f32 0.2, %v2102_v62  ;;  %vm2294_vm0 = vcmp.ge.f32.partialorder %v2166_v63, 0.0  ;;  %v1272_v9 = vpop.f32.mrf.mxu0  ;;  %v1528_v10 = vpop.f32.mrf.mxu1 }
 0x10c   : > { %2680 = vst [vmem:[%s3469_s4 + $0x2b8] sm:$0xff] %v2552_v4  ;;  %v2422_v8 = vmul.f32 0.2, %v2166_v63  ;;  %vm2235_vm1 = vcmp.ge.f32.partialorder %v2107_v5, 0.0  ;;  %v2363_v11 = vmul.f32 0.2, %v2107_v5  ;;  %v2105_v15 = vadd.f32 %v3461_v3, %v1272_v9 }
 0x10d   : > { %vm2299_vm2 = vcmp.ge.f32.partialorder %v2171_v6, 0.0  ;;  %v2427_v12 = vmul.f32 0.2, %v2171_v6  ;;  %v2486_v13 = vsel %vm2230_vm15, %v2102_v62, %v2358_v7  ;;  %v2169_v16 = vadd.f32 %v3461_v3, %v1528_v10  ;;  %v3052_v17 = vpop.f32.mrf.mxu0  ;;  %v3116_v18 = vpop.f32.mrf.mxu1 }
 0x10e   : > { %v2550_v14 = vsel %vm2294_vm0, %v2166_v63, %v2422_v8  ;;  %2614 = vst [vmem:[%s3469_s4 + $0xa8] sm:$0xff] %v2486_v13  ;;  %v2491_v19 = vsel %vm2235_vm1, %v2107_v5, %v2363_v11  ;;  %v2108_v21 = vadd.f32 %v3052_v17, %v3461_v3  ;;  %v2172_v22 = vadd.f32 %v3116_v18, %v3461_v3 }
 0x10f   : > { %2678 = vst [vmem:[%s3469_s4 + $0x2a8] sm:$0xff] %v2550_v14  ;;  %v2555_v20 = vsel %vm2299_vm2, %v2171_v6, %v2427_v12  ;;  %2619 = vst [vmem:[%s3469_s4 + $0xd0] sm:$0xff] %v2491_v19  ;;  %vm2233_vm3 = vcmp.ge.f32.partialorder %v2105_v15, 0.0  ;;  %v2361_v23 = vmul.f32 0.2, %v2105_v15  ;;  %vm2297_vm4 = vcmp.ge.f32.partialorder %v2169_v16, 0.0  ;;  %v1275_v25 = vpop.f32.mrf.mxu0  ;;  %v1531_v26 = vpop.f32.mrf.mxu1 }
 0x110   : > { %2683 = vst [vmem:[%s3469_s4 + $0x2d0] sm:$0xff] %v2555_v20  ;;  %v2425_v24 = vmul.f32 0.2, %v2169_v16  ;;  %vm2236_vm5 = vcmp.ge.f32.partialorder %v2108_v21, 0.0  ;;  %v2364_v27 = vmul.f32 0.2, %v2108_v21  ;;  %v2106_v31 = vadd.f32 %v3461_v3, %v1275_v25 }
 0x111   : > { %vm2300_vm6 = vcmp.ge.f32.partialorder %v2172_v22, 0.0  ;;  %v2428_v28 = vmul.f32 0.2, %v2172_v22  ;;  %v2489_v29 = vsel %vm2233_vm3, %v2105_v15, %v2361_v23  ;;  %v2170_v32 = vadd.f32 %v3461_v3, %v1531_v26  ;;  %v3055_v33 = vpop.f32.mrf.mxu0  ;;  %v3119_v34 = vpop.f32.mrf.mxu1 }
 0x112   : > { %v2553_v30 = vsel %vm2297_vm4, %v2169_v16, %v2425_v24  ;;  %2617 = vst [vmem:[%s3469_s4 + $0xc0] sm:$0xff] %v2489_v29  ;;  %v2492_v35 = vsel %vm2236_vm5, %v2108_v21, %v2364_v27  ;;  %v2111_v37 = vadd.f32 %v3055_v33, %v3461_v3  ;;  %v2175_v38 = vadd.f32 %v3119_v34, %v3461_v3 }
 0x113   : > { %2681 = vst [vmem:[%s3469_s4 + $0x2c0] sm:$0xff] %v2553_v30  ;;  %v2556_v36 = vsel %vm2300_vm6, %v2172_v22, %v2428_v28  ;;  %2620 = vst [vmem:[%s3469_s4 + $0xd8] sm:$0xff] %v2492_v35  ;;  %vm2234_vm7 = vcmp.ge.f32.partialorder %v2106_v31, 0.0  ;;  %v2362_v39 = vmul.f32 0.2, %v2106_v31  ;;  %vm2298_vm8 = vcmp.ge.f32.partialorder %v2170_v32, 0.0  ;;  %v1288_v41 = vpop.f32.mrf.mxu0  ;;  %v1544_v42 = vpop.f32.mrf.mxu1 }
 0x114   : > { %2684 = vst [vmem:[%s3469_s4 + $0x2d8] sm:$0xff] %v2556_v36  ;;  %v2426_v40 = vmul.f32 0.2, %v2170_v32  ;;  %vm2239_vm9 = vcmp.ge.f32.partialorder %v2111_v37, 0.0  ;;  %v2367_v43 = vmul.f32 0.2, %v2111_v37  ;;  %v2109_v47 = vadd.f32 %v3461_v3, %v1288_v41 }
 0x115   : > { %vm2303_vm10 = vcmp.ge.f32.partialorder %v2175_v38, 0.0  ;;  %v2431_v44 = vmul.f32 0.2, %v2175_v38  ;;  %v2490_v45 = vsel %vm2234_vm7, %v2106_v31, %v2362_v39  ;;  %v2173_v48 = vadd.f32 %v3461_v3, %v1544_v42  ;;  %v3056_v49 = vpop.f32.mrf.mxu0  ;;  %v3120_v50 = vpop.f32.mrf.mxu1 }
 0x116   : > { %v2554_v46 = vsel %vm2298_vm8, %v2170_v32, %v2426_v40  ;;  %2618 = vst [vmem:[%s3469_s4 + $0xc8] sm:$0xff] %v2490_v45  ;;  %v2495_v51 = vsel %vm2239_vm9, %v2111_v37, %v2367_v43  ;;  %v2112_v53 = vadd.f32 %v3056_v49, %v3461_v3  ;;  %v2176_v54 = vadd.f32 %v3120_v50, %v3461_v3 }
 0x117   : > { %2682 = vst [vmem:[%s3469_s4 + $0x2c8] sm:$0xff] %v2554_v46  ;;  %v2559_v52 = vsel %vm2303_vm10, %v2175_v38, %v2431_v44  ;;  %2623 = vst [vmem:[%s3469_s4 + $0xf0] sm:$0xff] %v2495_v51  ;;  %vm2237_vm11 = vcmp.ge.f32.partialorder %v2109_v47, 0.0  ;;  %v2365_v55 = vmul.f32 0.2, %v2109_v47  ;;  %vm2301_vm12 = vcmp.ge.f32.partialorder %v2173_v48, 0.0  ;;  %v1291_v57 = vpop.f32.mrf.mxu0  ;;  %v1547_v58 = vpop.f32.mrf.mxu1 }
 0x118   : > { %2687 = vst [vmem:[%s3469_s4 + $0x2f0] sm:$0xff] %v2559_v52  ;;  %v2429_v56 = vmul.f32 0.2, %v2173_v48  ;;  %vm2240_vm13 = vcmp.ge.f32.partialorder %v2112_v53, 0.0  ;;  %v2368_v59 = vmul.f32 0.2, %v2112_v53  ;;  %v2110_v63 = vadd.f32 %v3461_v3, %v1291_v57 }
 0x119   : > { %vm2304_vm14 = vcmp.ge.f32.partialorder %v2176_v54, 0.0  ;;  %v2432_v60 = vmul.f32 0.2, %v2176_v54  ;;  %v2493_v61 = vsel %vm2237_vm11, %v2109_v47, %v2365_v55  ;;  %v2174_v0 = vadd.f32 %v3461_v3, %v1547_v58  ;;  %v3059_v1 = vpop.f32.mrf.mxu0  ;;  %v3123_v2 = vpop.f32.mrf.mxu1 }
 0x11a   : > { %v2557_v62 = vsel %vm2301_vm12, %v2173_v48, %v2429_v56  ;;  %2621 = vst [vmem:[%s3469_s4 + $0xe0] sm:$0xff] %v2493_v61  ;;  %v2496_v4 = vsel %vm2240_vm13, %v2112_v53, %v2368_v59  ;;  %v2115_v6 = vadd.f32 %v3059_v1, %v3461_v3  ;;  %v2179_v7 = vadd.f32 %v3123_v2, %v3461_v3 }
 0x11b   : > { %2685 = vst [vmem:[%s3469_s4 + $0x2e0] sm:$0xff] %v2557_v62  ;;  %v2560_v5 = vsel %vm2304_vm14, %v2176_v54, %v2432_v60  ;;  %2624 = vst [vmem:[%s3469_s4 + $0xf8] sm:$0xff] %v2496_v4  ;;  %vm2238_vm15 = vcmp.ge.f32.partialorder %v2110_v63, 0.0  ;;  %v2366_v8 = vmul.f32 0.2, %v2110_v63  ;;  %vm2302_vm0 = vcmp.ge.f32.partialorder %v2174_v0, 0.0  ;;  %v1304_v10 = vpop.f32.mrf.mxu0  ;;  %v1560_v11 = vpop.f32.mrf.mxu1 }
 0x11c   : > { %2688 = vst [vmem:[%s3469_s4 + $0x2f8] sm:$0xff] %v2560_v5  ;;  %v2430_v9 = vmul.f32 0.2, %v2174_v0  ;;  %vm2243_vm1 = vcmp.ge.f32.partialorder %v2115_v6, 0.0  ;;  %v2371_v12 = vmul.f32 0.2, %v2115_v6  ;;  %v2113_v16 = vadd.f32 %v3461_v3, %v1304_v10 }
 0x11d   : > { %vm2307_vm2 = vcmp.ge.f32.partialorder %v2179_v7, 0.0  ;;  %v2435_v13 = vmul.f32 0.2, %v2179_v7  ;;  %v2494_v14 = vsel %vm2238_vm15, %v2110_v63, %v2366_v8  ;;  %v2177_v17 = vadd.f32 %v3461_v3, %v1560_v11  ;;  %v3060_v18 = vpop.f32.mrf.mxu0  ;;  %v3124_v19 = vpop.f32.mrf.mxu1 }
 0x11e   : > { %v2558_v15 = vsel %vm2302_vm0, %v2174_v0, %v2430_v9  ;;  %2622 = vst [vmem:[%s3469_s4 + $0xe8] sm:$0xff] %v2494_v14  ;;  %v2499_v20 = vsel %vm2243_vm1, %v2115_v6, %v2371_v12  ;;  %v2116_v22 = vadd.f32 %v3060_v18, %v3461_v3  ;;  %v2180_v23 = vadd.f32 %v3124_v19, %v3461_v3 }
 0x11f   : > { %2686 = vst [vmem:[%s3469_s4 + $0x2e8] sm:$0xff] %v2558_v15  ;;  %v2563_v21 = vsel %vm2307_vm2, %v2179_v7, %v2435_v13  ;;  %2627 = vst [vmem:[%s3469_s4 + $0x110] sm:$0xff] %v2499_v20  ;;  %vm2241_vm3 = vcmp.ge.f32.partialorder %v2113_v16, 0.0  ;;  %v2369_v24 = vmul.f32 0.2, %v2113_v16  ;;  %vm2305_vm4 = vcmp.ge.f32.partialorder %v2177_v17, 0.0  ;;  %v1307_v26 = vpop.f32.mrf.mxu0  ;;  %v1563_v27 = vpop.f32.mrf.mxu1 }
 0x120   : > { %2691 = vst [vmem:[%s3469_s4 + $0x310] sm:$0xff] %v2563_v21  ;;  %v2433_v25 = vmul.f32 0.2, %v2177_v17  ;;  %vm2244_vm5 = vcmp.ge.f32.partialorder %v2116_v22, 0.0  ;;  %v2372_v28 = vmul.f32 0.2, %v2116_v22  ;;  %v2114_v32 = vadd.f32 %v3461_v3, %v1307_v26 }
 0x121   : > { %vm2308_vm6 = vcmp.ge.f32.partialorder %v2180_v23, 0.0  ;;  %v2436_v29 = vmul.f32 0.2, %v2180_v23  ;;  %v2497_v30 = vsel %vm2241_vm3, %v2113_v16, %v2369_v24  ;;  %v2178_v33 = vadd.f32 %v3461_v3, %v1563_v27  ;;  %v3063_v34 = vpop.f32.mrf.mxu0  ;;  %v3127_v35 = vpop.f32.mrf.mxu1 }
 0x122   : > { %v2561_v31 = vsel %vm2305_vm4, %v2177_v17, %v2433_v25  ;;  %2625 = vst [vmem:[%s3469_s4 + $0x100] sm:$0xff] %v2497_v30  ;;  %v2500_v36 = vsel %vm2244_vm5, %v2116_v22, %v2372_v28  ;;  %v2119_v38 = vadd.f32 %v3063_v34, %v3461_v3  ;;  %v2183_v39 = vadd.f32 %v3127_v35, %v3461_v3 }
 0x123   : > { %2689 = vst [vmem:[%s3469_s4 + $0x300] sm:$0xff] %v2561_v31  ;;  %v2564_v37 = vsel %vm2308_vm6, %v2180_v23, %v2436_v29  ;;  %2628 = vst [vmem:[%s3469_s4 + $0x118] sm:$0xff] %v2500_v36  ;;  %vm2242_vm7 = vcmp.ge.f32.partialorder %v2114_v32, 0.0  ;;  %v2370_v40 = vmul.f32 0.2, %v2114_v32  ;;  %vm2306_vm8 = vcmp.ge.f32.partialorder %v2178_v33, 0.0  ;;  %v1320_v42 = vpop.f32.mrf.mxu0  ;;  %v1576_v43 = vpop.f32.mrf.mxu1 }
 0x124   : > { %2692 = vst [vmem:[%s3469_s4 + $0x318] sm:$0xff] %v2564_v37  ;;  %v2434_v41 = vmul.f32 0.2, %v2178_v33  ;;  %vm2247_vm9 = vcmp.ge.f32.partialorder %v2119_v38, 0.0  ;;  %v2375_v44 = vmul.f32 0.2, %v2119_v38  ;;  %v2117_v48 = vadd.f32 %v3461_v3, %v1320_v42 }
 0x125   : > { %vm2311_vm10 = vcmp.ge.f32.partialorder %v2183_v39, 0.0  ;;  %v2439_v45 = vmul.f32 0.2, %v2183_v39  ;;  %v2498_v46 = vsel %vm2242_vm7, %v2114_v32, %v2370_v40  ;;  %v2181_v49 = vadd.f32 %v3461_v3, %v1576_v43  ;;  %v3064_v50 = vpop.f32.mrf.mxu0  ;;  %v3128_v51 = vpop.f32.mrf.mxu1 }
 0x126   : > { %v2562_v47 = vsel %vm2306_vm8, %v2178_v33, %v2434_v41  ;;  %2626 = vst [vmem:[%s3469_s4 + $0x108] sm:$0xff] %v2498_v46  ;;  %v2503_v52 = vsel %vm2247_vm9, %v2119_v38, %v2375_v44  ;;  %v2120_v54 = vadd.f32 %v3064_v50, %v3461_v3  ;;  %v2184_v55 = vadd.f32 %v3128_v51, %v3461_v3 }
 0x127   : > { %2690 = vst [vmem:[%s3469_s4 + $0x308] sm:$0xff] %v2562_v47  ;;  %v2567_v53 = vsel %vm2311_vm10, %v2183_v39, %v2439_v45  ;;  %2631 = vst [vmem:[%s3469_s4 + $0x130] sm:$0xff] %v2503_v52  ;;  %vm2245_vm11 = vcmp.ge.f32.partialorder %v2117_v48, 0.0  ;;  %v2373_v56 = vmul.f32 0.2, %v2117_v48  ;;  %vm2309_vm12 = vcmp.ge.f32.partialorder %v2181_v49, 0.0  ;;  %v1323_v58 = vpop.f32.mrf.mxu0  ;;  %v1579_v59 = vpop.f32.mrf.mxu1 }
 0x128   : > { %2695 = vst [vmem:[%s3469_s4 + $0x330] sm:$0xff] %v2567_v53  ;;  %v2437_v57 = vmul.f32 0.2, %v2181_v49  ;;  %vm2248_vm13 = vcmp.ge.f32.partialorder %v2120_v54, 0.0  ;;  %v2376_v60 = vmul.f32 0.2, %v2120_v54  ;;  %v2118_v0 = vadd.f32 %v3461_v3, %v1323_v58 }
 0x129   : > { %vm2312_vm14 = vcmp.ge.f32.partialorder %v2184_v55, 0.0  ;;  %v2440_v61 = vmul.f32 0.2, %v2184_v55  ;;  %v2501_v62 = vsel %vm2245_vm11, %v2117_v48, %v2373_v56  ;;  %v2182_v1 = vadd.f32 %v3461_v3, %v1579_v59  ;;  %v3067_v2 = vpop.f32.mrf.mxu0  ;;  %v3131_v4 = vpop.f32.mrf.mxu1 }
 0x12a   : > { %v2565_v63 = vsel %vm2309_vm12, %v2181_v49, %v2437_v57  ;;  %2629 = vst [vmem:[%s3469_s4 + $0x120] sm:$0xff] %v2501_v62  ;;  %v2504_v5 = vsel %vm2248_vm13, %v2120_v54, %v2376_v60  ;;  %v2123_v7 = vadd.f32 %v3067_v2, %v3461_v3  ;;  %v2187_v8 = vadd.f32 %v3131_v4, %v3461_v3 }
 0x12b   : > { %2693 = vst [vmem:[%s3469_s4 + $0x320] sm:$0xff] %v2565_v63  ;;  %v2568_v6 = vsel %vm2312_vm14, %v2184_v55, %v2440_v61  ;;  %2632 = vst [vmem:[%s3469_s4 + $0x138] sm:$0xff] %v2504_v5  ;;  %vm2246_vm15 = vcmp.ge.f32.partialorder %v2118_v0, 0.0  ;;  %v2374_v9 = vmul.f32 0.2, %v2118_v0  ;;  %vm2310_vm0 = vcmp.ge.f32.partialorder %v2182_v1, 0.0  ;;  %v1336_v11 = vpop.f32.mrf.mxu0  ;;  %v1592_v12 = vpop.f32.mrf.mxu1 }
 0x12c   : > { %2696 = vst [vmem:[%s3469_s4 + $0x338] sm:$0xff] %v2568_v6  ;;  %v2438_v10 = vmul.f32 0.2, %v2182_v1  ;;  %vm2251_vm1 = vcmp.ge.f32.partialorder %v2123_v7, 0.0  ;;  %v2379_v13 = vmul.f32 0.2, %v2123_v7  ;;  %v2121_v17 = vadd.f32 %v3461_v3, %v1336_v11 }
 0x12d   : > { %vm2315_vm2 = vcmp.ge.f32.partialorder %v2187_v8, 0.0  ;;  %v2443_v14 = vmul.f32 0.2, %v2187_v8  ;;  %v2502_v15 = vsel %vm2246_vm15, %v2118_v0, %v2374_v9  ;;  %v2185_v18 = vadd.f32 %v3461_v3, %v1592_v12  ;;  %v3068_v19 = vpop.f32.mrf.mxu0  ;;  %v3132_v20 = vpop.f32.mrf.mxu1 }
 0x12e   : > { %v2566_v16 = vsel %vm2310_vm0, %v2182_v1, %v2438_v10  ;;  %2630 = vst [vmem:[%s3469_s4 + $0x128] sm:$0xff] %v2502_v15  ;;  %v2507_v21 = vsel %vm2251_vm1, %v2123_v7, %v2379_v13  ;;  %v2124_v23 = vadd.f32 %v3068_v19, %v3461_v3  ;;  %v2188_v24 = vadd.f32 %v3132_v20, %v3461_v3  ;;  %v3640_v3 = vld [vmem:[%s3741_s2] ss:$0 sm:$0xff] }
 0x12f   : > { %2694 = vst [vmem:[%s3469_s4 + $0x328] sm:$0xff] %v2566_v16  ;;  %v2571_v22 = vsel %vm2315_vm2, %v2187_v8, %v2443_v14  ;;  %2635 = vst [vmem:[%s3469_s4 + $0x150] sm:$0xff] %v2507_v21  ;;  %vm2249_vm3 = vcmp.ge.f32.partialorder %v2121_v17, 0.0  ;;  %v2377_v25 = vmul.f32 0.2, %v2121_v17  ;;  %vm2313_vm4 = vcmp.ge.f32.partialorder %v2185_v18, 0.0  ;;  %v1339_v27 = vpop.f32.mrf.mxu0  ;;  %v1595_v28 = vpop.f32.mrf.mxu1 }
 0x130   : > { %2699 = vst [vmem:[%s3469_s4 + $0x350] sm:$0xff] %v2571_v22  ;;  %v2441_v26 = vmul.f32 0.2, %v2185_v18  ;;  %vm2252_vm5 = vcmp.ge.f32.partialorder %v2124_v23, 0.0  ;;  %v2380_v29 = vmul.f32 0.2, %v2124_v23  ;;  %v2122_v33 = vadd.f32 %v3640_v3, %v1339_v27 }
 0x131   : > { %vm2316_vm6 = vcmp.ge.f32.partialorder %v2188_v24, 0.0  ;;  %v2444_v30 = vmul.f32 0.2, %v2188_v24  ;;  %v2505_v31 = vsel %vm2249_vm3, %v2121_v17, %v2377_v25  ;;  %v2186_v34 = vadd.f32 %v3640_v3, %v1595_v28  ;;  %v3071_v35 = vpop.f32.mrf.mxu0  ;;  %v3135_v36 = vpop.f32.mrf.mxu1 }
 0x132   : > { %v2569_v32 = vsel %vm2313_vm4, %v2185_v18, %v2441_v26  ;;  %2633 = vst [vmem:[%s3469_s4 + $0x140] sm:$0xff] %v2505_v31  ;;  %v2508_v37 = vsel %vm2252_vm5, %v2124_v23, %v2380_v29  ;;  %v2127_v39 = vadd.f32 %v3640_v3, %v3071_v35  ;;  %v2191_v40 = vadd.f32 %v3640_v3, %v3135_v36 }
 0x133   : > { %2697 = vst [vmem:[%s3469_s4 + $0x340] sm:$0xff] %v2569_v32  ;;  %v2572_v38 = vsel %vm2316_vm6, %v2188_v24, %v2444_v30  ;;  %2636 = vst [vmem:[%s3469_s4 + $0x158] sm:$0xff] %v2508_v37  ;;  %vm2250_vm7 = vcmp.ge.f32.partialorder %v2122_v33, 0.0  ;;  %v2378_v41 = vmul.f32 0.2, %v2122_v33  ;;  %vm2314_vm8 = vcmp.ge.f32.partialorder %v2186_v34, 0.0  ;;  %v1352_v43 = vpop.f32.mrf.mxu0  ;;  %v1608_v44 = vpop.f32.mrf.mxu1 }
 0x134   : > { %2700 = vst [vmem:[%s3469_s4 + $0x358] sm:$0xff] %v2572_v38  ;;  %v2442_v42 = vmul.f32 0.2, %v2186_v34  ;;  %vm2255_vm9 = vcmp.ge.f32.partialorder %v2127_v39, 0.0  ;;  %v2383_v45 = vmul.f32 0.2, %v2127_v39  ;;  %v2125_v49 = vadd.f32 %v3640_v3, %v1352_v43 }
 0x135   : > { %vm2319_vm10 = vcmp.ge.f32.partialorder %v2191_v40, 0.0  ;;  %v2447_v46 = vmul.f32 0.2, %v2191_v40  ;;  %v2506_v47 = vsel %vm2250_vm7, %v2122_v33, %v2378_v41  ;;  %v2189_v50 = vadd.f32 %v3640_v3, %v1608_v44  ;;  %v3072_v51 = vpop.f32.mrf.mxu0  ;;  %v3136_v52 = vpop.f32.mrf.mxu1 }
 0x136   : > { %v2570_v48 = vsel %vm2314_vm8, %v2186_v34, %v2442_v42  ;;  %2634 = vst [vmem:[%s3469_s4 + $0x148] sm:$0xff] %v2506_v47  ;;  %v2511_v53 = vsel %vm2255_vm9, %v2127_v39, %v2383_v45  ;;  %v2128_v55 = vadd.f32 %v3640_v3, %v3072_v51  ;;  %v2192_v56 = vadd.f32 %v3640_v3, %v3136_v52 }
 0x137   : > { %2698 = vst [vmem:[%s3469_s4 + $0x348] sm:$0xff] %v2570_v48  ;;  %v2575_v54 = vsel %vm2319_vm10, %v2191_v40, %v2447_v46  ;;  %2639 = vst [vmem:[%s3469_s4 + $0x170] sm:$0xff] %v2511_v53  ;;  %vm2253_vm11 = vcmp.ge.f32.partialorder %v2125_v49, 0.0  ;;  %v2381_v57 = vmul.f32 0.2, %v2125_v49  ;;  %vm2317_vm12 = vcmp.ge.f32.partialorder %v2189_v50, 0.0  ;;  %v1355_v59 = vpop.f32.mrf.mxu0  ;;  %v1611_v60 = vpop.f32.mrf.mxu1 }
 0x138   : > { %2703 = vst [vmem:[%s3469_s4 + $0x370] sm:$0xff] %v2575_v54  ;;  %v2445_v58 = vmul.f32 0.2, %v2189_v50  ;;  %vm2256_vm13 = vcmp.ge.f32.partialorder %v2128_v55, 0.0  ;;  %v2384_v61 = vmul.f32 0.2, %v2128_v55  ;;  %v2126_v1 = vadd.f32 %v3640_v3, %v1355_v59 }
 0x139   : > { %vm2320_vm14 = vcmp.ge.f32.partialorder %v2192_v56, 0.0  ;;  %v2448_v62 = vmul.f32 0.2, %v2192_v56  ;;  %v2509_v63 = vsel %vm2253_vm11, %v2125_v49, %v2381_v57  ;;  %v2190_v2 = vadd.f32 %v3640_v3, %v1611_v60  ;;  %v3075_v4 = vpop.f32.mrf.mxu0  ;;  %v3139_v5 = vpop.f32.mrf.mxu1 }
 0x13a   : > { %v2573_v0 = vsel %vm2317_vm12, %v2189_v50, %v2445_v58  ;;  %2637 = vst [vmem:[%s3469_s4 + $0x160] sm:$0xff] %v2509_v63  ;;  %v2512_v6 = vsel %vm2256_vm13, %v2128_v55, %v2384_v61  ;;  %v2131_v8 = vadd.f32 %v3640_v3, %v3075_v4  ;;  %v2195_v9 = vadd.f32 %v3640_v3, %v3139_v5 }
 0x13b   : > { %2701 = vst [vmem:[%s3469_s4 + $0x360] sm:$0xff] %v2573_v0  ;;  %v2576_v7 = vsel %vm2320_vm14, %v2192_v56, %v2448_v62  ;;  %2640 = vst [vmem:[%s3469_s4 + $0x178] sm:$0xff] %v2512_v6  ;;  %vm2254_vm15 = vcmp.ge.f32.partialorder %v2126_v1, 0.0  ;;  %v2382_v10 = vmul.f32 0.2, %v2126_v1  ;;  %vm2318_vm0 = vcmp.ge.f32.partialorder %v2190_v2, 0.0  ;;  %v1368_v12 = vpop.f32.mrf.mxu0  ;;  %v1624_v13 = vpop.f32.mrf.mxu1 }
 0x13c   : > { %2704 = vst [vmem:[%s3469_s4 + $0x378] sm:$0xff] %v2576_v7  ;;  %v2446_v11 = vmul.f32 0.2, %v2190_v2  ;;  %vm2259_vm1 = vcmp.ge.f32.partialorder %v2131_v8, 0.0  ;;  %v2387_v14 = vmul.f32 0.2, %v2131_v8  ;;  %v2129_v18 = vadd.f32 %v3640_v3, %v1368_v12 }
 0x13d   : > { %vm2323_vm2 = vcmp.ge.f32.partialorder %v2195_v9, 0.0  ;;  %v2451_v15 = vmul.f32 0.2, %v2195_v9  ;;  %v2510_v16 = vsel %vm2254_vm15, %v2126_v1, %v2382_v10  ;;  %v2193_v19 = vadd.f32 %v3640_v3, %v1624_v13  ;;  %v3076_v20 = vpop.f32.mrf.mxu0  ;;  %v3140_v21 = vpop.f32.mrf.mxu1 }
 0x13e   : > { %v2574_v17 = vsel %vm2318_vm0, %v2190_v2, %v2446_v11  ;;  %2638 = vst [vmem:[%s3469_s4 + $0x168] sm:$0xff] %v2510_v16  ;;  %v2515_v22 = vsel %vm2259_vm1, %v2131_v8, %v2387_v14  ;;  %v2132_v24 = vadd.f32 %v3640_v3, %v3076_v20  ;;  %v2196_v25 = vadd.f32 %v3640_v3, %v3140_v21 }
 0x13f   : > { %2702 = vst [vmem:[%s3469_s4 + $0x368] sm:$0xff] %v2574_v17  ;;  %v2579_v23 = vsel %vm2323_vm2, %v2195_v9, %v2451_v15  ;;  %2643 = vst [vmem:[%s3469_s4 + $0x190] sm:$0xff] %v2515_v22  ;;  %vm2257_vm3 = vcmp.ge.f32.partialorder %v2129_v18, 0.0  ;;  %v2385_v26 = vmul.f32 0.2, %v2129_v18  ;;  %vm2321_vm4 = vcmp.ge.f32.partialorder %v2193_v19, 0.0  ;;  %v1371_v28 = vpop.f32.mrf.mxu0  ;;  %v1627_v29 = vpop.f32.mrf.mxu1 }
 0x140   : > { %2707 = vst [vmem:[%s3469_s4 + $0x390] sm:$0xff] %v2579_v23  ;;  %v2449_v27 = vmul.f32 0.2, %v2193_v19  ;;  %vm2260_vm5 = vcmp.ge.f32.partialorder %v2132_v24, 0.0  ;;  %v2388_v30 = vmul.f32 0.2, %v2132_v24  ;;  %v2130_v34 = vadd.f32 %v3640_v3, %v1371_v28 }
 0x141   : > { %vm2324_vm6 = vcmp.ge.f32.partialorder %v2196_v25, 0.0  ;;  %v2452_v31 = vmul.f32 0.2, %v2196_v25  ;;  %v2513_v32 = vsel %vm2257_vm3, %v2129_v18, %v2385_v26  ;;  %v2194_v35 = vadd.f32 %v3640_v3, %v1627_v29  ;;  %v3079_v36 = vpop.f32.mrf.mxu0  ;;  %v3143_v37 = vpop.f32.mrf.mxu1 }
 0x142   : > { %v2577_v33 = vsel %vm2321_vm4, %v2193_v19, %v2449_v27  ;;  %2641 = vst [vmem:[%s3469_s4 + $0x180] sm:$0xff] %v2513_v32  ;;  %v2516_v38 = vsel %vm2260_vm5, %v2132_v24, %v2388_v30  ;;  %v2135_v40 = vadd.f32 %v3640_v3, %v3079_v36  ;;  %v2199_v41 = vadd.f32 %v3640_v3, %v3143_v37 }
 0x143   : > { %2705 = vst [vmem:[%s3469_s4 + $0x380] sm:$0xff] %v2577_v33  ;;  %v2580_v39 = vsel %vm2324_vm6, %v2196_v25, %v2452_v31  ;;  %2644 = vst [vmem:[%s3469_s4 + $0x198] sm:$0xff] %v2516_v38  ;;  %vm2258_vm7 = vcmp.ge.f32.partialorder %v2130_v34, 0.0  ;;  %v2386_v42 = vmul.f32 0.2, %v2130_v34  ;;  %vm2322_vm8 = vcmp.ge.f32.partialorder %v2194_v35, 0.0  ;;  %v1384_v44 = vpop.f32.mrf.mxu0  ;;  %v1640_v45 = vpop.f32.mrf.mxu1 }
 0x144   : > { %2708 = vst [vmem:[%s3469_s4 + $0x398] sm:$0xff] %v2580_v39  ;;  %v2450_v43 = vmul.f32 0.2, %v2194_v35  ;;  %vm2263_vm9 = vcmp.ge.f32.partialorder %v2135_v40, 0.0  ;;  %v2391_v46 = vmul.f32 0.2, %v2135_v40  ;;  %v2133_v50 = vadd.f32 %v3640_v3, %v1384_v44 }
 0x145   : > { %vm2327_vm10 = vcmp.ge.f32.partialorder %v2199_v41, 0.0  ;;  %v2455_v47 = vmul.f32 0.2, %v2199_v41  ;;  %v2514_v48 = vsel %vm2258_vm7, %v2130_v34, %v2386_v42  ;;  %v2197_v51 = vadd.f32 %v3640_v3, %v1640_v45  ;;  %v3080_v52 = vpop.f32.mrf.mxu0  ;;  %v3144_v53 = vpop.f32.mrf.mxu1 }
 0x146   : > { %v2578_v49 = vsel %vm2322_vm8, %v2194_v35, %v2450_v43  ;;  %2642 = vst [vmem:[%s3469_s4 + $0x188] sm:$0xff] %v2514_v48  ;;  %v2519_v54 = vsel %vm2263_vm9, %v2135_v40, %v2391_v46  ;;  %v2136_v56 = vadd.f32 %v3640_v3, %v3080_v52  ;;  %v2200_v57 = vadd.f32 %v3640_v3, %v3144_v53 }
 0x147   : > { %2706 = vst [vmem:[%s3469_s4 + $0x388] sm:$0xff] %v2578_v49  ;;  %v2583_v55 = vsel %vm2327_vm10, %v2199_v41, %v2455_v47  ;;  %2647 = vst [vmem:[%s3469_s4 + $0x1b0] sm:$0xff] %v2519_v54  ;;  %vm2261_vm11 = vcmp.ge.f32.partialorder %v2133_v50, 0.0  ;;  %v2389_v58 = vmul.f32 0.2, %v2133_v50  ;;  %vm2325_vm12 = vcmp.ge.f32.partialorder %v2197_v51, 0.0  ;;  %v1387_v60 = vpop.f32.mrf.mxu0  ;;  %v1643_v61 = vpop.f32.mrf.mxu1 }
 0x148   : > { %2711 = vst [vmem:[%s3469_s4 + $0x3b0] sm:$0xff] %v2583_v55  ;;  %v2453_v59 = vmul.f32 0.2, %v2197_v51  ;;  %vm2264_vm13 = vcmp.ge.f32.partialorder %v2136_v56, 0.0  ;;  %v2392_v62 = vmul.f32 0.2, %v2136_v56  ;;  %v2134_v2 = vadd.f32 %v3640_v3, %v1387_v60 }
 0x149   : > { %vm2328_vm14 = vcmp.ge.f32.partialorder %v2200_v57, 0.0  ;;  %v2456_v63 = vmul.f32 0.2, %v2200_v57  ;;  %v2517_v0 = vsel %vm2261_vm11, %v2133_v50, %v2389_v58  ;;  %v2198_v4 = vadd.f32 %v3640_v3, %v1643_v61  ;;  %v3083_v5 = vpop.f32.mrf.mxu0  ;;  %v3147_v6 = vpop.f32.mrf.mxu1 }
 0x14a   : > { %v2581_v1 = vsel %vm2325_vm12, %v2197_v51, %v2453_v59  ;;  %2645 = vst [vmem:[%s3469_s4 + $0x1a0] sm:$0xff] %v2517_v0  ;;  %v2520_v7 = vsel %vm2264_vm13, %v2136_v56, %v2392_v62  ;;  %v2139_v9 = vadd.f32 %v3640_v3, %v3083_v5  ;;  %v2203_v10 = vadd.f32 %v3640_v3, %v3147_v6 }
 0x14b   : > { %2709 = vst [vmem:[%s3469_s4 + $0x3a0] sm:$0xff] %v2581_v1  ;;  %v2584_v8 = vsel %vm2328_vm14, %v2200_v57, %v2456_v63  ;;  %2648 = vst [vmem:[%s3469_s4 + $0x1b8] sm:$0xff] %v2520_v7  ;;  %vm2262_vm15 = vcmp.ge.f32.partialorder %v2134_v2, 0.0  ;;  %v2390_v11 = vmul.f32 0.2, %v2134_v2  ;;  %vm2326_vm0 = vcmp.ge.f32.partialorder %v2198_v4, 0.0  ;;  %v1400_v13 = vpop.f32.mrf.mxu0  ;;  %v1656_v14 = vpop.f32.mrf.mxu1 }
 0x14c   : > { %2712 = vst [vmem:[%s3469_s4 + $0x3b8] sm:$0xff] %v2584_v8  ;;  %v2454_v12 = vmul.f32 0.2, %v2198_v4  ;;  %vm2267_vm1 = vcmp.ge.f32.partialorder %v2139_v9, 0.0  ;;  %v2395_v15 = vmul.f32 0.2, %v2139_v9  ;;  %v2137_v19 = vadd.f32 %v3640_v3, %v1400_v13 }
 0x14d   : > { %vm2331_vm2 = vcmp.ge.f32.partialorder %v2203_v10, 0.0  ;;  %v2459_v16 = vmul.f32 0.2, %v2203_v10  ;;  %v2518_v17 = vsel %vm2262_vm15, %v2134_v2, %v2390_v11  ;;  %v2201_v20 = vadd.f32 %v3640_v3, %v1656_v14  ;;  %v3084_v21 = vpop.f32.mrf.mxu0  ;;  %v3148_v22 = vpop.f32.mrf.mxu1 }
 0x14e   : > { %v2582_v18 = vsel %vm2326_vm0, %v2198_v4, %v2454_v12  ;;  %2646 = vst [vmem:[%s3469_s4 + $0x1a8] sm:$0xff] %v2518_v17  ;;  %v2523_v23 = vsel %vm2267_vm1, %v2139_v9, %v2395_v15  ;;  %v2140_v25 = vadd.f32 %v3640_v3, %v3084_v21  ;;  %v2204_v26 = vadd.f32 %v3640_v3, %v3148_v22 }
 0x14f   : > { %2710 = vst [vmem:[%s3469_s4 + $0x3a8] sm:$0xff] %v2582_v18  ;;  %v2587_v24 = vsel %vm2331_vm2, %v2203_v10, %v2459_v16  ;;  %2651 = vst [vmem:[%s3469_s4 + $0x1d0] sm:$0xff] %v2523_v23  ;;  %vm2265_vm3 = vcmp.ge.f32.partialorder %v2137_v19, 0.0  ;;  %v2393_v27 = vmul.f32 0.2, %v2137_v19  ;;  %vm2329_vm4 = vcmp.ge.f32.partialorder %v2201_v20, 0.0  ;;  %v1403_v29 = vpop.f32.mrf.mxu0  ;;  %v1659_v30 = vpop.f32.mrf.mxu1 }
 0x150   : > { %2715 = vst [vmem:[%s3469_s4 + $0x3d0] sm:$0xff] %v2587_v24  ;;  %v2457_v28 = vmul.f32 0.2, %v2201_v20  ;;  %vm2268_vm5 = vcmp.ge.f32.partialorder %v2140_v25, 0.0  ;;  %v2396_v31 = vmul.f32 0.2, %v2140_v25  ;;  %v2138_v35 = vadd.f32 %v3640_v3, %v1403_v29 }
 0x151   : > { %vm2332_vm6 = vcmp.ge.f32.partialorder %v2204_v26, 0.0  ;;  %v2460_v32 = vmul.f32 0.2, %v2204_v26  ;;  %v2521_v33 = vsel %vm2265_vm3, %v2137_v19, %v2393_v27  ;;  %v2202_v36 = vadd.f32 %v3640_v3, %v1659_v30  ;;  %v3087_v37 = vpop.f32.mrf.mxu0  ;;  %v3151_v38 = vpop.f32.mrf.mxu1 }
 0x152   : > { %v2585_v34 = vsel %vm2329_vm4, %v2201_v20, %v2457_v28  ;;  %2649 = vst [vmem:[%s3469_s4 + $0x1c0] sm:$0xff] %v2521_v33  ;;  %v2524_v39 = vsel %vm2268_vm5, %v2140_v25, %v2396_v31  ;;  %v2143_v41 = vadd.f32 %v3640_v3, %v3087_v37  ;;  %v2207_v42 = vadd.f32 %v3640_v3, %v3151_v38 }
 0x153   : > { %2713 = vst [vmem:[%s3469_s4 + $0x3c0] sm:$0xff] %v2585_v34  ;;  %v2588_v40 = vsel %vm2332_vm6, %v2204_v26, %v2460_v32  ;;  %2652 = vst [vmem:[%s3469_s4 + $0x1d8] sm:$0xff] %v2524_v39  ;;  %vm2266_vm7 = vcmp.ge.f32.partialorder %v2138_v35, 0.0  ;;  %v2394_v43 = vmul.f32 0.2, %v2138_v35  ;;  %vm2330_vm8 = vcmp.ge.f32.partialorder %v2202_v36, 0.0  ;;  %v1416_v45 = vpop.f32.mrf.mxu0  ;;  %v1672_v46 = vpop.f32.mrf.mxu1 }
 0x154   : > { %2716 = vst [vmem:[%s3469_s4 + $0x3d8] sm:$0xff] %v2588_v40  ;;  %v2458_v44 = vmul.f32 0.2, %v2202_v36  ;;  %vm2271_vm9 = vcmp.ge.f32.partialorder %v2143_v41, 0.0  ;;  %v2399_v47 = vmul.f32 0.2, %v2143_v41  ;;  %v2141_v51 = vadd.f32 %v3640_v3, %v1416_v45 }
 0x155   : > { %vm2335_vm10 = vcmp.ge.f32.partialorder %v2207_v42, 0.0  ;;  %v2463_v48 = vmul.f32 0.2, %v2207_v42  ;;  %v2522_v49 = vsel %vm2266_vm7, %v2138_v35, %v2394_v43  ;;  %v2205_v52 = vadd.f32 %v3640_v3, %v1672_v46  ;;  %v3088_v53 = vpop.f32.mrf.mxu0  ;;  %v3152_v54 = vpop.f32.mrf.mxu1 }
 0x156   : > { %v2586_v50 = vsel %vm2330_vm8, %v2202_v36, %v2458_v44  ;;  %2650 = vst [vmem:[%s3469_s4 + $0x1c8] sm:$0xff] %v2522_v49  ;;  %v2527_v55 = vsel %vm2271_vm9, %v2143_v41, %v2399_v47  ;;  %v2144_v57 = vadd.f32 %v3640_v3, %v3088_v53  ;;  %v2208_v58 = vadd.f32 %v3640_v3, %v3152_v54 }
 0x157   : > { %2714 = vst [vmem:[%s3469_s4 + $0x3c8] sm:$0xff] %v2586_v50  ;;  %v2591_v56 = vsel %vm2335_vm10, %v2207_v42, %v2463_v48  ;;  %2655 = vst [vmem:[%s3469_s4 + $0x1f0] sm:$0xff] %v2527_v55  ;;  %vm2269_vm11 = vcmp.ge.f32.partialorder %v2141_v51, 0.0  ;;  %v2397_v59 = vmul.f32 0.2, %v2141_v51  ;;  %vm2333_vm12 = vcmp.ge.f32.partialorder %v2205_v52, 0.0  ;;  %v1419_v61 = vpop.f32.mrf.mxu0  ;;  %v1675_v62 = vpop.f32.mrf.mxu1 }
 0x158   : > { %2719 = vst [vmem:[%s3469_s4 + $0x3f0] sm:$0xff] %v2591_v56  ;;  %v2461_v60 = vmul.f32 0.2, %v2205_v52  ;;  %vm2272_vm13 = vcmp.ge.f32.partialorder %v2144_v57, 0.0  ;;  %v2400_v63 = vmul.f32 0.2, %v2144_v57  ;;  %v2142_v4 = vadd.f32 %v3640_v3, %v1419_v61 }
 0x159   : > { %vm2336_vm14 = vcmp.ge.f32.partialorder %v2208_v58, 0.0  ;;  %v2464_v0 = vmul.f32 0.2, %v2208_v58  ;;  %v2525_v1 = vsel %vm2269_vm11, %v2141_v51, %v2397_v59  ;;  %v2206_v5 = vadd.f32 %v3640_v3, %v1675_v62 }
 0x15a   : > { %v2589_v2 = vsel %vm2333_vm12, %v2205_v52, %v2461_v60  ;;  %2653 = vst [vmem:[%s3469_s4 + $0x1e0] sm:$0xff] %v2525_v1  ;;  %v2528_v6 = vsel %vm2272_vm13, %v2144_v57, %v2400_v63  ;;  %vm2270_vm15 = vcmp.ge.f32.partialorder %v2142_v4, 0.0  ;;  %v2398_v8 = vmul.f32 0.2, %v2142_v4 }
 0x15b   : > { %2717 = vst [vmem:[%s3469_s4 + $0x3e0] sm:$0xff] %v2589_v2  ;;  %v2592_v7 = vsel %vm2336_vm14, %v2208_v58, %v2464_v0  ;;  %2656 = vst [vmem:[%s3469_s4 + $0x1f8] sm:$0xff] %v2528_v6  ;;  %vm2334_vm0 = vcmp.ge.f32.partialorder %v2206_v5, 0.0  ;;  %v2462_v9 = vmul.f32 0.2, %v2206_v5 }
 0x15c   : > { %2720 = vst [vmem:[%s3469_s4 + $0x3f8] sm:$0xff] %v2592_v7  ;;  %v2526_v10 = vsel %vm2270_vm15, %v2142_v4, %v2398_v8 }
 0x15d   : > { %v2590_v11 = vsel %vm2334_vm0, %v2206_v5, %v2462_v9  ;;  %2654 = vst [vmem:[%s3469_s4 + $0x1e8] sm:$0xff] %v2526_v10 }
 0x15e   : > { %2718 = vst [vmem:[%s3469_s4 + $0x3e8] sm:$0xff] %v2590_v11 }
 0x15f PF: > { %s13_s14 = sadd.s32 1, %s3273_s14   ;;  %s3743_s12 = smov %s3269_s13 }
 0x160   : > { %p10_p5 = scmp.ge.s32.totalorder %s13_s14, 4   ;;  %s3744_s13 = smov %s3746_s15 }
 0x162   :  { %12 = sbr.rel (!%p10_p5) target bundleno = 2 (0x2), region = 73 }

// kernel: discriminator_forward.6
= control target key start
LH: loop header
LB: loop body
LE: loop exit
PB: predicated region body
PF: predicated region fallthrough
CT: control target
= control target key end

     0   :  { %s3530_s12 = smov 0   ;;  %s3532_s13 = smov 0   ;;  %s4551_s0 = inlined_call_operand.vmem [shape: bf16[2,256,1024], index: 0, kind: input, shape index: {}]   ;;  %s4552_s1 = inlined_call_operand.vmem [shape: bf16[1024,128], index: 1, kind: input, shape index: {}]   ;;  %s4553_s2 = inlined_call_operand.vmem [shape: f32[1,128], index: 2, kind: input, shape index: {}]   ;;  %s4554_s3 = inlined_call_operand.vmem [shape: f32[2,256,128], index: 3, kind: output, shape index: {}]  }
   0x1   :  { %s3534_s14 = smov 0  }
   0x2 LB: > { %s25_s15 = sadd.s32 1, %s3504_s13  ;;  %p2746_p0 = scmp.ge.s32.totalorder %s3508_s14, 1  ;;  %s3508_s14 = sphi %s3534_s14, %s13_s14   ;;  %s3504_s13 = sphi %s3532_s13, %s4604_s13   ;;  %s3500_s12 = sphi %s3530_s12, %s4603_s12  }
   0x3   : > { %p27_p1 = scmp.ge.s32.totalorder %s25_s15, 2  ;;  %p167_p2 = scmp.lt.s32.totalorder %s3508_s14, 3 }
   0x5   : > { %s4606_s15 = smov (%p27_p1, %s25_s15), 0  ;;  %p168_p3 = pnand %p2746_p0, %p167_p2 }
   0x7   : > { %171 = sbr.rel (%p168_p3) target bundleno = 574 (0x23e), region = 32 }
   0xc   : > { %v3420_v0 = vld [vmem:[%s4552_s1 + $0x78] sm:$0xff]   ;;  %v3424_v4 = vld [vmem:[%s4552_s1 + $0x70] sm:$0xff]   ;;  %v3428_v8 = vld [vmem:[%s4552_s1 + $0x68] sm:$0xff]   ;;  %p201_p4 = scmp.lt.s32.totalorder %s3500_s12, 1 }
   0xd   : > { %v3421_v1 = vld [vmem:[%s4552_s1 + $0xf8] sm:$0xff]   ;;  %2948 = vmatprep.subr.bf16.mxu0 %v3420_v0  ;;  %v3425_v5 = vld [vmem:[%s4552_s1 + $0xf0] sm:$0xff]   ;;  %v3429_v9 = vld [vmem:[%s4552_s1 + $0xe8] sm:$0xff]  }
   0xe   : > { %v3422_v2 = vld [vmem:[%s4552_s1 + $0x38] sm:$0xff]   ;;  %3060 = vmatprep.subr.bf16.mxu1 %v3421_v1  ;;  %v3426_v6 = vld [vmem:[%s4552_s1 + $0x30] sm:$0xff]   ;;  %v3430_v10 = vld [vmem:[%s4552_s1 + $0x28] sm:$0xff]   ;;  %s4608_s12 = smov (!%p201_p4, %s3500_s12), 1 }
   0xf   : > { %v3423_v3 = vld [vmem:[%s4552_s1 + $0xb8] sm:$0xff]   ;;  %2949 = vmatpush3.bf16.msra.mxu0 %v3422_v2  ;;  %v3427_v7 = vld [vmem:[%s4552_s1 + $0xb0] sm:$0xff]   ;;  %v3431_v11 = vld [vmem:[%s4552_s1 + $0xa8] sm:$0xff]   ;;  %s2946_s24 = sshll.u32 %s4608_s12, 10  ;;  %s2947_s10 = sshll.u32 %s4608_s12, 8 }
  0x10   : > { %3061 = vmatpush3.bf16.msra.mxu1 %v3423_v3  ;;  %2950 = vmatprep.subr.bf16.mxu0 %v3424_v4  ;;  %v3432_v12 = vld [vmem:[%s4552_s1 + $0x60] sm:$0xff]   ;;  %v3436_v16 = vld [vmem:[%s4552_s1 + $0x58] sm:$0xff]   ;;  %v3440_v20 = vld [vmem:[%s4552_s1 + $0x50] sm:$0xff]   ;;  %s3648_s6 = scalar_lea.vmem %s4551_s0, %s2946_s24  ;;  %s4358_s16 = scalar_lea.vmem %s4554_s3, %s2947_s10 }
  0x11   : > { %3062 = vmatprep.subr.bf16.mxu1 %v3425_v5  ;;  %v3433_v13 = vld [vmem:[%s4552_s1 + $0xe0] sm:$0xff]   ;;  %v3437_v17 = vld [vmem:[%s4552_s1 + $0xd8] sm:$0xff]   ;;  %v3441_v21 = vld [vmem:[%s4552_s1 + $0xd0] sm:$0xff]  }
  0x12   : > { %v3434_v14 = vld [vmem:[%s4552_s1 + $0x20] sm:$0xff]   ;;  %v3438_v18 = vld [vmem:[%s4552_s1 + $0x18] sm:$0xff]   ;;  %v3442_v22 = vld [vmem:[%s4552_s1 + $0x10] sm:$0xff]  }
  0x13   : > { %2951 = vmatpush3.bf16.msra.mxu0 %v3426_v6  ;;  %v3435_v15 = vld [vmem:[%s4552_s1 + $0xa0] sm:$0xff]   ;;  %v3439_v19 = vld [vmem:[%s4552_s1 + $0x98] sm:$0xff]   ;;  %v3443_v23 = vld [vmem:[%s4552_s1 + $0x90] sm:$0xff]  }
  0x14   : > { %3063 = vmatpush3.bf16.msra.mxu1 %v3427_v7  ;;  %2952 = vmatprep.subr.bf16.mxu0 %v3428_v8  ;;  %v3444_v24 = vld [vmem:[%s4552_s1 + $0x48] sm:$0xff]   ;;  %v3448_v28 = vld [vmem:[%s4552_s1 + $0x40] sm:$0xff]   ;;  %v3452_v40 = vld [vmem:[%s4552_s1 + $0x178] sm:$0xff]  }
  0x15   : > { %3064 = vmatprep.subr.bf16.mxu1 %v3429_v9  ;;  %v3445_v25 = vld [vmem:[%s4552_s1 + $0xc8] sm:$0xff]   ;;  %v3449_v29 = vld [vmem:[%s4552_s1 + $0xc0] sm:$0xff]   ;;  %v3453_v41 = vld [vmem:[%s4552_s1 + $0x138] sm:$0xff]  }
  0x16   : > { %v3446_v26 = vld [vmem:[%s4552_s1 + $0x8] sm:$0xff]   ;;  %v3450_v30 = vld [vmem:[%s4552_s1] sm:$0xff]   ;;  %v3454_v42 = vld [vmem:[%s4552_s1 + $0x1f8] sm:$0xff]  }
  0x17   : > { %2953 = vmatpush3.bf16.msra.mxu0 %v3430_v10  ;;  %v3447_v27 = vld [vmem:[%s4552_s1 + $0x88] sm:$0xff]   ;;  %v3451_v31 = vld [vmem:[%s4552_s1 + $0x80] sm:$0xff]   ;;  %v3455_v43 = vld [vmem:[%s4552_s1 + $0x1b8] sm:$0xff]  }
  0x18   : > { %3065 = vmatpush3.bf16.msra.mxu1 %v3431_v11  ;;  %2954 = vmatprep.subr.bf16.mxu0 %v3432_v12  ;;  %v290_v32 = vld [vmem:[%s3648_s6] sm:$0xff]  ;;  %v291_v34 = vld [vmem:[%s3648_s6 + $0x8] sm:$0xff]  ;;  %v3456_v55 = vld [vmem:[%s4552_s1 + $0x170] sm:$0xff]  }
  0x19   : > { %3066 = vmatprep.subr.bf16.mxu1 %v3433_v13  ;;  %v294_v33 = vld [vmem:[%s3648_s6 + $0x20] sm:$0xff]  ;;  %v295_v37 = vld [vmem:[%s3648_s6 + $0x28] sm:$0xff]  ;;  %v3457_v58 = vld [vmem:[%s4552_s1 + $0x130] sm:$0xff]  }
  0x1a   : > { %v2751_v35 = vcombine.low %v290_v32, %v294_v33  ;;  %v2752_v36 = vcombine.high %v290_v32, %v294_v33  ;;  %v2753_v38 = vcombine.low %v291_v34, %v295_v37  ;;  %v2754_v39 = vcombine.high %v291_v34, %v295_v37  ;;  %v298_v44 = vld [vmem:[%s3648_s6 + $0x40] sm:$0xff]  ;;  %v299_v47 = vld [vmem:[%s3648_s6 + $0x48] sm:$0xff]  ;;  %v3458_v60 = vld [vmem:[%s4552_s1 + $0x1f0] sm:$0xff]  }
  0x1b   : > { %2955 = vmatpush3.bf16.msra.mxu0 %v3434_v14  ;;  %v302_v45 = vld [vmem:[%s3648_s6 + $0x60] sm:$0xff]  ;;  %v303_v48 = vld [vmem:[%s3648_s6 + $0x68] sm:$0xff]  ;;  %v3459_v61 = vld [vmem:[%s4552_s1 + $0x1b0] sm:$0xff]  }
  0x1c   : > { %3067 = vmatpush3.bf16.msra.mxu1 %v3435_v15  ;;  %2956 = vmatprep.subr.bf16.mxu0 %v3436_v16  ;;  %v2760_v46 = vcombine.high %v298_v44, %v302_v45  ;;  %v306_v49 = vld [vmem:[%s3648_s6 + $0x80] sm:$0xff]  ;;  %v2762_v50 = vcombine.high %v299_v47, %v303_v48  ;;  %v307_v52 = vld [vmem:[%s3648_s6 + $0x88] sm:$0xff]  ;;  %v2759_v54 = vcombine.low %v298_v44, %v302_v45  ;;  %v3472_v34 = vld [vmem:[%s4552_s1 + $0x150] sm:$0xff]  }
  0x1d   : > { %3068 = vmatprep.subr.bf16.mxu1 %v3437_v17  ;;  %1602 = vmatprep.mubr.bf16.mxu0 %v2752_v36  ;;  %v310_v51 = vld [vmem:[%s3648_s6 + $0xa0] sm:$0xff]  ;;  %v311_v53 = vld [vmem:[%s3648_s6 + $0xa8] sm:$0xff]  ;;  %v2761_v56 = vcombine.low %v299_v47, %v303_v48  ;;  %v3473_v36 = vld [vmem:[%s4552_s1 + $0x110] sm:$0xff]  }
  0x1e   : > { %1763 = vmatprep.mubr.bf16.mxu1 %v2754_v39  ;;  %v2768_v57 = vcombine.high %v306_v49, %v310_v51  ;;  %v2770_v59 = vcombine.high %v307_v52, %v311_v53  ;;  %v314_v62 = vld [vmem:[%s3648_s6 + $0xc0] sm:$0xff]  ;;  %v315_v0 = vld [vmem:[%s3648_s6 + $0xc8] sm:$0xff]  ;;  %v2767_v3 = vcombine.low %v306_v49, %v310_v51  ;;  %v2769_v5 = vcombine.low %v307_v52, %v311_v53  ;;  %v3474_v37 = vld [vmem:[%s4552_s1 + $0x1d0] sm:$0xff]  }
  0x1f   : > { %2957 = vmatpush3.bf16.msra.mxu0 %v3438_v18  ;;  %v318_v63 = vld [vmem:[%s3648_s6 + $0xe0] sm:$0xff]  ;;  %v319_v1 = vld [vmem:[%s3648_s6 + $0xe8] sm:$0xff]  ;;  %v3475_v39 = vld [vmem:[%s4552_s1 + $0x190] sm:$0xff]  }
  0x20   : > { %3069 = vmatpush3.bf16.msra.mxu1 %v3439_v19  ;;  %2958 = vmatprep.subr.bf16.mxu0 %v3440_v20  ;;  %v3460_v2 = vld [vmem:[%s4552_s1 + $0x168] sm:$0xff]   ;;  %v2776_v6 = vcombine.high %v314_v62, %v318_v63  ;;  %v2778_v8 = vcombine.high %v315_v0, %v319_v1  ;;  %v322_v10 = vld [vmem:[%s3648_s6 + $0x100] sm:$0xff]  ;;  %v2775_v16 = vcombine.low %v314_v62, %v318_v63 }
  0x21   : > { %3070 = vmatprep.subr.bf16.mxu1 %v3441_v21  ;;  %v3461_v4 = vld [vmem:[%s4552_s1 + $0x128] sm:$0xff]   ;;  %v326_v11 = vld [vmem:[%s3648_s6 + $0x120] sm:$0xff]  ;;  %v2777_v18 = vcombine.low %v315_v0, %v319_v1 }
  0x22   : > { %v3462_v7 = vld [vmem:[%s4552_s1 + $0x1e8] sm:$0xff]   ;;  %v3464_v14 = vld [vmem:[%s4552_s1 + $0x160] sm:$0xff]   ;;  %v2784_v19 = vcombine.high %v322_v10, %v326_v11 }
  0x23   : > { %2959 = vmatpush3.bf16.msra.mxu0 %v3442_v22  ;;  %v3463_v9 = vld [vmem:[%s4552_s1 + $0x1a8] sm:$0xff]   ;;  %v3465_v15 = vld [vmem:[%s4552_s1 + $0x120] sm:$0xff]  }
  0x24   : > { %3071 = vmatpush3.bf16.msra.mxu1 %v3443_v23  ;;  %2960 = vmatprep.subr.bf16.mxu0 %v3444_v24  ;;  %v323_v12 = vld [vmem:[%s3648_s6 + $0x108] sm:$0xff]  ;;  %v3466_v17 = vld [vmem:[%s4552_s1 + $0x1e0] sm:$0xff]   ;;  %v3468_v24 = vld [vmem:[%s4552_s1 + $0x158] sm:$0xff]  }
  0x25   : > { %3072 = vmatprep.subr.bf16.mxu1 %v3445_v25  ;;  %v327_v13 = vld [vmem:[%s3648_s6 + $0x128] sm:$0xff]  ;;  %v3467_v20 = vld [vmem:[%s4552_s1 + $0x1a0] sm:$0xff]  }
  0x26   : > { %v2786_v21 = vcombine.high %v323_v12, %v327_v13  ;;  %v330_v22 = vld [vmem:[%s3648_s6 + $0x140] sm:$0xff]  ;;  %v331_v25 = vld [vmem:[%s3648_s6 + $0x148] sm:$0xff] }
  0x27   : > { %2961 = vmatpush3.bf16.msra.mxu0 %v3446_v26  ;;  %v334_v23 = vld [vmem:[%s3648_s6 + $0x160] sm:$0xff]  ;;  %v335_v26 = vld [vmem:[%s3648_s6 + $0x168] sm:$0xff] }
  0x28   : > { %3073 = vmatpush3.bf16.msra.mxu1 %v3447_v27  ;;  %2962 = vmatprep.subr.bf16.mxu0 %v3448_v28  ;;  %v3469_v27 = vld [vmem:[%s4552_s1 + $0x118] sm:$0xff]   ;;  %v2792_v32 = vcombine.high %v330_v22, %v334_v23  ;;  %v2794_v33 = vcombine.high %v331_v25, %v335_v26  ;;  %v3477_v47 = vld [vmem:[%s4552_s1 + $0x108] sm:$0xff]   ;;  %v350_v51 = vld [vmem:[%s3648_s6 + $0x1e0] sm:$0xff] }
  0x29   : > { %3074 = vmatprep.subr.bf16.mxu1 %v3449_v29  ;;  %v3470_v28 = vld [vmem:[%s4552_s1 + $0x1d8] sm:$0xff]   ;;  %v3478_v48 = vld [vmem:[%s4552_s1 + $0x1c8] sm:$0xff]   ;;  %v354_v62 = vld [vmem:[%s3648_s6 + $0x200] sm:$0xff] }
  0x2a   : > { %v3471_v29 = vld [vmem:[%s4552_s1 + $0x198] sm:$0xff]   ;;  %v3479_v49 = vld [vmem:[%s4552_s1 + $0x188] sm:$0xff]   ;;  %v358_v63 = vld [vmem:[%s3648_s6 + $0x220] sm:$0xff] }
  0x2b   : > { %2963 = vmatpush3.bf16.msra.mxu0 %v3450_v30  ;;  %v2783_v30 = vcombine.low %v322_v10, %v326_v11  ;;  %v347_v52 = vld [vmem:[%s3648_s6 + $0x1c8] sm:$0xff]  ;;  %v2815_v10 = vcombine.low %v354_v62, %v358_v63 }
  0x2c   : > { %3075 = vmatpush3.bf16.msra.mxu1 %v3451_v31  ;;  %3172 = vmatprep.subr.bf16.mxu0 %v3452_v40  ;;  %v2785_v31 = vcombine.low %v323_v12, %v327_v13  ;;  %v339_v40 = vld [vmem:[%s3648_s6 + $0x188] sm:$0xff] }
  0x2d   : > { %3284 = vmatprep.subr.bf16.mxu1 %v3454_v42  ;;  %v2791_v42 = vcombine.low %v330_v22, %v334_v23  ;;  %v351_v53 = vld [vmem:[%s3648_s6 + $0x1e8] sm:$0xff]  ;;  %v378_v22 = vld [vmem:[%s3648_s6 + $0x2c0] sm:$0xff] }
  0x2e   : > { %1603 = vmatmul.mubr.bf16.vlgmr.msra.gmra.mxu0 %v2751_v35  ;;  %v338_v35 = vld [vmem:[%s3648_s6 + $0x180] sm:$0xff]  ;;  %v355_v0 = vld [vmem:[%s3648_s6 + $0x208] sm:$0xff] }
  0x2f   : > { %1764 = vmatmul.mubr.bf16.vlgmr.msra.gmra.mxu1 %v2753_v38  ;;  %3173 = vmatpush3.bf16.msra.mxu0 %v3453_v41  ;;  %v342_v38 = vld [vmem:[%s3648_s6 + $0x1a0] sm:$0xff]  ;;  %v343_v41 = vld [vmem:[%s3648_s6 + $0x1a8] sm:$0xff] }
  0x30   : > { %3285 = vmatpush3.bf16.msra.mxu1 %v3455_v43  ;;  %1610 = vmatprep.mubr.bf16.mxu0 %v2760_v46  ;;  %v2793_v43 = vcombine.low %v331_v25, %v335_v26  ;;  %v2800_v44 = vcombine.high %v338_v35, %v342_v38  ;;  %v2802_v45 = vcombine.high %v339_v40, %v343_v41  ;;  %v3476_v46 = vld [vmem:[%s4552_s1 + $0x148] sm:$0xff]   ;;  %v382_v23 = vld [vmem:[%s3648_s6 + $0x2e0] sm:$0xff] }
  0x31   : > { %1771 = vmatprep.mubr.bf16.mxu1 %v2762_v50  ;;  %3174 = vmatprep.subr.bf16.mxu0 %v3456_v55  ;;  %v346_v50 = vld [vmem:[%s3648_s6 + $0x1c0] sm:$0xff]  ;;  %v359_v1 = vld [vmem:[%s3648_s6 + $0x228] sm:$0xff] }
  0x32   : > { %3286 = vmatprep.subr.bf16.mxu1 %v3458_v60  ;;  %v3480_v55 = vld [vmem:[%s4552_s1 + $0x140] sm:$0xff]   ;;  %v2817_v11 = vcombine.low %v355_v0, %v359_v1  ;;  %v383_v25 = vld [vmem:[%s3648_s6 + $0x2e8] sm:$0xff] }
  0x33   : > { %3175 = vmatpush3.bf16.msra.mxu0 %v3457_v58  ;;  %v3481_v58 = vld [vmem:[%s4552_s1 + $0x100] sm:$0xff]  }
  0x34   : > { %3287 = vmatpush3.bf16.msra.mxu1 %v3459_v61  ;;  %3176 = vmatprep.subr.bf16.mxu0 %v3460_v2  ;;  %v3482_v60 = vld [vmem:[%s4552_s1 + $0x1c0] sm:$0xff]   ;;  %v2807_v2 = vcombine.low %v346_v50, %v350_v51 }
  0x35   : > { %3288 = vmatprep.subr.bf16.mxu1 %v3462_v7  ;;  %v3483_v61 = vld [vmem:[%s4552_s1 + $0x180] sm:$0xff]  }
  0x36   : > { %1611 = vmatmul.mubr.bf16.gmra.mxu0 %v2759_v54  ;;  %v2799_v54 = vcombine.low %v338_v35, %v342_v38  ;;  %v366_v7 = vld [vmem:[%s3648_s6 + $0x260] sm:$0xff] }
  0x37   : > { %1772 = vmatmul.mubr.bf16.gmra.mxu1 %v2761_v56  ;;  %1618 = vmatprep.mubr.bf16.mxu0 %v2768_v57  ;;  %v2801_v56 = vcombine.low %v339_v40, %v343_v41  ;;  %v2808_v57 = vcombine.high %v346_v50, %v350_v51  ;;  %v394_v38 = vld [vmem:[%s3648_s6 + $0x340] sm:$0xff]  ;;  %v395_v40 = vld [vmem:[%s3648_s6 + $0x348] sm:$0xff] }
  0x38   : > { %1779 = vmatprep.mubr.bf16.mxu1 %v2770_v59  ;;  %3177 = vmatpush3.bf16.msra.mxu0 %v3461_v4  ;;  %v2810_v59 = vcombine.high %v347_v52, %v351_v53  ;;  %v2816_v4 = vcombine.high %v354_v62, %v358_v63  ;;  %v399_v41 = vld [vmem:[%s3648_s6 + $0x368] sm:$0xff]  ;;  %v292_v62 = vld [vmem:[%s3648_s6 + $0x10] sm:$0xff] }
  0x39   : > { %3289 = vmatpush3.bf16.msra.mxu1 %v3463_v9  ;;  %3178 = vmatprep.subr.bf16.mxu0 %v3464_v14  ;;  %v367_v9 = vld [vmem:[%s3648_s6 + $0x268] sm:$0xff]  ;;  %v370_v14 = vld [vmem:[%s3648_s6 + $0x280] sm:$0xff]  ;;  %v2857_v51 = vcombine.low %v395_v40, %v399_v41  ;;  %v296_v63 = vld [vmem:[%s3648_s6 + $0x30] sm:$0xff] }
  0x3a   : > { %3290 = vmatprep.subr.bf16.mxu1 %v3466_v17  ;;  %v375_v17 = vld [vmem:[%s3648_s6 + $0x2a8] sm:$0xff] }
  0x3c   : > { %3179 = vmatpush3.bf16.msra.mxu0 %v3465_v15  ;;  %v374_v15 = vld [vmem:[%s3648_s6 + $0x2a0] sm:$0xff] }
  0x3d   : > { %3291 = vmatpush3.bf16.msra.mxu1 %v3467_v20  ;;  %3180 = vmatprep.subr.bf16.mxu0 %v3468_v24  ;;  %v2832_v20 = vcombine.high %v370_v14, %v374_v15  ;;  %v379_v24 = vld [vmem:[%s3648_s6 + $0x2c8] sm:$0xff]  ;;  %v2831_v26 = vcombine.low %v370_v14, %v374_v15  ;;  %v308_v14 = vld [vmem:[%s3648_s6 + $0x90] sm:$0xff] }
  0x3e   : > { %1619 = vmatmul.mubr.bf16.gmra.mxu0 %v2767_v3  ;;  %3292 = vmatprep.subr.bf16.mxu1 %v3470_v28  ;;  %v2809_v3 = vcombine.low %v347_v52, %v351_v53  ;;  %v2840_v28 = vcombine.high %v378_v22, %v382_v23  ;;  %v2841_v35 = vcombine.low %v379_v24, %v383_v25  ;;  %v312_v15 = vld [vmem:[%s3648_s6 + $0xb0] sm:$0xff] }
  0x3f   : > { %1780 = vmatmul.mubr.bf16.gmra.mxu1 %v2769_v5  ;;  %1626 = vmatprep.mubr.bf16.mxu0 %v2776_v6  ;;  %v2818_v5 = vcombine.high %v355_v0, %v359_v1  ;;  %v362_v6 = vld [vmem:[%s3648_s6 + $0x240] sm:$0xff]  ;;  %v293_v0 = vld [vmem:[%s3648_s6 + $0x18] sm:$0xff] }
  0x40   : > { %1787 = vmatprep.mubr.bf16.mxu1 %v2778_v8  ;;  %3181 = vmatpush3.bf16.msra.mxu0 %v3469_v27  ;;  %v363_v8 = vld [vmem:[%s3648_s6 + $0x248] sm:$0xff]  ;;  %v2824_v12 = vcombine.high %v362_v6, %v366_v7  ;;  %v297_v1 = vld [vmem:[%s3648_s6 + $0x38] sm:$0xff] }
  0x41   : > { %3293 = vmatpush3.bf16.msra.mxu1 %v3471_v29  ;;  %3182 = vmatprep.subr.bf16.mxu0 %v3472_v34  ;;  %v2826_v13 = vcombine.high %v363_v8, %v367_v9  ;;  %v2842_v29 = vcombine.high %v379_v24, %v383_v25  ;;  %v2839_v34 = vcombine.low %v378_v22, %v382_v23  ;;  %v316_v22 = vld [vmem:[%s3648_s6 + $0xd0] sm:$0xff]  ;;  %v317_v24 = vld [vmem:[%s3648_s6 + $0xd8] sm:$0xff] }
  0x42   : > { %3294 = vmatprep.subr.bf16.mxu1 %v3474_v37  ;;  %v320_v23 = vld [vmem:[%s3648_s6 + $0xf0] sm:$0xff]  ;;  %v321_v25 = vld [vmem:[%s3648_s6 + $0xf8] sm:$0xff] }
  0x44   : > { %3183 = vmatpush3.bf16.msra.mxu0 %v3473_v36 }
  0x45   : > { %3295 = vmatpush3.bf16.msra.mxu1 %v3475_v39  ;;  %3184 = vmatprep.subr.bf16.mxu0 %v3476_v46  ;;  %v398_v39 = vld [vmem:[%s3648_s6 + $0x360] sm:$0xff] }
  0x46   : > { %1627 = vmatmul.mubr.bf16.gmra.mxu0 %v2775_v16  ;;  %3296 = vmatprep.subr.bf16.mxu1 %v3478_v48  ;;  %v371_v16 = vld [vmem:[%s3648_s6 + $0x288] sm:$0xff]  ;;  %v402_v46 = vld [vmem:[%s3648_s6 + $0x380] sm:$0xff]  ;;  %v2855_v50 = vcombine.low %v394_v38, %v398_v39 }
  0x47   : > { %1788 = vmatmul.mubr.bf16.gmra.mxu1 %v2777_v18  ;;  %1634 = vmatprep.mubr.bf16.mxu0 %v2784_v19  ;;  %v2823_v18 = vcombine.low %v362_v6, %v366_v7  ;;  %v2825_v19 = vcombine.low %v363_v8, %v367_v9  ;;  %v2833_v27 = vcombine.low %v371_v16, %v375_v17  ;;  %v403_v48 = vld [vmem:[%s3648_s6 + $0x388] sm:$0xff]  ;;  %v300_v6 = vld [vmem:[%s3648_s6 + $0x50] sm:$0xff]  ;;  %v301_v8 = vld [vmem:[%s3648_s6 + $0x58] sm:$0xff] }
  0x48   : > { %1795 = vmatprep.mubr.bf16.mxu1 %v2786_v21  ;;  %3185 = vmatpush3.bf16.msra.mxu0 %v3477_v47  ;;  %v2834_v21 = vcombine.high %v371_v16, %v375_v17  ;;  %v406_v47 = vld [vmem:[%s3648_s6 + $0x3a0] sm:$0xff]  ;;  %v304_v7 = vld [vmem:[%s3648_s6 + $0x70] sm:$0xff]  ;;  %v305_v9 = vld [vmem:[%s3648_s6 + $0x78] sm:$0xff] }
  0x49   : > { %3297 = vmatpush3.bf16.msra.mxu1 %v3479_v49  ;;  %3186 = vmatprep.subr.bf16.mxu0 %v3480_v55  ;;  %v407_v49 = vld [vmem:[%s3648_s6 + $0x3a8] sm:$0xff]  ;;  %v2864_v52 = vcombine.high %v402_v46, %v406_v47  ;;  %v414_v55 = vld [vmem:[%s3648_s6 + $0x3e0] sm:$0xff]  ;;  %v309_v16 = vld [vmem:[%s3648_s6 + $0x98] sm:$0xff] }
  0x4a   : > { %3298 = vmatprep.subr.bf16.mxu1 %v3482_v60  ;;  %v2866_v53 = vcombine.high %v403_v48, %v407_v49  ;;  %v313_v17 = vld [vmem:[%s3648_s6 + $0xb8] sm:$0xff] }
  0x4c   : > { %3187 = vmatpush3.bf16.msra.mxu0 %v3481_v58  ;;  %v2863_v58 = vcombine.low %v402_v46, %v406_v47  ;;  %v340_v46 = vld [vmem:[%s3648_s6 + $0x190] sm:$0xff] }
  0x4d   : > { %3299 = vmatpush3.bf16.msra.mxu1 %v3483_v61  ;;  %v344_v47 = vld [vmem:[%s3648_s6 + $0x1b0] sm:$0xff] }
  0x4e   : > { %1635 = vmatmul.mubr.bf16.gmra.mxu0 %v2783_v30  ;;  %v386_v30 = vld [vmem:[%s3648_s6 + $0x300] sm:$0xff] }
  0x4f   : > { %1796 = vmatmul.mubr.bf16.gmra.mxu1 %v2785_v31  ;;  %1642 = vmatprep.mubr.bf16.mxu0 %v2792_v32  ;;  %v390_v31 = vld [vmem:[%s3648_s6 + $0x320] sm:$0xff]  ;;  %v387_v32 = vld [vmem:[%s3648_s6 + $0x308] sm:$0xff] }
  0x50   : > { %1803 = vmatprep.mubr.bf16.mxu1 %v2794_v33  ;;  %v391_v33 = vld [vmem:[%s3648_s6 + $0x328] sm:$0xff]  ;;  %v2848_v36 = vcombine.high %v386_v30, %v390_v31 }
  0x51   : > { %v2850_v37 = vcombine.high %v387_v32, %v391_v33 }
  0x56   : > { %1643 = vmatmul.mubr.bf16.gmra.mxu0 %v2791_v42  ;;  %v2847_v42 = vcombine.low %v386_v30, %v390_v31  ;;  %v324_v30 = vld [vmem:[%s3648_s6 + $0x110] sm:$0xff] }
  0x57   : > { %1804 = vmatmul.mubr.bf16.gmra.mxu1 %v2793_v43  ;;  %1650 = vmatprep.mubr.bf16.mxu0 %v2800_v44  ;;  %v2849_v43 = vcombine.low %v387_v32, %v391_v33  ;;  %v2856_v44 = vcombine.high %v394_v38, %v398_v39  ;;  %v328_v31 = vld [vmem:[%s3648_s6 + $0x130] sm:$0xff]  ;;  %v325_v32 = vld [vmem:[%s3648_s6 + $0x118] sm:$0xff] }
  0x58   : > { %1811 = vmatprep.mubr.bf16.mxu1 %v2802_v45  ;;  %v2858_v45 = vcombine.high %v395_v40, %v399_v41  ;;  %v329_v33 = vld [vmem:[%s3648_s6 + $0x138] sm:$0xff]  ;;  %v332_v38 = vld [vmem:[%s3648_s6 + $0x150] sm:$0xff] }
  0x59   : > { %v336_v39 = vld [vmem:[%s3648_s6 + $0x170] sm:$0xff]  ;;  %v333_v40 = vld [vmem:[%s3648_s6 + $0x158] sm:$0xff] }
  0x5a   : > { %v337_v41 = vld [vmem:[%s3648_s6 + $0x178] sm:$0xff] }
  0x5e   : > { %1651 = vmatmul.mubr.bf16.gmra.mxu0 %v2799_v54  ;;  %v410_v54 = vld [vmem:[%s3648_s6 + $0x3c0] sm:$0xff] }
  0x5f   : > { %1812 = vmatmul.mubr.bf16.gmra.mxu1 %v2801_v56  ;;  %1658 = vmatprep.mubr.bf16.mxu0 %v2808_v57  ;;  %v411_v56 = vld [vmem:[%s3648_s6 + $0x3c8] sm:$0xff]  ;;  %v2872_v60 = vcombine.high %v410_v54, %v414_v55 }
  0x60   : > { %1819 = vmatprep.mubr.bf16.mxu1 %v2810_v59  ;;  %v415_v57 = vld [vmem:[%s3648_s6 + $0x3e8] sm:$0xff]  ;;  %v2865_v59 = vcombine.low %v403_v48, %v407_v49  ;;  %v341_v48 = vld [vmem:[%s3648_s6 + $0x198] sm:$0xff] }
  0x61   : > { %v2874_v61 = vcombine.high %v411_v56, %v415_v57  ;;  %v345_v49 = vld [vmem:[%s3648_s6 + $0x1b8] sm:$0xff] }
  0x66   : > { %1659 = vmatmul.mubr.bf16.gmra.mxu0 %v2807_v2  ;;  %v2871_v2 = vcombine.low %v410_v54, %v414_v55  ;;  %v348_v54 = vld [vmem:[%s3648_s6 + $0x1d0] sm:$0xff] }
  0x67   : > { %1820 = vmatmul.mubr.bf16.gmra.mxu1 %v2809_v3  ;;  %1666 = vmatprep.mubr.bf16.mxu0 %v2816_v4  ;;  %v2873_v3 = vcombine.low %v411_v56, %v415_v57  ;;  %v2756_v4 = vcombine.high %v292_v62, %v296_v63  ;;  %v352_v55 = vld [vmem:[%s3648_s6 + $0x1f0] sm:$0xff]  ;;  %v349_v56 = vld [vmem:[%s3648_s6 + $0x1d8] sm:$0xff] }
  0x68   : > { %1827 = vmatprep.mubr.bf16.mxu1 %v2818_v5  ;;  %v2758_v5 = vcombine.high %v293_v0, %v297_v1  ;;  %v353_v57 = vld [vmem:[%s3648_s6 + $0x1f8] sm:$0xff] }
  0x6e   : > { %1667 = vmatmul.mubr.bf16.gmra.mxu0 %v2815_v10  ;;  %v2755_v10 = vcombine.low %v292_v62, %v296_v63  ;;  %v356_v62 = vld [vmem:[%s3648_s6 + $0x210] sm:$0xff] }
  0x6f   : > { %1828 = vmatmul.mubr.bf16.gmra.mxu1 %v2817_v11  ;;  %1674 = vmatprep.mubr.bf16.mxu0 %v2824_v12  ;;  %v2757_v11 = vcombine.low %v293_v0, %v297_v1  ;;  %v2764_v12 = vcombine.high %v300_v6, %v304_v7  ;;  %v360_v63 = vld [vmem:[%s3648_s6 + $0x230] sm:$0xff]  ;;  %v357_v0 = vld [vmem:[%s3648_s6 + $0x218] sm:$0xff] }
  0x70   : > { %1835 = vmatprep.mubr.bf16.mxu1 %v2826_v13  ;;  %v2766_v13 = vcombine.high %v301_v8, %v305_v9  ;;  %v361_v1 = vld [vmem:[%s3648_s6 + $0x238] sm:$0xff] }
  0x76   : > { %1675 = vmatmul.mubr.bf16.gmra.mxu0 %v2823_v18  ;;  %v2763_v18 = vcombine.low %v300_v6, %v304_v7  ;;  %v364_v6 = vld [vmem:[%s3648_s6 + $0x250] sm:$0xff] }
  0x77   : > { %1836 = vmatmul.mubr.bf16.gmra.mxu1 %v2825_v19  ;;  %1682 = vmatprep.mubr.bf16.mxu0 %v2832_v20  ;;  %v2765_v19 = vcombine.low %v301_v8, %v305_v9  ;;  %v2772_v20 = vcombine.high %v308_v14, %v312_v15  ;;  %v368_v7 = vld [vmem:[%s3648_s6 + $0x270] sm:$0xff]  ;;  %v365_v8 = vld [vmem:[%s3648_s6 + $0x258] sm:$0xff] }
  0x78   : > { %1843 = vmatprep.mubr.bf16.mxu1 %v2834_v21  ;;  %v2774_v21 = vcombine.high %v309_v16, %v313_v17  ;;  %v369_v9 = vld [vmem:[%s3648_s6 + $0x278] sm:$0xff] }
  0x7e   : > { %1683 = vmatmul.mubr.bf16.gmra.mxu0 %v2831_v26  ;;  %v2771_v26 = vcombine.low %v308_v14, %v312_v15 }
  0x7f   : > { %1844 = vmatmul.mubr.bf16.gmra.mxu1 %v2833_v27  ;;  %1690 = vmatprep.mubr.bf16.mxu0 %v2840_v28  ;;  %v2773_v27 = vcombine.low %v309_v16, %v313_v17  ;;  %v2780_v28 = vcombine.high %v316_v22, %v320_v23  ;;  %v372_v17 = vld [vmem:[%s3648_s6 + $0x290] sm:$0xff] }
  0x80   : > { %1851 = vmatprep.mubr.bf16.mxu1 %v2842_v29  ;;  %v2782_v29 = vcombine.high %v317_v24, %v321_v25 }
  0x86   : > { %1691 = vmatmul.mubr.bf16.gmra.mxu0 %v2839_v34  ;;  %v2779_v34 = vcombine.low %v316_v22, %v320_v23  ;;  %v377_v22 = vld [vmem:[%s3648_s6 + $0x2b8] sm:$0xff] }
  0x87   : > { %1852 = vmatmul.mubr.bf16.gmra.mxu1 %v2841_v35  ;;  %1698 = vmatprep.mubr.bf16.mxu0 %v2848_v36  ;;  %v2781_v35 = vcombine.low %v317_v24, %v321_v25  ;;  %v2788_v36 = vcombine.high %v324_v30, %v328_v31  ;;  %v2827_v25 = vcombine.low %v364_v6, %v368_v7 }
  0x88   : > { %1859 = vmatprep.mubr.bf16.mxu1 %v2850_v37  ;;  %v2790_v37 = vcombine.high %v325_v32, %v329_v33 }
  0x8e   : > { %1699 = vmatmul.mubr.bf16.gmra.mxu0 %v2847_v42  ;;  %v2787_v42 = vcombine.low %v324_v30, %v328_v31 }
  0x8f   : > { %1860 = vmatmul.mubr.bf16.gmra.mxu1 %v2849_v43  ;;  %1706 = vmatprep.mubr.bf16.mxu0 %v2856_v44  ;;  %v2789_v43 = vcombine.low %v325_v32, %v329_v33  ;;  %v2796_v44 = vcombine.high %v332_v38, %v336_v39 }
  0x90   : > { %1867 = vmatprep.mubr.bf16.mxu1 %v2858_v45  ;;  %v2798_v45 = vcombine.high %v333_v40, %v337_v41 }
  0x96   : > { %1707 = vmatmul.mubr.bf16.gmra.mxu0 %v2855_v50  ;;  %v2795_v50 = vcombine.low %v332_v38, %v336_v39  ;;  %v380_v39 = vld [vmem:[%s3648_s6 + $0x2d0] sm:$0xff] }
  0x97   : > { %1868 = vmatmul.mubr.bf16.gmra.mxu1 %v2857_v51  ;;  %1714 = vmatprep.mubr.bf16.mxu0 %v2864_v52  ;;  %v2797_v51 = vcombine.low %v333_v40, %v337_v41  ;;  %v2804_v52 = vcombine.high %v340_v46, %v344_v47  ;;  %v384_v40 = vld [vmem:[%s3648_s6 + $0x2f0] sm:$0xff] }
  0x98   : > { %1875 = vmatprep.mubr.bf16.mxu1 %v2866_v53  ;;  %v2806_v53 = vcombine.high %v341_v48, %v345_v49 }
  0x9e   : > { %1715 = vmatmul.mubr.bf16.gmra.mxu0 %v2863_v58  ;;  %v2803_v58 = vcombine.low %v340_v46, %v344_v47 }
  0x9f   : > { %1876 = vmatmul.mubr.bf16.gmra.mxu1 %v2865_v59  ;;  %1722 = vmatprep.mubr.bf16.mxu0 %v2872_v60  ;;  %v2805_v59 = vcombine.low %v341_v48, %v345_v49  ;;  %v2812_v60 = vcombine.high %v348_v54, %v352_v55 }
  0xa0   : > { %1883 = vmatprep.mubr.bf16.mxu1 %v2874_v61  ;;  %v2814_v61 = vcombine.high %v349_v56, %v353_v57 }
  0xa6   : > { %1723 = vmatmul.mubr.bf16.gmra.mxu0 %v2871_v2  ;;  %v2811_v2 = vcombine.low %v348_v54, %v352_v55 }
  0xa7   : > { %1884 = vmatmul.mubr.bf16.gmra.mxu1 %v2873_v3  ;;  %1924 = vmatprep.mubr.bf16.mxu0 %v2756_v4  ;;  %v2813_v3 = vcombine.low %v349_v56, %v353_v57  ;;  %v2820_v4 = vcombine.high %v356_v62, %v360_v63 }
  0xa8   : > { %2085 = vmatprep.mubr.bf16.mxu1 %v2758_v5  ;;  %v2822_v5 = vcombine.high %v357_v0, %v361_v1 }
  0xae   : > { %1925 = vmatmul.mubr.bf16.vlgmr.msra.gmra.mxu0 %v2755_v10  ;;  %v2819_v10 = vcombine.low %v356_v62, %v360_v63  ;;  %v392_v62 = vld [vmem:[%s3648_s6 + $0x330] sm:$0xff] }
  0xaf   : > { %2086 = vmatmul.mubr.bf16.vlgmr.msra.gmra.mxu1 %v2757_v11  ;;  %1932 = vmatprep.mubr.bf16.mxu0 %v2764_v12  ;;  %v2821_v11 = vcombine.low %v357_v0, %v361_v1  ;;  %v2828_v12 = vcombine.high %v364_v6, %v368_v7  ;;  %v389_v1 = vld [vmem:[%s3648_s6 + $0x318] sm:$0xff] }
  0xb0   : > { %2093 = vmatprep.mubr.bf16.mxu1 %v2766_v13  ;;  %v2830_v13 = vcombine.high %v365_v8, %v369_v9 }
  0xb6   : > { %1933 = vmatmul.mubr.bf16.gmra.mxu0 %v2763_v18  ;;  %v376_v18 = vld [vmem:[%s3648_s6 + $0x2b0] sm:$0xff] }
  0xb7   : > { %2094 = vmatmul.mubr.bf16.gmra.mxu1 %v2765_v19  ;;  %1940 = vmatprep.mubr.bf16.mxu0 %v2772_v20  ;;  %v2835_v47 = vcombine.low %v372_v17, %v376_v18 }
  0xb8   : > { %2101 = vmatprep.mubr.bf16.mxu1 %v2774_v21  ;;  %v373_v21 = vld [vmem:[%s3648_s6 + $0x298] sm:$0xff] }
  0xb9   : > { %v2838_v31 = vcombine.high %v373_v21, %v377_v22  ;;  %v2837_v49 = vcombine.low %v373_v21, %v377_v22 }
  0xbe   : > { %1941 = vmatmul.mubr.bf16.gmra.mxu0 %v2771_v26 }
  0xbf   : > { %2102 = vmatmul.mubr.bf16.gmra.mxu1 %v2773_v27  ;;  %1948 = vmatprep.mubr.bf16.mxu0 %v2780_v28  ;;  %v2829_v27 = vcombine.low %v365_v8, %v369_v9  ;;  %v2836_v28 = vcombine.high %v372_v17, %v376_v18 }
  0xc0   : > { %2109 = vmatprep.mubr.bf16.mxu1 %v2782_v29 }
  0xc6   : > { %1949 = vmatmul.mubr.bf16.gmra.mxu0 %v2779_v34 }
  0xc7   : > { %2110 = vmatmul.mubr.bf16.gmra.mxu1 %v2781_v35  ;;  %1956 = vmatprep.mubr.bf16.mxu0 %v2788_v36 }
  0xc8   : > { %2117 = vmatprep.mubr.bf16.mxu1 %v2790_v37 }
  0xce   : > { %1957 = vmatmul.mubr.bf16.gmra.mxu0 %v2787_v42 }
  0xcf   : > { %2118 = vmatmul.mubr.bf16.gmra.mxu1 %v2789_v43  ;;  %1964 = vmatprep.mubr.bf16.mxu0 %v2796_v44  ;;  %v381_v43 = vld [vmem:[%s3648_s6 + $0x2d8] sm:$0xff] }
  0xd0   : > { %2125 = vmatprep.mubr.bf16.mxu1 %v2798_v45  ;;  %v385_v44 = vld [vmem:[%s3648_s6 + $0x2f8] sm:$0xff] }
  0xd1   : > { %v2845_v7 = vcombine.low %v381_v43, %v385_v44 }
  0xd6   : > { %1965 = vmatmul.mubr.bf16.gmra.mxu0 %v2795_v50  ;;  %v2844_v50 = vcombine.high %v380_v39, %v384_v40 }
  0xd7   : > { %2126 = vmatmul.mubr.bf16.gmra.mxu1 %v2797_v51  ;;  %1972 = vmatprep.mubr.bf16.mxu0 %v2804_v52 }
  0xd8   : > { %2133 = vmatprep.mubr.bf16.mxu1 %v2806_v53  ;;  %v2846_v53 = vcombine.high %v381_v43, %v385_v44  ;;  %v404_v43 = vld [vmem:[%s3648_s6 + $0x390] sm:$0xff] }
  0xd9   : > { %v408_v44 = vld [vmem:[%s3648_s6 + $0x3b0] sm:$0xff] }
  0xde   : > { %1973 = vmatmul.mubr.bf16.gmra.mxu0 %v2803_v58 }
  0xdf   : > { %2134 = vmatmul.mubr.bf16.gmra.mxu1 %v2805_v59  ;;  %1980 = vmatprep.mubr.bf16.mxu0 %v2812_v60 }
  0xe0   : > { %2141 = vmatprep.mubr.bf16.mxu1 %v2814_v61  ;;  %v388_v61 = vld [vmem:[%s3648_s6 + $0x310] sm:$0xff] }
  0xe1   : > { %v2852_v8 = vcombine.high %v388_v61, %v392_v62 }
  0xe6   : > { %1981 = vmatmul.mubr.bf16.gmra.mxu0 %v2811_v2  ;;  %v393_v2 = vld [vmem:[%s3648_s6 + $0x338] sm:$0xff] }
  0xe7   : > { %2142 = vmatmul.mubr.bf16.gmra.mxu1 %v2813_v3  ;;  %1988 = vmatprep.mubr.bf16.mxu0 %v2820_v4 }
  0xe8   : > { %2149 = vmatprep.mubr.bf16.mxu1 %v2822_v5  ;;  %v2843_v5 = vcombine.low %v380_v39, %v384_v40 }
  0xee   : > { %v2964_v14 = vpop.f32.mrf.mxu0  ;;  %1989 = vmatmul.mubr.bf16.gmra.mxu0 %v2819_v10 }
  0xef   : > { %v3076_v15 = vpop.f32.mrf.mxu1  ;;  %2150 = vmatmul.mubr.bf16.gmra.mxu1 %v2821_v11  ;;  %1996 = vmatprep.mubr.bf16.mxu0 %v2828_v12  ;;  %v2854_v11 = vcombine.high %v389_v1, %v393_v2 }
  0xf0   : > { %v2965_v16 = vpop.f32.mrf.mxu0  ;;  %2157 = vmatprep.mubr.bf16.mxu1 %v2830_v13 }
  0xf1   : > { %v2966_v19 = vadd.f32 %v2965_v16, %v2964_v14  ;;  %v3077_v20 = vpop.f32.mrf.mxu1 }
  0xf2   : > { %v3078_v23 = vadd.f32 %v3077_v20, %v3076_v15  ;;  %v2967_v24 = vpop.f32.mrf.mxu0  ;;  %v400_v20 = vld [vmem:[%s3648_s6 + $0x370] sm:$0xff] }
  0xf3   : > { %v3079_v26 = vpop.f32.mrf.mxu1 }
  0xf4   : > { %v3860_v29 = vadd.f32 %v3078_v23, %v2966_v19  ;;  %v2968_v30 = vpop.f32.mrf.mxu0  ;;  %v396_v19 = vld [vmem:[%s3648_s6 + $0x350] sm:$0xff]  ;;  %v397_v23 = vld [vmem:[%s3648_s6 + $0x358] sm:$0xff] }
  0xf5   : > { %v2969_v32 = vadd.f32 %v2968_v30, %v2967_v24  ;;  %v3080_v33 = vpop.f32.mrf.mxu1  ;;  %v401_v24 = vld [vmem:[%s3648_s6 + $0x378] sm:$0xff]  ;;  %v2853_v30 = vcombine.low %v389_v1, %v393_v2 }
  0xf6   : > { %v3081_v34 = vadd.f32 %v3080_v33, %v3079_v26  ;;  %v2970_v35 = vpop.f32.mrf.mxu0  ;;  %1997 = vmatmul.mubr.bf16.gmra.mxu0 %v2827_v25 }
  0xf7   : > { %v3082_v36 = vpop.f32.mrf.mxu1  ;;  %2158 = vmatmul.mubr.bf16.gmra.mxu1 %v2829_v27  ;;  %2004 = vmatprep.mubr.bf16.mxu0 %v2836_v28  ;;  %v2851_v27 = vcombine.low %v388_v61, %v392_v62 }
  0xf8   : > { %v3862_v37 = vadd.f32 %v3081_v34, %v2969_v32  ;;  %v2971_v38 = vpop.f32.mrf.mxu0  ;;  %2165 = vmatprep.mubr.bf16.mxu1 %v2838_v31  ;;  %v2860_v31 = vcombine.high %v396_v19, %v400_v20  ;;  %v2862_v34 = vcombine.high %v397_v23, %v401_v24 }
  0xf9   : > { %v2972_v41 = vadd.f32 %v2971_v38, %v2970_v35  ;;  %v3083_v42 = vpop.f32.mrf.mxu1 }
  0xfa   : > { %v3084_v45 = vadd.f32 %v3083_v42, %v3082_v36  ;;  %v2973_v46 = vpop.f32.mrf.mxu0 }
  0xfb   : > { %v3085_v48 = vpop.f32.mrf.mxu1 }
  0xfc   : > { %v3868_v51 = vadd.f32 %v3084_v45, %v2972_v41  ;;  %v2974_v52 = vpop.f32.mrf.mxu0 }
  0xfd   : > { %v2975_v54 = vadd.f32 %v2974_v52, %v2973_v46  ;;  %v3086_v55 = vpop.f32.mrf.mxu1  ;;  %v2859_v52 = vcombine.low %v396_v19, %v400_v20 }
  0xfe   : > { %v3087_v56 = vadd.f32 %v3086_v55, %v3085_v48  ;;  %v2976_v57 = vpop.f32.mrf.mxu0  ;;  %2005 = vmatmul.mubr.bf16.gmra.mxu0 %v2835_v47  ;;  %v405_v47 = vld [vmem:[%s3648_s6 + $0x398] sm:$0xff]  ;;  %v2868_v55 = vcombine.high %v404_v43, %v408_v44 }
  0xff   : > { %v3088_v58 = vpop.f32.mrf.mxu1  ;;  %2166 = vmatmul.mubr.bf16.gmra.mxu1 %v2837_v49  ;;  %2012 = vmatprep.mubr.bf16.mxu0 %v2844_v50  ;;  %v409_v48 = vld [vmem:[%s3648_s6 + $0x3b8] sm:$0xff] }
 0x100   : > { %v3870_v59 = vadd.f32 %v3087_v56, %v2975_v54  ;;  %v2977_v60 = vpop.f32.mrf.mxu0  ;;  %2173 = vmatprep.mubr.bf16.mxu1 %v2846_v53  ;;  %v2861_v54 = vcombine.low %v397_v23, %v401_v24 }
 0x101   : > { %v2978_v63 = vadd.f32 %v2977_v60, %v2976_v57  ;;  %v3089_v0 = vpop.f32.mrf.mxu1 }
 0x102   : > { %v3090_v3 = vadd.f32 %v3089_v0, %v3088_v58  ;;  %v2979_v4 = vpop.f32.mrf.mxu0  ;;  %v2870_v58 = vcombine.high %v405_v47, %v409_v48 }
 0x103   : > { %v3091_v6 = vpop.f32.mrf.mxu1 }
 0x104   : > { %v3876_v9 = vadd.f32 %v3090_v3, %v2978_v63  ;;  %v2980_v10 = vpop.f32.mrf.mxu0  ;;  %v412_v3 = vld [vmem:[%s3648_s6 + $0x3d0] sm:$0xff] }
 0x105   : > { %v2981_v12 = vadd.f32 %v2980_v10, %v2979_v4  ;;  %v3092_v13 = vpop.f32.mrf.mxu1  ;;  %v416_v4 = vld [vmem:[%s3648_s6 + $0x3f0] sm:$0xff] }
 0x106   : > { %v3093_v14 = vadd.f32 %v3092_v13, %v3091_v6  ;;  %v2982_v15 = vpop.f32.mrf.mxu0  ;;  %2013 = vmatmul.mubr.bf16.gmra.mxu0 %v2843_v5 }
 0x107   : > { %v3094_v16 = vpop.f32.mrf.mxu1  ;;  %2174 = vmatmul.mubr.bf16.gmra.mxu1 %v2845_v7  ;;  %2020 = vmatprep.mubr.bf16.mxu0 %v2852_v8  ;;  %v413_v7 = vld [vmem:[%s3648_s6 + $0x3d8] sm:$0xff] }
 0x108   : > { %v3878_v17 = vadd.f32 %v3093_v14, %v2981_v12  ;;  %v2983_v18 = vpop.f32.mrf.mxu0  ;;  %2181 = vmatprep.mubr.bf16.mxu1 %v2854_v11  ;;  %v417_v8 = vld [vmem:[%s3648_s6 + $0x3f8] sm:$0xff]  ;;  %v2867_v12 = vcombine.low %v404_v43, %v408_v44  ;;  %v2869_v14 = vcombine.low %v405_v47, %v409_v48 }
 0x109   : > { %v2984_v21 = vadd.f32 %v2983_v18, %v2982_v15  ;;  %v3095_v22 = vpop.f32.mrf.mxu1  ;;  %v2876_v15 = vcombine.high %v412_v3, %v416_v4  ;;  %v2878_v19 = vcombine.high %v413_v7, %v417_v8 }
 0x10a   : > { %v3096_v25 = vadd.f32 %v3095_v22, %v3094_v16  ;;  %v2985_v26 = vpop.f32.mrf.mxu0 }
 0x10b   : > { %v3097_v28 = vpop.f32.mrf.mxu1 }
 0x10c   : > { %v3884_v32 = vadd.f32 %v3096_v25, %v2984_v21  ;;  %v2986_v33 = vpop.f32.mrf.mxu0 }
 0x10d   : > { %v2987_v35 = vadd.f32 %v2986_v33, %v2985_v26  ;;  %v3098_v36 = vpop.f32.mrf.mxu1  ;;  %v2875_v33 = vcombine.low %v412_v3, %v416_v4 }
 0x10e   : > { %v3099_v38 = vadd.f32 %v3098_v36, %v3097_v28  ;;  %v2988_v39 = vpop.f32.mrf.mxu0  ;;  %2021 = vmatmul.mubr.bf16.gmra.mxu0 %v2851_v27 }
 0x10f   : > { %v3100_v40 = vpop.f32.mrf.mxu1  ;;  %2182 = vmatmul.mubr.bf16.gmra.mxu1 %v2853_v30  ;;  %2028 = vmatprep.mubr.bf16.mxu0 %v2860_v31 }
 0x110   : > { %v3886_v41 = vadd.f32 %v3099_v38, %v2987_v35  ;;  %v2989_v42 = vpop.f32.mrf.mxu0  ;;  %2189 = vmatprep.mubr.bf16.mxu1 %v2862_v34  ;;  %v2877_v35 = vcombine.low %v413_v7, %v417_v8 }
 0x111   : > { %v2990_v45 = vadd.f32 %v2989_v42, %v2988_v39  ;;  %v3101_v46 = vpop.f32.mrf.mxu1 }
 0x112   : > { %v3102_v49 = vadd.f32 %v3101_v46, %v3100_v40  ;;  %v2991_v50 = vpop.f32.mrf.mxu0 }
 0x113   : > { %v3103_v53 = vpop.f32.mrf.mxu1 }
 0x114   : > { %v3892_v56 = vadd.f32 %v3102_v49, %v2990_v45  ;;  %v2992_v57 = vpop.f32.mrf.mxu0 }
 0x115   : > { %v2993_v60 = vadd.f32 %v2992_v57, %v2991_v50  ;;  %v3104_v61 = vpop.f32.mrf.mxu1 }
 0x116   : > { %v3105_v62 = vadd.f32 %v3104_v61, %v3103_v53  ;;  %v2994_v63 = vpop.f32.mrf.mxu0  ;;  %2029 = vmatmul.mubr.bf16.gmra.mxu0 %v2859_v52 }
 0x117   : > { %v3106_v0 = vpop.f32.mrf.mxu1  ;;  %2190 = vmatmul.mubr.bf16.gmra.mxu1 %v2861_v54  ;;  %2036 = vmatprep.mubr.bf16.mxu0 %v2868_v55 }
 0x118   : > { %v3894_v1 = vadd.f32 %v3105_v62, %v2993_v60  ;;  %v2995_v2 = vpop.f32.mrf.mxu0  ;;  %2197 = vmatprep.mubr.bf16.mxu1 %v2870_v58 }
 0x119   : > { %v2996_v5 = vadd.f32 %v2995_v2, %v2994_v63  ;;  %v3107_v6 = vpop.f32.mrf.mxu1 }
 0x11a   : > { %v3108_v10 = vadd.f32 %v3107_v6, %v3106_v0  ;;  %v2997_v11 = vpop.f32.mrf.mxu0 }
 0x11b   : > { %v3109_v13 = vpop.f32.mrf.mxu1 }
 0x11c   : > { %v3900_v16 = vadd.f32 %v3108_v10, %v2996_v5  ;;  %v2998_v18 = vpop.f32.mrf.mxu0 }
 0x11d   : > { %v2999_v20 = vadd.f32 %v2998_v18, %v2997_v11  ;;  %v3110_v21 = vpop.f32.mrf.mxu1 }
 0x11e   : > { %v3111_v22 = vadd.f32 %v3110_v21, %v3109_v13  ;;  %v3000_v23 = vpop.f32.mrf.mxu0  ;;  %2037 = vmatmul.mubr.bf16.gmra.mxu0 %v2867_v12 }
 0x11f   : > { %v3112_v24 = vpop.f32.mrf.mxu1  ;;  %2198 = vmatmul.mubr.bf16.gmra.mxu1 %v2869_v14  ;;  %2044 = vmatprep.mubr.bf16.mxu0 %v2876_v15 }
 0x120   : > { %v3902_v25 = vadd.f32 %v3111_v22, %v2999_v20  ;;  %v3001_v26 = vpop.f32.mrf.mxu0  ;;  %2205 = vmatprep.mubr.bf16.mxu1 %v2878_v19 }
 0x121   : > { %v3002_v27 = vadd.f32 %v3001_v26, %v3000_v23  ;;  %v3113_v28 = vpop.f32.mrf.mxu1 }
 0x122   : > { %v3114_v30 = vadd.f32 %v3113_v28, %v3112_v24  ;;  %v3003_v31 = vpop.f32.mrf.mxu0 }
 0x123   : > { %v3115_v34 = vpop.f32.mrf.mxu1 }
 0x124   : > { %v3904_v36 = vadd.f32 %v3114_v30, %v3002_v27  ;;  %v3004_v38 = vpop.f32.mrf.mxu0 }
 0x125   : > { %v3005_v39 = vadd.f32 %v3004_v38, %v3003_v31  ;;  %v3116_v40 = vpop.f32.mrf.mxu1 }
 0x126   : > { %v3117_v42 = vadd.f32 %v3116_v40, %v3115_v34  ;;  %v3006_v43 = vpop.f32.mrf.mxu0  ;;  %2045 = vmatmul.mubr.bf16.gmra.mxu0 %v2875_v33 }
 0x127   : > { %v3118_v44 = vpop.f32.mrf.mxu1  ;;  %2206 = vmatmul.mubr.bf16.gmra.mxu1 %v2877_v35 }
 0x128   : > { %v3906_v45 = vadd.f32 %v3117_v42, %v3005_v39  ;;  %v3007_v46 = vpop.f32.mrf.mxu0 }
 0x129   : > { %v3008_v47 = vadd.f32 %v3007_v46, %v3006_v43  ;;  %v3119_v48 = vpop.f32.mrf.mxu1 }
 0x12a   : > { %v3120_v49 = vadd.f32 %v3119_v48, %v3118_v44  ;;  %v3009_v50 = vpop.f32.mrf.mxu0 }
 0x12b   : > { %v3121_v52 = vpop.f32.mrf.mxu1 }
 0x12c   : > { %v3908_v53 = vadd.f32 %v3120_v49, %v3008_v47  ;;  %v3010_v54 = vpop.f32.mrf.mxu0 }
 0x12d   : > { %v3011_v55 = vadd.f32 %v3010_v54, %v3009_v50  ;;  %v3122_v57 = vpop.f32.mrf.mxu1 }
 0x12e   : > { %v3123_v58 = vadd.f32 %v3122_v57, %v3121_v52  ;;  %v3012_v60 = vpop.f32.mrf.mxu0 }
 0x12f   : > { %v3124_v61 = vpop.f32.mrf.mxu1 }
 0x130   : > { %v3910_v62 = vadd.f32 %v3123_v58, %v3011_v55  ;;  %v3013_v63 = vpop.f32.mrf.mxu0 }
 0x131   : > { %v3014_v0 = vadd.f32 %v3013_v63, %v3012_v60  ;;  %v3125_v2 = vpop.f32.mrf.mxu1 }
 0x132   : > { %4555 = vst [vmem:[#allocation3_spill] sm:$0xff] %v3910_v62  ;;  %v3126_v3 = vadd.f32 %v3125_v2, %v3124_v61  ;;  %v3015_v4 = vpop.f32.mrf.mxu0 }
 0x133   : > { %v3127_v5 = vpop.f32.mrf.mxu1 }
 0x134   : > { %v3912_v6 = vadd.f32 %v3126_v3, %v3014_v0  ;;  %v3016_v7 = vpop.f32.mrf.mxu0 }
 0x135   : > { %v3017_v8 = vadd.f32 %v3016_v7, %v3015_v4  ;;  %v3128_v10 = vpop.f32.mrf.mxu1 }
 0x136   : > { %4556 = vst [vmem:[#allocation4_spill] sm:$0xff] %v3912_v6  ;;  %v3129_v11 = vadd.f32 %v3128_v10, %v3127_v5  ;;  %v3018_v12 = vpop.f32.mrf.mxu0 }
 0x137   : > { %v3130_v13 = vpop.f32.mrf.mxu1 }
 0x138   : > { %v3914_v14 = vadd.f32 %v3129_v11, %v3017_v8  ;;  %v3019_v15 = vpop.f32.mrf.mxu0 }
 0x139   : > { %v3020_v18 = vadd.f32 %v3019_v15, %v3018_v12  ;;  %v3131_v19 = vpop.f32.mrf.mxu1 }
 0x13a   : > { %4557 = vst [vmem:[#allocation5_spill] sm:$0xff] %v3914_v14  ;;  %v3132_v20 = vadd.f32 %v3131_v19, %v3130_v13  ;;  %v3021_v21 = vpop.f32.mrf.mxu0 }
 0x13b   : > { %v3133_v22 = vpop.f32.mrf.mxu1 }
 0x13c   : > { %v3916_v23 = vadd.f32 %v3132_v20, %v3020_v18  ;;  %v3022_v24 = vpop.f32.mrf.mxu0 }
 0x13d   : > { %v3023_v26 = vadd.f32 %v3022_v24, %v3021_v21  ;;  %v3134_v27 = vpop.f32.mrf.mxu1 }
 0x13e   : > { %4558 = vst [vmem:[#allocation6_spill] sm:$0xff] %v3916_v23  ;;  %v3135_v28 = vadd.f32 %v3134_v27, %v3133_v22  ;;  %v3024_v30 = vpop.f32.mrf.mxu0 }
 0x13f   : > { %v3136_v31 = vpop.f32.mrf.mxu1 }
 0x140   : > { %v3918_v33 = vadd.f32 %v3135_v28, %v3023_v26  ;;  %v3025_v34 = vpop.f32.mrf.mxu0 }
 0x141   : > { %v3026_v35 = vadd.f32 %v3025_v34, %v3024_v30  ;;  %v3137_v38 = vpop.f32.mrf.mxu1 }
 0x142   : > { %4559 = vst [vmem:[#allocation7_spill] sm:$0xff] %v3918_v33  ;;  %v3138_v39 = vadd.f32 %v3137_v38, %v3136_v31  ;;  %v3027_v40 = vpop.f32.mrf.mxu0 }
 0x143   : > { %v3139_v42 = vpop.f32.mrf.mxu1 }
 0x144   : > { %v3920_v43 = vadd.f32 %v3138_v39, %v3026_v35  ;;  %v3028_v44 = vpop.f32.mrf.mxu0 }
 0x145   : > { %v3029_v46 = vadd.f32 %v3028_v44, %v3027_v40  ;;  %v3140_v47 = vpop.f32.mrf.mxu1 }
 0x146   : > { %4560 = vst [vmem:[#allocation8_spill] sm:$0xff] %v3920_v43  ;;  %v3141_v48 = vadd.f32 %v3140_v47, %v3139_v42  ;;  %v3030_v49 = vpop.f32.mrf.mxu0 }
 0x147   : > { %v3142_v50 = vpop.f32.mrf.mxu1 }
 0x148   : > { %v3922_v52 = vadd.f32 %v3141_v48, %v3029_v46  ;;  %v3031_v54 = vpop.f32.mrf.mxu0 }
 0x149   : > { %v3032_v55 = vadd.f32 %v3031_v54, %v3030_v49  ;;  %v3143_v57 = vpop.f32.mrf.mxu1 }
 0x14a   : > { %4561 = vst [vmem:[#allocation9_spill] sm:$0xff] %v3922_v52  ;;  %v3144_v58 = vadd.f32 %v3143_v57, %v3142_v50  ;;  %v3033_v60 = vpop.f32.mrf.mxu0 }
 0x14b   : > { %v3145_v61 = vpop.f32.mrf.mxu1 }
 0x14c   : > { %v3924_v63 = vadd.f32 %v3144_v58, %v3032_v55  ;;  %v3034_v0 = vpop.f32.mrf.mxu0 }
 0x14d   : > { %v3035_v2 = vadd.f32 %v3034_v0, %v3033_v60  ;;  %v3146_v3 = vpop.f32.mrf.mxu1 }
 0x14e   : > { %4562 = vst [vmem:[#allocation10_spill] sm:$0xff] %v3924_v63  ;;  %v3147_v4 = vadd.f32 %v3146_v3, %v3145_v61  ;;  %v3036_v5 = vpop.f32.mrf.mxu0 }
 0x14f   : > { %v3148_v7 = vpop.f32.mrf.mxu1 }
 0x150   : > { %v3926_v8 = vadd.f32 %v3147_v4, %v3035_v2  ;;  %v3037_v10 = vpop.f32.mrf.mxu0 }
 0x151   : > { %v3038_v11 = vadd.f32 %v3037_v10, %v3036_v5  ;;  %v3149_v12 = vpop.f32.mrf.mxu1 }
 0x152   : > { %4563 = vst [vmem:[#allocation11_spill] sm:$0xff] %v3926_v8  ;;  %v3150_v13 = vadd.f32 %v3149_v12, %v3148_v7  ;;  %v3039_v15 = vpop.f32.mrf.mxu0 }
 0x153   : > { %v3151_v18 = vpop.f32.mrf.mxu1 }
 0x154   : > { %v3928_v19 = vadd.f32 %v3150_v13, %v3038_v11  ;;  %v3040_v20 = vpop.f32.mrf.mxu0 }
 0x155   : > { %v3041_v21 = vadd.f32 %v3040_v20, %v3039_v15  ;;  %v3152_v22 = vpop.f32.mrf.mxu1 }
 0x156   : > { %4564 = vst [vmem:[#allocation12_spill] sm:$0xff] %v3928_v19  ;;  %v3153_v24 = vadd.f32 %v3152_v22, %v3151_v18  ;;  %v3042_v26 = vpop.f32.mrf.mxu0 }
 0x157   : > { %v3154_v27 = vpop.f32.mrf.mxu1 }
 0x158   : > { %v3930_v28 = vadd.f32 %v3153_v24, %v3041_v21  ;;  %v3043_v30 = vpop.f32.mrf.mxu0 }
 0x159   : > { %v3044_v31 = vadd.f32 %v3043_v30, %v3042_v26  ;;  %v3155_v34 = vpop.f32.mrf.mxu1 }
 0x15a   : > { %4565 = vst [vmem:[#allocation13_spill] sm:$0xff] %v3930_v28  ;;  %v3156_v35 = vadd.f32 %v3155_v34, %v3154_v27  ;;  %v3045_v38 = vpop.f32.mrf.mxu0 }
 0x15b   : > { %v3157_v39 = vpop.f32.mrf.mxu1 }
 0x15c   : > { %v3932_v40 = vadd.f32 %v3156_v35, %v3044_v31  ;;  %v3046_v42 = vpop.f32.mrf.mxu0 }
 0x15d   : > { %v3047_v44 = vadd.f32 %v3046_v42, %v3045_v38  ;;  %v3158_v46 = vpop.f32.mrf.mxu1 }
 0x15e   : > { %4566 = vst [vmem:[#allocation14_spill] sm:$0xff] %v3932_v40  ;;  %v3159_v47 = vadd.f32 %v3158_v46, %v3157_v39  ;;  %v3048_v48 = vpop.f32.mrf.mxu0 }
 0x15f   : > { %v3160_v49 = vpop.f32.mrf.mxu1 }
 0x160   : > { %v3934_v50 = vadd.f32 %v3159_v47, %v3047_v44  ;;  %v3049_v54 = vpop.f32.mrf.mxu0 }
 0x161   : > { %v3050_v55 = vadd.f32 %v3049_v54, %v3048_v48  ;;  %v3161_v57 = vpop.f32.mrf.mxu1 }
 0x162   : > { %4567 = vst [vmem:[#allocation15_spill] sm:$0xff] %v3934_v50  ;;  %v3162_v58 = vadd.f32 %v3161_v57, %v3160_v49  ;;  %v3051_v60 = vpop.f32.mrf.mxu0 }
 0x163   : > { %v3163_v61 = vpop.f32.mrf.mxu1 }
 0x164   : > { %v3936_v0 = vadd.f32 %v3162_v58, %v3050_v55  ;;  %v3052_v2 = vpop.f32.mrf.mxu0 }
 0x165   : > { %v3053_v3 = vadd.f32 %v3052_v2, %v3051_v60  ;;  %v3164_v4 = vpop.f32.mrf.mxu1 }
 0x166   : > { %4568 = vst [vmem:[#allocation16_spill] sm:$0xff] %v3936_v0  ;;  %v3165_v5 = vadd.f32 %v3164_v4, %v3163_v61  ;;  %v3054_v7 = vpop.f32.mrf.mxu0 }
 0x167   : > { %v3166_v10 = vpop.f32.mrf.mxu1 }
 0x168   : > { %v3938_v11 = vadd.f32 %v3165_v5, %v3053_v3  ;;  %v3055_v12 = vpop.f32.mrf.mxu0 }
 0x169   : > { %v3056_v13 = vadd.f32 %v3055_v12, %v3054_v7  ;;  %v3167_v15 = vpop.f32.mrf.mxu1 }
 0x16a   : > { %4569 = vst [vmem:[#allocation17_spill] sm:$0xff] %v3938_v11  ;;  %v3168_v18 = vadd.f32 %v3167_v15, %v3166_v10  ;;  %v3057_v20 = vpop.f32.mrf.mxu0 }
 0x16b   : > { %v3169_v21 = vpop.f32.mrf.mxu1 }
 0x16c   : > { %v3940_v22 = vadd.f32 %v3168_v18, %v3056_v13  ;;  %v3058_v24 = vpop.f32.mrf.mxu0 }
 0x16d   : > { %v3059_v26 = vadd.f32 %v3058_v24, %v3057_v20  ;;  %v3170_v27 = vpop.f32.mrf.mxu1 }
 0x16e   : > { %4570 = vst [vmem:[#allocation18_spill] sm:$0xff] %v3940_v22  ;;  %v3171_v30 = vadd.f32 %v3170_v27, %v3169_v21  ;;  %v3188_v31 = vpop.f32.mrf.mxu0 }
 0x16f   : > { %v3300_v34 = vpop.f32.mrf.mxu1 }
 0x170   : > { %v3942_v35 = vadd.f32 %v3171_v30, %v3059_v26  ;;  %v3189_v38 = vpop.f32.mrf.mxu0 }
 0x171   : > { %v3190_v39 = vadd.f32 %v3189_v38, %v3188_v31  ;;  %v3301_v42 = vpop.f32.mrf.mxu1 }
 0x172   : > { %4571 = vst [vmem:[#allocation19_spill] sm:$0xff] %v3942_v35  ;;  %v3302_v44 = vadd.f32 %v3301_v42, %v3300_v34  ;;  %v3191_v46 = vpop.f32.mrf.mxu0 }
 0x173   : > { %v1927_v47 = vadd.f32 %v3190_v39, %v3860_v29  ;;  %v3303_v48 = vpop.f32.mrf.mxu1 }
 0x174   : > { %v3192_v49 = vpop.f32.mrf.mxu0 }
 0x175   : > { %v3945_v54 = vadd.f32 %v3302_v44, %v1927_v47  ;;  %v3304_v55 = vpop.f32.mrf.mxu1  ;;  %v3193_v35 = vadd.f32 %v3192_v49, %v3191_v46 }
 0x176   : > { %v3194_v57 = vpop.f32.mrf.mxu0  ;;  %v3305_v52 = vadd.f32 %v3304_v55, %v3303_v48 }
 0x177   : > { %v3306_v58 = vpop.f32.mrf.mxu1  ;;  %v1930_v28 = vadd.f32 %v3193_v35, %v3862_v37 }
 0x178   : > { %v3195_v60 = vpop.f32.mrf.mxu0 }
 0x179   : > { %v3307_v61 = vpop.f32.mrf.mxu1  ;;  %v3196_v0 = vadd.f32 %v3195_v60, %v3194_v57  ;;  %v2091_v46 = vadd.f32 %v3305_v52, %v1930_v28 }
 0x17a   : > { %v3197_v2 = vpop.f32.mrf.mxu0  ;;  %v3308_v49 = vadd.f32 %v3307_v61, %v3306_v58 }
 0x17b   : > { %v3309_v3 = vpop.f32.mrf.mxu1  ;;  %v1935_v43 = vadd.f32 %v3196_v0, %v3868_v51  ;;  %v3970_v51 = vld [vmem:[%s4553_s2] ss:$0 sm:$0xff] }
 0x17c   : > { %v3198_v4 = vpop.f32.mrf.mxu0  ;;  %v3975_v52 = vadd.f32 %v3970_v51, %v2091_v46 }
 0x17d   : > { %v3310_v5 = vpop.f32.mrf.mxu1  ;;  %v3199_v19 = vadd.f32 %v3198_v4, %v3197_v2  ;;  %v2096_v37 = vadd.f32 %v3308_v49, %v1935_v43 }
 0x17e   : > { %v3200_v7 = vpop.f32.mrf.mxu0  ;;  %v3311_v35 = vadd.f32 %v3310_v5, %v3309_v3 }
 0x17f   : > { %v3312_v10 = vpop.f32.mrf.mxu1  ;;  %v1938_v57 = vadd.f32 %v3199_v19, %v3870_v59 }
 0x180   : > { %v3201_v12 = vpop.f32.mrf.mxu0 }
 0x181   : > { %v3313_v13 = vpop.f32.mrf.mxu1  ;;  %v3202_v33 = vadd.f32 %v3201_v12, %v3200_v7  ;;  %v2099_v59 = vadd.f32 %v3311_v35, %v1938_v57 }
 0x182   : > { %v3203_v15 = vpop.f32.mrf.mxu0  ;;  %v3314_v19 = vadd.f32 %v3313_v13, %v3312_v10 }
 0x183   : > { %v3315_v18 = vpop.f32.mrf.mxu1  ;;  %v1943_v2 = vadd.f32 %v3202_v33, %v3876_v9  ;;  %v3982_v9 = vadd.f32 %v3970_v51, %v3945_v54  ;;  %v3985_v33 = vadd.f32 %v3970_v51, %v2096_v37  ;;  %v3993_v13 = vadd.f32 %v3970_v51, %v2099_v59 }
 0x184   : > { %v3204_v29 = vpop.f32.mrf.mxu0 }
 0x185   : > { %v3316_v20 = vpop.f32.mrf.mxu1  ;;  %v3205_v60 = vadd.f32 %v3204_v29, %v3203_v15  ;;  %v2104_v61 = vadd.f32 %v3314_v19, %v1943_v2  ;;  %v2392_v46 = vmul.f32 %v3993_v13, %v3993_v13 }
 0x186   : > { %v3206_v21 = vpop.f32.mrf.mxu0  ;;  %v3317_v3 = vadd.f32 %v3316_v20, %v3315_v18  ;;  %v2391_v18 = vmul.f32 %v3985_v33, %v3985_v33 }
 0x187   : > { %v3318_v24 = vpop.f32.mrf.mxu1  ;;  %v1946_v28 = vadd.f32 %v3205_v60, %v3878_v17  ;;  %v2390_v17 = vmul.f32 %v3975_v52, %v3975_v52  ;;  %v4003_v20 = vadd.f32 %v3970_v51, %v2104_v61 }
 0x188   : > { %v3207_v26 = vpop.f32.mrf.mxu0 }
 0x189   : > { %v3319_v27 = vpop.f32.mrf.mxu1  ;;  %v3208_v0 = vadd.f32 %v3207_v26, %v3206_v21  ;;  %v2107_v15 = vadd.f32 %v3317_v3, %v1946_v28  ;;  %v2393_v35 = vmul.f32 %v4003_v20, %v4003_v20 }
 0x18a   : > { %v3209_v30 = vpop.f32.mrf.mxu0  ;;  %v3320_v29 = vadd.f32 %v3319_v27, %v3318_v24 }
 0x18b   : > { %v3947_v31 = vpop.f32.mrf.mxu1  ;;  %v1951_v7 = vadd.f32 %v3208_v0, %v3884_v32  ;;  %v2389_v32 = vmul.f32 %v3982_v9, %v3982_v9  ;;  %v4012_v49 = vadd.f32 %v3970_v51, %v2107_v15 }
 0x18c   : > { %v3210_v34 = vpop.f32.mrf.mxu0 }
 0x18d   : > { %v3322_v38 = vpop.f32.mrf.mxu1  ;;  %v3211_v55 = vadd.f32 %v3210_v34, %v3209_v30 }
 0x18e   : > { %v3212_v39 = vpop.f32.mrf.mxu0 }
 0x18f   : > { %v3949_v42 = vpop.f32.mrf.mxu1  ;;  %v1954_v21 = vadd.f32 %v3211_v55, %v3886_v41 }
 0x190   : > { %v3213_v44 = vpop.f32.mrf.mxu0 }
 0x191   : > { %v3951_v47 = vpop.f32.mrf.mxu1  ;;  %v3214_v12 = vadd.f32 %v3213_v44, %v3212_v39  ;;  %v2112_v39 = vadd.f32 %v3320_v29, %v1951_v7  ;;  %v3323_v44 = vadd.f32 %v3322_v38, %v3947_v31 }
 0x192   : > { %v3215_v22 = vpop.f32.mrf.mxu0  ;;  %v3326_v37 = vadd.f32 %v3951_v47, %v3949_v42 }
 0x193   : > { %v3953_v11 = vpop.f32.mrf.mxu1  ;;  %v1959_v24 = vadd.f32 %v3214_v12, %v3892_v56  ;;  %v2115_v60 = vadd.f32 %v3323_v44, %v1954_v21  ;;  %v4021_v0 = vadd.f32 %v3970_v51, %v2112_v39 }
 0x194   : > { %v3216_v50 = vpop.f32.mrf.mxu0 }
 0x195   : > { %v3955_v40 = vpop.f32.mrf.mxu1  ;;  %v3217_v26 = vadd.f32 %v3216_v50, %v3215_v22  ;;  %v2352_v50 = vadd.f32 %v3975_v52, %v3982_v9  ;;  %v2421_v22 = vadd.f32 %v2390_v17, %v2389_v32  ;;  %v2120_v59 = vadd.f32 %v3326_v37, %v1959_v24 }
 0x196   : > { %v3218_v8 = vpop.f32.mrf.mxu0  ;;  %v3329_v19 = vadd.f32 %v3955_v40, %v3953_v11  ;;  %v4030_v61 = vadd.f32 %v3970_v51, %v2115_v60  ;;  %v2395_v29 = vmul.f32 %v4021_v0, %v4021_v0 }
 0x197   : > { %v3958_v63 = vpop.f32.mrf.mxu1  ;;  %v1962_v31 = vadd.f32 %v3217_v26, %v3894_v1  ;;  %v2422_v38 = vadd.f32 %v2421_v22, %v2391_v18 }
 0x198   : > { %v3219_v23 = vpop.f32.mrf.mxu0 }
 0x199   : > { %v3961_v14 = vpop.f32.mrf.mxu1  ;;  %v3220_v27 = vadd.f32 %v3219_v23, %v3218_v8  ;;  %v2353_v8 = vadd.f32 %v2352_v50, %v3985_v33  ;;  %v2123_v3 = vadd.f32 %v3329_v19, %v1962_v31  ;;  %v4572_v19 = vld [vmem:[#allocation3_spill] sm:$0xff] }
 0x19a   : > { %v3221_v6 = vpop.f32.mrf.mxu0  ;;  %v3332_v7 = vadd.f32 %v3961_v14, %v3958_v63 }
 0x19b   : > { %v3964_v62 = vpop.f32.mrf.mxu1  ;;  %v1967_v42 = vadd.f32 %v3220_v27, %v3900_v16  ;;  %v2354_v1 = vadd.f32 %v2353_v8, %v3993_v13 }
 0x19c   : > { %v3222_v4 = vpop.f32.mrf.mxu0 }
 0x19d   : > { %v3972_v48 = vpop.f32.mrf.mxu1  ;;  %v3223_v56 = vadd.f32 %v3222_v4, %v3221_v6  ;;  %v2423_v6 = vadd.f32 %v2422_v38, %v2392_v46  ;;  %v2394_v4 = vmul.f32 %v4012_v49, %v4012_v49  ;;  %v2355_v16 = vadd.f32 %v2354_v1, %v4003_v20 }
 0x19e   : > { %v3224_v43 = vpop.f32.mrf.mxu0  ;;  %v3335_v21 = vadd.f32 %v3972_v48, %v3964_v62 }
 0x19f   : > { %v3978_v58 = vpop.f32.mrf.mxu1  ;;  %v1970_v40 = vadd.f32 %v3223_v56, %v3902_v25  ;;  %v2424_v12 = vadd.f32 %v2423_v6, %v2393_v35  ;;  %v2356_v14 = vadd.f32 %v2355_v16, %v4012_v49 }
 0x1a0   : > { %v3225_v5 = vpop.f32.mrf.mxu0 }
 0x1a1   : > { %v3988_v10 = vpop.f32.mrf.mxu1  ;;  %v3226_v28 = vadd.f32 %v3225_v5, %v3224_v43  ;;  %v4039_v43 = vadd.f32 %v3970_v51, %v2120_v59  ;;  %v2128_v5 = vadd.f32 %v3332_v7, %v1967_v42  ;;  %v2425_v18 = vadd.f32 %v2424_v12, %v2394_v4  ;;  %v4573_v7 = vld [vmem:[#allocation4_spill] sm:$0xff] }
 0x1a2   : > { %v3227_v54 = vpop.f32.mrf.mxu0  ;;  %v2131_v39 = vadd.f32 %v3335_v21, %v1970_v40  ;;  %v3338_v24 = vadd.f32 %v3988_v10, %v3978_v58  ;;  %v4574_v21 = vld [vmem:[#allocation5_spill] sm:$0xff] }
 0x1a3   : > { %v3996_v30 = vpop.f32.mrf.mxu1  ;;  %v1975_v25 = vadd.f32 %v3226_v28, %v3904_v36  ;;  %v2357_v36 = vadd.f32 %v2356_v14, %v4021_v0  ;;  %v2426_v50 = vadd.f32 %v2425_v18, %v2395_v29  ;;  %v2397_v22 = vmul.f32 %v4039_v43, %v4039_v43 }
 0x1a4   : > { %v3228_v34 = vpop.f32.mrf.mxu0  ;;  %v4057_v46 = vadd.f32 %v3970_v51, %v2128_v5  ;;  %v4065_v38 = vadd.f32 %v3970_v51, %v2131_v39 }
 0x1a5   : > { %v3340_v41 = vpop.f32.mrf.mxu1  ;;  %v3229_v17 = vadd.f32 %v3228_v34, %v3227_v54  ;;  %v2396_v54 = vmul.f32 %v4030_v61, %v4030_v61  ;;  %v4048_v34 = vadd.f32 %v3970_v51, %v2123_v3  ;;  %v2136_v60 = vadd.f32 %v3338_v24, %v1975_v25 }
 0x1a6   : > { %v3230_v57 = vpop.f32.mrf.mxu0  ;;  %v3341_v37 = vadd.f32 %v3340_v41, %v3996_v30  ;;  %v2399_v41 = vmul.f32 %v4057_v46, %v4057_v46  ;;  %v2400_v12 = vmul.f32 %v4065_v38, %v4065_v38 }
 0x1a7   : > { %v3342_v23 = vpop.f32.mrf.mxu1  ;;  %v1978_v62 = vadd.f32 %v3229_v17, %v3906_v45  ;;  %v2358_v45 = vadd.f32 %v2357_v36, %v4030_v61  ;;  %v2427_v56 = vadd.f32 %v2426_v50, %v2396_v54  ;;  %v2398_v8 = vmul.f32 %v4048_v34, %v4048_v34 }
 0x1a8   : > { %v3231_v2 = vpop.f32.mrf.mxu0  ;;  %v4072_v28 = vadd.f32 %v3970_v51, %v2136_v60 }
 0x1a9   : > { %v3343_v47 = vpop.f32.mrf.mxu1  ;;  %v3232_v63 = vadd.f32 %v3231_v2, %v3230_v57  ;;  %v2139_v2 = vadd.f32 %v3341_v37, %v1978_v62  ;;  %v2359_v30 = vadd.f32 %v2358_v45, %v4039_v43 }
 0x1aa   : > { %v3233_v55 = vpop.f32.mrf.mxu0  ;;  %v3344_v59 = vadd.f32 %v3343_v47, %v3342_v23  ;;  %v2401_v18 = vmul.f32 %v4072_v28, %v4072_v28 }
 0x1ab   : > { %v3345_v11 = vpop.f32.mrf.mxu1  ;;  %v1983_v31 = vadd.f32 %v3232_v63, %v3908_v53  ;;  %v2428_v53 = vadd.f32 %v2427_v56, %v2397_v22  ;;  %v2360_v23 = vadd.f32 %v2359_v30, %v4048_v34 }
 0x1ac   : > { %v3234_v15 = vpop.f32.mrf.mxu0 }
 0x1ad   : > { %v3346_v26 = vpop.f32.mrf.mxu1  ;;  %v3235_v48 = vadd.f32 %v3234_v15, %v3233_v55  ;;  %v2144_v55 = vadd.f32 %v3344_v59, %v1983_v31  ;;  %v2429_v47 = vadd.f32 %v2428_v53, %v2398_v8  ;;  %v4079_v15 = vadd.f32 %v3970_v51, %v2139_v2 }
 0x1ae   : > { %v3236_v32 = vpop.f32.mrf.mxu0  ;;  %v3347_v3 = vadd.f32 %v3346_v26, %v3345_v11  ;;  %v2361_v11 = vadd.f32 %v2360_v23, %v4057_v46 }
 0x1af   : > { %v3348_v44 = vpop.f32.mrf.mxu1  ;;  %v1986_v42 = vadd.f32 %v3235_v48, %v4572_v19  ;;  %v2430_v26 = vadd.f32 %v2429_v47, %v2399_v41  ;;  %v4086_v54 = vadd.f32 %v3970_v51, %v2144_v55  ;;  %v2402_v22 = vmul.f32 %v4079_v15, %v4079_v15 }
 0x1b0   : > { %v3237_v27 = vpop.f32.mrf.mxu0  ;;  %v2362_v48 = vadd.f32 %v2361_v11, %v4065_v38 }
 0x1b1   : > { %v3349_v57 = vpop.f32.mrf.mxu1  ;;  %v3238_v58 = vadd.f32 %v3237_v27, %v3236_v32  ;;  %v2147_v29 = vadd.f32 %v3347_v3, %v1986_v42  ;;  %v4575_v27 = vld [vmem:[#allocation6_spill] sm:$0xff]  ;;  %v2403_v8 = vmul.f32 %v4086_v54, %v4086_v54  ;;  %v4576_v42 = vld [vmem:[#allocation7_spill] sm:$0xff] }
 0x1b2   : > { %v3239_v10 = vpop.f32.mrf.mxu0  ;;  %v3350_v5 = vadd.f32 %v3349_v57, %v3348_v44  ;;  %v2431_v44 = vadd.f32 %v2430_v26, %v2400_v12 }
 0x1b3   : > { %v3351_v35 = vpop.f32.mrf.mxu1  ;;  %v1991_v40 = vadd.f32 %v3238_v58, %v4573_v7  ;;  %v4093_v57 = vadd.f32 %v3970_v51, %v2147_v29  ;;  %v2363_v58 = vadd.f32 %v2362_v48, %v4072_v28 }
 0x1b4   : > { %v3240_v1 = vpop.f32.mrf.mxu0  ;;  %v2432_v56 = vadd.f32 %v2431_v44, %v2401_v18 }
 0x1b5   : > { %v3241_v6 = vadd.f32 %v3240_v1, %v3239_v10  ;;  %v3352_v4 = vpop.f32.mrf.mxu1  ;;  %v2152_v39 = vadd.f32 %v3350_v5, %v1991_v40  ;;  %v2364_v19 = vadd.f32 %v2363_v58, %v4079_v15  ;;  %v4577_v5 = vld [vmem:[#allocation8_spill] sm:$0xff] }
 0x1b6   : > { %v3242_v16 = vpop.f32.mrf.mxu0  ;;  %v3353_v24 = vadd.f32 %v3352_v4, %v3351_v35  ;;  %v2433_v41 = vadd.f32 %v2432_v56, %v2402_v22  ;;  %v4578_v22 = vld [vmem:[#allocation9_spill] sm:$0xff] }
 0x1b7   : > { %v3354_v17 = vpop.f32.mrf.mxu1  ;;  %v1994_v14 = vadd.f32 %v3241_v6, %v4574_v21  ;;  %v4099_v35 = vadd.f32 %v3970_v51, %v2152_v39  ;;  %v2404_v6 = vmul.f32 %v4093_v57, %v4093_v57  ;;  %v2365_v3 = vadd.f32 %v2364_v19, %v4086_v54 }
 0x1b8   : > { %v3243_v25 = vpop.f32.mrf.mxu0  ;;  %v2434_v23 = vadd.f32 %v2433_v41, %v2403_v8  ;;  %v4579_v41 = vld [vmem:[#allocation10_spill] sm:$0xff] }
 0x1b9   : > { %v3244_v63 = vadd.f32 %v3243_v25, %v3242_v16  ;;  %v3355_v32 = vpop.f32.mrf.mxu1  ;;  %v2155_v60 = vadd.f32 %v3353_v24, %v1994_v14  ;;  %v2405_v47 = vmul.f32 %v4099_v35, %v4099_v35  ;;  %v2366_v29 = vadd.f32 %v2365_v3, %v4093_v57 }
 0x1ba   : > { %v3245_v62 = vpop.f32.mrf.mxu0  ;;  %v3356_v37 = vadd.f32 %v3355_v32, %v3354_v17  ;;  %v2435_v11 = vadd.f32 %v2434_v23, %v2404_v6 }
 0x1bb   : > { %v1999_v36 = vadd.f32 %v3244_v63, %v4575_v27  ;;  %v3357_v50 = vpop.f32.mrf.mxu1  ;;  %v4106_v4 = vadd.f32 %v3970_v51, %v2155_v60  ;;  %v2367_v18 = vadd.f32 %v2366_v29, %v4099_v35 }
 0x1bc   : > { %v3246_v31 = vpop.f32.mrf.mxu0  ;;  %v2436_v48 = vadd.f32 %v2435_v11, %v2405_v47  ;;  %v4580_v11 = vld [vmem:[#allocation11_spill] sm:$0xff] }
 0x1bd   : > { %v3247_v10 = vadd.f32 %v3246_v31, %v3245_v62  ;;  %v3358_v45 = vpop.f32.mrf.mxu1  ;;  %v2160_v2 = vadd.f32 %v3356_v37, %v1999_v36  ;;  %v2406_v26 = vmul.f32 %v4106_v4, %v4106_v4  ;;  %v2368_v36 = vadd.f32 %v2367_v18, %v4106_v4 }
 0x1be   : > { %v3248_v59 = vpop.f32.mrf.mxu0  ;;  %v3359_v30 = vadd.f32 %v3358_v45, %v3357_v50 }
 0x1bf   : > { %v2002_v1 = vadd.f32 %v3247_v10, %v4576_v42  ;;  %v3360_v53 = vpop.f32.mrf.mxu1  ;;  %v4112_v12 = vadd.f32 %v3970_v51, %v2160_v2  ;;  %v2437_v58 = vadd.f32 %v2436_v48, %v2406_v26 }
 0x1c0   : > { %v3249_v55 = vpop.f32.mrf.mxu0 }
 0x1c1   : > { %v2163_v7 = vadd.f32 %v3359_v30, %v2002_v1  ;;  %v3250_v40 = vadd.f32 %v3249_v55, %v3248_v59  ;;  %v3361_v16 = vpop.f32.mrf.mxu1  ;;  %v2407_v44 = vmul.f32 %v4112_v12, %v4112_v12  ;;  %v2369_v56 = vadd.f32 %v2368_v36, %v4112_v12 }
 0x1c2   : > { %v3251_v17 = vpop.f32.mrf.mxu0  ;;  %v3362_v14 = vadd.f32 %v3361_v16, %v3360_v53 }
 0x1c3   : > { %v2007_v21 = vadd.f32 %v3250_v40, %v4577_v5  ;;  %v3363_v25 = vpop.f32.mrf.mxu1  ;;  %v4119_v63 = vadd.f32 %v3970_v51, %v2163_v7  ;;  %v2438_v19 = vadd.f32 %v2437_v58, %v2407_v44 }
 0x1c4   : > { %v3252_v32 = vpop.f32.mrf.mxu0 }
 0x1c5   : > { %v2168_v39 = vadd.f32 %v3362_v14, %v2007_v21  ;;  %v3253_v24 = vadd.f32 %v3252_v32, %v3251_v17  ;;  %v3364_v62 = vpop.f32.mrf.mxu1  ;;  %v2408_v10 = vmul.f32 %v4119_v63, %v4119_v63  ;;  %v2370_v30 = vadd.f32 %v2369_v56, %v4119_v63 }
 0x1c6   : > { %v3254_v27 = vpop.f32.mrf.mxu0  ;;  %v3365_v37 = vadd.f32 %v3364_v62, %v3363_v25 }
 0x1c7   : > { %v4126_v50 = vadd.f32 %v3970_v51, %v2168_v39  ;;  %v2010_v60 = vadd.f32 %v3253_v24, %v4578_v22  ;;  %v3366_v31 = vpop.f32.mrf.mxu1  ;;  %v2439_v7 = vadd.f32 %v2438_v19, %v2408_v10 }
 0x1c8   : > { %v3255_v45 = vpop.f32.mrf.mxu0 }
 0x1c9   : > { %v2171_v8 = vadd.f32 %v3365_v37, %v2010_v60  ;;  %v3256_v2 = vadd.f32 %v3255_v45, %v3254_v27  ;;  %v3367_v59 = vpop.f32.mrf.mxu1  ;;  %v2409_v42 = vmul.f32 %v4126_v50, %v4126_v50  ;;  %v2371_v16 = vadd.f32 %v2370_v30, %v4126_v50 }
 0x1ca   : > { %v3257_v1 = vpop.f32.mrf.mxu0  ;;  %v3368_v55 = vadd.f32 %v3367_v59, %v3366_v31  ;;  %v4581_v31 = vld [vmem:[#allocation12_spill] sm:$0xff] }
 0x1cb   : > { %v4136_v53 = vadd.f32 %v3970_v51, %v2171_v8  ;;  %v2015_v6 = vadd.f32 %v3256_v2, %v4579_v41  ;;  %v3369_v3 = vpop.f32.mrf.mxu1  ;;  %v2440_v5 = vadd.f32 %v2439_v7, %v2409_v42 }
 0x1cc   : > { %v3258_v40 = vpop.f32.mrf.mxu0 }
 0x1cd   : > { %v2410_v23 = vmul.f32 %v4136_v53, %v4136_v53  ;;  %v2176_v47 = vadd.f32 %v3368_v55, %v2015_v6  ;;  %v3259_v17 = vadd.f32 %v3258_v40, %v3257_v1  ;;  %v3370_v29 = vpop.f32.mrf.mxu1  ;;  %v2372_v14 = vadd.f32 %v2371_v16, %v4136_v53  ;;  %v4582_v6 = vld [vmem:[#allocation13_spill] sm:$0xff] }
 0x1ce   : > { %v3260_v21 = vpop.f32.mrf.mxu0  ;;  %v3371_v32 = vadd.f32 %v3370_v29, %v3369_v3 }
 0x1cf   : > { %v4144_v25 = vadd.f32 %v3970_v51, %v2176_v47  ;;  %v2018_v26 = vadd.f32 %v3259_v17, %v4580_v11  ;;  %v3372_v18 = vpop.f32.mrf.mxu1  ;;  %v2441_v39 = vadd.f32 %v2440_v5, %v2410_v23  ;;  %v4583_v11 = vld [vmem:[#allocation14_spill] sm:$0xff] }
 0x1d0   : > { %v3261_v24 = vpop.f32.mrf.mxu0 }
 0x1d1   : > { %v2373_v62 = vadd.f32 %v2372_v14, %v4144_v25  ;;  %v2411_v48 = vmul.f32 %v4144_v25, %v4144_v25  ;;  %v2179_v44 = vadd.f32 %v3371_v32, %v2018_v26  ;;  %v3262_v27 = vadd.f32 %v3261_v24, %v3260_v21  ;;  %v3373_v36 = vpop.f32.mrf.mxu1 }
 0x1d2   : > { %v3263_v22 = vpop.f32.mrf.mxu0  ;;  %v3374_v10 = vadd.f32 %v3373_v36, %v3372_v18 }
 0x1d3   : > { %v2442_v60 = vadd.f32 %v2441_v39, %v2411_v48  ;;  %v4151_v37 = vadd.f32 %v3970_v51, %v2179_v44  ;;  %v2023_v58 = vadd.f32 %v3262_v27, %v4581_v31  ;;  %v3375_v45 = vpop.f32.mrf.mxu1  ;;  %v4584_v31 = vld [vmem:[#allocation15_spill] sm:$0xff] }
 0x1d4   : > { %v3264_v56 = vpop.f32.mrf.mxu0 }
 0x1d5   : > { %v2374_v8 = vadd.f32 %v2373_v62, %v4151_v37  ;;  %v2412_v2 = vmul.f32 %v4151_v37, %v4151_v37  ;;  %v2184_v59 = vadd.f32 %v3374_v10, %v2023_v58  ;;  %v3265_v19 = vadd.f32 %v3264_v56, %v3263_v22  ;;  %v3376_v42 = vpop.f32.mrf.mxu1 }
 0x1d6   : > { %v3266_v1 = vpop.f32.mrf.mxu0  ;;  %v3377_v3 = vadd.f32 %v3376_v42, %v3375_v45 }
 0x1d7   : > { %v2443_v30 = vadd.f32 %v2442_v60, %v2412_v2  ;;  %v4158_v41 = vadd.f32 %v3970_v51, %v2184_v59  ;;  %v2026_v55 = vadd.f32 %v3265_v19, %v4582_v6  ;;  %v3378_v7 = vpop.f32.mrf.mxu1 }
 0x1d8   : > { %v3267_v40 = vpop.f32.mrf.mxu0 }
 0x1d9   : > { %v2375_v16 = vadd.f32 %v2374_v8, %v4158_v41  ;;  %v2413_v23 = vmul.f32 %v4158_v41, %v4158_v41  ;;  %v2187_v47 = vadd.f32 %v3377_v3, %v2026_v55  ;;  %v3268_v17 = vadd.f32 %v3267_v40, %v3266_v1  ;;  %v3379_v29 = vpop.f32.mrf.mxu1  ;;  %v4585_v55 = vld [vmem:[#allocation16_spill] sm:$0xff] }
 0x1da   : > { %v3269_v5 = vpop.f32.mrf.mxu0  ;;  %v3380_v32 = vadd.f32 %v3379_v29, %v3378_v7 }
 0x1db   : > { %v2444_v21 = vadd.f32 %v2443_v30, %v2413_v23  ;;  %v4165_v14 = vadd.f32 %v3970_v51, %v2187_v47  ;;  %v2031_v26 = vadd.f32 %v3268_v17, %v4583_v11  ;;  %v3381_v18 = vpop.f32.mrf.mxu1 }
 0x1dc   : > { %v3270_v39 = vpop.f32.mrf.mxu0 }
 0x1dd   : > { %v2376_v24 = vadd.f32 %v2375_v16, %v4165_v14  ;;  %v2414_v62 = vmul.f32 %v4165_v14, %v4165_v14  ;;  %v2192_v48 = vadd.f32 %v3380_v32, %v2031_v26  ;;  %v3271_v44 = vadd.f32 %v3270_v39, %v3269_v5  ;;  %v3382_v27 = vpop.f32.mrf.mxu1  ;;  %v4586_v32 = vld [vmem:[#allocation17_spill] sm:$0xff] }
 0x1de   : > { %v3272_v36 = vpop.f32.mrf.mxu0  ;;  %v3383_v10 = vadd.f32 %v3382_v27, %v3381_v18 }
 0x1df   : > { %v2445_v22 = vadd.f32 %v2444_v21, %v2414_v62  ;;  %v4172_v60 = vadd.f32 %v3970_v51, %v2192_v48  ;;  %v2034_v58 = vadd.f32 %v3271_v44, %v4584_v31  ;;  %v3384_v45 = vpop.f32.mrf.mxu1 }
 0x1e0   : > { %v3273_v56 = vpop.f32.mrf.mxu0 }
 0x1e1   : > { %v2377_v8 = vadd.f32 %v2376_v24, %v4172_v60  ;;  %v2415_v2 = vmul.f32 %v4172_v60, %v4172_v60  ;;  %v2195_v59 = vadd.f32 %v3383_v10, %v2034_v58  ;;  %v3274_v19 = vadd.f32 %v3273_v56, %v3272_v36  ;;  %v3385_v42 = vpop.f32.mrf.mxu1 }
 0x1e2   : > { %v3275_v1 = vpop.f32.mrf.mxu0  ;;  %v3386_v7 = vadd.f32 %v3385_v42, %v3384_v45  ;;  %v4587_v45 = vld [vmem:[#allocation18_spill] sm:$0xff] }
 0x1e3   : > { %v2446_v30 = vadd.f32 %v2445_v22, %v2415_v2  ;;  %v4179_v6 = vadd.f32 %v3970_v51, %v2195_v59  ;;  %v2039_v3 = vadd.f32 %v3274_v19, %v4585_v55  ;;  %v3387_v40 = vpop.f32.mrf.mxu1 }
 0x1e4   : > { %v3276_v16 = vpop.f32.mrf.mxu0 }
 0x1e5   : > { %v2378_v23 = vadd.f32 %v2377_v8, %v4179_v6  ;;  %v2416_v47 = vmul.f32 %v4179_v6, %v4179_v6  ;;  %v2200_v17 = vadd.f32 %v3386_v7, %v2039_v3  ;;  %v3277_v29 = vadd.f32 %v3276_v16, %v3275_v1  ;;  %v3388_v5 = vpop.f32.mrf.mxu1 }
 0x1e6   : > { %v3278_v21 = vpop.f32.mrf.mxu0  ;;  %v3389_v39 = vadd.f32 %v3388_v5, %v3387_v40  ;;  %v4588_v40 = vld [vmem:[#allocation19_spill] sm:$0xff] }
 0x1e7   : > { %v2447_v11 = vadd.f32 %v2446_v30, %v2416_v47  ;;  %v4186_v26 = vadd.f32 %v3970_v51, %v2200_v17  ;;  %v2042_v18 = vadd.f32 %v3277_v29, %v4586_v32  ;;  %v3390_v24 = vpop.f32.mrf.mxu1 }
 0x1e8   : > { %v3279_v62 = vpop.f32.mrf.mxu0 }
 0x1e9   : > { %v2379_v48 = vadd.f32 %v2378_v23, %v4186_v26  ;;  %v2417_v44 = vmul.f32 %v4186_v26, %v4186_v26  ;;  %v2203_v27 = vadd.f32 %v3389_v39, %v2042_v18  ;;  %v3280_v36 = vadd.f32 %v3279_v62, %v3278_v21  ;;  %v3391_v22 = vpop.f32.mrf.mxu1 }
 0x1ea   : > { %v3281_v31 = vpop.f32.mrf.mxu0  ;;  %v3392_v8 = vadd.f32 %v3391_v22, %v3390_v24 }
 0x1eb   : > { %v2448_v58 = vadd.f32 %v2447_v11, %v2417_v44  ;;  %v4193_v10 = vadd.f32 %v3970_v51, %v2203_v27  ;;  %v2047_v56 = vadd.f32 %v3280_v36, %v4587_v45  ;;  %v3393_v2 = vpop.f32.mrf.mxu1 }
 0x1ec   : > { %v3282_v59 = vpop.f32.mrf.mxu0 }
 0x1ed   : > { %v2380_v19 = vadd.f32 %v2379_v48, %v4193_v10  ;;  %v2418_v42 = vmul.f32 %v4193_v10, %v4193_v10  ;;  %v2208_v1 = vadd.f32 %v3392_v8, %v2047_v56  ;;  %v3283_v30 = vadd.f32 %v3282_v59, %v3281_v31  ;;  %v3394_v55 = vpop.f32.mrf.mxu1 }
 0x1ee   : > { %v3395_v23 = vadd.f32 %v3394_v55, %v3393_v2 }
 0x1ef   : > { %v2449_v3 = vadd.f32 %v2448_v58, %v2418_v42  ;;  %v4200_v7 = vadd.f32 %v3970_v51, %v2208_v1  ;;  %v2050_v16 = vadd.f32 %v3283_v30, %v4588_v40 }
 0x1f1   : > { %v2381_v47 = vadd.f32 %v2380_v19, %v4200_v7  ;;  %v2419_v17 = vmul.f32 %v4200_v7, %v4200_v7  ;;  %v2211_v29 = vadd.f32 %v3395_v23, %v2050_v16 }
 0x1f3   : > { %v2450_v5 = vadd.f32 %v2449_v3, %v2419_v17  ;;  %v4207_v21 = vadd.f32 %v3970_v51, %v2211_v29 }
 0x1f5   : > { %v2382_v11 = vadd.f32 %v2381_v47, %v4207_v21  ;;  %v2420_v32 = vmul.f32 %v4207_v21, %v4207_v21 }
 0x1f7   : > { %v2383_v18 = vrot.slane %v2382_v11, 4  ;;  %v2451_v39 = vadd.f32 %v2450_v5, %v2420_v32 }
 0x1f9   : > { %v2384_v24 = vadd.f32 %v2383_v18, %v2382_v11  ;;  %v2452_v62 = vrot.slane %v2451_v39, 4 }
 0x1fb   : > { %v2385_v48 = vrot.slane %v2384_v24, 2  ;;  %v2453_v44 = vadd.f32 %v2452_v62, %v2451_v39 }
 0x1fd   : > { %v2386_v27 = vadd.f32 %v2385_v48, %v2384_v24  ;;  %v2454_v36 = vrot.slane %v2453_v44, 2 }
 0x1ff   : > { %v2387_v22 = vrot.slane %v2386_v27, 1  ;;  %v2455_v31 = vadd.f32 %v2454_v36, %v2453_v44 }
 0x201   : > { %v2388_v58 = vadd.f32 %v2387_v22, %v2386_v27  ;;  %v2456_v45 = vrot.slane %v2455_v31, 1 }
 0x203   : > { %v2457_v56 = vadd.f32 %v2456_v45, %v2455_v31  ;;  %v4212_v51 = vmul.f32 0.00390625, %v2388_v58 }
 0x205   : > { %v2459_v8 = vmul.f32 0.00390625, %v2457_v56  ;;  %v2460_v2 = vmul.f32 %v4212_v51, %v4212_v51  ;;  %v2483_v19 = vsub.f32 %v4136_v53, %v4212_v51  ;;  %v2484_v42 = vsub.f32 %v4144_v25, %v4212_v51 }
 0x206   : > { %v2485_v1 = vsub.f32 %v4151_v37, %v4212_v51  ;;  %v2486_v30 = vsub.f32 %v4158_v41, %v4212_v51  ;;  %v2487_v55 = vsub.f32 %v4165_v14, %v4212_v51  ;;  %v2488_v3 = vsub.f32 %v4172_v60, %v4212_v51 }
 0x207   : > { %v2461_v59 = vsub.f32 %v2459_v8, %v2460_v2  ;;  %v2489_v40 = vsub.f32 %v4179_v6, %v4212_v51  ;;  %v2490_v53 = vsub.f32 %v4186_v26, %v4212_v51  ;;  %v2491_v25 = vsub.f32 %v4193_v10, %v4212_v51 }
 0x208   : > { %v2492_v37 = vsub.f32 %v4200_v7, %v4212_v51  ;;  %v2493_v41 = vsub.f32 %v4207_v21, %v4212_v51  ;;  %v2462_v14 = vsub.f32 %v3982_v9, %v4212_v51  ;;  %v2463_v60 = vsub.f32 %v3975_v52, %v4212_v51 }
 0x209   : > { %v2494_v16 = vadd.f32 1e-05, %v2461_v59  ;;  %v2464_v6 = vsub.f32 %v3985_v33, %v4212_v51  ;;  %v2465_v26 = vsub.f32 %v3993_v13, %v4212_v51  ;;  %v2466_v10 = vsub.f32 %v4003_v20, %v4212_v51 }
 0x20a   : > { %v2467_v7 = vsub.f32 %v4012_v49, %v4212_v51  ;;  %v2468_v23 = vsub.f32 %v4021_v0, %v4212_v51  ;;  %v2469_v9 = vsub.f32 %v4030_v61, %v4212_v51  ;;  %v2470_v52 = vsub.f32 %v4039_v43, %v4212_v51 }
 0x20b   : > { %3484 = vrsqrt.f32 %v2494_v16  ;;  %v2471_v33 = vsub.f32 %v4048_v34, %v4212_v51  ;;  %v2472_v13 = vsub.f32 %v4057_v46, %v4212_v51  ;;  %v2473_v20 = vsub.f32 %v4065_v38, %v4212_v51 }
 0x20c   : > { %v2474_v49 = vsub.f32 %v4072_v28, %v4212_v51  ;;  %v2475_v0 = vsub.f32 %v4079_v15, %v4212_v51  ;;  %v2476_v61 = vsub.f32 %v4086_v54, %v4212_v51  ;;  %v2477_v43 = vsub.f32 %v4093_v57, %v4212_v51 }
 0x20d   : > { %v2478_v34 = vsub.f32 %v4099_v35, %v4212_v51  ;;  %v2479_v46 = vsub.f32 %v4106_v4, %v4212_v51  ;;  %v2480_v38 = vsub.f32 %v4112_v12, %v4212_v51  ;;  %v2481_v28 = vsub.f32 %v4119_v63, %v4212_v51 }
 0x20e   : > { %v2482_v15 = vsub.f32 %v4126_v50, %v4212_v51 }
 0x218   : > { %v3485_v47 = vpop.eup %3484 }
 0x219   : > { %v4280_v54 = vmul.f32 %v3485_v47, %v2462_v14  ;;  %v4282_v17 = vmul.f32 %v3485_v47, %v2463_v60  ;;  %v4284_v57 = vmul.f32 %v3485_v47, %v2464_v6  ;;  %v4286_v35 = vmul.f32 %v3485_v47, %v2465_v26 }
 0x21a   : > { %v4288_v29 = vmul.f32 %v3485_v47, %v2466_v10  ;;  %v4290_v4 = vmul.f32 %v3485_v47, %v2467_v7  ;;  %v4292_v5 = vmul.f32 %v3485_v47, %v2468_v23  ;;  %v4294_v12 = vmul.f32 %v3485_v47, %v2469_v9 }
 0x21b   : > { %v4296_v63 = vmul.f32 %v3485_v47, %v2470_v52  ;;  %v4298_v21 = vmul.f32 %v3485_v47, %v2471_v33  ;;  %v4300_v50 = vmul.f32 %v3485_v47, %v2472_v13  ;;  %v4302_v11 = vmul.f32 %v3485_v47, %v2473_v20 }
 0x21c   : > { %v4304_v32 = vmul.f32 %v3485_v47, %v2474_v49  ;;  %v4306_v18 = vmul.f32 %v3485_v47, %v2475_v0  ;;  %v4308_v39 = vmul.f32 %v3485_v47, %v2476_v61  ;;  %v4310_v24 = vmul.f32 %v3485_v47, %v2477_v43 }
 0x21d   : > { %v4312_v62 = vmul.f32 %v3485_v47, %v2478_v34  ;;  %v4314_v48 = vmul.f32 %v3485_v47, %v2479_v46  ;;  %v4316_v44 = vmul.f32 %v3485_v47, %v2480_v38  ;;  %v4318_v27 = vmul.f32 %v3485_v47, %v2481_v28 }
 0x21e   : > { %v4320_v36 = vmul.f32 %v3485_v47, %v2482_v15  ;;  %v4322_v22 = vmul.f32 %v3485_v47, %v2483_v19  ;;  %v4324_v31 = vmul.f32 %v3485_v47, %v2484_v42  ;;  %v4326_v58 = vmul.f32 %v3485_v47, %v2485_v1 }
 0x21f   : > { %v4328_v45 = vmul.f32 %v3485_v47, %v2486_v30  ;;  %v4330_v56 = vmul.f32 %v3485_v47, %v2487_v55  ;;  %v4332_v51 = vmul.f32 %v3485_v47, %v2488_v3  ;;  %v4334_v8 = vmul.f32 %v3485_v47, %v2489_v40 }
 0x220   : > { %v4336_v2 = vmul.f32 %v3485_v47, %v2490_v53  ;;  %v4338_v59 = vmul.f32 %v3485_v47, %v2491_v25  ;;  %v4340_v16 = vmul.f32 %v3485_v47, %v2492_v37  ;;  %v4342_v19 = vmul.f32 %v3485_v47, %v2493_v41 }
 0x221   : > { %vm2528_vm0 = vcmp.ge.f32.partialorder %v4280_v54, 0.0  ;;  %vm2529_vm1 = vcmp.ge.f32.partialorder %v4282_v17, 0.0  ;;  %vm2530_vm2 = vcmp.ge.f32.partialorder %v4284_v57, 0.0  ;;  %vm2531_vm3 = vcmp.ge.f32.partialorder %v4286_v35, 0.0 }
 0x222   : > { %vm2532_vm4 = vcmp.ge.f32.partialorder %v4288_v29, 0.0  ;;  %vm2533_vm5 = vcmp.ge.f32.partialorder %v4290_v4, 0.0  ;;  %vm2534_vm6 = vcmp.ge.f32.partialorder %v4292_v5, 0.0  ;;  %vm2535_vm7 = vcmp.ge.f32.partialorder %v4294_v12, 0.0 }
 0x223   : > { %vm2536_vm8 = vcmp.ge.f32.partialorder %v4296_v63, 0.0  ;;  %v2560_v42 = vmul.f32 0.2, %v4280_v54  ;;  %v2561_v1 = vmul.f32 0.2, %v4282_v17  ;;  %vm2543_vm15 = vcmp.ge.f32.partialorder %v4310_v24, 0.0 }
 0x224   : > { %v2562_v30 = vmul.f32 0.2, %v4284_v57  ;;  %vm2544_vm9 = vcmp.ge.f32.partialorder %v4312_v62, 0.0  ;;  %v2563_v55 = vmul.f32 0.2, %v4286_v35  ;;  %vm2549_vm14 = vcmp.ge.f32.partialorder %v4322_v22, 0.0 }
 0x225   : > { %v2564_v3 = vmul.f32 0.2, %v4288_v29  ;;  %v2565_v40 = vmul.f32 0.2, %v4290_v4  ;;  %v2566_v53 = vmul.f32 0.2, %v4292_v5  ;;  %v2592_v41 = vsel %vm2528_vm0, %v4280_v54, %v2560_v42 }
 0x226   : > { %v2567_v25 = vmul.f32 0.2, %v4294_v12  ;;  %v2568_v37 = vmul.f32 0.2, %v4296_v63  ;;  %vm2550_vm10 = vcmp.ge.f32.partialorder %v4324_v31, 0.0  ;;  %v2593_v26 = vsel %vm2529_vm1, %v4282_v17, %v2561_v1  ;;  %2624 = vst [vmem:[%s4358_s16] sm:$0xff] %v2592_v41 }
 0x227   : > { %v2569_v14 = vmul.f32 0.2, %v4298_v21  ;;  %v2570_v60 = vmul.f32 0.2, %v4300_v50  ;;  %v2571_v6 = vmul.f32 0.2, %v4302_v11  ;;  %v2594_v9 = vsel %vm2530_vm2, %v4284_v57, %v2562_v30 }
 0x228   : > { %vm2554_vm0 = vcmp.ge.f32.partialorder %v4332_v51, 0.0  ;;  %vm2556_vm12 = vcmp.ge.f32.partialorder %v4336_v2, 0.0  ;;  %vm2557_vm11 = vcmp.ge.f32.partialorder %v4338_v59, 0.0  ;;  %v2572_v10 = vmul.f32 0.2, %v4304_v32  ;;  %2625 = vst [vmem:[%s4358_s16 + $0x8] sm:$0xff] %v2593_v26 }
 0x229   : > { %v2573_v7 = vmul.f32 0.2, %v4306_v18  ;;  %v2574_v23 = vmul.f32 0.2, %v4308_v39  ;;  %vm2558_vm1 = vcmp.ge.f32.partialorder %v4340_v16, 0.0  ;;  %vm2559_vm13 = vcmp.ge.f32.partialorder %v4342_v19, 0.0 }
 0x22a   : > { %v2575_v52 = vmul.f32 0.2, %v4310_v24  ;;  %v2576_v33 = vmul.f32 0.2, %v4312_v62  ;;  %v2577_v13 = vmul.f32 0.2, %v4314_v48  ;;  %v2595_v20 = vsel %vm2531_vm3, %v4286_v35, %v2563_v55 }
 0x22b   : > { %2626 = vst [vmem:[%s4358_s16 + $0x10] sm:$0xff] %v2594_v9  ;;  %v2578_v49 = vmul.f32 0.2, %v4316_v44  ;;  %v2579_v0 = vmul.f32 0.2, %v4318_v27  ;;  %v2596_v43 = vsel %vm2532_vm4, %v4288_v29, %v2564_v3  ;;  %2627 = vst [vmem:[%s4358_s16 + $0x18] sm:$0xff] %v2595_v20  ;;  %v2597_v38 = vsel %vm2533_vm5, %v4290_v4, %v2565_v40 }
 0x22c   : > { %v2580_v61 = vmul.f32 0.2, %v4320_v36  ;;  %v2581_v34 = vmul.f32 0.2, %v4322_v22  ;;  %v2582_v47 = vmul.f32 0.2, %v4324_v31  ;;  %v2598_v17 = vsel %vm2534_vm6, %v4292_v5, %v2566_v53 }
 0x22d   : > { %v2583_v46 = vmul.f32 0.2, %v4326_v58  ;;  %2628 = vst [vmem:[%s4358_s16 + $0x20] sm:$0xff] %v2596_v43  ;;  %v2584_v28 = vmul.f32 0.2, %v4328_v45  ;;  %2629 = vst [vmem:[%s4358_s16 + $0x28] sm:$0xff] %v2597_v38  ;;  %v2599_v4 = vsel %vm2535_vm7, %v4294_v12, %v2567_v25  ;;  %v2600_v1 = vsel %vm2536_vm8, %v4296_v63, %v2568_v37 }
 0x22e   : > { %v2585_v15 = vmul.f32 0.2, %v4330_v56  ;;  %v2586_v54 = vmul.f32 0.2, %v4332_v51  ;;  %v2587_v57 = vmul.f32 0.2, %v4334_v8 }
 0x22f   : > { %v2588_v35 = vmul.f32 0.2, %v4336_v2  ;;  %v2589_v29 = vmul.f32 0.2, %v4338_v59  ;;  %2630 = vst [vmem:[%s4358_s16 + $0x30] sm:$0xff] %v2598_v17  ;;  %vm4589_vm2 = vcmp.ge.f32.partialorder %v4298_v21, 0.0 }
 0x230   : > { %v2590_v42 = vmul.f32 0.2, %v4340_v16  ;;  %v2591_v5 = vmul.f32 0.2, %v4342_v19  ;;  %v2601_v30 = vsel %vm4589_vm2, %v4298_v21, %v2569_v14  ;;  %2631 = vst [vmem:[%s4358_s16 + $0x38] sm:$0xff] %v2599_v4  ;;  %vm4590_vm3 = vcmp.ge.f32.partialorder %v4300_v50, 0.0 }
 0x231   : > { %v2602_v12 = vsel %vm4590_vm3, %v4300_v50, %v2570_v60  ;;  %vm4591_vm4 = vcmp.ge.f32.partialorder %v4302_v11, 0.0  ;;  %vm4592_vm5 = vcmp.ge.f32.partialorder %v4304_v32, 0.0  ;;  %vm4593_vm6 = vcmp.ge.f32.partialorder %v4306_v18, 0.0  ;;  %2632 = vst [vmem:[%s4358_s16 + $0x40] sm:$0xff] %v2600_v1  ;;  %2633 = vst [vmem:[%s4358_s16 + $0x48] sm:$0xff] %v2601_v30 }
 0x232   : > { %v2603_v55 = vsel %vm4591_vm4, %v4302_v11, %v2571_v6  ;;  %v2604_v3 = vsel %vm4592_vm5, %v4304_v32, %v2572_v10  ;;  %v2605_v63 = vsel %vm4593_vm6, %v4306_v18, %v2573_v7  ;;  %vm4594_vm7 = vcmp.ge.f32.partialorder %v4308_v39, 0.0  ;;  %2634 = vst [vmem:[%s4358_s16 + $0x50] sm:$0xff] %v2602_v12 }
 0x233   : > { %v2606_v21 = vsel %vm4594_vm7, %v4308_v39, %v2574_v23  ;;  %v2607_v50 = vsel %vm2543_vm15, %v4310_v24, %v2575_v52  ;;  %v2608_v11 = vsel %vm2544_vm9, %v4312_v62, %v2576_v33  ;;  %vm4595_vm8 = vcmp.ge.f32.partialorder %v4314_v48, 0.0  ;;  %2635 = vst [vmem:[%s4358_s16 + $0x58] sm:$0xff] %v2603_v55  ;;  %2636 = vst [vmem:[%s4358_s16 + $0x60] sm:$0xff] %v2604_v3 }
 0x234   : > { %v2609_v32 = vsel %vm4595_vm8, %v4314_v48, %v2577_v13  ;;  %2637 = vst [vmem:[%s4358_s16 + $0x68] sm:$0xff] %v2605_v63  ;;  %vm4596_vm2 = vcmp.ge.f32.partialorder %v4316_v44, 0.0  ;;  %vm4597_vm15 = vcmp.ge.f32.partialorder %v4318_v27, 0.0  ;;  %vm4598_vm9 = vcmp.ge.f32.partialorder %v4320_v36, 0.0  ;;  %2638 = vst [vmem:[%s4358_s16 + $0x70] sm:$0xff] %v2606_v21 }
 0x235   : > { %v2610_v18 = vsel %vm4596_vm2, %v4316_v44, %v2578_v49  ;;  %v2611_v39 = vsel %vm4597_vm15, %v4318_v27, %v2579_v0  ;;  %v2612_v24 = vsel %vm4598_vm9, %v4320_v36, %v2580_v61  ;;  %v2613_v62 = vsel %vm2549_vm14, %v4322_v22, %v2581_v34  ;;  %2639 = vst [vmem:[%s4358_s16 + $0x78] sm:$0xff] %v2607_v50 }
 0x236   : > { %2640 = vst [vmem:[%s4358_s16 + $0x80] sm:$0xff] %v2608_v11  ;;  %2641 = vst [vmem:[%s4358_s16 + $0x88] sm:$0xff] %v2609_v32  ;;  %v2614_v48 = vsel %vm2550_vm10, %v4324_v31, %v2582_v47  ;;  %vm4599_vm3 = vcmp.ge.f32.partialorder %v4326_v58, 0.0  ;;  %vm4600_vm4 = vcmp.ge.f32.partialorder %v4328_v45, 0.0  ;;  %vm4601_vm14 = vcmp.ge.f32.partialorder %v4330_v56, 0.0 }
 0x237   : > { %v2615_v44 = vsel %vm4599_vm3, %v4326_v58, %v2583_v46  ;;  %v2616_v27 = vsel %vm4600_vm4, %v4328_v45, %v2584_v28  ;;  %v2617_v36 = vsel %vm4601_vm14, %v4330_v56, %v2585_v15  ;;  %2642 = vst [vmem:[%s4358_s16 + $0x90] sm:$0xff] %v2610_v18  ;;  %2643 = vst [vmem:[%s4358_s16 + $0x98] sm:$0xff] %v2611_v39  ;;  %vm4602_vm10 = vcmp.ge.f32.partialorder %v4334_v8, 0.0 }
 0x238   : > { %2644 = vst [vmem:[%s4358_s16 + $0xa0] sm:$0xff] %v2612_v24  ;;  %2645 = vst [vmem:[%s4358_s16 + $0xa8] sm:$0xff] %v2613_v62  ;;  %v2618_v22 = vsel %vm2554_vm0, %v4332_v51, %v2586_v54  ;;  %v2619_v31 = vsel %vm4602_vm10, %v4334_v8, %v2587_v57  ;;  %v2620_v58 = vsel %vm2556_vm12, %v4336_v2, %v2588_v35 }
 0x239   : > { %v2621_v45 = vsel %vm2557_vm11, %v4338_v59, %v2589_v29  ;;  %2646 = vst [vmem:[%s4358_s16 + $0xb0] sm:$0xff] %v2614_v48  ;;  %2647 = vst [vmem:[%s4358_s16 + $0xb8] sm:$0xff] %v2615_v44  ;;  %v2622_v56 = vsel %vm2558_vm1, %v4340_v16, %v2590_v42  ;;  %v2623_v51 = vsel %vm2559_vm13, %v4342_v19, %v2591_v5 }
 0x23a   : > { %2648 = vst [vmem:[%s4358_s16 + $0xc0] sm:$0xff] %v2616_v27  ;;  %2649 = vst [vmem:[%s4358_s16 + $0xc8] sm:$0xff] %v2617_v36 }
 0x23b   : > { %2650 = vst [vmem:[%s4358_s16 + $0xd0] sm:$0xff] %v2618_v22  ;;  %2651 = vst [vmem:[%s4358_s16 + $0xd8] sm:$0xff] %v2619_v31 }
 0x23c   : > { %2652 = vst [vmem:[%s4358_s16 + $0xe0] sm:$0xff] %v2620_v58  ;;  %2653 = vst [vmem:[%s4358_s16 + $0xe8] sm:$0xff] %v2621_v45 }
 0x23d   : > { %2654 = vst [vmem:[%s4358_s16 + $0xf0] sm:$0xff] %v2622_v56  ;;  %2655 = vst [vmem:[%s4358_s16 + $0xf8] sm:$0xff] %v2623_v51 }
 0x23e PF: > { %s13_s14 = sadd.s32 1, %s3508_s14   ;;  %s4603_s12 = smov %s3504_s13 }
 0x23f   : > { %p10_p5 = scmp.ge.s32.totalorder %s13_s14, 4   ;;  %s4604_s13 = smov %s4606_s15 }
 0x241   :  { %12 = sbr.rel (!%p10_p5) target bundleno = 2 (0x2), region = 73 }

// kernel: discriminator_forward.7
= control target key start
LH: loop header
LB: loop body
LE: loop exit
PB: predicated region body
PF: predicated region fallthrough
CT: control target
= control target key end

     0   :  { %s3894_s12 = smov 0   ;;  %s3896_s13 = smov 0   ;;  %s5138_s0 = inlined_call_operand.vmem [shape: bf16[2,64,2048], index: 0, kind: input, shape index: {}]   ;;  %s5139_s1 = inlined_call_operand.vmem [shape: bf16[2048,256], index: 1, kind: input, shape index: {}]   ;;  %s5140_s2 = inlined_call_operand.vmem [shape: f32[1,256], index: 2, kind: input, shape index: {}]   ;;  %s5141_s3 = inlined_call_operand.vmem [shape: f32[2,64,256], index: 3, kind: output, shape index: {}]  }
   0x1   :  { %s3898_s14 = smov 0  }
   0x2 LB: > { %s25_s15 = sadd.s32 1, %s3868_s13  ;;  %p3109_p0 = scmp.ge.s32.totalorder %s3872_s14, 1  ;;  %s3872_s14 = sphi %s3898_s14, %s13_s14   ;;  %s3868_s13 = sphi %s3896_s13, %s5159_s13   ;;  %s3864_s12 = sphi %s3894_s12, %s5158_s12  }
   0x3   : > { %p27_p1 = scmp.ge.s32.totalorder %s25_s15, 2  ;;  %p168_p2 = scmp.lt.s32.totalorder %s3872_s14, 3 }
   0x5   : > { %s5161_s15 = smov (%p27_p1, %s25_s15), 0  ;;  %p169_p3 = pnand %p3109_p0, %p168_p2 }
   0x7   : > { %172 = sbr.rel (%p169_p3) target bundleno = 551 (0x227), region = 32 }
   0xc   : > { %v3462_v0 = vld [vmem:[%s5139_s1 + $0x74] ss:$8 sps:$4 sm:$0xff]   ;;  %v3466_v2 = vld [vmem:[%s5139_s1 + $0x70] ss:$8 sps:$4 sm:$0xff]   ;;  %v3468_v4 = vld [vmem:[%s5139_s1 + $0x64] ss:$8 sps:$4 sm:$0xff]  }
   0xd   : > { %v3464_v1 = vld [vmem:[%s5139_s1 + $0x174] ss:$8 sps:$4 sm:$0xff]   ;;  %2180 = vmatprep.subr.bf16.mxu0 %v3462_v0  ;;  %v3467_v3 = vld [vmem:[%s5139_s1 + $0x170] ss:$8 sps:$4 sm:$0xff]   ;;  %v3470_v5 = vld [vmem:[%s5139_s1 + $0x164] ss:$8 sps:$4 sm:$0xff]  }
   0xe   : > { %2253 = vmatprep.subr.bf16.mxu1 %v3464_v1  ;;  %2181 = vmatpush1.bf16.msra.mxu0 %v3466_v2  ;;  %v3472_v6 = vld [vmem:[%s5139_s1 + $0x60] ss:$8 sps:$4 sm:$0xff]   ;;  %v3474_v8 = vld [vmem:[%s5139_s1 + $0x54] ss:$8 sps:$4 sm:$0xff]   ;;  %v3478_v10 = vld [vmem:[%s5139_s1 + $0x50] ss:$8 sps:$4 sm:$0xff]  }
   0xf   : > { %2254 = vmatpush1.bf16.msra.mxu1 %v3467_v3  ;;  %2182 = vmatprep.subr.bf16.mxu0 %v3468_v4  ;;  %v3473_v7 = vld [vmem:[%s5139_s1 + $0x160] ss:$8 sps:$4 sm:$0xff]   ;;  %v3476_v9 = vld [vmem:[%s5139_s1 + $0x154] ss:$8 sps:$4 sm:$0xff]   ;;  %v3479_v11 = vld [vmem:[%s5139_s1 + $0x150] ss:$8 sps:$4 sm:$0xff]  }
  0x10   : > { %2255 = vmatprep.subr.bf16.mxu1 %v3470_v5  ;;  %v3480_v12 = vld [vmem:[%s5139_s1 + $0x44] ss:$8 sps:$4 sm:$0xff]   ;;  %v3484_v14 = vld [vmem:[%s5139_s1 + $0x40] ss:$8 sps:$4 sm:$0xff]   ;;  %v3486_v16 = vld [vmem:[%s5139_s1 + $0x34] ss:$8 sps:$4 sm:$0xff]  }
  0x11   : > { %v3482_v13 = vld [vmem:[%s5139_s1 + $0x144] ss:$8 sps:$4 sm:$0xff]   ;;  %v3485_v15 = vld [vmem:[%s5139_s1 + $0x140] ss:$8 sps:$4 sm:$0xff]   ;;  %v3488_v17 = vld [vmem:[%s5139_s1 + $0x134] ss:$8 sps:$4 sm:$0xff]  }
  0x12   : > { %2183 = vmatpush1.bf16.msra.mxu0 %v3472_v6  ;;  %v3490_v18 = vld [vmem:[%s5139_s1 + $0x30] ss:$8 sps:$4 sm:$0xff]   ;;  %v3492_v20 = vld [vmem:[%s5139_s1 + $0x24] ss:$8 sps:$4 sm:$0xff]   ;;  %v3496_v22 = vld [vmem:[%s5139_s1 + $0x20] ss:$8 sps:$4 sm:$0xff]  }
  0x13   : > { %2256 = vmatpush1.bf16.msra.mxu1 %v3473_v7  ;;  %2184 = vmatprep.subr.bf16.mxu0 %v3474_v8  ;;  %v3491_v19 = vld [vmem:[%s5139_s1 + $0x130] ss:$8 sps:$4 sm:$0xff]   ;;  %v3494_v21 = vld [vmem:[%s5139_s1 + $0x124] ss:$8 sps:$4 sm:$0xff]   ;;  %v3497_v23 = vld [vmem:[%s5139_s1 + $0x120] ss:$8 sps:$4 sm:$0xff]  }
  0x14   : > { %2257 = vmatprep.subr.bf16.mxu1 %v3476_v9  ;;  %v3498_v24 = vld [vmem:[%s5139_s1 + $0x14] ss:$8 sps:$4 sm:$0xff]   ;;  %v3502_v26 = vld [vmem:[%s5139_s1 + $0x10] ss:$8 sps:$4 sm:$0xff]   ;;  %v3504_v28 = vld [vmem:[%s5139_s1 + $0x4] ss:$8 sps:$4 sm:$0xff]  }
  0x15   : > { %v3500_v25 = vld [vmem:[%s5139_s1 + $0x114] ss:$8 sps:$4 sm:$0xff]   ;;  %v3503_v27 = vld [vmem:[%s5139_s1 + $0x110] ss:$8 sps:$4 sm:$0xff]   ;;  %v3506_v29 = vld [vmem:[%s5139_s1 + $0x104] ss:$8 sps:$4 sm:$0xff]  }
  0x16   : > { %2185 = vmatpush1.bf16.msra.mxu0 %v3478_v10  ;;  %v3508_v30 = vld [vmem:[%s5139_s1] ss:$8 sps:$4 sm:$0xff]   ;;  %v3510_v32 = vld [vmem:[%s5139_s1 + $0xf4] ss:$8 sps:$4 sm:$0xff]   ;;  %p203_p4 = scmp.lt.s32.totalorder %s3864_s12, 1 }
  0x17   : > { %2258 = vmatpush1.bf16.msra.mxu1 %v3479_v11  ;;  %2186 = vmatprep.subr.bf16.mxu0 %v3480_v12  ;;  %v3509_v31 = vld [vmem:[%s5139_s1 + $0x100] ss:$8 sps:$4 sm:$0xff]   ;;  %v3512_v33 = vld [vmem:[%s5139_s1 + $0x1f4] ss:$8 sps:$4 sm:$0xff]   ;;  %v3514_v34 = vld [vmem:[%s5139_s1 + $0xf0] ss:$8 sps:$4 sm:$0xff]  }
  0x18   : > { %2259 = vmatprep.subr.bf16.mxu1 %v3482_v13  ;;  %v3515_v35 = vld [vmem:[%s5139_s1 + $0x1f0] ss:$8 sps:$4 sm:$0xff]   ;;  %v3516_v36 = vld [vmem:[%s5139_s1 + $0xe4] ss:$8 sps:$4 sm:$0xff]   ;;  %s5163_s12 = smov (!%p203_p4, %s3864_s12), 1 }
  0x19   : > { %v3518_v37 = vld [vmem:[%s5139_s1 + $0x1e4] ss:$8 sps:$4 sm:$0xff]   ;;  %v3520_v38 = vld [vmem:[%s5139_s1 + $0xe0] ss:$8 sps:$4 sm:$0xff]   ;;  %v3522_v40 = vld [vmem:[%s5139_s1 + $0xd4] ss:$8 sps:$4 sm:$0xff]  }
  0x1a   : > { %2187 = vmatpush1.bf16.msra.mxu0 %v3484_v14  ;;  %v3521_v39 = vld [vmem:[%s5139_s1 + $0x1e0] ss:$8 sps:$4 sm:$0xff]   ;;  %s3436_s29 = sshll.u32 %s5163_s12, 9  ;;  %v3524_v41 = vld [vmem:[%s5139_s1 + $0x1d4] ss:$8 sps:$4 sm:$0xff]   ;;  %s3437_s23 = sshll.u32 %s5163_s12, 7 }
  0x1b   : > { %2260 = vmatpush1.bf16.msra.mxu1 %v3485_v15  ;;  %2188 = vmatprep.subr.bf16.mxu0 %v3486_v16  ;;  %v3526_v42 = vld [vmem:[%s5139_s1 + $0xd0] ss:$8 sps:$4 sm:$0xff]   ;;  %s4054_s11 = scalar_lea.vmem %s5138_s0, %s3436_s29  ;;  %v3528_v44 = vld [vmem:[%s5139_s1 + $0xc4] ss:$8 sps:$4 sm:$0xff]   ;;  %v3532_v46 = vld [vmem:[%s5139_s1 + $0xc0] ss:$8 sps:$4 sm:$0xff]   ;;  %s5095_s26 = scalar_lea.vmem %s5141_s3, %s3437_s23 }
  0x1c   : > { %2261 = vmatprep.subr.bf16.mxu1 %v3488_v17  ;;  %v3527_v43 = vld [vmem:[%s5139_s1 + $0x1d0] ss:$8 sps:$4 sm:$0xff]   ;;  %v3530_v45 = vld [vmem:[%s5139_s1 + $0x1c4] ss:$8 sps:$4 sm:$0xff]   ;;  %v3533_v47 = vld [vmem:[%s5139_s1 + $0x1c0] ss:$8 sps:$4 sm:$0xff]  }
  0x1d   : > { %v260_v48 = vld [vmem:[%s4054_s11] sm:$0xff]  ;;  %v261_v50 = vld [vmem:[%s4054_s11 + $0x8] sm:$0xff]  ;;  %v3534_v52 = vld [vmem:[%s5139_s1 + $0xb4] ss:$8 sps:$4 sm:$0xff]  }
  0x1e   : > { %2189 = vmatpush1.bf16.msra.mxu0 %v3490_v18  ;;  %v268_v49 = vld [vmem:[%s4054_s11 + $0x40] sm:$0xff]  ;;  %v269_v51 = vld [vmem:[%s4054_s11 + $0x48] sm:$0xff]  ;;  %v3536_v54 = vld [vmem:[%s5139_s1 + $0x1b4] ss:$8 sps:$4 sm:$0xff]  }
  0x1f   : > { %2262 = vmatpush1.bf16.msra.mxu1 %v3491_v19  ;;  %2190 = vmatprep.subr.bf16.mxu0 %v3492_v20  ;;  %v3115_v53 = vcombine.high %v260_v48, %v268_v49  ;;  %v3117_v55 = vcombine.high %v261_v50, %v269_v51  ;;  %v3538_v56 = vld [vmem:[%s5139_s1 + $0xb0] ss:$8 sps:$4 sm:$0xff]   ;;  %v3540_v58 = vld [vmem:[%s5139_s1 + $0xa4] ss:$8 sps:$4 sm:$0xff]   ;;  %v3544_v60 = vld [vmem:[%s5139_s1 + $0xa0] ss:$8 sps:$4 sm:$0xff]   ;;  %v3114_v8 = vcombine.low %v260_v48, %v268_v49 }
  0x20   : > { %2263 = vmatprep.subr.bf16.mxu1 %v3494_v21  ;;  %v3539_v57 = vld [vmem:[%s5139_s1 + $0x1b0] ss:$8 sps:$4 sm:$0xff]   ;;  %v3542_v59 = vld [vmem:[%s5139_s1 + $0x1a4] ss:$8 sps:$4 sm:$0xff]   ;;  %v3545_v61 = vld [vmem:[%s5139_s1 + $0x1a0] ss:$8 sps:$4 sm:$0xff]   ;;  %v3116_v9 = vcombine.low %v261_v50, %v269_v51 }
  0x21   : > { %2212 = vmatprep.mubr.bf16.mxu0 %v3115_v53  ;;  %2285 = vmatprep.mubr.bf16.mxu1 %v3117_v55  ;;  %v3546_v62 = vld [vmem:[%s5139_s1 + $0x94] ss:$8 sps:$4 sm:$0xff]   ;;  %v3550_v0 = vld [vmem:[%s5139_s1 + $0x90] ss:$8 sps:$4 sm:$0xff]   ;;  %v3552_v2 = vld [vmem:[%s5139_s1 + $0x84] ss:$8 sps:$4 sm:$0xff]  }
  0x22   : > { %2191 = vmatpush1.bf16.msra.mxu0 %v3496_v22  ;;  %v3548_v63 = vld [vmem:[%s5139_s1 + $0x194] ss:$8 sps:$4 sm:$0xff]   ;;  %v3551_v1 = vld [vmem:[%s5139_s1 + $0x190] ss:$8 sps:$4 sm:$0xff]   ;;  %v3554_v3 = vld [vmem:[%s5139_s1 + $0x184] ss:$8 sps:$4 sm:$0xff]  }
  0x23   : > { %2264 = vmatpush1.bf16.msra.mxu1 %v3497_v23  ;;  %2192 = vmatprep.subr.bf16.mxu0 %v3498_v24  ;;  %v3556_v4 = vld [vmem:[%s5139_s1 + $0x80] ss:$8 sps:$4 sm:$0xff]   ;;  %v3560_v6 = vld [vmem:[%s5139_s1 + $0x274] ss:$8 sps:$4 sm:$0xff]   ;;  %v3558_v10 = vld [vmem:[%s5139_s1 + $0x270] ss:$8 sps:$4 sm:$0xff]  }
  0x24   : > { %2265 = vmatprep.subr.bf16.mxu1 %v3500_v25  ;;  %v3557_v5 = vld [vmem:[%s5139_s1 + $0x180] ss:$8 sps:$4 sm:$0xff]   ;;  %v3563_v7 = vld [vmem:[%s5139_s1 + $0x374] ss:$8 sps:$4 sm:$0xff]   ;;  %v3561_v11 = vld [vmem:[%s5139_s1 + $0x370] ss:$8 sps:$4 sm:$0xff]  }
  0x25   : > { %v3566_v12 = vld [vmem:[%s5139_s1 + $0x264] ss:$8 sps:$4 sm:$0xff]   ;;  %v3564_v14 = vld [vmem:[%s5139_s1 + $0x260] ss:$8 sps:$4 sm:$0xff]   ;;  %v3572_v16 = vld [vmem:[%s5139_s1 + $0x254] ss:$8 sps:$4 sm:$0xff]  }
  0x26   : > { %2193 = vmatpush1.bf16.msra.mxu0 %v3502_v26  ;;  %v3569_v13 = vld [vmem:[%s5139_s1 + $0x364] ss:$8 sps:$4 sm:$0xff]   ;;  %v3567_v15 = vld [vmem:[%s5139_s1 + $0x360] ss:$8 sps:$4 sm:$0xff]   ;;  %v3575_v17 = vld [vmem:[%s5139_s1 + $0x354] ss:$8 sps:$4 sm:$0xff]  }
  0x27   : > { %2266 = vmatpush1.bf16.msra.mxu1 %v3503_v27  ;;  %2194 = vmatprep.subr.bf16.mxu0 %v3504_v28  ;;  %v276_v18 = vld [vmem:[%s4054_s11 + $0x80] sm:$0xff]  ;;  %v277_v20 = vld [vmem:[%s4054_s11 + $0x88] sm:$0xff]  ;;  %v3570_v24 = vld [vmem:[%s5139_s1 + $0x250] ss:$8 sps:$4 sm:$0xff]  }
  0x28   : > { %2267 = vmatprep.subr.bf16.mxu1 %v3506_v29  ;;  %v284_v19 = vld [vmem:[%s4054_s11 + $0xc0] sm:$0xff]  ;;  %v285_v22 = vld [vmem:[%s4054_s11 + $0xc8] sm:$0xff]  ;;  %v3573_v25 = vld [vmem:[%s5139_s1 + $0x350] ss:$8 sps:$4 sm:$0xff]  }
  0x29   : > { %v3131_v21 = vcombine.high %v276_v18, %v284_v19  ;;  %v3133_v23 = vcombine.high %v277_v20, %v285_v22  ;;  %v3130_v26 = vcombine.low %v276_v18, %v284_v19  ;;  %v3132_v27 = vcombine.low %v277_v20, %v285_v22  ;;  %v3578_v28 = vld [vmem:[%s5139_s1 + $0x244] ss:$8 sps:$4 sm:$0xff]   ;;  %v3588_v51 = vld [vmem:[%s5139_s1 + $0x220] ss:$8 sps:$4 sm:$0xff]   ;;  %v3599_v55 = vld [vmem:[%s5139_s1 + $0x314] ss:$8 sps:$4 sm:$0xff]  }
  0x2a   : > { %2195 = vmatpush1.bf16.msra.mxu0 %v3508_v30  ;;  %v3581_v29 = vld [vmem:[%s5139_s1 + $0x344] ss:$8 sps:$4 sm:$0xff]   ;;  %v3576_v30 = vld [vmem:[%s5139_s1 + $0x240] ss:$8 sps:$4 sm:$0xff]   ;;  %v3632_v22 = vld [vmem:[%s5139_s1 + $0x2b4] ss:$8 sps:$4 sm:$0xff]  }
  0x2b   : > { %2268 = vmatpush1.bf16.msra.mxu1 %v3509_v31  ;;  %2196 = vmatprep.subr.bf16.mxu0 %v3510_v32  ;;  %v3579_v31 = vld [vmem:[%s5139_s1 + $0x340] ss:$8 sps:$4 sm:$0xff]   ;;  %v3626_v18 = vld [vmem:[%s5139_s1 + $0x2c4] ss:$8 sps:$4 sm:$0xff]  }
  0x2c   : > { %2269 = vmatprep.subr.bf16.mxu1 %v3512_v33  ;;  %v292_v32 = vld [vmem:[%s4054_s11 + $0x100] sm:$0xff]  ;;  %v309_v49 = vld [vmem:[%s4054_s11 + $0x188] sm:$0xff] }
  0x2d   : > { %v300_v33 = vld [vmem:[%s4054_s11 + $0x140] sm:$0xff]  ;;  %v317_v50 = vld [vmem:[%s4054_s11 + $0x1c8] sm:$0xff] }
  0x2e   : > { %2197 = vmatpush2.bf16.msra.mxu0 %v3514_v34  ;;  %v293_v34 = vld [vmem:[%s4054_s11 + $0x108] sm:$0xff]  ;;  %v3165_v53 = vcombine.high %v309_v49, %v317_v50 }
  0x2f   : > { %2270 = vmatpush2.bf16.msra.mxu1 %v3515_v35  ;;  %2198 = vmatprep.subr.bf16.mxu0 %v3516_v36  ;;  %v301_v35 = vld [vmem:[%s4054_s11 + $0x148] sm:$0xff]  ;;  %v3584_v36 = vld [vmem:[%s5139_s1 + $0x234] ss:$8 sps:$4 sm:$0xff]  }
  0x30   : > { %2271 = vmatprep.subr.bf16.mxu1 %v3518_v37  ;;  %v3147_v37 = vcombine.high %v292_v32, %v300_v33  ;;  %v3629_v19 = vld [vmem:[%s5139_s1 + $0x3c4] ss:$8 sps:$4 sm:$0xff]   ;;  %v3624_v20 = vld [vmem:[%s5139_s1 + $0x2c0] ss:$8 sps:$4 sm:$0xff]  }
  0x32   : > { %2199 = vmatpush2.bf16.msra.mxu0 %v3520_v38  ;;  %v3149_v38 = vcombine.high %v293_v34, %v301_v35 }
  0x33   : > { %2272 = vmatpush2.bf16.msra.mxu1 %v3521_v39  ;;  %2200 = vmatprep.subr.bf16.mxu0 %v3522_v40  ;;  %v3587_v39 = vld [vmem:[%s5139_s1 + $0x334] ss:$8 sps:$4 sm:$0xff]   ;;  %v3582_v40 = vld [vmem:[%s5139_s1 + $0x230] ss:$8 sps:$4 sm:$0xff]  }
  0x34   : > { %2273 = vmatprep.subr.bf16.mxu1 %v3524_v41  ;;  %v3585_v41 = vld [vmem:[%s5139_s1 + $0x330] ss:$8 sps:$4 sm:$0xff]  }
  0x36   : > { %2201 = vmatpush2.bf16.msra.mxu0 %v3526_v42  ;;  %v3146_v42 = vcombine.low %v292_v32, %v300_v33  ;;  %v3642_v32 = vld [vmem:[%s5139_s1 + $0x290] ss:$8 sps:$4 sm:$0xff]  }
  0x37   : > { %2274 = vmatpush2.bf16.msra.mxu1 %v3527_v43  ;;  %2202 = vmatprep.subr.bf16.mxu0 %v3528_v44  ;;  %v3148_v43 = vcombine.low %v293_v34, %v301_v35  ;;  %v3590_v44 = vld [vmem:[%s5139_s1 + $0x224] ss:$8 sps:$4 sm:$0xff]   ;;  %v3645_v33 = vld [vmem:[%s5139_s1 + $0x390] ss:$8 sps:$4 sm:$0xff]  }
  0x38   : > { %2275 = vmatprep.subr.bf16.mxu1 %v3530_v45  ;;  %v3593_v45 = vld [vmem:[%s5139_s1 + $0x324] ss:$8 sps:$4 sm:$0xff]  }
  0x39   : > { %v3650_v34 = vld [vmem:[%s5139_s1 + $0x284] ss:$8 sps:$4 sm:$0xff]  }
  0x3a   : > { %2203 = vmatpush2.bf16.msra.mxu0 %v3532_v46  ;;  %v308_v46 = vld [vmem:[%s4054_s11 + $0x180] sm:$0xff] }
  0x3b   : > { %2276 = vmatpush2.bf16.msra.mxu1 %v3533_v47  ;;  %2204 = vmatprep.subr.bf16.mxu0 %v3534_v52  ;;  %v316_v47 = vld [vmem:[%s4054_s11 + $0x1c0] sm:$0xff] }
  0x3c   : > { %2277 = vmatprep.subr.bf16.mxu1 %v3536_v54  ;;  %v3163_v48 = vcombine.high %v308_v46, %v316_v47  ;;  %v3591_v52 = vld [vmem:[%s5139_s1 + $0x320] ss:$8 sps:$4 sm:$0xff]   ;;  %v3596_v54 = vld [vmem:[%s5139_s1 + $0x214] ss:$8 sps:$4 sm:$0xff]   ;;  %v3653_v35 = vld [vmem:[%s5139_s1 + $0x384] ss:$8 sps:$4 sm:$0xff]  }
  0x3e   : > { %2205 = vmatpush2.bf16.msra.mxu0 %v3538_v56  ;;  %v3594_v56 = vld [vmem:[%s5139_s1 + $0x210] ss:$8 sps:$4 sm:$0xff]  }
  0x3f   : > { %2278 = vmatpush2.bf16.msra.mxu1 %v3539_v57  ;;  %2206 = vmatprep.subr.bf16.mxu0 %v3540_v58  ;;  %v3597_v57 = vld [vmem:[%s5139_s1 + $0x310] ss:$8 sps:$4 sm:$0xff]   ;;  %v3162_v58 = vcombine.low %v308_v46, %v316_v47 }
  0x40   : > { %2279 = vmatprep.subr.bf16.mxu1 %v3542_v59  ;;  %v3164_v59 = vcombine.low %v309_v49, %v317_v50  ;;  %v279_v46 = vld [vmem:[%s4054_s11 + $0x98] sm:$0xff]  ;;  %v3665_v49 = vld [vmem:[%s5139_s1 + $0x564] ss:$8 sps:$4 sm:$0xff]  }
  0x41   : > { %v287_v47 = vld [vmem:[%s4054_s11 + $0xd8] sm:$0xff] }
  0x42   : > { %2207 = vmatpush2.bf16.msra.mxu0 %v3544_v60  ;;  %v3602_v60 = vld [vmem:[%s5139_s1 + $0x204] ss:$8 sps:$4 sm:$0xff]  }
  0x43   : > { %2280 = vmatpush2.bf16.msra.mxu1 %v3545_v61  ;;  %2208 = vmatprep.subr.bf16.mxu0 %v3546_v62  ;;  %v3605_v61 = vld [vmem:[%s5139_s1 + $0x304] ss:$8 sps:$4 sm:$0xff]   ;;  %v3600_v62 = vld [vmem:[%s5139_s1 + $0x200] ss:$8 sps:$4 sm:$0xff]  }
  0x44   : > { %2281 = vmatprep.subr.bf16.mxu1 %v3548_v63  ;;  %v3603_v63 = vld [vmem:[%s5139_s1 + $0x300] ss:$8 sps:$4 sm:$0xff]  }
  0x46   : > { %2209 = vmatpush2.bf16.msra.mxu0 %v3550_v0  ;;  %v4229_v0 = vld [vmem:[%s4054_s11 + $0x10] sm:$0xff] }
  0x47   : > { %2282 = vmatpush2.bf16.msra.mxu1 %v3551_v1  ;;  %2210 = vmatprep.subr.bf16.mxu0 %v3552_v2  ;;  %v4232_v1 = vld [vmem:[%s4054_s11 + $0x50] sm:$0xff]  ;;  %v4235_v2 = vld [vmem:[%s4054_s11 + $0x18] sm:$0xff] }
  0x48   : > { %2283 = vmatprep.subr.bf16.mxu1 %v3554_v3  ;;  %v4238_v3 = vld [vmem:[%s4054_s11 + $0x58] sm:$0xff] }
  0x4a   : > { %2211 = vmatpush2.bf16.msra.mxu0 %v3556_v4  ;;  %v3608_v4 = vld [vmem:[%s5139_s1 + $0x2f4] ss:$8 sps:$4 sm:$0xff]  }
  0x4b   : > { %2284 = vmatpush2.bf16.msra.mxu1 %v3557_v5  ;;  %2326 = vmatprep.subr.bf16.mxu0 %v3560_v6  ;;  %v3119_v5 = vcombine.high %v4229_v0, %v4232_v1  ;;  %v3611_v6 = vld [vmem:[%s5139_s1 + $0x3f4] ss:$8 sps:$4 sm:$0xff]  }
  0x4c   : > { %2399 = vmatprep.subr.bf16.mxu1 %v3563_v7  ;;  %v3121_v7 = vcombine.high %v4235_v2, %v4238_v3 }
  0x4d   : > { %2213 = vmatmul.mubr.bf16.vlgmr.msra.gmra.mxu0 %v3114_v8  ;;  %v3606_v8 = vld [vmem:[%s5139_s1 + $0x2f0] ss:$8 sps:$4 sm:$0xff]  }
  0x4e   : > { %2286 = vmatmul.mubr.bf16.vlgmr.msra.gmra.mxu1 %v3116_v9  ;;  %2327 = vmatpush1.bf16.msra.mxu0 %v3558_v10  ;;  %v3609_v9 = vld [vmem:[%s5139_s1 + $0x3f0] ss:$8 sps:$4 sm:$0xff]   ;;  %v3614_v10 = vld [vmem:[%s5139_s1 + $0x2e4] ss:$8 sps:$4 sm:$0xff]  }
  0x4f   : > { %2400 = vmatpush1.bf16.msra.mxu1 %v3561_v11  ;;  %2328 = vmatprep.subr.bf16.mxu0 %v3566_v12  ;;  %v3617_v11 = vld [vmem:[%s5139_s1 + $0x3e4] ss:$8 sps:$4 sm:$0xff]   ;;  %v3612_v12 = vld [vmem:[%s5139_s1 + $0x2e0] ss:$8 sps:$4 sm:$0xff]  }
  0x50   : > { %2401 = vmatprep.subr.bf16.mxu1 %v3569_v13  ;;  %2222 = vmatprep.mubr.bf16.mxu0 %v3131_v21  ;;  %v3615_v13 = vld [vmem:[%s5139_s1 + $0x3e0] ss:$8 sps:$4 sm:$0xff]  }
  0x51   : > { %2295 = vmatprep.mubr.bf16.mxu1 %v3133_v23  ;;  %v3627_v21 = vld [vmem:[%s5139_s1 + $0x3c0] ss:$8 sps:$4 sm:$0xff]   ;;  %v3635_v23 = vld [vmem:[%s5139_s1 + $0x3b4] ss:$8 sps:$4 sm:$0xff]  }
  0x52   : > { %2329 = vmatpush1.bf16.msra.mxu0 %v3564_v14  ;;  %v3620_v14 = vld [vmem:[%s5139_s1 + $0x2d4] ss:$8 sps:$4 sm:$0xff]  }
  0x53   : > { %2402 = vmatpush1.bf16.msra.mxu1 %v3567_v15  ;;  %2330 = vmatprep.subr.bf16.mxu0 %v3572_v16  ;;  %v3623_v15 = vld [vmem:[%s5139_s1 + $0x3d4] ss:$8 sps:$4 sm:$0xff]   ;;  %v3618_v16 = vld [vmem:[%s5139_s1 + $0x2d0] ss:$8 sps:$4 sm:$0xff]  }
  0x54   : > { %2403 = vmatprep.subr.bf16.mxu1 %v3575_v17  ;;  %v3621_v17 = vld [vmem:[%s5139_s1 + $0x3d0] ss:$8 sps:$4 sm:$0xff]  }
  0x55   : > { %2223 = vmatmul.mubr.bf16.gmra.mxu0 %v3130_v26  ;;  %v3638_v26 = vld [vmem:[%s5139_s1 + $0x2a4] ss:$8 sps:$4 sm:$0xff]  }
  0x56   : > { %2296 = vmatmul.mubr.bf16.gmra.mxu1 %v3132_v27  ;;  %2331 = vmatpush1.bf16.msra.mxu0 %v3570_v24  ;;  %v3630_v24 = vld [vmem:[%s5139_s1 + $0x2b0] ss:$8 sps:$4 sm:$0xff]   ;;  %v3641_v27 = vld [vmem:[%s5139_s1 + $0x3a4] ss:$8 sps:$4 sm:$0xff]  }
  0x57   : > { %2404 = vmatpush1.bf16.msra.mxu1 %v3573_v25  ;;  %2332 = vmatprep.subr.bf16.mxu0 %v3578_v28  ;;  %v3633_v25 = vld [vmem:[%s5139_s1 + $0x3b0] ss:$8 sps:$4 sm:$0xff]   ;;  %v3636_v28 = vld [vmem:[%s5139_s1 + $0x2a0] ss:$8 sps:$4 sm:$0xff]  }
  0x58   : > { %2405 = vmatprep.subr.bf16.mxu1 %v3581_v29  ;;  %2232 = vmatprep.mubr.bf16.mxu0 %v3147_v37  ;;  %v3639_v29 = vld [vmem:[%s5139_s1 + $0x3a0] ss:$8 sps:$4 sm:$0xff]  }
  0x59   : > { %2305 = vmatprep.mubr.bf16.mxu1 %v3149_v38  ;;  %v3651_v37 = vld [vmem:[%s5139_s1 + $0x380] ss:$8 sps:$4 sm:$0xff]   ;;  %v3656_v38 = vld [vmem:[%s5139_s1 + $0x474] ss:$8 sps:$4 sm:$0xff]  }
  0x5a   : > { %2333 = vmatpush1.bf16.msra.mxu0 %v3576_v30  ;;  %v3644_v30 = vld [vmem:[%s5139_s1 + $0x294] ss:$8 sps:$4 sm:$0xff]  }
  0x5b   : > { %2406 = vmatpush1.bf16.msra.mxu1 %v3579_v31  ;;  %2334 = vmatprep.subr.bf16.mxu0 %v3584_v36  ;;  %v3647_v31 = vld [vmem:[%s5139_s1 + $0x394] ss:$8 sps:$4 sm:$0xff]   ;;  %v3648_v36 = vld [vmem:[%s5139_s1 + $0x280] ss:$8 sps:$4 sm:$0xff]  }
  0x5c   : > { %2407 = vmatprep.subr.bf16.mxu1 %v3587_v39  ;;  %v3659_v39 = vld [vmem:[%s5139_s1 + $0x574] ss:$8 sps:$4 sm:$0xff]  }
  0x5d   : > { %2233 = vmatmul.mubr.bf16.gmra.mxu0 %v3146_v42  ;;  %v278_v42 = vld [vmem:[%s4054_s11 + $0x90] sm:$0xff] }
  0x5e   : > { %2306 = vmatmul.mubr.bf16.gmra.mxu1 %v3148_v43  ;;  %2335 = vmatpush1.bf16.msra.mxu0 %v3582_v40  ;;  %v3654_v40 = vld [vmem:[%s5139_s1 + $0x470] ss:$8 sps:$4 sm:$0xff]  }
  0x5f   : > { %2408 = vmatpush1.bf16.msra.mxu1 %v3585_v41  ;;  %2336 = vmatprep.subr.bf16.mxu0 %v3590_v44  ;;  %v3657_v41 = vld [vmem:[%s5139_s1 + $0x570] ss:$8 sps:$4 sm:$0xff]   ;;  %v3118_v44 = vcombine.low %v4229_v0, %v4232_v1  ;;  %v3674_v0 = vld [vmem:[%s5139_s1 + $0x444] ss:$8 sps:$4 sm:$0xff]  }
  0x60   : > { %2409 = vmatprep.subr.bf16.mxu1 %v3593_v45  ;;  %2242 = vmatprep.mubr.bf16.mxu0 %v3163_v48  ;;  %v286_v43 = vld [vmem:[%s4054_s11 + $0xd0] sm:$0xff]  ;;  %v3120_v45 = vcombine.low %v4235_v2, %v4238_v3  ;;  %v3662_v48 = vld [vmem:[%s5139_s1 + $0x464] ss:$8 sps:$4 sm:$0xff]  }
  0x61   : > { %2315 = vmatprep.mubr.bf16.mxu1 %v3165_v53  ;;  %v3135_v50 = vcombine.high %v278_v42, %v286_v43  ;;  %v3663_v53 = vld [vmem:[%s5139_s1 + $0x560] ss:$8 sps:$4 sm:$0xff]   ;;  %v3677_v1 = vld [vmem:[%s5139_s1 + $0x544] ss:$8 sps:$4 sm:$0xff]  }
  0x62   : > { %2337 = vmatpush1.bf16.msra.mxu0 %v3588_v51  ;;  %v3137_v51 = vcombine.high %v279_v46, %v287_v47 }
  0x63   : > { %2410 = vmatpush1.bf16.msra.mxu1 %v3591_v52  ;;  %2338 = vmatprep.subr.bf16.mxu0 %v3596_v54  ;;  %v3660_v52 = vld [vmem:[%s5139_s1 + $0x460] ss:$8 sps:$4 sm:$0xff]   ;;  %v3668_v54 = vld [vmem:[%s5139_s1 + $0x454] ss:$8 sps:$4 sm:$0xff]  }
  0x64   : > { %2411 = vmatprep.subr.bf16.mxu1 %v3599_v55  ;;  %v3671_v55 = vld [vmem:[%s5139_s1 + $0x554] ss:$8 sps:$4 sm:$0xff]  }
  0x65   : > { %2243 = vmatmul.mubr.bf16.gmra.mxu0 %v3162_v58  ;;  %v294_v58 = vld [vmem:[%s4054_s11 + $0x110] sm:$0xff] }
  0x66   : > { %2316 = vmatmul.mubr.bf16.gmra.mxu1 %v3164_v59  ;;  %2339 = vmatpush1.bf16.msra.mxu0 %v3594_v56  ;;  %v3666_v56 = vld [vmem:[%s5139_s1 + $0x450] ss:$8 sps:$4 sm:$0xff]  }
  0x67   : > { %2412 = vmatpush1.bf16.msra.mxu1 %v3597_v57  ;;  %2340 = vmatprep.subr.bf16.mxu0 %v3602_v60  ;;  %v3669_v57 = vld [vmem:[%s5139_s1 + $0x550] ss:$8 sps:$4 sm:$0xff]   ;;  %v3134_v60 = vcombine.low %v278_v42, %v286_v43  ;;  %v3710_v42 = vld [vmem:[%s5139_s1 + $0x4e4] ss:$8 sps:$4 sm:$0xff]  }
  0x68   : > { %2413 = vmatprep.subr.bf16.mxu1 %v3605_v61  ;;  %2358 = vmatprep.mubr.bf16.mxu0 %v3119_v5  ;;  %v302_v59 = vld [vmem:[%s4054_s11 + $0x150] sm:$0xff]  ;;  %v3136_v61 = vcombine.low %v279_v46, %v287_v47  ;;  %v3675_v5 = vld [vmem:[%s5139_s1 + $0x540] ss:$8 sps:$4 sm:$0xff]   ;;  %v3713_v43 = vld [vmem:[%s5139_s1 + $0x5e4] ss:$8 sps:$4 sm:$0xff]  }
  0x69   : > { %2431 = vmatprep.mubr.bf16.mxu1 %v3121_v7  ;;  %v3151_v2 = vcombine.high %v294_v58, %v302_v59  ;;  %v3683_v7 = vld [vmem:[%s5139_s1 + $0x534] ss:$8 sps:$4 sm:$0xff]  }
  0x6a   : > { %2341 = vmatpush1.bf16.msra.mxu0 %v3600_v62  ;;  %v295_v62 = vld [vmem:[%s4054_s11 + $0x118] sm:$0xff] }
  0x6b   : > { %2414 = vmatpush1.bf16.msra.mxu1 %v3603_v63  ;;  %2342 = vmatprep.subr.bf16.mxu0 %v3608_v4  ;;  %v303_v63 = vld [vmem:[%s4054_s11 + $0x158] sm:$0xff]  ;;  %v3672_v4 = vld [vmem:[%s5139_s1 + $0x440] ss:$8 sps:$4 sm:$0xff]  }
  0x6c   : > { %2415 = vmatprep.subr.bf16.mxu1 %v3611_v6  ;;  %v3153_v3 = vcombine.high %v295_v62, %v303_v63  ;;  %v3680_v6 = vld [vmem:[%s5139_s1 + $0x434] ss:$8 sps:$4 sm:$0xff]  }
  0x6d   : > { %v3716_v46 = vld [vmem:[%s5139_s1 + $0x4d4] ss:$8 sps:$4 sm:$0xff]  }
  0x6e   : > { %2343 = vmatpush2.bf16.msra.mxu0 %v3606_v8  ;;  %v3678_v8 = vld [vmem:[%s5139_s1 + $0x430] ss:$8 sps:$4 sm:$0xff]   ;;  %v3719_v47 = vld [vmem:[%s5139_s1 + $0x5d4] ss:$8 sps:$4 sm:$0xff]  }
  0x6f   : > { %2416 = vmatpush2.bf16.msra.mxu1 %v3609_v9  ;;  %2344 = vmatprep.subr.bf16.mxu0 %v3614_v10  ;;  %v310_v9 = vld [vmem:[%s4054_s11 + $0x190] sm:$0xff] }
  0x70   : > { %2417 = vmatprep.subr.bf16.mxu1 %v3617_v11  ;;  %v318_v10 = vld [vmem:[%s4054_s11 + $0x1d0] sm:$0xff]  ;;  %v3150_v11 = vcombine.low %v294_v58, %v302_v59  ;;  %v3734_v58 = vld [vmem:[%s5139_s1 + $0x4a4] ss:$8 sps:$4 sm:$0xff]  }
  0x71   : > { %v3737_v59 = vld [vmem:[%s5139_s1 + $0x5a4] ss:$8 sps:$4 sm:$0xff]  }
  0x72   : > { %2345 = vmatpush2.bf16.msra.mxu0 %v3612_v12  ;;  %v3152_v12 = vcombine.low %v295_v62, %v303_v63  ;;  %v3740_v62 = vld [vmem:[%s5139_s1 + $0x494] ss:$8 sps:$4 sm:$0xff]  }
  0x73   : > { %2418 = vmatpush2.bf16.msra.mxu1 %v3615_v13  ;;  %2346 = vmatprep.subr.bf16.mxu0 %v3620_v14  ;;  %v311_v13 = vld [vmem:[%s4054_s11 + $0x198] sm:$0xff] }
  0x74   : > { %2419 = vmatprep.subr.bf16.mxu1 %v3623_v15  ;;  %v319_v14 = vld [vmem:[%s4054_s11 + $0x1d8] sm:$0xff] }
  0x75   : > { %v3681_v15 = vld [vmem:[%s5139_s1 + $0x530] ss:$8 sps:$4 sm:$0xff]   ;;  %v3743_v63 = vld [vmem:[%s5139_s1 + $0x594] ss:$8 sps:$4 sm:$0xff]  }
  0x76   : > { %2347 = vmatpush2.bf16.msra.mxu0 %v3618_v16  ;;  %v3686_v16 = vld [vmem:[%s5139_s1 + $0x424] ss:$8 sps:$4 sm:$0xff]  }
  0x77   : > { %2420 = vmatpush2.bf16.msra.mxu1 %v3621_v17  ;;  %2348 = vmatprep.subr.bf16.mxu0 %v3626_v18  ;;  %v3689_v17 = vld [vmem:[%s5139_s1 + $0x524] ss:$8 sps:$4 sm:$0xff]   ;;  %v3167_v18 = vcombine.high %v310_v9, %v318_v10 }
  0x78   : > { %2421 = vmatprep.subr.bf16.mxu1 %v3629_v19  ;;  %v3169_v19 = vcombine.high %v311_v13, %v319_v14 }
  0x7a   : > { %2349 = vmatpush2.bf16.msra.mxu0 %v3624_v20  ;;  %v3684_v20 = vld [vmem:[%s5139_s1 + $0x420] ss:$8 sps:$4 sm:$0xff]  }
  0x7b   : > { %2422 = vmatpush2.bf16.msra.mxu1 %v3627_v21  ;;  %2350 = vmatprep.subr.bf16.mxu0 %v3632_v22  ;;  %v3687_v21 = vld [vmem:[%s5139_s1 + $0x520] ss:$8 sps:$4 sm:$0xff]   ;;  %v3692_v22 = vld [vmem:[%s5139_s1 + $0x414] ss:$8 sps:$4 sm:$0xff]  }
  0x7c   : > { %2423 = vmatprep.subr.bf16.mxu1 %v3635_v23  ;;  %v3695_v23 = vld [vmem:[%s5139_s1 + $0x514] ss:$8 sps:$4 sm:$0xff]  }
  0x7e   : > { %2351 = vmatpush2.bf16.msra.mxu0 %v3630_v24  ;;  %v4435_v24 = vld [vmem:[%s4054_s11 + $0x20] sm:$0xff] }
  0x7f   : > { %2424 = vmatpush2.bf16.msra.mxu1 %v3633_v25  ;;  %2352 = vmatprep.subr.bf16.mxu0 %v3638_v26  ;;  %v4438_v25 = vld [vmem:[%s4054_s11 + $0x60] sm:$0xff]  ;;  %v3166_v26 = vcombine.low %v310_v9, %v318_v10 }
  0x80   : > { %2425 = vmatprep.subr.bf16.mxu1 %v3641_v27  ;;  %v3168_v27 = vcombine.low %v311_v13, %v319_v14  ;;  %v3122_v9 = vcombine.low %v4435_v24, %v4438_v25  ;;  %v289_v13 = vld [vmem:[%s4054_s11 + $0xe8] sm:$0xff]  ;;  %v3750_v14 = vld [vmem:[%s5139_s1 + $0x670] ss:$8 sps:$4 sm:$0xff]  }
  0x82   : > { %2353 = vmatpush2.bf16.msra.mxu0 %v3636_v28  ;;  %v4441_v28 = vld [vmem:[%s4054_s11 + $0x28] sm:$0xff] }
  0x83   : > { %2426 = vmatpush2.bf16.msra.mxu1 %v3639_v29  ;;  %2354 = vmatprep.subr.bf16.mxu0 %v3644_v30  ;;  %v4444_v29 = vld [vmem:[%s4054_s11 + $0x68] sm:$0xff]  ;;  %v3690_v30 = vld [vmem:[%s5139_s1 + $0x410] ss:$8 sps:$4 sm:$0xff]  }
  0x84   : > { %2427 = vmatprep.subr.bf16.mxu1 %v3647_v31  ;;  %v3693_v31 = vld [vmem:[%s5139_s1 + $0x510] ss:$8 sps:$4 sm:$0xff]   ;;  %v3124_v10 = vcombine.low %v4441_v28, %v4444_v29 }
  0x86   : > { %2355 = vmatpush2.bf16.msra.mxu0 %v3642_v32  ;;  %v3698_v32 = vld [vmem:[%s5139_s1 + $0x404] ss:$8 sps:$4 sm:$0xff]  }
  0x87   : > { %2428 = vmatpush2.bf16.msra.mxu1 %v3645_v33  ;;  %2356 = vmatprep.subr.bf16.mxu0 %v3650_v34  ;;  %v3701_v33 = vld [vmem:[%s5139_s1 + $0x504] ss:$8 sps:$4 sm:$0xff]   ;;  %v3123_v34 = vcombine.high %v4435_v24, %v4438_v25 }
  0x88   : > { %2429 = vmatprep.subr.bf16.mxu1 %v3653_v35  ;;  %v3125_v35 = vcombine.high %v4441_v28, %v4444_v29  ;;  %v296_v24 = vld [vmem:[%s4054_s11 + $0x120] sm:$0xff]  ;;  %v297_v28 = vld [vmem:[%s4054_s11 + $0x128] sm:$0xff] }
  0x89   : > { %v305_v29 = vld [vmem:[%s4054_s11 + $0x168] sm:$0xff] }
  0x8a   : > { %2357 = vmatpush2.bf16.msra.mxu0 %v3648_v36  ;;  %v3696_v36 = vld [vmem:[%s5139_s1 + $0x400] ss:$8 sps:$4 sm:$0xff]  }
  0x8b   : > { %2430 = vmatpush2.bf16.msra.mxu1 %v3651_v37  ;;  %2472 = vmatprep.subr.bf16.mxu0 %v3656_v38  ;;  %v3699_v37 = vld [vmem:[%s5139_s1 + $0x500] ss:$8 sps:$4 sm:$0xff]   ;;  %v3704_v38 = vld [vmem:[%s5139_s1 + $0x4f4] ss:$8 sps:$4 sm:$0xff]  }
  0x8c   : > { %2545 = vmatprep.subr.bf16.mxu1 %v3659_v39  ;;  %v3707_v39 = vld [vmem:[%s5139_s1 + $0x5f4] ss:$8 sps:$4 sm:$0xff]  }
  0x8d   : > { %2359 = vmatmul.mubr.bf16.vlgmr.msra.gmra.mxu0 %v3118_v44  ;;  %v3708_v44 = vld [vmem:[%s5139_s1 + $0x4e0] ss:$8 sps:$4 sm:$0xff]  }
  0x8e   : > { %2432 = vmatmul.mubr.bf16.vlgmr.msra.gmra.mxu1 %v3120_v45  ;;  %2473 = vmatpush1.bf16.msra.mxu0 %v3654_v40  ;;  %v3702_v40 = vld [vmem:[%s5139_s1 + $0x4f0] ss:$8 sps:$4 sm:$0xff]   ;;  %v3711_v45 = vld [vmem:[%s5139_s1 + $0x5e0] ss:$8 sps:$4 sm:$0xff]  }
  0x8f   : > { %2546 = vmatpush1.bf16.msra.mxu1 %v3657_v41  ;;  %2474 = vmatprep.subr.bf16.mxu0 %v3662_v48  ;;  %v3705_v41 = vld [vmem:[%s5139_s1 + $0x5f0] ss:$8 sps:$4 sm:$0xff]  }
  0x90   : > { %2547 = vmatprep.subr.bf16.mxu1 %v3665_v49  ;;  %2368 = vmatprep.mubr.bf16.mxu0 %v3135_v50  ;;  %v3714_v48 = vld [vmem:[%s5139_s1 + $0x4d0] ss:$8 sps:$4 sm:$0xff]   ;;  %v3722_v50 = vld [vmem:[%s5139_s1 + $0x4c4] ss:$8 sps:$4 sm:$0xff]  }
  0x91   : > { %2441 = vmatprep.mubr.bf16.mxu1 %v3137_v51  ;;  %v3717_v49 = vld [vmem:[%s5139_s1 + $0x5d0] ss:$8 sps:$4 sm:$0xff]   ;;  %v3725_v51 = vld [vmem:[%s5139_s1 + $0x5c4] ss:$8 sps:$4 sm:$0xff]  }
  0x92   : > { %2475 = vmatpush1.bf16.msra.mxu0 %v3660_v52  ;;  %v3720_v52 = vld [vmem:[%s5139_s1 + $0x4c0] ss:$8 sps:$4 sm:$0xff]  }
  0x93   : > { %2548 = vmatpush1.bf16.msra.mxu1 %v3663_v53  ;;  %2476 = vmatprep.subr.bf16.mxu0 %v3668_v54  ;;  %v3723_v53 = vld [vmem:[%s5139_s1 + $0x5c0] ss:$8 sps:$4 sm:$0xff]   ;;  %v3728_v54 = vld [vmem:[%s5139_s1 + $0x4b4] ss:$8 sps:$4 sm:$0xff]  }
  0x94   : > { %2549 = vmatprep.subr.bf16.mxu1 %v3671_v55  ;;  %v3731_v55 = vld [vmem:[%s5139_s1 + $0x5b4] ss:$8 sps:$4 sm:$0xff]  }
  0x95   : > { %2369 = vmatmul.mubr.bf16.gmra.mxu0 %v3134_v60  ;;  %v3732_v60 = vld [vmem:[%s5139_s1 + $0x4a0] ss:$8 sps:$4 sm:$0xff]  }
  0x96   : > { %2442 = vmatmul.mubr.bf16.gmra.mxu1 %v3136_v61  ;;  %2477 = vmatpush1.bf16.msra.mxu0 %v3666_v56  ;;  %v3726_v56 = vld [vmem:[%s5139_s1 + $0x4b0] ss:$8 sps:$4 sm:$0xff]   ;;  %v3735_v61 = vld [vmem:[%s5139_s1 + $0x5a0] ss:$8 sps:$4 sm:$0xff]  }
  0x97   : > { %2550 = vmatpush1.bf16.msra.mxu1 %v3669_v57  ;;  %2478 = vmatprep.subr.bf16.mxu0 %v3674_v0  ;;  %v3729_v57 = vld [vmem:[%s5139_s1 + $0x5b0] ss:$8 sps:$4 sm:$0xff]  }
  0x98   : > { %2551 = vmatprep.subr.bf16.mxu1 %v3677_v1  ;;  %2378 = vmatprep.mubr.bf16.mxu0 %v3151_v2  ;;  %v3738_v0 = vld [vmem:[%s5139_s1 + $0x490] ss:$8 sps:$4 sm:$0xff]   ;;  %v3746_v2 = vld [vmem:[%s5139_s1 + $0x484] ss:$8 sps:$4 sm:$0xff]  }
  0x99   : > { %2451 = vmatprep.mubr.bf16.mxu1 %v3153_v3  ;;  %v3741_v1 = vld [vmem:[%s5139_s1 + $0x590] ss:$8 sps:$4 sm:$0xff]   ;;  %v3749_v3 = vld [vmem:[%s5139_s1 + $0x584] ss:$8 sps:$4 sm:$0xff]  }
  0x9a   : > { %2479 = vmatpush1.bf16.msra.mxu0 %v3672_v4  ;;  %v3744_v4 = vld [vmem:[%s5139_s1 + $0x480] ss:$8 sps:$4 sm:$0xff]  }
  0x9b   : > { %2552 = vmatpush1.bf16.msra.mxu1 %v3675_v5  ;;  %2480 = vmatprep.subr.bf16.mxu0 %v3680_v6  ;;  %v3747_v5 = vld [vmem:[%s5139_s1 + $0x580] ss:$8 sps:$4 sm:$0xff]   ;;  %v3752_v6 = vld [vmem:[%s5139_s1 + $0x674] ss:$8 sps:$4 sm:$0xff]  }
  0x9c   : > { %2553 = vmatprep.subr.bf16.mxu1 %v3683_v7  ;;  %v3755_v7 = vld [vmem:[%s5139_s1 + $0x774] ss:$8 sps:$4 sm:$0xff]  }
  0x9d   : > { %2379 = vmatmul.mubr.bf16.gmra.mxu0 %v3150_v11  ;;  %v288_v11 = vld [vmem:[%s4054_s11 + $0xe0] sm:$0xff] }
  0x9e   : > { %2452 = vmatmul.mubr.bf16.gmra.mxu1 %v3152_v12  ;;  %2481 = vmatpush1.bf16.msra.mxu0 %v3678_v8  ;;  %v280_v8 = vld [vmem:[%s4054_s11 + $0xa0] sm:$0xff]  ;;  %v281_v12 = vld [vmem:[%s4054_s11 + $0xa8] sm:$0xff] }
  0x9f   : > { %2554 = vmatpush1.bf16.msra.mxu1 %v3681_v15  ;;  %2482 = vmatprep.subr.bf16.mxu0 %v3686_v16  ;;  %v3753_v15 = vld [vmem:[%s5139_s1 + $0x770] ss:$8 sps:$4 sm:$0xff]   ;;  %v3758_v16 = vld [vmem:[%s5139_s1 + $0x664] ss:$8 sps:$4 sm:$0xff]   ;;  %v3138_v25 = vcombine.low %v280_v8, %v288_v11 }
  0xa0   : > { %2555 = vmatprep.subr.bf16.mxu1 %v3689_v17  ;;  %2388 = vmatprep.mubr.bf16.mxu0 %v3167_v18  ;;  %v3761_v17 = vld [vmem:[%s5139_s1 + $0x764] ss:$8 sps:$4 sm:$0xff]   ;;  %v3139_v18 = vcombine.high %v280_v8, %v288_v11  ;;  %v3798_v8 = vld [vmem:[%s5139_s1 + $0x6f0] ss:$8 sps:$4 sm:$0xff]  }
  0xa1   : > { %2461 = vmatprep.mubr.bf16.mxu1 %v3169_v19  ;;  %v3141_v19 = vcombine.high %v281_v12, %v289_v13  ;;  %v3809_v11 = vld [vmem:[%s5139_s1 + $0x7e4] ss:$8 sps:$4 sm:$0xff]  }
  0xa2   : > { %2483 = vmatpush1.bf16.msra.mxu0 %v3684_v20  ;;  %v3756_v20 = vld [vmem:[%s5139_s1 + $0x660] ss:$8 sps:$4 sm:$0xff]  }
  0xa3   : > { %2556 = vmatpush1.bf16.msra.mxu1 %v3687_v21  ;;  %2484 = vmatprep.subr.bf16.mxu0 %v3692_v22  ;;  %v3759_v21 = vld [vmem:[%s5139_s1 + $0x760] ss:$8 sps:$4 sm:$0xff]   ;;  %v3764_v22 = vld [vmem:[%s5139_s1 + $0x654] ss:$8 sps:$4 sm:$0xff]  }
  0xa4   : > { %2557 = vmatprep.subr.bf16.mxu1 %v3695_v23  ;;  %v3767_v23 = vld [vmem:[%s5139_s1 + $0x754] ss:$8 sps:$4 sm:$0xff]  }
  0xa5   : > { %2389 = vmatmul.mubr.bf16.gmra.mxu0 %v3166_v26  ;;  %v3140_v26 = vcombine.low %v281_v12, %v289_v13  ;;  %v3804_v12 = vld [vmem:[%s5139_s1 + $0x6e0] ss:$8 sps:$4 sm:$0xff]  }
  0xa6   : > { %2462 = vmatmul.mubr.bf16.gmra.mxu1 %v3168_v27  ;;  %2485 = vmatpush1.bf16.msra.mxu0 %v3690_v30  ;;  %v304_v27 = vld [vmem:[%s4054_s11 + $0x160] sm:$0xff]  ;;  %v3762_v30 = vld [vmem:[%s5139_s1 + $0x650] ss:$8 sps:$4 sm:$0xff]  }
  0xa7   : > { %2558 = vmatpush1.bf16.msra.mxu1 %v3693_v31  ;;  %2486 = vmatprep.subr.bf16.mxu0 %v3698_v32  ;;  %v3765_v31 = vld [vmem:[%s5139_s1 + $0x750] ss:$8 sps:$4 sm:$0xff]   ;;  %v3770_v32 = vld [vmem:[%s5139_s1 + $0x644] ss:$8 sps:$4 sm:$0xff]   ;;  %v3807_v13 = vld [vmem:[%s5139_s1 + $0x7e0] ss:$8 sps:$4 sm:$0xff]  }
  0xa8   : > { %2559 = vmatprep.subr.bf16.mxu1 %v3701_v33  ;;  %2504 = vmatprep.mubr.bf16.mxu0 %v3123_v34  ;;  %v3773_v33 = vld [vmem:[%s5139_s1 + $0x744] ss:$8 sps:$4 sm:$0xff]   ;;  %v3155_v34 = vcombine.high %v296_v24, %v304_v27 }
  0xa9   : > { %2577 = vmatprep.mubr.bf16.mxu1 %v3125_v35  ;;  %v3157_v35 = vcombine.high %v297_v28, %v305_v29 }
  0xaa   : > { %2487 = vmatpush1.bf16.msra.mxu0 %v3696_v36  ;;  %v3768_v36 = vld [vmem:[%s5139_s1 + $0x640] ss:$8 sps:$4 sm:$0xff]  }
  0xab   : > { %2560 = vmatpush1.bf16.msra.mxu1 %v3699_v37  ;;  %2488 = vmatprep.subr.bf16.mxu0 %v3704_v38  ;;  %v3771_v37 = vld [vmem:[%s5139_s1 + $0x740] ss:$8 sps:$4 sm:$0xff]   ;;  %v3776_v38 = vld [vmem:[%s5139_s1 + $0x634] ss:$8 sps:$4 sm:$0xff]  }
  0xac   : > { %2561 = vmatprep.subr.bf16.mxu1 %v3707_v39  ;;  %v3779_v39 = vld [vmem:[%s5139_s1 + $0x734] ss:$8 sps:$4 sm:$0xff]  }
  0xae   : > { %2489 = vmatpush2.bf16.msra.mxu0 %v3702_v40  ;;  %v312_v40 = vld [vmem:[%s4054_s11 + $0x1a0] sm:$0xff] }
  0xaf   : > { %2562 = vmatpush2.bf16.msra.mxu1 %v3705_v41  ;;  %2490 = vmatprep.subr.bf16.mxu0 %v3710_v42  ;;  %v3154_v41 = vcombine.low %v296_v24, %v304_v27  ;;  %v3156_v42 = vcombine.low %v297_v28, %v305_v29  ;;  %v3822_v24 = vld [vmem:[%s5139_s1 + $0x6b0] ss:$8 sps:$4 sm:$0xff]   ;;  %v3833_v27 = vld [vmem:[%s5139_s1 + $0x7a4] ss:$8 sps:$4 sm:$0xff]   ;;  %v3828_v28 = vld [vmem:[%s5139_s1 + $0x6a0] ss:$8 sps:$4 sm:$0xff]  }
  0xb0   : > { %2563 = vmatprep.subr.bf16.mxu1 %v3713_v43  ;;  %v320_v43 = vld [vmem:[%s4054_s11 + $0x1e0] sm:$0xff] }
  0xb1   : > { %v3831_v29 = vld [vmem:[%s5139_s1 + $0x7a0] ss:$8 sps:$4 sm:$0xff]  }
  0xb2   : > { %2491 = vmatpush2.bf16.msra.mxu0 %v3708_v44  ;;  %v313_v44 = vld [vmem:[%s4054_s11 + $0x1a8] sm:$0xff] }
  0xb3   : > { %2564 = vmatpush2.bf16.msra.mxu1 %v3711_v45  ;;  %2492 = vmatprep.subr.bf16.mxu0 %v3716_v46  ;;  %v321_v45 = vld [vmem:[%s4054_s11 + $0x1e8] sm:$0xff]  ;;  %v3774_v46 = vld [vmem:[%s5139_s1 + $0x630] ss:$8 sps:$4 sm:$0xff]  }
  0xb4   : > { %2565 = vmatprep.subr.bf16.mxu1 %v3719_v47  ;;  %v3777_v47 = vld [vmem:[%s5139_s1 + $0x730] ss:$8 sps:$4 sm:$0xff]  }
  0xb6   : > { %2493 = vmatpush2.bf16.msra.mxu0 %v3714_v48  ;;  %v3782_v48 = vld [vmem:[%s5139_s1 + $0x624] ss:$8 sps:$4 sm:$0xff]  }
  0xb7   : > { %2566 = vmatpush2.bf16.msra.mxu1 %v3717_v49  ;;  %2494 = vmatprep.subr.bf16.mxu0 %v3722_v50  ;;  %v3785_v49 = vld [vmem:[%s5139_s1 + $0x724] ss:$8 sps:$4 sm:$0xff]   ;;  %v3171_v50 = vcombine.high %v312_v40, %v320_v43 }
  0xb8   : > { %2567 = vmatprep.subr.bf16.mxu1 %v3725_v51  ;;  %v3173_v51 = vcombine.high %v313_v44, %v321_v45 }
  0xba   : > { %2495 = vmatpush2.bf16.msra.mxu0 %v3720_v52  ;;  %v3780_v52 = vld [vmem:[%s5139_s1 + $0x620] ss:$8 sps:$4 sm:$0xff]  }
  0xbb   : > { %2568 = vmatpush2.bf16.msra.mxu1 %v3723_v53  ;;  %2496 = vmatprep.subr.bf16.mxu0 %v3728_v54  ;;  %v3783_v53 = vld [vmem:[%s5139_s1 + $0x720] ss:$8 sps:$4 sm:$0xff]   ;;  %v3788_v54 = vld [vmem:[%s5139_s1 + $0x614] ss:$8 sps:$4 sm:$0xff]  }
  0xbc   : > { %2569 = vmatprep.subr.bf16.mxu1 %v3731_v55  ;;  %v3791_v55 = vld [vmem:[%s5139_s1 + $0x714] ss:$8 sps:$4 sm:$0xff]  }
  0xbe   : > { %2497 = vmatpush2.bf16.msra.mxu0 %v3726_v56  ;;  %v4659_v56 = vld [vmem:[%s4054_s11 + $0x30] sm:$0xff] }
  0xbf   : > { %2570 = vmatpush2.bf16.msra.mxu1 %v3729_v57  ;;  %2498 = vmatprep.subr.bf16.mxu0 %v3734_v58  ;;  %v3170_v57 = vcombine.low %v312_v40, %v320_v43  ;;  %v3172_v58 = vcombine.low %v313_v44, %v321_v45  ;;  %v283_v40 = vld [vmem:[%s4054_s11 + $0xb8] sm:$0xff] }
  0xc0   : > { %2571 = vmatprep.subr.bf16.mxu1 %v3737_v59  ;;  %v4662_v59 = vld [vmem:[%s4054_s11 + $0x70] sm:$0xff] }
  0xc2   : > { %2499 = vmatpush2.bf16.msra.mxu0 %v3732_v60  ;;  %v4665_v60 = vld [vmem:[%s4054_s11 + $0x38] sm:$0xff] }
  0xc3   : > { %2572 = vmatpush2.bf16.msra.mxu1 %v3735_v61  ;;  %2500 = vmatprep.subr.bf16.mxu0 %v3740_v62  ;;  %v4668_v61 = vld [vmem:[%s4054_s11 + $0x78] sm:$0xff] }
  0xc4   : > { %2573 = vmatprep.subr.bf16.mxu1 %v3743_v63  ;;  %v3786_v62 = vld [vmem:[%s5139_s1 + $0x610] ss:$8 sps:$4 sm:$0xff]   ;;  %v3128_v43 = vcombine.low %v4665_v60, %v4668_v61 }
  0xc5   : > { %v3789_v63 = vld [vmem:[%s5139_s1 + $0x710] ss:$8 sps:$4 sm:$0xff]  }
  0xc6   : > { %2501 = vmatpush2.bf16.msra.mxu0 %v3738_v0  ;;  %v3794_v0 = vld [vmem:[%s5139_s1 + $0x604] ss:$8 sps:$4 sm:$0xff]  }
  0xc7   : > { %2574 = vmatpush2.bf16.msra.mxu1 %v3741_v1  ;;  %2502 = vmatprep.subr.bf16.mxu0 %v3746_v2  ;;  %v3797_v1 = vld [vmem:[%s5139_s1 + $0x704] ss:$8 sps:$4 sm:$0xff]   ;;  %v3127_v2 = vcombine.high %v4659_v56, %v4662_v59 }
  0xc8   : > { %2575 = vmatprep.subr.bf16.mxu1 %v3749_v3  ;;  %v3129_v3 = vcombine.high %v4665_v60, %v4668_v61 }
  0xca   : > { %2503 = vmatpush2.bf16.msra.mxu0 %v3744_v4  ;;  %v3792_v4 = vld [vmem:[%s5139_s1 + $0x600] ss:$8 sps:$4 sm:$0xff]  }
  0xcb   : > { %2576 = vmatpush2.bf16.msra.mxu1 %v3747_v5  ;;  %2618 = vmatprep.subr.bf16.mxu0 %v3752_v6  ;;  %v3795_v5 = vld [vmem:[%s5139_s1 + $0x700] ss:$8 sps:$4 sm:$0xff]   ;;  %v3800_v6 = vld [vmem:[%s5139_s1 + $0x6f4] ss:$8 sps:$4 sm:$0xff]  }
  0xcc   : > { %2691 = vmatprep.subr.bf16.mxu1 %v3755_v7  ;;  %v3803_v7 = vld [vmem:[%s5139_s1 + $0x7f4] ss:$8 sps:$4 sm:$0xff]  }
  0xcd   : > { %2505 = vmatmul.mubr.bf16.vlgmr.msra.gmra.mxu0 %v3122_v9  ;;  %v3801_v9 = vld [vmem:[%s5139_s1 + $0x7f0] ss:$8 sps:$4 sm:$0xff]  }
  0xce   : > { %2578 = vmatmul.mubr.bf16.vlgmr.msra.gmra.mxu1 %v3124_v10  ;;  %2619 = vmatpush1.bf16.msra.mxu0 %v3750_v14  ;;  %v3806_v10 = vld [vmem:[%s5139_s1 + $0x6e4] ss:$8 sps:$4 sm:$0xff]   ;;  %v3812_v14 = vld [vmem:[%s5139_s1 + $0x6d4] ss:$8 sps:$4 sm:$0xff]  }
  0xcf   : > { %2692 = vmatpush1.bf16.msra.mxu1 %v3753_v15  ;;  %2620 = vmatprep.subr.bf16.mxu0 %v3758_v16  ;;  %v3815_v15 = vld [vmem:[%s5139_s1 + $0x7d4] ss:$8 sps:$4 sm:$0xff]   ;;  %v3810_v16 = vld [vmem:[%s5139_s1 + $0x6d0] ss:$8 sps:$4 sm:$0xff]  }
  0xd0   : > { %2693 = vmatprep.subr.bf16.mxu1 %v3761_v17  ;;  %2514 = vmatprep.mubr.bf16.mxu0 %v3139_v18  ;;  %v3813_v17 = vld [vmem:[%s5139_s1 + $0x7d0] ss:$8 sps:$4 sm:$0xff]   ;;  %v3818_v18 = vld [vmem:[%s5139_s1 + $0x6c4] ss:$8 sps:$4 sm:$0xff]  }
  0xd1   : > { %2587 = vmatprep.mubr.bf16.mxu1 %v3141_v19  ;;  %v3821_v19 = vld [vmem:[%s5139_s1 + $0x7c4] ss:$8 sps:$4 sm:$0xff]  }
  0xd2   : > { %2621 = vmatpush1.bf16.msra.mxu0 %v3756_v20  ;;  %v3816_v20 = vld [vmem:[%s5139_s1 + $0x6c0] ss:$8 sps:$4 sm:$0xff]  }
  0xd3   : > { %2694 = vmatpush1.bf16.msra.mxu1 %v3759_v21  ;;  %2622 = vmatprep.subr.bf16.mxu0 %v3764_v22  ;;  %v3819_v21 = vld [vmem:[%s5139_s1 + $0x7c0] ss:$8 sps:$4 sm:$0xff]   ;;  %v3824_v22 = vld [vmem:[%s5139_s1 + $0x6b4] ss:$8 sps:$4 sm:$0xff]  }
  0xd4   : > { %2695 = vmatprep.subr.bf16.mxu1 %v3767_v23  ;;  %v3827_v23 = vld [vmem:[%s5139_s1 + $0x7b4] ss:$8 sps:$4 sm:$0xff]  }
  0xd5   : > { %2515 = vmatmul.mubr.bf16.gmra.mxu0 %v3138_v25  ;;  %v3825_v25 = vld [vmem:[%s5139_s1 + $0x7b0] ss:$8 sps:$4 sm:$0xff]  }
  0xd6   : > { %2588 = vmatmul.mubr.bf16.gmra.mxu1 %v3140_v26  ;;  %2623 = vmatpush1.bf16.msra.mxu0 %v3762_v30  ;;  %v3830_v26 = vld [vmem:[%s5139_s1 + $0x6a4] ss:$8 sps:$4 sm:$0xff]   ;;  %v3836_v30 = vld [vmem:[%s5139_s1 + $0x694] ss:$8 sps:$4 sm:$0xff]  }
  0xd7   : > { %2696 = vmatpush1.bf16.msra.mxu1 %v3765_v31  ;;  %2624 = vmatprep.subr.bf16.mxu0 %v3770_v32  ;;  %v3839_v31 = vld [vmem:[%s5139_s1 + $0x794] ss:$8 sps:$4 sm:$0xff]   ;;  %v3834_v32 = vld [vmem:[%s5139_s1 + $0x690] ss:$8 sps:$4 sm:$0xff]  }
  0xd8   : > { %2697 = vmatprep.subr.bf16.mxu1 %v3773_v33  ;;  %2524 = vmatprep.mubr.bf16.mxu0 %v3155_v34  ;;  %v3837_v33 = vld [vmem:[%s5139_s1 + $0x790] ss:$8 sps:$4 sm:$0xff]   ;;  %v3842_v34 = vld [vmem:[%s5139_s1 + $0x684] ss:$8 sps:$4 sm:$0xff]  }
  0xd9   : > { %2597 = vmatprep.mubr.bf16.mxu1 %v3157_v35  ;;  %v3845_v35 = vld [vmem:[%s5139_s1 + $0x784] ss:$8 sps:$4 sm:$0xff]  }
  0xda   : > { %2625 = vmatpush1.bf16.msra.mxu0 %v3768_v36  ;;  %v3840_v36 = vld [vmem:[%s5139_s1 + $0x680] ss:$8 sps:$4 sm:$0xff]  }
  0xdb   : > { %2698 = vmatpush1.bf16.msra.mxu1 %v3771_v37  ;;  %2626 = vmatprep.subr.bf16.mxu0 %v3776_v38  ;;  %v3843_v37 = vld [vmem:[%s5139_s1 + $0x780] ss:$8 sps:$4 sm:$0xff]   ;;  %v282_v38 = vld [vmem:[%s4054_s11 + $0xb0] sm:$0xff] }
  0xdc   : > { %2699 = vmatprep.subr.bf16.mxu1 %v3779_v39  ;;  %v290_v39 = vld [vmem:[%s4054_s11 + $0xf0] sm:$0xff] }
  0xdd   : > { %2525 = vmatmul.mubr.bf16.gmra.mxu0 %v3154_v41  ;;  %v291_v41 = vld [vmem:[%s4054_s11 + $0xf8] sm:$0xff]  ;;  %v3143_v44 = vcombine.high %v282_v38, %v290_v39 }
  0xde   : > { %2598 = vmatmul.mubr.bf16.gmra.mxu1 %v3156_v42  ;;  %2627 = vmatpush1.bf16.msra.mxu0 %v3774_v46  ;;  %v3126_v42 = vcombine.low %v4659_v56, %v4662_v59  ;;  %v3145_v45 = vcombine.high %v283_v40, %v291_v41  ;;  %v3144_v59 = vcombine.low %v283_v40, %v291_v41 }
  0xdf   : > { %2700 = vmatpush1.bf16.msra.mxu1 %v3777_v47  ;;  %2628 = vmatprep.subr.bf16.mxu0 %v3782_v48 }
  0xe0   : > { %2701 = vmatprep.subr.bf16.mxu1 %v3785_v49  ;;  %2534 = vmatprep.mubr.bf16.mxu0 %v3171_v50  ;;  %v298_v49 = vld [vmem:[%s4054_s11 + $0x130] sm:$0xff] }
  0xe1   : > { %2607 = vmatprep.mubr.bf16.mxu1 %v3173_v51 }
  0xe2   : > { %2629 = vmatpush1.bf16.msra.mxu0 %v3780_v52  ;;  %v306_v52 = vld [vmem:[%s4054_s11 + $0x170] sm:$0xff] }
  0xe3   : > { %2702 = vmatpush1.bf16.msra.mxu1 %v3783_v53  ;;  %2630 = vmatprep.subr.bf16.mxu0 %v3788_v54  ;;  %v299_v53 = vld [vmem:[%s4054_s11 + $0x138] sm:$0xff]  ;;  %v3159_v61 = vcombine.high %v298_v49, %v306_v52 }
  0xe4   : > { %2703 = vmatprep.subr.bf16.mxu1 %v3791_v55  ;;  %v307_v54 = vld [vmem:[%s4054_s11 + $0x178] sm:$0xff] }
  0xe5   : > { %2535 = vmatmul.mubr.bf16.gmra.mxu0 %v3170_v57 }
  0xe6   : > { %2608 = vmatmul.mubr.bf16.gmra.mxu1 %v3172_v58  ;;  %2631 = vmatpush1.bf16.msra.mxu0 %v3786_v62  ;;  %v3142_v58 = vcombine.low %v282_v38, %v290_v39  ;;  %v3161_v62 = vcombine.high %v299_v53, %v307_v54 }
  0xe7   : > { %2704 = vmatpush1.bf16.msra.mxu1 %v3789_v63  ;;  %2632 = vmatprep.subr.bf16.mxu0 %v3794_v0 }
  0xe8   : > { %2705 = vmatprep.subr.bf16.mxu1 %v3797_v1  ;;  %2650 = vmatprep.mubr.bf16.mxu0 %v3127_v2 }
  0xe9   : > { %2723 = vmatprep.mubr.bf16.mxu1 %v3129_v3 }
  0xea   : > { %2633 = vmatpush1.bf16.msra.mxu0 %v3792_v4  ;;  %v314_v4 = vld [vmem:[%s4054_s11 + $0x1b0] sm:$0xff] }
  0xeb   : > { %2706 = vmatpush1.bf16.msra.mxu1 %v3795_v5  ;;  %2634 = vmatprep.subr.bf16.mxu0 %v3800_v6  ;;  %v322_v6 = vld [vmem:[%s4054_s11 + $0x1f0] sm:$0xff] }
  0xec   : > { %2707 = vmatprep.subr.bf16.mxu1 %v3803_v7  ;;  %v315_v7 = vld [vmem:[%s4054_s11 + $0x1b8] sm:$0xff] }
  0xee   : > { %2635 = vmatpush2.bf16.msra.mxu0 %v3798_v8  ;;  %v323_v8 = vld [vmem:[%s4054_s11 + $0x1f8] sm:$0xff] }
  0xef   : > { %2708 = vmatpush2.bf16.msra.mxu1 %v3801_v9  ;;  %2636 = vmatprep.subr.bf16.mxu0 %v3806_v10 }
  0xf0   : > { %2709 = vmatprep.subr.bf16.mxu1 %v3809_v11 }
  0xf2   : > { %2637 = vmatpush2.bf16.msra.mxu0 %v3804_v12  ;;  %v3158_v12 = vcombine.low %v298_v49, %v306_v52 }
  0xf3   : > { %2710 = vmatpush2.bf16.msra.mxu1 %v3807_v13  ;;  %2638 = vmatprep.subr.bf16.mxu0 %v3812_v14  ;;  %v3160_v13 = vcombine.low %v299_v53, %v307_v54 }
  0xf4   : > { %2711 = vmatprep.subr.bf16.mxu1 %v3815_v15 }
  0xf6   : > { %2639 = vmatpush2.bf16.msra.mxu0 %v3810_v16  ;;  %v3175_v16 = vcombine.high %v314_v4, %v322_v6 }
  0xf7   : > { %2712 = vmatpush2.bf16.msra.mxu1 %v3813_v17  ;;  %2640 = vmatprep.subr.bf16.mxu0 %v3818_v18  ;;  %v3177_v17 = vcombine.high %v315_v7, %v323_v8 }
  0xf8   : > { %2713 = vmatprep.subr.bf16.mxu1 %v3821_v19 }
  0xfa   : > { %2641 = vmatpush2.bf16.msra.mxu0 %v3816_v20 }
  0xfb   : > { %2714 = vmatpush2.bf16.msra.mxu1 %v3819_v21  ;;  %2642 = vmatprep.subr.bf16.mxu0 %v3824_v22 }
  0xfc   : > { %2715 = vmatprep.subr.bf16.mxu1 %v3827_v23 }
  0xfe   : > { %2643 = vmatpush2.bf16.msra.mxu0 %v3822_v24 }
  0xff   : > { %2716 = vmatpush2.bf16.msra.mxu1 %v3825_v25  ;;  %2644 = vmatprep.subr.bf16.mxu0 %v3830_v26 }
 0x100   : > { %2717 = vmatprep.subr.bf16.mxu1 %v3833_v27 }
 0x102   : > { %2645 = vmatpush2.bf16.msra.mxu0 %v3828_v28  ;;  %v3174_v28 = vcombine.low %v314_v4, %v322_v6 }
 0x103   : > { %2718 = vmatpush2.bf16.msra.mxu1 %v3831_v29  ;;  %2646 = vmatprep.subr.bf16.mxu0 %v3836_v30  ;;  %v3176_v29 = vcombine.low %v315_v7, %v323_v8 }
 0x104   : > { %2719 = vmatprep.subr.bf16.mxu1 %v3839_v31 }
 0x106   : > { %2647 = vmatpush2.bf16.msra.mxu0 %v3834_v32 }
 0x107   : > { %2720 = vmatpush2.bf16.msra.mxu1 %v3837_v33  ;;  %2648 = vmatprep.subr.bf16.mxu0 %v3842_v34 }
 0x108   : > { %2721 = vmatprep.subr.bf16.mxu1 %v3845_v35 }
 0x10a   : > { %2649 = vmatpush2.bf16.msra.mxu0 %v3840_v36 }
 0x10b   : > { %2722 = vmatpush2.bf16.msra.mxu1 %v3843_v37 }
 0x10d   : > { %v2214_v46 = vpop.f32.mrf.mxu0  ;;  %2651 = vmatmul.mubr.bf16.vlgmr.msra.gmra.mxu0 %v3126_v42 }
 0x10e   : > { %v2287_v47 = vpop.f32.mrf.mxu1  ;;  %2724 = vmatmul.mubr.bf16.vlgmr.msra.gmra.mxu1 %v3128_v43  ;;  %2660 = vmatprep.mubr.bf16.mxu0 %v3143_v44 }
 0x10f   : > { %v4796_v48 = vadd.f32 %v2287_v47, %v2214_v46  ;;  %2733 = vmatprep.mubr.bf16.mxu1 %v3145_v45  ;;  %v2216_v50 = vpop.f32.mrf.mxu0 }
 0x110   : > { %v2289_v51 = vpop.f32.mrf.mxu1 }
 0x111   : > { %v4802_v55 = vadd.f32 %v2289_v51, %v2216_v50  ;;  %v2218_v56 = vpop.f32.mrf.mxu0 }
 0x112   : > { %v2291_v57 = vpop.f32.mrf.mxu1 }
 0x113   : > { %v4804_v60 = vadd.f32 %v2291_v57, %v2218_v56  ;;  %v2220_v63 = vpop.f32.mrf.mxu0 }
 0x114   : > { %v2293_v0 = vpop.f32.mrf.mxu1 }
 0x115   : > { %v4806_v1 = vadd.f32 %v2293_v0, %v2220_v63  ;;  %2661 = vmatmul.mubr.bf16.gmra.mxu0 %v3142_v58  ;;  %v2224_v2 = vpop.f32.mrf.mxu0 }
 0x116   : > { %2734 = vmatmul.mubr.bf16.gmra.mxu1 %v3144_v59  ;;  %v2297_v3 = vpop.f32.mrf.mxu1  ;;  %2670 = vmatprep.mubr.bf16.mxu0 %v3159_v61 }
 0x117   : > { %2743 = vmatprep.mubr.bf16.mxu1 %v3161_v62  ;;  %v4809_v5 = vadd.f32 %v2297_v3, %v2224_v2  ;;  %v2226_v9 = vpop.f32.mrf.mxu0 }
 0x118   : > { %v2299_v10 = vpop.f32.mrf.mxu1 }
 0x119   : > { %v4814_v11 = vadd.f32 %v2299_v10, %v2226_v9  ;;  %v2228_v14 = vpop.f32.mrf.mxu0 }
 0x11a   : > { %v2301_v15 = vpop.f32.mrf.mxu1 }
 0x11b   : > { %v2302_v18 = vadd.f32 %v2301_v15, %v2228_v14  ;;  %v2230_v19 = vpop.f32.mrf.mxu0 }
 0x11c   : > { %v2303_v20 = vpop.f32.mrf.mxu1 }
 0x11d   : > { %v2304_v21 = vadd.f32 %v2303_v20, %v2230_v19  ;;  %2671 = vmatmul.mubr.bf16.gmra.mxu0 %v3158_v12  ;;  %v2234_v22 = vpop.f32.mrf.mxu0 }
 0x11e   : > { %2744 = vmatmul.mubr.bf16.gmra.mxu1 %v3160_v13  ;;  %v2307_v23 = vpop.f32.mrf.mxu1  ;;  %2680 = vmatprep.mubr.bf16.mxu0 %v3175_v16 }
 0x11f   : > { %2753 = vmatprep.mubr.bf16.mxu1 %v3177_v17  ;;  %v4816_v24 = vadd.f32 %v2307_v23, %v2234_v22  ;;  %v2236_v25 = vpop.f32.mrf.mxu0 }
 0x120   : > { %v2309_v26 = vpop.f32.mrf.mxu1 }
 0x121   : > { %v2310_v27 = vadd.f32 %v2309_v26, %v2236_v25  ;;  %v2238_v30 = vpop.f32.mrf.mxu0 }
 0x122   : > { %v2311_v31 = vpop.f32.mrf.mxu1 }
 0x123   : > { %v4818_v32 = vadd.f32 %v2311_v31, %v2238_v30  ;;  %v2240_v33 = vpop.f32.mrf.mxu0 }
 0x124   : > { %v2313_v34 = vpop.f32.mrf.mxu1 }
 0x125   : > { %v2314_v35 = vadd.f32 %v2313_v34, %v2240_v33  ;;  %2681 = vmatmul.mubr.bf16.gmra.mxu0 %v3174_v28  ;;  %v2244_v36 = vpop.f32.mrf.mxu0 }
 0x126   : > { %2754 = vmatmul.mubr.bf16.gmra.mxu1 %v3176_v29  ;;  %v2317_v37 = vpop.f32.mrf.mxu1 }
 0x127   : > { %v4820_v38 = vadd.f32 %v2317_v37, %v2244_v36  ;;  %v2246_v39 = vpop.f32.mrf.mxu0 }
 0x128   : > { %v2319_v40 = vpop.f32.mrf.mxu1 }
 0x129   : > { %v2320_v41 = vadd.f32 %v2319_v40, %v2246_v39  ;;  %v2248_v42 = vpop.f32.mrf.mxu0 }
 0x12a   : > { %v2321_v43 = vpop.f32.mrf.mxu1 }
 0x12b   : > { %v4822_v44 = vadd.f32 %v2321_v43, %v2248_v42  ;;  %v2250_v45 = vpop.f32.mrf.mxu0 }
 0x12c   : > { %v2323_v46 = vpop.f32.mrf.mxu1 }
 0x12d   : > { %v4824_v47 = vadd.f32 %v2323_v46, %v2250_v45 }
 0x14d   : > { %v2360_v49 = vpop.f32.mrf.mxu0 }
 0x14e   : > { %v2433_v50 = vpop.f32.mrf.mxu1  ;;  %v2361_v51 = vadd.f32 %v2360_v49, %v4796_v48 }
 0x14f   : > { %v2362_v52 = vpop.f32.mrf.mxu0 }
 0x150   : > { %v2435_v53 = vpop.f32.mrf.mxu1  ;;  %v4827_v54 = vadd.f32 %v2433_v50, %v2361_v51  ;;  %v2363_v56 = vadd.f32 %v2362_v52, %v4802_v55 }
 0x151   : > { %v2364_v57 = vpop.f32.mrf.mxu0 }
 0x152   : > { %v2437_v58 = vpop.f32.mrf.mxu1  ;;  %v4830_v59 = vadd.f32 %v2435_v53, %v2363_v56  ;;  %v2365_v61 = vadd.f32 %v2364_v57, %v4804_v60 }
 0x153   : > { %v2366_v62 = vpop.f32.mrf.mxu0 }
 0x154   : > { %v2439_v63 = vpop.f32.mrf.mxu1  ;;  %v4833_v0 = vadd.f32 %v2437_v58, %v2365_v61  ;;  %v2367_v2 = vadd.f32 %v2366_v62, %v4806_v1 }
 0x155   : > { %v2370_v3 = vpop.f32.mrf.mxu0 }
 0x156   : > { %v2443_v48 = vpop.f32.mrf.mxu1  ;;  %v4836_v4 = vadd.f32 %v2439_v63, %v2367_v2  ;;  %v2371_v6 = vadd.f32 %v2370_v3, %v4809_v5 }
 0x157   : > { %v2372_v7 = vpop.f32.mrf.mxu0 }
 0x158   : > { %v2445_v55 = vpop.f32.mrf.mxu1  ;;  %v2373_v8 = vadd.f32 %v2372_v7, %v4814_v11  ;;  %v4840_v9 = vadd.f32 %v2443_v48, %v2371_v6 }
 0x159   : > { %v2374_v10 = vpop.f32.mrf.mxu0 }
 0x15a   : > { %v2447_v60 = vpop.f32.mrf.mxu1  ;;  %v2375_v12 = vadd.f32 %v2374_v10, %v2302_v18  ;;  %v4842_v13 = vadd.f32 %v2445_v55, %v2373_v8 }
 0x15b   : > { %v2376_v14 = vpop.f32.mrf.mxu0 }
 0x15c   : > { %v2449_v15 = vpop.f32.mrf.mxu1  ;;  %v2377_v1 = vadd.f32 %v2376_v14, %v2304_v21  ;;  %v4844_v16 = vadd.f32 %v2447_v60, %v2375_v12 }
 0x15d   : > { %v4846_v17 = vpop.f32.mrf.mxu0 }
 0x15e   : > { %v4848_v19 = vpop.f32.mrf.mxu1  ;;  %v4850_v5 = vadd.f32 %v2449_v15, %v2377_v1  ;;  %v2817_v1 = vlaneseq }
 0x15f   : > { %v2382_v20 = vpop.f32.mrf.mxu0 }
 0x160   : > { %v2455_v11 = vpop.f32.mrf.mxu1  ;;  %v2383_v22 = vadd.f32 %v2382_v20, %v2310_v27 }
 0x161   : > { %v4852_v23 = vpop.f32.mrf.mxu0 }
 0x162   : > { %v4854_v25 = vpop.f32.mrf.mxu1  ;;  %v4856_v18 = vadd.f32 %v2455_v11, %v2383_v22  ;;  %v2818_v22 = vshrl.u32 %v2817_v1, 7 }
 0x163   : > { %v2386_v26 = vpop.f32.mrf.mxu0 }
 0x164   : > { %v2459_v28 = vpop.f32.mrf.mxu1  ;;  %v2387_v21 = vadd.f32 %v2386_v26, %v2314_v35 }
 0x165   : > { %v4858_v29 = vpop.f32.mrf.mxu0 }
 0x166   : > { %v4860_v30 = vpop.f32.mrf.mxu1  ;;  %v4862_v31 = vadd.f32 %v2459_v28, %v2387_v21 }
 0x167   : > { %v2392_v33 = vpop.f32.mrf.mxu0 }
 0x168   : > { %v2465_v34 = vpop.f32.mrf.mxu1  ;;  %v2393_v36 = vadd.f32 %v2392_v33, %v2320_v41 }
 0x169   : > { %v4866_v27 = vpop.f32.mrf.mxu0 }
 0x16a   : > { %v4864_v37 = vadd.f32 %v2465_v34, %v2393_v36  ;;  %v4868_v39 = vpop.f32.mrf.mxu1  ;;  %v2819_v34 = vsub.s32 0, %v2818_v22 }
 0x16b   : > { %v4870_v40 = vpop.f32.mrf.mxu0 }
 0x16c   : > { %v4872_v42 = vpop.f32.mrf.mxu1 }
 0x16d   : > { %5142 = vst [vmem:[#allocation3_spill] sm:$0xff] %v4872_v42 }
 0x18d   : > { %v2506_v35 = vpop.f32.mrf.mxu0 }
 0x18e   : > { %v2579_v43 = vpop.f32.mrf.mxu1  ;;  %v2507_v26 = vadd.f32 %v2506_v35, %v4827_v54 }
 0x18f   : > { %v2508_v45 = vpop.f32.mrf.mxu0 }
 0x190   : > { %v2581_v46 = vpop.f32.mrf.mxu1  ;;  %v2509_v28 = vadd.f32 %v2508_v45, %v4830_v59  ;;  %v2580_v36 = vadd.f32 %v2579_v43, %v2507_v26  ;;  %v2381_v59 = vadd.f32 %v4846_v17, %v4816_v24  ;;  %v2385_v45 = vadd.f32 %v4852_v23, %v4818_v32 }
 0x191   : > { %v2510_v49 = vpop.f32.mrf.mxu0 }
 0x192   : > { %v2583_v50 = vpop.f32.mrf.mxu1  ;;  %v2511_v42 = vadd.f32 %v2510_v49, %v4833_v0  ;;  %v2582_v1 = vadd.f32 %v2581_v46, %v2509_v28  ;;  %v2391_v46 = vadd.f32 %v4858_v29, %v4820_v38  ;;  %v2458_v29 = vadd.f32 %v4854_v25, %v2385_v45 }
 0x193   : > { %v2512_v51 = vpop.f32.mrf.mxu0 }
 0x194   : > { %v2585_v52 = vpop.f32.mrf.mxu1  ;;  %v2513_v54 = vadd.f32 %v2512_v51, %v4836_v4  ;;  %v2584_v26 = vadd.f32 %v2583_v50, %v2511_v42 }
 0x195   : > { %v2516_v53 = vpop.f32.mrf.mxu0 }
 0x196   : > { %v2589_v41 = vpop.f32.mrf.mxu1  ;;  %v2586_v24 = vadd.f32 %v2585_v52, %v2513_v54 }
 0x197   : > { %v2518_v56 = vpop.f32.mrf.mxu0 }
 0x198   : > { %v4874_v57 = vpop.f32.mrf.mxu1  ;;  %v2519_v17 = vadd.f32 %v2518_v56, %v4842_v13  ;;  %v2464_v13 = vadd.f32 %v4860_v30, %v2391_v46  ;;  %v2395_v56 = vadd.f32 %v4866_v27, %v4822_v44 }
 0x199   : > { %v2520_v58 = vpop.f32.mrf.mxu0 }
 0x19a   : > { %v4876_v61 = vpop.f32.mrf.mxu1  ;;  %v2521_v42 = vadd.f32 %v2520_v58, %v4844_v16  ;;  %v4943_v16 = vadd.f32 %v4870_v40, %v4824_v47 }
 0x19b   : > { %v2522_v62 = vpop.f32.mrf.mxu0 }
 0x19c   : > { %v4878_v63 = vpop.f32.mrf.mxu1  ;;  %v2594_v30 = vadd.f32 %v4876_v61, %v2521_v42 }
 0x19d   : > { %v4880_v2 = vpop.f32.mrf.mxu0 }
 0x19e   : > { %v4882_v3 = vpop.f32.mrf.mxu1 }
 0x19f   : > { %v4884_v48 = vpop.f32.mrf.mxu0 }
 0x1a0   : > { %v4886_v6 = vpop.f32.mrf.mxu1  ;;  %v2529_v61 = vadd.f32 %v4884_v48, %v4856_v18 }
 0x1a1   : > { %v4888_v7 = vpop.f32.mrf.mxu0 }
 0x1a2   : > { %v4890_v55 = vpop.f32.mrf.mxu1 }
 0x1a3   : > { %v4892_v8 = vpop.f32.mrf.mxu0 }
 0x1a4   : > { %v4894_v10 = vpop.f32.mrf.mxu1  ;;  %v2533_v48 = vadd.f32 %v4892_v8, %v4862_v31 }
 0x1a5   : > { %v4896_v60 = vpop.f32.mrf.mxu0 }
 0x1a6   : > { %v4898_v12 = vpop.f32.mrf.mxu1 }
 0x1a7   : > { %5143 = vst [vmem:[#allocation4_spill] sm:$0xff] %v4898_v12  ;;  %v4900_v14 = vpop.f32.mrf.mxu0 }
 0x1a8   : > { %5144 = vst [vmem:[#allocation5_spill] sm:$0xff] %v4900_v14  ;;  %v4902_v15 = vpop.f32.mrf.mxu1 }
 0x1a9   : > { %5145 = vst [vmem:[#allocation6_spill] sm:$0xff] %v4902_v15  ;;  %v4904_v20 = vpop.f32.mrf.mxu0  ;;  %v2815_v15 = vld [vmem:[%s5140_s2] sm:$0x3] }
 0x1aa   : > { %5146 = vst [vmem:[#allocation7_spill] sm:$0xff] %v4904_v20  ;;  %v4906_v11 = vpop.f32.mrf.mxu1  ;;  %v4923_v43 = vrot.slane %v2815_v15, %v2819_v34 }
 0x1ab   : > { %5147 = vst [vmem:[#allocation8_spill] sm:$0xff] %v4906_v11  ;;  %v4910_v21 = vpop.f32.mrf.mxu0  ;;  %v2823_v11 = vsub.s32 1, %v2818_v22  ;;  %v2454_v22 = vadd.f32 %v4848_v19, %v2381_v59 }
 0x1ac   : > { %5148 = vst [vmem:[#allocation9_spill] sm:$0xff] %v4910_v21  ;;  %v4912_v33 = vpop.f32.mrf.mxu1 }
 0x1ad   : > { %5149 = vst [vmem:[#allocation10_spill] sm:$0xff] %v4912_v33  ;;  %v2517_v33 = vadd.f32 %v2516_v53, %v4840_v9  ;;  %v4928_v4 = vrot.slane %v2815_v15, %v2823_v11  ;;  %v2523_v9 = vadd.f32 %v2522_v62, %v4850_v5  ;;  %v2592_v62 = vadd.f32 %v4874_v57, %v2519_v17 }
 0x1ae   : > { %v2527_v44 = vadd.f32 %v4880_v2, %v2454_v22  ;;  %v2468_v17 = vadd.f32 %v4868_v39, %v2395_v56 }
 0x1af   : > { %v2596_v27 = vadd.f32 %v4878_v63, %v2523_v9  ;;  %v2531_v63 = vadd.f32 %v4888_v7, %v2458_v29 }
 0x1b0   : > { %v2600_v18 = vadd.f32 %v4882_v3, %v2527_v44 }
 0x1b1   : > { %v2604_v22 = vadd.f32 %v4890_v55, %v2531_v63 }
 0x1cd   : > { %v2652_v20 = vpop.f32.mrf.mxu0 }
 0x1ce   : > { %v2725_v12 = vpop.f32.mrf.mxu1  ;;  %v2653_v35 = vadd.f32 %v2652_v20, %v2580_v36 }
 0x1cf   : > { %v2654_v0 = vpop.f32.mrf.mxu0 }
 0x1d0   : > { %v2727_v49 = vpop.f32.mrf.mxu1  ;;  %v2726_v21 = vadd.f32 %v2725_v12, %v2653_v35  ;;  %v2655_v14 = vadd.f32 %v2654_v0, %v2582_v1  ;;  %v2590_v12 = vadd.f32 %v2589_v41, %v2517_v33 }
 0x1d1   : > { %v2656_v51 = vpop.f32.mrf.mxu0 }
 0x1d2   : > { %v2729_v20 = vpop.f32.mrf.mxu1  ;;  %v2728_v32 = vadd.f32 %v2727_v49, %v2655_v14  ;;  %v2657_v23 = vadd.f32 %v2656_v51, %v2584_v26  ;;  %v4935_v50 = vadd.f32 %v4923_v43, %v2726_v21 }
 0x1d3   : > { %v2658_v53 = vpop.f32.mrf.mxu0 }
 0x1d4   : > { %v2731_v38 = vpop.f32.mrf.mxu1  ;;  %v2730_v15 = vadd.f32 %v2729_v20, %v2657_v23  ;;  %v2659_v52 = vadd.f32 %v2658_v53, %v2586_v24  ;;  %v4946_v19 = vadd.f32 %v4928_v4, %v2728_v32  ;;  %v2869_v47 = vmul.f32 %v4935_v50, %v4935_v50 }
 0x1d5   : > { %v2662_v5 = vpop.f32.mrf.mxu0  ;;  %v2602_v32 = vadd.f32 %v4886_v6, %v2529_v61 }
 0x1d6   : > { %v2735_v58 = vpop.f32.mrf.mxu1  ;;  %v4950_v25 = vadd.f32 %v4923_v43, %v2730_v15  ;;  %v2732_v41 = vadd.f32 %v2731_v38, %v2659_v52  ;;  %v2663_v14 = vadd.f32 %v2662_v5, %v2590_v12  ;;  %v2870_v2 = vmul.f32 %v4946_v19, %v4946_v19 }
 0x1d7   : > { %v2664_v40 = vpop.f32.mrf.mxu0  ;;  %v2537_v38 = vadd.f32 %v4896_v60, %v2464_v13  ;;  %v2606_v52 = vadd.f32 %v4894_v10, %v2533_v48 }
 0x1d8   : > { %v2737_v11 = vpop.f32.mrf.mxu1  ;;  %v2843_v28 = vadd.f32 %v4950_v25, %v4935_v50  ;;  %v2871_v57 = vmul.f32 %v4950_v25, %v4950_v25  ;;  %v4962_v21 = vadd.f32 %v4928_v4, %v2732_v41  ;;  %v2736_v33 = vadd.f32 %v2735_v58, %v2663_v14  ;;  %v5150_v58 = vld [vmem:[#allocation5_spill] sm:$0xff] }
 0x1d9   : > { %v2665_v34 = vadd.f32 %v2664_v40, %v2592_v62  ;;  %v2666_v36 = vpop.f32.mrf.mxu0  ;;  %v2539_v60 = vadd.f32 %v5150_v58, %v4864_v37  ;;  %v5151_v40 = vld [vmem:[#allocation4_spill] sm:$0xff]  ;;  %v5152_v37 = vld [vmem:[#allocation7_spill] sm:$0xff]  ;;  %v5157_v58 = vld [vmem:[#allocation10_spill] sm:$0xff] }
 0x1da   : > { %v2739_v1 = vpop.f32.mrf.mxu1  ;;  %v2885_v54 = vadd.f32 %v2871_v57, %v2869_v47  ;;  %v2856_v35 = vadd.f32 %v4962_v21, %v4946_v19  ;;  %v2872_v59 = vmul.f32 %v4962_v21, %v4962_v21  ;;  %v4974_v45 = vadd.f32 %v4923_v43, %v2736_v33 }
 0x1db   : > { %v2738_v7 = vadd.f32 %v2737_v11, %v2665_v34  ;;  %v2667_v0 = vadd.f32 %v2666_v36, %v2594_v30  ;;  %v2668_v49 = vpop.f32.mrf.mxu0  ;;  %v2610_v11 = vadd.f32 %v5151_v40, %v2537_v38 }
 0x1dc   : > { %v2741_v26 = vpop.f32.mrf.mxu1  ;;  %v2898_v46 = vadd.f32 %v2872_v59, %v2870_v2  ;;  %v2844_v51 = vadd.f32 %v2843_v28, %v4974_v45  ;;  %v2873_v20 = vmul.f32 %v4974_v45, %v4974_v45  ;;  %v2669_v24 = vadd.f32 %v2668_v49, %v2596_v27  ;;  %v5154_v59 = vld [vmem:[#allocation6_spill] sm:$0xff] }
 0x1dd   : > { %v4985_v3 = vadd.f32 %v4928_v4, %v2738_v7  ;;  %v2740_v23 = vadd.f32 %v2739_v1, %v2667_v0  ;;  %v2672_v31 = vpop.f32.mrf.mxu0  ;;  %v2541_v28 = vadd.f32 %v5152_v37, %v2468_v17 }
 0x1de   : > { %v2745_v8 = vpop.f32.mrf.mxu1  ;;  %v2886_v42 = vadd.f32 %v2885_v54, %v2873_v20  ;;  %v2742_v9 = vadd.f32 %v2741_v26, %v2669_v24  ;;  %v2673_v53 = vadd.f32 %v2672_v31, %v2600_v18  ;;  %v5153_v54 = vld [vmem:[#allocation3_spill] sm:$0xff]  ;;  %v2612_v18 = vadd.f32 %v5154_v59, %v2539_v60  ;;  %v5155_v24 = vld [vmem:[#allocation9_spill] sm:$0xff] }
 0x1df   : > { %v2857_v29 = vadd.f32 %v2856_v35, %v4985_v3  ;;  %v2874_v39 = vmul.f32 %v4985_v3, %v4985_v3  ;;  %v4993_v6 = vadd.f32 %v4923_v43, %v2740_v23  ;;  %v2674_v12 = vpop.f32.mrf.mxu0  ;;  %v2470_v35 = vadd.f32 %v5153_v54, %v4943_v16 }
 0x1e0   : > { %v2747_v15 = vpop.f32.mrf.mxu1  ;;  %v4997_v56 = vadd.f32 %v4928_v4, %v2742_v9  ;;  %v2746_v55 = vadd.f32 %v2745_v8, %v2673_v53  ;;  %v2675_v5 = vadd.f32 %v2674_v12, %v2602_v32  ;;  %v5156_v8 = vld [vmem:[#allocation8_spill] sm:$0xff] }
 0x1e1   : > { %v2899_v13 = vadd.f32 %v2898_v46, %v2874_v39  ;;  %v2845_v62 = vadd.f32 %v2844_v51, %v4993_v6  ;;  %v2875_v41 = vmul.f32 %v4993_v6, %v4993_v6  ;;  %v2676_v14 = vpop.f32.mrf.mxu0  ;;  %v2543_v17 = vadd.f32 %v5155_v24, %v2470_v35 }
 0x1e2   : > { %v2749_v30 = vpop.f32.mrf.mxu1  ;;  %v2858_v44 = vadd.f32 %v2857_v29, %v4997_v56  ;;  %v2876_v10 = vmul.f32 %v4997_v56, %v4997_v56  ;;  %v5008_v27 = vadd.f32 %v4923_v43, %v2746_v55  ;;  %v2748_v47 = vadd.f32 %v2747_v15, %v2675_v5 }
 0x1e3   : > { %v2887_v57 = vadd.f32 %v2886_v42, %v2875_v41  ;;  %v2677_v33 = vadd.f32 %v2676_v14, %v2604_v22  ;;  %v2678_v61 = vpop.f32.mrf.mxu0  ;;  %v2614_v22 = vadd.f32 %v5156_v8, %v2541_v28  ;;  %v2616_v60 = vadd.f32 %v5157_v58, %v2543_v17 }
 0x1e4   : > { %v2751_v63 = vpop.f32.mrf.mxu1  ;;  %v2900_v2 = vadd.f32 %v2899_v13, %v2876_v10  ;;  %v2846_v34 = vadd.f32 %v2845_v62, %v5008_v27  ;;  %v2877_v36 = vmul.f32 %v5008_v27, %v5008_v27  ;;  %v5016_v1 = vadd.f32 %v4928_v4, %v2748_v47 }
 0x1e5   : > { %v2750_v48 = vadd.f32 %v2749_v30, %v2677_v33  ;;  %v2679_v7 = vadd.f32 %v2678_v61, %v2606_v52  ;;  %v2682_v0 = vpop.f32.mrf.mxu0 }
 0x1e6   : > { %v2755_v49 = vpop.f32.mrf.mxu1  ;;  %v2888_v26 = vadd.f32 %v2887_v57, %v2877_v36  ;;  %v2859_v46 = vadd.f32 %v2858_v44, %v5016_v1  ;;  %v2878_v51 = vmul.f32 %v5016_v1, %v5016_v1  ;;  %v2683_v20 = vadd.f32 %v2682_v0, %v2610_v11 }
 0x1e7   : > { %v5026_v32 = vadd.f32 %v4923_v43, %v2750_v48  ;;  %v2752_v23 = vadd.f32 %v2751_v63, %v2679_v7  ;;  %v2684_v16 = vpop.f32.mrf.mxu0 }
 0x1e8   : > { %v2757_v31 = vpop.f32.mrf.mxu1  ;;  %v2901_v42 = vadd.f32 %v2900_v2, %v2878_v51  ;;  %v2756_v9 = vadd.f32 %v2755_v49, %v2683_v20  ;;  %v2685_v53 = vadd.f32 %v2684_v16, %v2612_v18 }
 0x1e9   : > { %v2847_v38 = vadd.f32 %v2846_v34, %v5026_v32  ;;  %v2879_v29 = vmul.f32 %v5026_v32, %v5026_v32  ;;  %v5033_v39 = vadd.f32 %v4928_v4, %v2752_v23  ;;  %v2686_v12 = vpop.f32.mrf.mxu0 }
 0x1ea   : > { %v5036_v15 = vadd.f32 %v4923_v43, %v2756_v9  ;;  %v2758_v52 = vadd.f32 %v2757_v31, %v2685_v53  ;;  %v2687_v55 = vadd.f32 %v2686_v12, %v2614_v22  ;;  %v2759_v5 = vpop.f32.mrf.mxu1 }
 0x1eb   : > { %v2889_v13 = vadd.f32 %v2888_v26, %v2879_v29  ;;  %v2860_v62 = vadd.f32 %v2859_v46, %v5033_v39  ;;  %v2880_v41 = vmul.f32 %v5033_v39, %v5033_v39  ;;  %v2688_v14 = vpop.f32.mrf.mxu0 }
 0x1ec   : > { %v2848_v30 = vadd.f32 %v2847_v38, %v5036_v15  ;;  %v2881_v44 = vmul.f32 %v5036_v15, %v5036_v15  ;;  %v5046_v10 = vadd.f32 %v4928_v4, %v2758_v52  ;;  %v2760_v47 = vadd.f32 %v2759_v5, %v2687_v55  ;;  %v2761_v61 = vpop.f32.mrf.mxu1 }
 0x1ed   : > { %v2902_v40 = vadd.f32 %v2901_v42, %v2880_v41  ;;  %v2689_v11 = vadd.f32 %v2688_v14, %v2616_v60 }
 0x1ee   : > { %v2890_v37 = vadd.f32 %v2889_v13, %v2881_v44  ;;  %v2861_v28 = vadd.f32 %v2860_v62, %v5046_v10  ;;  %v2882_v57 = vmul.f32 %v5046_v10, %v5046_v10  ;;  %v5052_v33 = vadd.f32 %v4923_v43, %v2760_v47 }
 0x1ef   : > { %v2762_v63 = vadd.f32 %v2761_v61, %v2689_v11 }
 0x1f0   : > { %v2903_v2 = vadd.f32 %v2902_v40, %v2882_v57  ;;  %v2849_v34 = vadd.f32 %v2848_v30, %v5052_v33  ;;  %v2883_v36 = vmul.f32 %v5052_v33, %v5052_v33 }
 0x1f1   : > { %v5058_v54 = vadd.f32 %v4928_v4, %v2762_v63 }
 0x1f2   : > { %v2850_v35 = vrot.slane %v2849_v34, 4  ;;  %v2891_v59 = vadd.f32 %v2890_v37, %v2883_v36 }
 0x1f3   : > { %v2862_v18 = vadd.f32 %v2861_v28, %v5058_v54  ;;  %v2884_v48 = vmul.f32 %v5058_v54, %v5058_v54 }
 0x1f4   : > { %v2851_v43 = vadd.f32 %v2850_v35, %v2849_v34  ;;  %v2892_v7 = vrot.slane %v2891_v59, 4 }
 0x1f5   : > { %v2863_v0 = vrot.slane %v2862_v18, 4  ;;  %v2904_v49 = vadd.f32 %v2903_v2, %v2884_v48 }
 0x1f6   : > { %v2852_v26 = vrot.slane %v2851_v43, 2  ;;  %v2893_v46 = vadd.f32 %v2892_v7, %v2891_v59 }
 0x1f7   : > { %v2864_v51 = vadd.f32 %v2863_v0, %v2862_v18  ;;  %v2905_v20 = vrot.slane %v2904_v49, 4 }
 0x1f8   : > { %v2853_v24 = vadd.f32 %v2852_v26, %v2851_v43  ;;  %v2894_v17 = vrot.slane %v2893_v46, 2 }
 0x1f9   : > { %v2865_v23 = vrot.slane %v2864_v51, 2  ;;  %v2906_v4 = vadd.f32 %v2905_v20, %v2904_v49 }
 0x1fa   : > { %v2854_v16 = vrot.slane %v2853_v24, 1  ;;  %v2895_v31 = vadd.f32 %v2894_v17, %v2893_v46 }
 0x1fb   : > { %v2866_v8 = vadd.f32 %v2865_v23, %v2864_v51  ;;  %v2907_v22 = vrot.slane %v2906_v4, 2 }
 0x1fc   : > { %v2855_v42 = vadd.f32 %v2854_v16, %v2853_v24  ;;  %v2896_v9 = vrot.slane %v2895_v31, 1 }
 0x1fd   : > { %v2867_v53 = vrot.slane %v2866_v8, 1  ;;  %v2908_v38 = vadd.f32 %v2907_v22, %v2906_v4 }
 0x1fe   : > { %v2897_v29 = vadd.f32 %v2896_v9, %v2895_v31  ;;  %v2911_v12 = vmul.f32 0.015625, %v2855_v42 }
 0x1ff   : > { %v2868_v52 = vadd.f32 %v2867_v53, %v2866_v8  ;;  %v2909_v55 = vrot.slane %v2908_v38, 1 }
 0x200   : > { %v2913_v5 = vmul.f32 0.015625, %v2897_v29  ;;  %v2915_v58 = vmul.f32 %v2911_v12, %v2911_v12  ;;  %v2919_v60 = vsub.f32 %v4935_v50, %v2911_v12  ;;  %v2921_v13 = vsub.f32 %v4950_v25, %v2911_v12 }
 0x201   : > { %v2923_v62 = vsub.f32 %v4974_v45, %v2911_v12  ;;  %v2925_v41 = vsub.f32 %v4993_v6, %v2911_v12  ;;  %v2927_v14 = vsub.f32 %v5008_v27, %v2911_v12  ;;  %v2929_v30 = vsub.f32 %v5026_v32, %v2911_v12 }
 0x202   : > { %v2917_v44 = vsub.f32 %v2913_v5, %v2915_v58  ;;  %v2931_v47 = vsub.f32 %v5036_v15, %v2911_v12  ;;  %v2933_v40 = vsub.f32 %v5052_v33, %v2911_v12  ;;  %v2910_v11 = vadd.f32 %v2909_v55, %v2908_v38 }
 0x203   : > { %v5071_v37 = vmul.f32 0.015625, %v2868_v52 }
 0x204   : > { %v2935_v28 = vadd.f32 1e-05, %v2917_v44  ;;  %v2914_v50 = vmul.f32 0.015625, %v2910_v11 }
 0x205   : > { %v2916_v25 = vmul.f32 %v5071_v37, %v5071_v37  ;;  %v2920_v45 = vsub.f32 %v4946_v19, %v5071_v37  ;;  %v2922_v6 = vsub.f32 %v4962_v21, %v5071_v37  ;;  %v2924_v27 = vsub.f32 %v4985_v3, %v5071_v37 }
 0x206   : > { %3846 = vrsqrt.f32 %v2935_v28  ;;  %v2926_v32 = vsub.f32 %v4997_v56, %v5071_v37  ;;  %v2928_v15 = vsub.f32 %v5016_v1, %v5071_v37  ;;  %v2930_v57 = vsub.f32 %v5033_v39, %v5071_v37 }
 0x207   : > { %v2918_v33 = vsub.f32 %v2914_v50, %v2916_v25  ;;  %v2932_v19 = vsub.f32 %v5046_v10, %v5071_v37  ;;  %v2934_v21 = vsub.f32 %v5058_v54, %v5071_v37 }
 0x209   : > { %v2936_v61 = vadd.f32 1e-05, %v2918_v33 }
 0x20b   : > { %3848 = vrsqrt.f32 %v2936_v61 }
 0x213   : > { %v3847_v3 = vpop.eup %3846 }
 0x214   : > { %v2939_v63 = vmul.f32 %v3847_v3, %v2919_v60  ;;  %v2941_v2 = vmul.f32 %v3847_v3, %v2921_v13  ;;  %v2943_v34 = vmul.f32 %v3847_v3, %v2923_v62  ;;  %v2945_v56 = vmul.f32 %v3847_v3, %v2925_v41 }
 0x215   : > { %v2947_v36 = vmul.f32 %v3847_v3, %v2927_v14  ;;  %v2949_v1 = vmul.f32 %v3847_v3, %v2929_v30  ;;  %v2951_v35 = vmul.f32 %v3847_v3, %v2931_v47  ;;  %v2953_v59 = vmul.f32 %v3847_v3, %v2933_v40 }
 0x216   : > { %vm2955_vm0 = vcmp.ge.f32.partialorder %v2939_v63, 0.0  ;;  %vm2957_vm1 = vcmp.ge.f32.partialorder %v2941_v2, 0.0  ;;  %vm2959_vm2 = vcmp.ge.f32.partialorder %v2943_v34, 0.0  ;;  %vm2961_vm3 = vcmp.ge.f32.partialorder %v2945_v56, 0.0 }
 0x217   : > { %vm2963_vm4 = vcmp.ge.f32.partialorder %v2947_v36, 0.0  ;;  %vm2965_vm5 = vcmp.ge.f32.partialorder %v2949_v1, 0.0  ;;  %vm2967_vm6 = vcmp.ge.f32.partialorder %v2951_v35, 0.0  ;;  %vm2969_vm7 = vcmp.ge.f32.partialorder %v2953_v59, 0.0 }
 0x218   : > { %v3849_v39 = vpop.eup %3848  ;;  %v2971_v10 = vmul.f32 0.2, %v2939_v63  ;;  %v2973_v54 = vmul.f32 0.2, %v2941_v2  ;;  %v2975_v18 = vmul.f32 0.2, %v2943_v34 }
 0x219   : > { %v2977_v48 = vmul.f32 0.2, %v2945_v56  ;;  %v2979_v43 = vmul.f32 0.2, %v2947_v36  ;;  %v2981_v7 = vmul.f32 0.2, %v2949_v1  ;;  %v2940_v0 = vmul.f32 %v3849_v39, %v2920_v45 }
 0x21a   : > { %v2983_v49 = vmul.f32 0.2, %v2951_v35  ;;  %v2985_v26 = vmul.f32 0.2, %v2953_v59  ;;  %v2987_v46 = vsel %vm2955_vm0, %v2939_v63, %v2971_v10  ;;  %v2989_v51 = vsel %vm2957_vm1, %v2941_v2, %v2973_v54 }
 0x21b   : > { %v2991_v20 = vsel %vm2959_vm2, %v2943_v34, %v2975_v18  ;;  %v2993_v24 = vsel %vm2961_vm3, %v2945_v56, %v2977_v48  ;;  %v2995_v17 = vsel %vm2963_vm4, %v2947_v36, %v2979_v43  ;;  %v2997_v23 = vsel %vm2965_vm5, %v2949_v1, %v2981_v7  ;;  %3003 = vst [vmem:[%s5095_s26] sm:$0xff] %v2987_v46 }
 0x21c   : > { %3005 = vst [vmem:[%s5095_s26 + $0x10] sm:$0xff] %v2989_v51  ;;  %v2999_v4 = vsel %vm2967_vm6, %v2951_v35, %v2983_v49  ;;  %v3001_v16 = vsel %vm2969_vm7, %v2953_v59, %v2985_v26  ;;  %3007 = vst [vmem:[%s5095_s26 + $0x20] sm:$0xff] %v2991_v20  ;;  %v2942_v31 = vmul.f32 %v3849_v39, %v2922_v6  ;;  %vm2956_vm8 = vcmp.ge.f32.partialorder %v2940_v0, 0.0 }
 0x21d   : > { %3009 = vst [vmem:[%s5095_s26 + $0x30] sm:$0xff] %v2993_v24  ;;  %3011 = vst [vmem:[%s5095_s26 + $0x40] sm:$0xff] %v2995_v17  ;;  %v2944_v8 = vmul.f32 %v3849_v39, %v2924_v27  ;;  %v2946_v22 = vmul.f32 %v3849_v39, %v2926_v32  ;;  %v2948_v42 = vmul.f32 %v3849_v39, %v2928_v15  ;;  %v2972_v29 = vmul.f32 0.2, %v2940_v0 }
 0x21e   : > { %3013 = vst [vmem:[%s5095_s26 + $0x50] sm:$0xff] %v2997_v23  ;;  %3015 = vst [vmem:[%s5095_s26 + $0x60] sm:$0xff] %v2999_v4  ;;  %v2950_v9 = vmul.f32 %v3849_v39, %v2930_v57  ;;  %v2952_v53 = vmul.f32 %v3849_v39, %v2932_v19  ;;  %v2954_v38 = vmul.f32 %v3849_v39, %v2934_v21  ;;  %vm2958_vm9 = vcmp.ge.f32.partialorder %v2942_v31, 0.0 }
 0x21f   : > { %3017 = vst [vmem:[%s5095_s26 + $0x70] sm:$0xff] %v3001_v16  ;;  %vm2960_vm10 = vcmp.ge.f32.partialorder %v2944_v8, 0.0  ;;  %vm2962_vm11 = vcmp.ge.f32.partialorder %v2946_v22, 0.0  ;;  %vm2964_vm12 = vcmp.ge.f32.partialorder %v2948_v42, 0.0  ;;  %v2974_v12 = vmul.f32 0.2, %v2942_v31 }
 0x220   : > { %vm2966_vm13 = vcmp.ge.f32.partialorder %v2950_v9, 0.0  ;;  %vm2968_vm14 = vcmp.ge.f32.partialorder %v2952_v53, 0.0  ;;  %vm2970_vm15 = vcmp.ge.f32.partialorder %v2954_v38, 0.0  ;;  %v2976_v52 = vmul.f32 0.2, %v2944_v8 }
 0x221   : > { %v2978_v55 = vmul.f32 0.2, %v2946_v22  ;;  %v2980_v5 = vmul.f32 0.2, %v2948_v42  ;;  %v2982_v58 = vmul.f32 0.2, %v2950_v9  ;;  %v2988_v62 = vsel %vm2956_vm8, %v2940_v0, %v2972_v29 }
 0x222   : > { %v2984_v60 = vmul.f32 0.2, %v2952_v53  ;;  %v2986_v13 = vmul.f32 0.2, %v2954_v38  ;;  %v2990_v41 = vsel %vm2958_vm9, %v2942_v31, %v2974_v12  ;;  %v2992_v14 = vsel %vm2960_vm10, %v2944_v8, %v2976_v52  ;;  %3004 = vst [vmem:[%s5095_s26 + $0x8] sm:$0xff] %v2988_v62 }
 0x223   : > { %v2994_v30 = vsel %vm2962_vm11, %v2946_v22, %v2978_v55  ;;  %v2996_v44 = vsel %vm2964_vm12, %v2948_v42, %v2980_v5  ;;  %v2998_v47 = vsel %vm2966_vm13, %v2950_v9, %v2982_v58  ;;  %3006 = vst [vmem:[%s5095_s26 + $0x18] sm:$0xff] %v2990_v41  ;;  %3008 = vst [vmem:[%s5095_s26 + $0x28] sm:$0xff] %v2992_v14 }
 0x224   : > { %v3000_v40 = vsel %vm2968_vm14, %v2952_v53, %v2984_v60  ;;  %v3002_v11 = vsel %vm2970_vm15, %v2954_v38, %v2986_v13  ;;  %3010 = vst [vmem:[%s5095_s26 + $0x38] sm:$0xff] %v2994_v30  ;;  %3012 = vst [vmem:[%s5095_s26 + $0x48] sm:$0xff] %v2996_v44 }
 0x225   : > { %3014 = vst [vmem:[%s5095_s26 + $0x58] sm:$0xff] %v2998_v47  ;;  %3016 = vst [vmem:[%s5095_s26 + $0x68] sm:$0xff] %v3000_v40 }
 0x226   : > { %3018 = vst [vmem:[%s5095_s26 + $0x78] sm:$0xff] %v3002_v11 }
 0x227 PF: > { %s13_s14 = sadd.s32 1, %s3872_s14   ;;  %s5158_s12 = smov %s3868_s13 }
 0x228   : > { %p10_p5 = scmp.ge.s32.totalorder %s13_s14, 4   ;;  %s5159_s13 = smov %s5161_s15 }
 0x22a   :  { %12 = sbr.rel (!%p10_p5) target bundleno = 2 (0x2), region = 73 }

// kernel: discriminator_forward.8
= control target key start
LH: loop header
LB: loop body
LE: loop exit
PB: predicated region body
PF: predicated region fallthrough
CT: control target
= control target key end

     0   :  { %s5879_s12 = smov 0   ;;  %s5881_s13 = smov 0   ;;  %s6718_s0 = inlined_call_operand.vmem [shape: bf16[2,16,4096], index: 0, kind: input, shape index: {}]   ;;  %s6719_s1 = inlined_call_operand.vmem [shape: bf16[4096,512], index: 1, kind: input, shape index: {}]   ;;  %s6720_s2 = inlined_call_operand.vmem [shape: f32[1,512], index: 2, kind: input, shape index: {}]   ;;  %s6721_s3 = inlined_call_operand.vmem [shape: f32[2,16,512], index: 3, kind: output, shape index: {}]  }
   0x1   :  { %s5883_s14 = smov 0   ;;  %s5885_s15 = smov 0  }
   0x2   :  { %s5887_s16 = smov 0   ;;  %s5889_s17 = smov 0  }
   0x3   :  { %s5891_s18 = smov 0  }
   0x4 LB: > { %s22_s19 = sadd.s32 1, %s5848_s16  ;;  %s25_s20 = sadd.s32 1, %s5852_s17  ;;  %s5856_s18 = sphi %s5891_s18, %s13_s18   ;;  %s5852_s17 = sphi %s5889_s17, %s6727_s17   ;;  %s5848_s16 = sphi %s5887_s16, %s6726_s16   ;;  %s5844_s15 = sphi %s5885_s15, %s6725_s15   ;;  %s5840_s14 = sphi %s5883_s14, %s6724_s14   ;;  %s5836_s13 = sphi %s5881_s13, %s6723_s13   ;;  %s5832_s12 = sphi %s5879_s12, %s6722_s12  }
   0x5   : > { %p23_p0 = scmp.ge.s32.totalorder %s22_s19, 2  ;;  %p41_p1 = scmp.ne.s32.totalorder %s5836_s13, %s5832_s12 }
   0x6   : > { %p42_p2 = scmp.eq.s32.totalorder %s5856_s18, 0  ;;  %s34_s24 = sadd.s32 1, %s5836_s13 }
   0x7   : > { %s6729_s19 = smov (%p23_p0, %s22_s19), 0  ;;  %s6731_s20 = smov (!%p23_p0, %s25_s20), %s5852_s17 }
   0x8   : > { %p43_p3 = por %p42_p2, %p41_p1  ;;  %p27_p4 = scmp.ge.s32.totalorder %s6731_s20, 2 }
   0x9   : > { %s30_s21 = ssub.s32 %s5848_s16, %s6729_s19  ;;  %p4423_p6 = scmp.ge.s32.totalorder %s5856_s18, 4 }
   0xa   : > { %s6733_s20 = smov (%p27_p4, %s6731_s20), 0 }
   0xb   : > { %s29_s22 = ssub.s32 %s5852_s17, %s6733_s20  ;;  %143 = sbr.rel (%p4423_p6) target bundleno = 31 (0x1f), region = 20 }
   0xc   : > { %s31_s23 = sor.u32 %s30_s21, %s29_s22 }
   0xd   : > { %p32_p5 = scmp.eq.s32.totalorder %s31_s23, 0 }
   0xf   : > { %s5930_s25 = scalar_select %p32_p5, %s5836_s13, %s34_s24  }
  0x10   : > { %146 = sbr.rel (!%p43_p3) target bundleno = 31 (0x1f), region = 24  ;;  %s148_s26 = sand.u32 (%p43_p3), 1, %s5836_s13  }
  0x11   : > { %s4425_s27 = sshll.u32 (%p43_p3), %s5848_s16, 4  ;;  %s4424_s28 = sshll.u32 (%p43_p3), %s148_s26, 7 }
  0x12   : > { %s4426_s29 = sshll.u32 (%p43_p3), %s5852_s17, 6  ;;  %s150_s8 = scalar_lea.vmem (%p43_p3), [#allocation3], %s4424_s28 }
  0x13   : > { %s153_s30 = sadd.s32 (%p43_p3), %s4426_s29, %s4425_s27 }
  0x14   : > { %s4427_s4 = sshll.u32 (%p43_p3), %s153_s30, 2 }
  0x15   : > { %s5939_s7 = scalar_lea.vmem %s6718_s0, %s4427_s4 }
  0x16   : > { %v168_v0 = vld [vmem:[%s5939_s7] sm:$0xff]  ;;  %v170_v1 = vld [vmem:[%s5939_s7 + $0x8] sm:$0xff]  ;;  %v172_v2 = vld [vmem:[%s5939_s7 + $0x10] sm:$0xff] }
  0x17   : > { %169 = vst [vmem:[%s150_s8] sm:$0xff] %v168_v0  ;;  %171 = vst [vmem:[%s150_s8 + $0x8] sm:$0xff] %v170_v1  ;;  %v174_v3 = vld [vmem:[%s5939_s7 + $0x18] sm:$0xff]  ;;  %v176_v4 = vld [vmem:[%s5939_s7 + $0x20] sm:$0xff] }
  0x18   : > { %173 = vst [vmem:[%s150_s8 + $0x10] sm:$0xff] %v172_v2  ;;  %v178_v5 = vld [vmem:[%s5939_s7 + $0x28] sm:$0xff]  ;;  %175 = vst [vmem:[%s150_s8 + $0x18] sm:$0xff] %v174_v3  ;;  %v180_v6 = vld [vmem:[%s5939_s7 + $0x30] sm:$0xff] }
  0x19   : > { %177 = vst [vmem:[%s150_s8 + $0x20] sm:$0xff] %v176_v4  ;;  %179 = vst [vmem:[%s150_s8 + $0x28] sm:$0xff] %v178_v5  ;;  %v182_v7 = vld [vmem:[%s5939_s7 + $0x38] sm:$0xff]  ;;  %v184_v8 = vld [vmem:[%s5939_s7 + $0x80] sm:$0xff] }
  0x1a   : > { %181 = vst [vmem:[%s150_s8 + $0x30] sm:$0xff] %v180_v6  ;;  %183 = vst [vmem:[%s150_s8 + $0x38] sm:$0xff] %v182_v7  ;;  %v186_v9 = vld [vmem:[%s5939_s7 + $0x88] sm:$0xff]  ;;  %v188_v10 = vld [vmem:[%s5939_s7 + $0x90] sm:$0xff] }
  0x1b   : > { %185 = vst [vmem:[%s150_s8 + $0x40] sm:$0xff] %v184_v8  ;;  %v190_v11 = vld [vmem:[%s5939_s7 + $0x98] sm:$0xff]  ;;  %187 = vst [vmem:[%s150_s8 + $0x48] sm:$0xff] %v186_v9  ;;  %v192_v12 = vld [vmem:[%s5939_s7 + $0xa0] sm:$0xff] }
  0x1c   : > { %189 = vst [vmem:[%s150_s8 + $0x50] sm:$0xff] %v188_v10  ;;  %191 = vst [vmem:[%s150_s8 + $0x58] sm:$0xff] %v190_v11  ;;  %v194_v13 = vld [vmem:[%s5939_s7 + $0xa8] sm:$0xff]  ;;  %v196_v14 = vld [vmem:[%s5939_s7 + $0xb0] sm:$0xff] }
  0x1d   : > { %193 = vst [vmem:[%s150_s8 + $0x60] sm:$0xff] %v192_v12  ;;  %195 = vst [vmem:[%s150_s8 + $0x68] sm:$0xff] %v194_v13  ;;  %v198_v15 = vld [vmem:[%s5939_s7 + $0xb8] sm:$0xff] }
  0x1e   : > { %197 = vst [vmem:[%s150_s8 + $0x70] sm:$0xff] %v196_v14  ;;  %199 = vst [vmem:[%s150_s8 + $0x78] sm:$0xff] %v198_v15 }
  0x1f PF: > { %p4428_p7 = scmp.ge.s32.totalorder %s5856_s18, 1  ;;  %p214_p8 = scmp.lt.s32.totalorder %s5856_s18, 5 }
  0x21   : > { %p215_p9 = pnand %p4428_p7, %p214_p8 }
  0x22   : > { %s221_s9 = sand.u32 (!%p215_p9), 1, %s5832_s12   ;;  %s4430_s10 = sshll.u32 (!%p215_p9), %s5840_s14, 8 }
  0x23   : > { %218 = sbr.rel (%p215_p9) target bundleno = 830 (0x33e), region = 51  ;;  %s4429_s11 = sshll.u32 (!%p215_p9), %s221_s9, 7 }
  0x24   : > { %p252_p10 = scmp.lt.s32.totalorder (!%p215_p9), %s4430_s10, 511  ;;  %p258_p11 = scmp.lt.s32.totalorder (!%p215_p9), %s5844_s15, 1 }
  0x25   : > { %s5973_s30 = scalar_lea.vmem (!%p215_p9), [#allocation3], %s4429_s11  ;;  %p4435_p12 = scmp.ne.s32.totalorder (!%p215_p9), %s5840_s14, 0 }
  0x28   : > { %s6735_s10 = smov (!%p252_p10, %s4430_s10), 511  ;;  %s6737_s15 = smov (!%p258_p11, %s5844_s15), 1 }
  0x29   : > { %s4967_s21 = sshll.u32 %s6735_s10, 4  ;;  %s4968_s26 = sshll.u32 %s6737_s15, 6 }
  0x2a   : > { %s5966_s24 = scalar_lea.vmem %s6719_s1, %s4967_s21  ;;  %s5971_s29 = scalar_lea.vmem %s6721_s3, %s4968_s26 }
  0x2b   : > { %266 = sbr.rel (%p4435_p12) target bundleno = 53 (0x35), region = 59 }
  0x30   : > { %v5858_v16 = vmov 0.0  }
  0x31   : > { %267 = vst [vmem:[#allocation2 + $0x30] sm:$0xff] %v5858_v16  ;;  %268 = vst [vmem:[#allocation2] sm:$0xff] %v5858_v16 }
  0x32   : > { %269 = vst [vmem:[#allocation2 + $0x18] sm:$0xff] %v5858_v16  ;;  %270 = vst [vmem:[#allocation2 + $0x10] sm:$0xff] %v5858_v16 }
  0x33   : > { %271 = vst [vmem:[#allocation2 + $0x8] sm:$0xff] %v5858_v16  ;;  %272 = vst [vmem:[#allocation2 + $0x20] sm:$0xff] %v5858_v16 }
  0x34   : > { %273 = vst [vmem:[#allocation2 + $0x28] sm:$0xff] %v5858_v16  ;;  %274 = vst [vmem:[#allocation2 + $0x38] sm:$0xff] %v5858_v16 }
  0x35 PF: > { %v5026_v17 = vld [vmem:[%s5966_s24 + $0xe4] ss:$16 sps:$4 sm:$0xff]   ;;  %v5030_v19 = vld [vmem:[%s5966_s24 + $0xe0] ss:$16 sps:$4 sm:$0xff]   ;;  %v284_v3 = vld [vmem:[%s5973_s30 + $0x8] sm:$0xff]  ;;  %p4964_p13 = scmp.ne.s32.totalorder %s5840_s14, 1 }
  0x36   : > { %v5028_v18 = vld [vmem:[%s5966_s24 + $0x2e4] ss:$16 sps:$4 sm:$0xff]   ;;  %3451 = vmatprep.subr.bf16.mxu0 %v5026_v17  ;;  %v5031_v20 = vld [vmem:[%s5966_s24 + $0x2e0] ss:$16 sps:$4 sm:$0xff]   ;;  %v292_v4 = vld [vmem:[%s5973_s30 + $0x48] sm:$0xff] }
  0x37   : > { %3494 = vmatprep.subr.bf16.mxu1 %v5028_v18  ;;  %v5032_v21 = vld [vmem:[%s5966_s24 + $0xc4] ss:$16 sps:$4 sm:$0xff]   ;;  %3452 = vmatpush1.bf16.msra.mxu0 %v5030_v19  ;;  %v5036_v23 = vld [vmem:[%s5966_s24 + $0xc0] ss:$16 sps:$4 sm:$0xff]   ;;  %v6032_v8 = vcombine.high %v284_v3, %v292_v4 }
  0x38   : > { %3495 = vmatpush1.bf16.msra.mxu1 %v5031_v20  ;;  %v5034_v22 = vld [vmem:[%s5966_s24 + $0x2c4] ss:$16 sps:$4 sm:$0xff]   ;;  %3453 = vmatprep.subr.bf16.mxu0 %v5032_v21  ;;  %v5037_v24 = vld [vmem:[%s5966_s24 + $0x2c0] ss:$16 sps:$4 sm:$0xff]  }
  0x39   : > { %3496 = vmatprep.subr.bf16.mxu1 %v5034_v22  ;;  %v5038_v25 = vld [vmem:[%s5966_s24 + $0xa4] ss:$16 sps:$4 sm:$0xff]   ;;  %v5042_v27 = vld [vmem:[%s5966_s24 + $0xa0] ss:$16 sps:$4 sm:$0xff]   ;;  %3526 = vmatprep.mubr.bf16.mxu1 %v6032_v8 }
  0x3a   : > { %v5040_v26 = vld [vmem:[%s5966_s24 + $0x2a4] ss:$16 sps:$4 sm:$0xff]   ;;  %v5043_v28 = vld [vmem:[%s5966_s24 + $0x2a0] ss:$16 sps:$4 sm:$0xff]  }
  0x3b   : > { %3454 = vmatpush1.bf16.msra.mxu0 %v5036_v23  ;;  %v5044_v29 = vld [vmem:[%s5966_s24 + $0x84] ss:$16 sps:$4 sm:$0xff]   ;;  %v5048_v31 = vld [vmem:[%s5966_s24 + $0x80] ss:$16 sps:$4 sm:$0xff]  }
  0x3c   : > { %3497 = vmatpush1.bf16.msra.mxu1 %v5037_v24  ;;  %3455 = vmatprep.subr.bf16.mxu0 %v5038_v25  ;;  %v5046_v30 = vld [vmem:[%s5966_s24 + $0x284] ss:$16 sps:$4 sm:$0xff]   ;;  %v5049_v32 = vld [vmem:[%s5966_s24 + $0x280] ss:$16 sps:$4 sm:$0xff]  }
  0x3d   : > { %3498 = vmatprep.subr.bf16.mxu1 %v5040_v26  ;;  %v5050_v33 = vld [vmem:[%s5966_s24 + $0x64] ss:$16 sps:$4 sm:$0xff]   ;;  %v5054_v35 = vld [vmem:[%s5966_s24 + $0x60] ss:$16 sps:$4 sm:$0xff]   ;;  %v6054_v26 = vcombine.low %v284_v3, %v292_v4 }
  0x3e   : > { %v5052_v34 = vld [vmem:[%s5966_s24 + $0x264] ss:$16 sps:$4 sm:$0xff]   ;;  %v5055_v36 = vld [vmem:[%s5966_s24 + $0x260] ss:$16 sps:$4 sm:$0xff]  }
  0x3f   : > { %3456 = vmatpush1.bf16.msra.mxu0 %v5042_v27  ;;  %v5056_v37 = vld [vmem:[%s5966_s24 + $0x44] ss:$16 sps:$4 sm:$0xff]   ;;  %v5060_v39 = vld [vmem:[%s5966_s24 + $0x40] ss:$16 sps:$4 sm:$0xff]  }
  0x40   : > { %3499 = vmatpush1.bf16.msra.mxu1 %v5043_v28  ;;  %3457 = vmatprep.subr.bf16.mxu0 %v5044_v29  ;;  %v5058_v38 = vld [vmem:[%s5966_s24 + $0x244] ss:$16 sps:$4 sm:$0xff]   ;;  %v5061_v40 = vld [vmem:[%s5966_s24 + $0x240] ss:$16 sps:$4 sm:$0xff]  }
  0x41   : > { %3500 = vmatprep.subr.bf16.mxu1 %v5046_v30  ;;  %v5062_v41 = vld [vmem:[%s5966_s24 + $0x24] ss:$16 sps:$4 sm:$0xff]   ;;  %v5066_v43 = vld [vmem:[%s5966_s24 + $0x20] ss:$16 sps:$4 sm:$0xff]  }
  0x42   : > { %v5064_v42 = vld [vmem:[%s5966_s24 + $0x224] ss:$16 sps:$4 sm:$0xff]   ;;  %v5067_v44 = vld [vmem:[%s5966_s24 + $0x220] ss:$16 sps:$4 sm:$0xff]  }
  0x43   : > { %3458 = vmatpush1.bf16.msra.mxu0 %v5048_v31  ;;  %v5068_v45 = vld [vmem:[%s5966_s24 + $0x4] ss:$16 sps:$4 sm:$0xff]   ;;  %v5072_v47 = vld [vmem:[%s5966_s24] ss:$16 sps:$4 sm:$0xff]  }
  0x44   : > { %3501 = vmatpush1.bf16.msra.mxu1 %v5049_v32  ;;  %3459 = vmatprep.subr.bf16.mxu0 %v5050_v33  ;;  %v5070_v46 = vld [vmem:[%s5966_s24 + $0x204] ss:$16 sps:$4 sm:$0xff]   ;;  %v5073_v48 = vld [vmem:[%s5966_s24 + $0x200] ss:$16 sps:$4 sm:$0xff]  }
  0x45   : > { %3502 = vmatprep.subr.bf16.mxu1 %v5052_v34  ;;  %v5074_v49 = vld [vmem:[%s5966_s24 + $0x1e4] ss:$16 sps:$4 sm:$0xff]   ;;  %v5078_v51 = vld [vmem:[%s5966_s24 + $0x1e0] ss:$16 sps:$4 sm:$0xff]  }
  0x46   : > { %v5076_v50 = vld [vmem:[%s5966_s24 + $0x3e4] ss:$16 sps:$4 sm:$0xff]   ;;  %v5079_v52 = vld [vmem:[%s5966_s24 + $0x3e0] ss:$16 sps:$4 sm:$0xff]  }
  0x47   : > { %3460 = vmatpush1.bf16.msra.mxu0 %v5054_v35  ;;  %v5080_v53 = vld [vmem:[%s5966_s24 + $0x1c4] ss:$16 sps:$4 sm:$0xff]   ;;  %v5084_v55 = vld [vmem:[%s5966_s24 + $0x1c0] ss:$16 sps:$4 sm:$0xff]  }
  0x48   : > { %3503 = vmatpush1.bf16.msra.mxu1 %v5055_v36  ;;  %3461 = vmatprep.subr.bf16.mxu0 %v5056_v37  ;;  %v5082_v54 = vld [vmem:[%s5966_s24 + $0x3c4] ss:$16 sps:$4 sm:$0xff]   ;;  %v5085_v56 = vld [vmem:[%s5966_s24 + $0x3c0] ss:$16 sps:$4 sm:$0xff]  }
  0x49   : > { %3504 = vmatprep.subr.bf16.mxu1 %v5058_v38  ;;  %v5086_v57 = vld [vmem:[%s5966_s24 + $0x1a4] ss:$16 sps:$4 sm:$0xff]   ;;  %v5090_v59 = vld [vmem:[%s5966_s24 + $0x1a0] ss:$16 sps:$4 sm:$0xff]  }
  0x4a   : > { %v5088_v58 = vld [vmem:[%s5966_s24 + $0x3a4] ss:$16 sps:$4 sm:$0xff]   ;;  %v5091_v60 = vld [vmem:[%s5966_s24 + $0x3a0] ss:$16 sps:$4 sm:$0xff]  }
  0x4b   : > { %3462 = vmatpush1.bf16.msra.mxu0 %v5060_v39  ;;  %v5092_v61 = vld [vmem:[%s5966_s24 + $0x184] ss:$16 sps:$4 sm:$0xff]   ;;  %v5096_v63 = vld [vmem:[%s5966_s24 + $0x180] ss:$16 sps:$4 sm:$0xff]  }
  0x4c   : > { %3505 = vmatpush1.bf16.msra.mxu1 %v5061_v40  ;;  %3463 = vmatprep.subr.bf16.mxu0 %v5062_v41  ;;  %v5094_v62 = vld [vmem:[%s5966_s24 + $0x384] ss:$16 sps:$4 sm:$0xff]   ;;  %v5097_v0 = vld [vmem:[%s5966_s24 + $0x380] ss:$16 sps:$4 sm:$0xff]  }
  0x4d   : > { %3506 = vmatprep.subr.bf16.mxu1 %v5064_v42  ;;  %v283_v1 = vld [vmem:[%s5973_s30] sm:$0xff] }
  0x4e   : > { %v291_v2 = vld [vmem:[%s5973_s30 + $0x40] sm:$0xff] }
  0x4f   : > { %3464 = vmatpush1.bf16.msra.mxu0 %v5066_v43  ;;  %v5098_v5 = vld [vmem:[%s5966_s24 + $0x164] ss:$16 sps:$4 sm:$0xff]   ;;  %v6029_v6 = vcombine.high %v283_v1, %v291_v2  ;;  %v5102_v9 = vld [vmem:[%s5966_s24 + $0x160] ss:$16 sps:$4 sm:$0xff]   ;;  %v6052_v25 = vcombine.low %v283_v1, %v291_v2 }
  0x50   : > { %3507 = vmatpush1.bf16.msra.mxu1 %v5067_v44  ;;  %3465 = vmatprep.subr.bf16.mxu0 %v5068_v45  ;;  %v5100_v7 = vld [vmem:[%s5966_s24 + $0x364] ss:$16 sps:$4 sm:$0xff]   ;;  %v5103_v10 = vld [vmem:[%s5966_s24 + $0x360] ss:$16 sps:$4 sm:$0xff]  }
  0x51   : > { %3508 = vmatprep.subr.bf16.mxu1 %v5070_v46  ;;  %3483 = vmatprep.mubr.bf16.mxu0 %v6029_v6  ;;  %v5104_v11 = vld [vmem:[%s5966_s24 + $0x144] ss:$16 sps:$4 sm:$0xff]   ;;  %v5108_v13 = vld [vmem:[%s5966_s24 + $0x140] ss:$16 sps:$4 sm:$0xff]  }
  0x52   : > { %v5106_v12 = vld [vmem:[%s5966_s24 + $0x344] ss:$16 sps:$4 sm:$0xff]   ;;  %v5109_v14 = vld [vmem:[%s5966_s24 + $0x340] ss:$16 sps:$4 sm:$0xff]  }
  0x53   : > { %3466 = vmatpush1.bf16.msra.mxu0 %v5072_v47  ;;  %v5110_v15 = vld [vmem:[%s5966_s24 + $0x124] ss:$16 sps:$4 sm:$0xff]   ;;  %v5114_v17 = vld [vmem:[%s5966_s24 + $0x120] ss:$16 sps:$4 sm:$0xff]  }
  0x54   : > { %3509 = vmatpush1.bf16.msra.mxu1 %v5073_v48  ;;  %3467 = vmatprep.subr.bf16.mxu0 %v5074_v49  ;;  %v5112_v16 = vld [vmem:[%s5966_s24 + $0x324] ss:$16 sps:$4 sm:$0xff]   ;;  %v5115_v18 = vld [vmem:[%s5966_s24 + $0x320] ss:$16 sps:$4 sm:$0xff]  }
  0x55   : > { %3510 = vmatprep.subr.bf16.mxu1 %v5076_v50  ;;  %v5116_v19 = vld [vmem:[%s5966_s24 + $0x104] ss:$16 sps:$4 sm:$0xff]   ;;  %v5120_v21 = vld [vmem:[%s5966_s24 + $0x100] ss:$16 sps:$4 sm:$0xff]  }
  0x56   : > { %v5118_v20 = vld [vmem:[%s5966_s24 + $0x304] ss:$16 sps:$4 sm:$0xff]   ;;  %v5121_v22 = vld [vmem:[%s5966_s24 + $0x300] ss:$16 sps:$4 sm:$0xff]  }
  0x57   : > { %3468 = vmatpush2.bf16.msra.mxu0 %v5078_v51  ;;  %v5124_v23 = vld [vmem:[%s5966_s24 + $0x4e4] ss:$16 sps:$4 sm:$0xff]   ;;  %v5122_v27 = vld [vmem:[%s5966_s24 + $0x4e0] ss:$16 sps:$4 sm:$0xff]  }
  0x58   : > { %3511 = vmatpush2.bf16.msra.mxu1 %v5079_v52  ;;  %3469 = vmatprep.subr.bf16.mxu0 %v5080_v53  ;;  %v5127_v24 = vld [vmem:[%s5966_s24 + $0x6e4] ss:$16 sps:$4 sm:$0xff]   ;;  %v5125_v28 = vld [vmem:[%s5966_s24 + $0x6e0] ss:$16 sps:$4 sm:$0xff]  }
  0x59   : > { %3512 = vmatprep.subr.bf16.mxu1 %v5082_v54  ;;  %v5130_v29 = vld [vmem:[%s5966_s24 + $0x4c4] ss:$16 sps:$4 sm:$0xff]   ;;  %v5128_v31 = vld [vmem:[%s5966_s24 + $0x4c0] ss:$16 sps:$4 sm:$0xff]  }
  0x5a   : > { %v5133_v30 = vld [vmem:[%s5966_s24 + $0x6c4] ss:$16 sps:$4 sm:$0xff]   ;;  %v5131_v32 = vld [vmem:[%s5966_s24 + $0x6c0] ss:$16 sps:$4 sm:$0xff]  }
  0x5b   : > { %3470 = vmatpush2.bf16.msra.mxu0 %v5084_v55  ;;  %v5136_v33 = vld [vmem:[%s5966_s24 + $0x4a4] ss:$16 sps:$4 sm:$0xff]   ;;  %v5134_v35 = vld [vmem:[%s5966_s24 + $0x4a0] ss:$16 sps:$4 sm:$0xff]   ;;  %v6091_v55 = vld [vmem:[%s5973_s30 + $0x18] sm:$0xff] }
  0x5c   : > { %3513 = vmatpush2.bf16.msra.mxu1 %v5085_v56  ;;  %3471 = vmatprep.subr.bf16.mxu0 %v5086_v57  ;;  %v5139_v34 = vld [vmem:[%s5966_s24 + $0x6a4] ss:$16 sps:$4 sm:$0xff]   ;;  %v5137_v36 = vld [vmem:[%s5966_s24 + $0x6a0] ss:$16 sps:$4 sm:$0xff]   ;;  %v6094_v56 = vld [vmem:[%s5973_s30 + $0x58] sm:$0xff] }
  0x5d   : > { %3514 = vmatprep.subr.bf16.mxu1 %v5088_v58  ;;  %v5142_v37 = vld [vmem:[%s5966_s24 + $0x484] ss:$16 sps:$4 sm:$0xff]   ;;  %v5140_v39 = vld [vmem:[%s5966_s24 + $0x480] ss:$16 sps:$4 sm:$0xff]  }
  0x5e   : > { %v5145_v38 = vld [vmem:[%s5966_s24 + $0x684] ss:$16 sps:$4 sm:$0xff]   ;;  %v5143_v40 = vld [vmem:[%s5966_s24 + $0x680] ss:$16 sps:$4 sm:$0xff]  }
  0x5f   : > { %3472 = vmatpush2.bf16.msra.mxu0 %v5090_v59  ;;  %v5148_v41 = vld [vmem:[%s5966_s24 + $0x464] ss:$16 sps:$4 sm:$0xff]   ;;  %v5146_v43 = vld [vmem:[%s5966_s24 + $0x460] ss:$16 sps:$4 sm:$0xff]  }
  0x60   : > { %3515 = vmatpush2.bf16.msra.mxu1 %v5091_v60  ;;  %3473 = vmatprep.subr.bf16.mxu0 %v5092_v61  ;;  %v5151_v42 = vld [vmem:[%s5966_s24 + $0x664] ss:$16 sps:$4 sm:$0xff]   ;;  %v5149_v44 = vld [vmem:[%s5966_s24 + $0x660] ss:$16 sps:$4 sm:$0xff]   ;;  %v6104_v60 = vcombine.high %v6091_v55, %v6094_v56 }
  0x61   : > { %3516 = vmatprep.subr.bf16.mxu1 %v5094_v62  ;;  %v5154_v45 = vld [vmem:[%s5966_s24 + $0x444] ss:$16 sps:$4 sm:$0xff]   ;;  %v5152_v47 = vld [vmem:[%s5966_s24 + $0x440] ss:$16 sps:$4 sm:$0xff]  }
  0x62   : > { %v5157_v46 = vld [vmem:[%s5966_s24 + $0x644] ss:$16 sps:$4 sm:$0xff]   ;;  %v5155_v48 = vld [vmem:[%s5966_s24 + $0x640] ss:$16 sps:$4 sm:$0xff]  }
  0x63   : > { %3474 = vmatpush2.bf16.msra.mxu0 %v5096_v63  ;;  %v5160_v49 = vld [vmem:[%s5966_s24 + $0x424] ss:$16 sps:$4 sm:$0xff]   ;;  %v5158_v51 = vld [vmem:[%s5966_s24 + $0x420] ss:$16 sps:$4 sm:$0xff]  }
  0x64   : > { %3517 = vmatpush2.bf16.msra.mxu1 %v5097_v0  ;;  %3475 = vmatprep.subr.bf16.mxu0 %v5098_v5  ;;  %v5163_v50 = vld [vmem:[%s5966_s24 + $0x624] ss:$16 sps:$4 sm:$0xff]   ;;  %v5161_v52 = vld [vmem:[%s5966_s24 + $0x620] ss:$16 sps:$4 sm:$0xff]  }
  0x65   : > { %3518 = vmatprep.subr.bf16.mxu1 %v5100_v7  ;;  %v6085_v53 = vld [vmem:[%s5973_s30 + $0x10] sm:$0xff] }
  0x66   : > { %v6088_v54 = vld [vmem:[%s5973_s30 + $0x50] sm:$0xff] }
  0x67   : > { %3476 = vmatpush2.bf16.msra.mxu0 %v5102_v9  ;;  %v5166_v57 = vld [vmem:[%s5966_s24 + $0x404] ss:$16 sps:$4 sm:$0xff]   ;;  %v6099_v58 = vcombine.high %v6085_v53, %v6088_v54  ;;  %v5164_v61 = vld [vmem:[%s5966_s24 + $0x400] ss:$16 sps:$4 sm:$0xff]  }
  0x68   : > { %3519 = vmatpush2.bf16.msra.mxu1 %v5103_v10  ;;  %3477 = vmatprep.subr.bf16.mxu0 %v5104_v11  ;;  %v5169_v59 = vld [vmem:[%s5966_s24 + $0x604] ss:$16 sps:$4 sm:$0xff]   ;;  %v5167_v62 = vld [vmem:[%s5966_s24 + $0x600] ss:$16 sps:$4 sm:$0xff]  }
  0x69   : > { %3520 = vmatprep.subr.bf16.mxu1 %v5106_v12  ;;  %v5172_v63 = vld [vmem:[%s5966_s24 + $0x5e4] ss:$16 sps:$4 sm:$0xff]   ;;  %v5170_v1 = vld [vmem:[%s5966_s24 + $0x5e0] ss:$16 sps:$4 sm:$0xff]  }
  0x6a   : > { %v5175_v0 = vld [vmem:[%s5966_s24 + $0x7e4] ss:$16 sps:$4 sm:$0xff]   ;;  %v5173_v2 = vld [vmem:[%s5966_s24 + $0x7e0] ss:$16 sps:$4 sm:$0xff]  }
  0x6b   : > { %3478 = vmatpush2.bf16.msra.mxu0 %v5108_v13  ;;  %v5178_v3 = vld [vmem:[%s5966_s24 + $0x5c4] ss:$16 sps:$4 sm:$0xff]   ;;  %v5176_v5 = vld [vmem:[%s5966_s24 + $0x5c0] ss:$16 sps:$4 sm:$0xff]  }
  0x6c   : > { %3521 = vmatpush2.bf16.msra.mxu1 %v5109_v14  ;;  %3479 = vmatprep.subr.bf16.mxu0 %v5110_v15  ;;  %v5181_v4 = vld [vmem:[%s5966_s24 + $0x7c4] ss:$16 sps:$4 sm:$0xff]   ;;  %v5179_v7 = vld [vmem:[%s5966_s24 + $0x7c0] ss:$16 sps:$4 sm:$0xff]  }
  0x6d   : > { %3522 = vmatprep.subr.bf16.mxu1 %v5112_v16  ;;  %v5184_v9 = vld [vmem:[%s5966_s24 + $0x5a4] ss:$16 sps:$4 sm:$0xff]   ;;  %v5182_v11 = vld [vmem:[%s5966_s24 + $0x5a0] ss:$16 sps:$4 sm:$0xff]  }
  0x6e   : > { %v5187_v10 = vld [vmem:[%s5966_s24 + $0x7a4] ss:$16 sps:$4 sm:$0xff]   ;;  %v5185_v12 = vld [vmem:[%s5966_s24 + $0x7a0] ss:$16 sps:$4 sm:$0xff]  }
  0x6f   : > { %3480 = vmatpush2.bf16.msra.mxu0 %v5114_v17  ;;  %v5190_v13 = vld [vmem:[%s5966_s24 + $0x584] ss:$16 sps:$4 sm:$0xff]   ;;  %v5188_v15 = vld [vmem:[%s5966_s24 + $0x580] ss:$16 sps:$4 sm:$0xff]  }
  0x70   : > { %3523 = vmatpush2.bf16.msra.mxu1 %v5115_v18  ;;  %3481 = vmatprep.subr.bf16.mxu0 %v5116_v19  ;;  %v5193_v14 = vld [vmem:[%s5966_s24 + $0x784] ss:$16 sps:$4 sm:$0xff]   ;;  %v5191_v16 = vld [vmem:[%s5966_s24 + $0x780] ss:$16 sps:$4 sm:$0xff]  }
  0x71   : > { %3524 = vmatprep.subr.bf16.mxu1 %v5118_v20  ;;  %v5196_v17 = vld [vmem:[%s5966_s24 + $0x564] ss:$16 sps:$4 sm:$0xff]   ;;  %v5194_v19 = vld [vmem:[%s5966_s24 + $0x560] ss:$16 sps:$4 sm:$0xff]  }
  0x72   : > { %v5199_v18 = vld [vmem:[%s5966_s24 + $0x764] ss:$16 sps:$4 sm:$0xff]   ;;  %v5197_v20 = vld [vmem:[%s5966_s24 + $0x760] ss:$16 sps:$4 sm:$0xff]  }
  0x73   : > { %3482 = vmatpush2.bf16.msra.mxu0 %v5120_v21  ;;  %v5202_v21 = vld [vmem:[%s5966_s24 + $0x544] ss:$16 sps:$4 sm:$0xff]  }
  0x74   : > { %3525 = vmatpush2.bf16.msra.mxu1 %v5121_v22  ;;  %3537 = vmatprep.subr.bf16.mxu0 %v5124_v23  ;;  %v5205_v22 = vld [vmem:[%s5966_s24 + $0x744] ss:$16 sps:$4 sm:$0xff]   ;;  %v5200_v23 = vld [vmem:[%s5966_s24 + $0x540] ss:$16 sps:$4 sm:$0xff]  }
  0x75   : > { %3580 = vmatprep.subr.bf16.mxu1 %v5127_v24  ;;  %v5203_v24 = vld [vmem:[%s5966_s24 + $0x740] ss:$16 sps:$4 sm:$0xff]  }
  0x76   : > { %3484 = vmatmul.mubr.bf16.vlgmr.msra.gmra.mxu0 %v6052_v25 }
  0x77   : > { %3527 = vmatmul.mubr.bf16.vlgmr.msra.gmra.mxu1 %v6054_v26  ;;  %3538 = vmatpush1.bf16.msra.mxu0 %v5122_v27  ;;  %v5208_v27 = vld [vmem:[%s5966_s24 + $0x524] ss:$16 sps:$4 sm:$0xff]  }
  0x78   : > { %3581 = vmatpush1.bf16.msra.mxu1 %v5125_v28  ;;  %3539 = vmatprep.subr.bf16.mxu0 %v5130_v29  ;;  %v5211_v28 = vld [vmem:[%s5966_s24 + $0x724] ss:$16 sps:$4 sm:$0xff]   ;;  %v5206_v29 = vld [vmem:[%s5966_s24 + $0x520] ss:$16 sps:$4 sm:$0xff]  }
  0x79   : > { %3582 = vmatprep.subr.bf16.mxu1 %v5133_v30  ;;  %3569 = vmatprep.mubr.bf16.mxu0 %v6099_v58  ;;  %v5209_v30 = vld [vmem:[%s5966_s24 + $0x720] ss:$16 sps:$4 sm:$0xff]  }
  0x7a   : > { %3612 = vmatprep.mubr.bf16.mxu1 %v6104_v60 }
  0x7b   : > { %3540 = vmatpush1.bf16.msra.mxu0 %v5128_v31  ;;  %v5214_v31 = vld [vmem:[%s5966_s24 + $0x504] ss:$16 sps:$4 sm:$0xff]  }
  0x7c   : > { %3583 = vmatpush1.bf16.msra.mxu1 %v5131_v32  ;;  %3541 = vmatprep.subr.bf16.mxu0 %v5136_v33  ;;  %v5217_v32 = vld [vmem:[%s5966_s24 + $0x704] ss:$16 sps:$4 sm:$0xff]   ;;  %v5212_v33 = vld [vmem:[%s5966_s24 + $0x500] ss:$16 sps:$4 sm:$0xff]  }
  0x7d   : > { %3584 = vmatprep.subr.bf16.mxu1 %v5139_v34  ;;  %v5215_v34 = vld [vmem:[%s5966_s24 + $0x700] ss:$16 sps:$4 sm:$0xff]  }
  0x7f   : > { %3542 = vmatpush1.bf16.msra.mxu0 %v5134_v35  ;;  %v5220_v35 = vld [vmem:[%s5966_s24 + $0x8e4] ss:$16 sps:$4 sm:$0xff]  }
  0x80   : > { %3585 = vmatpush1.bf16.msra.mxu1 %v5137_v36  ;;  %3543 = vmatprep.subr.bf16.mxu0 %v5142_v37  ;;  %v5223_v36 = vld [vmem:[%s5966_s24 + $0xae4] ss:$16 sps:$4 sm:$0xff]   ;;  %v6146_v37 = vcombine.low %v6085_v53, %v6088_v54  ;;  %v5230_v53 = vld [vmem:[%s5966_s24 + $0x8a0] ss:$16 sps:$4 sm:$0xff]  }
  0x81   : > { %3586 = vmatprep.subr.bf16.mxu1 %v5145_v38  ;;  %v6150_v38 = vcombine.low %v6091_v55, %v6094_v56  ;;  %v5233_v54 = vld [vmem:[%s5966_s24 + $0xaa0] ss:$16 sps:$4 sm:$0xff]   ;;  %v5238_v55 = vld [vmem:[%s5966_s24 + $0x884] ss:$16 sps:$4 sm:$0xff]  }
  0x82   : > { %v5241_v56 = vld [vmem:[%s5966_s24 + $0xa84] ss:$16 sps:$4 sm:$0xff]  }
  0x83   : > { %3544 = vmatpush1.bf16.msra.mxu0 %v5140_v39  ;;  %v5218_v39 = vld [vmem:[%s5966_s24 + $0x8e0] ss:$16 sps:$4 sm:$0xff]  }
  0x84   : > { %3587 = vmatpush1.bf16.msra.mxu1 %v5143_v40  ;;  %3545 = vmatprep.subr.bf16.mxu0 %v5148_v41  ;;  %v5221_v40 = vld [vmem:[%s5966_s24 + $0xae0] ss:$16 sps:$4 sm:$0xff]   ;;  %v5226_v41 = vld [vmem:[%s5966_s24 + $0x8c4] ss:$16 sps:$4 sm:$0xff]  }
  0x85   : > { %3588 = vmatprep.subr.bf16.mxu1 %v5151_v42  ;;  %v5229_v42 = vld [vmem:[%s5966_s24 + $0xac4] ss:$16 sps:$4 sm:$0xff]  }
  0x87   : > { %3546 = vmatpush1.bf16.msra.mxu0 %v5146_v43  ;;  %v5224_v43 = vld [vmem:[%s5966_s24 + $0x8c0] ss:$16 sps:$4 sm:$0xff]  }
  0x88   : > { %3589 = vmatpush1.bf16.msra.mxu1 %v5149_v44  ;;  %3547 = vmatprep.subr.bf16.mxu0 %v5154_v45  ;;  %v5227_v44 = vld [vmem:[%s5966_s24 + $0xac0] ss:$16 sps:$4 sm:$0xff]  }
  0x89   : > { %3590 = vmatprep.subr.bf16.mxu1 %v5157_v46  ;;  %v6159_v45 = vld [vmem:[%s5973_s30 + $0x20] sm:$0xff] }
  0x8a   : > { %v6164_v46 = vld [vmem:[%s5973_s30 + $0x60] sm:$0xff] }
  0x8b   : > { %3548 = vmatpush1.bf16.msra.mxu0 %v5152_v47  ;;  %v6167_v47 = vld [vmem:[%s5973_s30 + $0x28] sm:$0xff] }
  0x8c   : > { %3591 = vmatpush1.bf16.msra.mxu1 %v5155_v48  ;;  %3549 = vmatprep.subr.bf16.mxu0 %v5160_v49  ;;  %v6170_v48 = vld [vmem:[%s5973_s30 + $0x68] sm:$0xff]  ;;  %v5232_v49 = vld [vmem:[%s5966_s24 + $0x8a4] ss:$16 sps:$4 sm:$0xff]  }
  0x8d   : > { %3592 = vmatprep.subr.bf16.mxu1 %v5163_v50  ;;  %v6175_v50 = vcombine.high %v6159_v45, %v6164_v46 }
  0x8f   : > { %3550 = vmatpush1.bf16.msra.mxu0 %v5158_v51  ;;  %v5235_v51 = vld [vmem:[%s5966_s24 + $0xaa4] ss:$16 sps:$4 sm:$0xff]  }
  0x90   : > { %3593 = vmatpush1.bf16.msra.mxu1 %v5161_v52  ;;  %3551 = vmatprep.subr.bf16.mxu0 %v5166_v57  ;;  %v6180_v52 = vcombine.high %v6167_v47, %v6170_v48  ;;  %v5236_v57 = vld [vmem:[%s5966_s24 + $0x880] ss:$16 sps:$4 sm:$0xff]  }
  0x91   : > { %3594 = vmatprep.subr.bf16.mxu1 %v5169_v59  ;;  %v5239_v59 = vld [vmem:[%s5966_s24 + $0xa80] ss:$16 sps:$4 sm:$0xff]  }
  0x93   : > { %3552 = vmatpush1.bf16.msra.mxu0 %v5164_v61  ;;  %v5244_v61 = vld [vmem:[%s5966_s24 + $0x864] ss:$16 sps:$4 sm:$0xff]  }
  0x94   : > { %3595 = vmatpush1.bf16.msra.mxu1 %v5167_v62  ;;  %3553 = vmatprep.subr.bf16.mxu0 %v5172_v63  ;;  %v5247_v62 = vld [vmem:[%s5966_s24 + $0xa64] ss:$16 sps:$4 sm:$0xff]   ;;  %v5242_v63 = vld [vmem:[%s5966_s24 + $0x860] ss:$16 sps:$4 sm:$0xff]  }
  0x95   : > { %3596 = vmatprep.subr.bf16.mxu1 %v5175_v0  ;;  %v5245_v0 = vld [vmem:[%s5966_s24 + $0xa60] ss:$16 sps:$4 sm:$0xff]  }
  0x97   : > { %3554 = vmatpush2.bf16.msra.mxu0 %v5170_v1  ;;  %v5250_v1 = vld [vmem:[%s5966_s24 + $0x844] ss:$16 sps:$4 sm:$0xff]  }
  0x98   : > { %3597 = vmatpush2.bf16.msra.mxu1 %v5173_v2  ;;  %3555 = vmatprep.subr.bf16.mxu0 %v5178_v3  ;;  %v5253_v2 = vld [vmem:[%s5966_s24 + $0xa44] ss:$16 sps:$4 sm:$0xff]   ;;  %v5248_v3 = vld [vmem:[%s5966_s24 + $0x840] ss:$16 sps:$4 sm:$0xff]  }
  0x99   : > { %3598 = vmatprep.subr.bf16.mxu1 %v5181_v4  ;;  %v5251_v4 = vld [vmem:[%s5966_s24 + $0xa40] ss:$16 sps:$4 sm:$0xff]  }
  0x9b   : > { %3556 = vmatpush2.bf16.msra.mxu0 %v5176_v5  ;;  %v5256_v5 = vld [vmem:[%s5966_s24 + $0x824] ss:$16 sps:$4 sm:$0xff]  }
  0x9c   : > { %3599 = vmatpush2.bf16.msra.mxu1 %v5179_v7  ;;  %3557 = vmatprep.subr.bf16.mxu0 %v5184_v9  ;;  %v5259_v7 = vld [vmem:[%s5966_s24 + $0xa24] ss:$16 sps:$4 sm:$0xff]   ;;  %v5254_v9 = vld [vmem:[%s5966_s24 + $0x820] ss:$16 sps:$4 sm:$0xff]  }
  0x9d   : > { %3600 = vmatprep.subr.bf16.mxu1 %v5187_v10  ;;  %v5257_v10 = vld [vmem:[%s5966_s24 + $0xa20] ss:$16 sps:$4 sm:$0xff]  }
  0x9f   : > { %3558 = vmatpush2.bf16.msra.mxu0 %v5182_v11  ;;  %v5262_v11 = vld [vmem:[%s5966_s24 + $0x804] ss:$16 sps:$4 sm:$0xff]  }
  0xa0   : > { %3601 = vmatpush2.bf16.msra.mxu1 %v5185_v12  ;;  %3559 = vmatprep.subr.bf16.mxu0 %v5190_v13  ;;  %v5265_v12 = vld [vmem:[%s5966_s24 + $0xa04] ss:$16 sps:$4 sm:$0xff]   ;;  %v5260_v13 = vld [vmem:[%s5966_s24 + $0x800] ss:$16 sps:$4 sm:$0xff]  }
  0xa1   : > { %3602 = vmatprep.subr.bf16.mxu1 %v5193_v14  ;;  %v5263_v14 = vld [vmem:[%s5966_s24 + $0xa00] ss:$16 sps:$4 sm:$0xff]  }
  0xa3   : > { %3560 = vmatpush2.bf16.msra.mxu0 %v5188_v15  ;;  %v5268_v15 = vld [vmem:[%s5966_s24 + $0x9e4] ss:$16 sps:$4 sm:$0xff]  }
  0xa4   : > { %3603 = vmatpush2.bf16.msra.mxu1 %v5191_v16  ;;  %3561 = vmatprep.subr.bf16.mxu0 %v5196_v17  ;;  %v5271_v16 = vld [vmem:[%s5966_s24 + $0xbe4] ss:$16 sps:$4 sm:$0xff]   ;;  %v5266_v17 = vld [vmem:[%s5966_s24 + $0x9e0] ss:$16 sps:$4 sm:$0xff]  }
  0xa5   : > { %3604 = vmatprep.subr.bf16.mxu1 %v5199_v18  ;;  %v5269_v18 = vld [vmem:[%s5966_s24 + $0xbe0] ss:$16 sps:$4 sm:$0xff]  }
  0xa7   : > { %3562 = vmatpush2.bf16.msra.mxu0 %v5194_v19  ;;  %v5274_v19 = vld [vmem:[%s5966_s24 + $0x9c4] ss:$16 sps:$4 sm:$0xff]  }
  0xa8   : > { %3605 = vmatpush2.bf16.msra.mxu1 %v5197_v20  ;;  %3563 = vmatprep.subr.bf16.mxu0 %v5202_v21  ;;  %v5277_v20 = vld [vmem:[%s5966_s24 + $0xbc4] ss:$16 sps:$4 sm:$0xff]   ;;  %v5272_v21 = vld [vmem:[%s5966_s24 + $0x9c0] ss:$16 sps:$4 sm:$0xff]  }
  0xa9   : > { %3606 = vmatprep.subr.bf16.mxu1 %v5205_v22  ;;  %v5275_v22 = vld [vmem:[%s5966_s24 + $0xbc0] ss:$16 sps:$4 sm:$0xff]  }
  0xab   : > { %3564 = vmatpush2.bf16.msra.mxu0 %v5200_v23  ;;  %v5280_v23 = vld [vmem:[%s5966_s24 + $0x9a4] ss:$16 sps:$4 sm:$0xff]  }
  0xac   : > { %3607 = vmatpush2.bf16.msra.mxu1 %v5203_v24  ;;  %3565 = vmatprep.subr.bf16.mxu0 %v5208_v27  ;;  %v5283_v24 = vld [vmem:[%s5966_s24 + $0xba4] ss:$16 sps:$4 sm:$0xff]   ;;  %v5278_v27 = vld [vmem:[%s5966_s24 + $0x9a0] ss:$16 sps:$4 sm:$0xff]  }
  0xad   : > { %3608 = vmatprep.subr.bf16.mxu1 %v5211_v28  ;;  %v5281_v28 = vld [vmem:[%s5966_s24 + $0xba0] ss:$16 sps:$4 sm:$0xff]  }
  0xaf   : > { %3566 = vmatpush2.bf16.msra.mxu0 %v5206_v29  ;;  %v5286_v29 = vld [vmem:[%s5966_s24 + $0x984] ss:$16 sps:$4 sm:$0xff]  }
  0xb0   : > { %3609 = vmatpush2.bf16.msra.mxu1 %v5209_v30  ;;  %3567 = vmatprep.subr.bf16.mxu0 %v5214_v31  ;;  %v5289_v30 = vld [vmem:[%s5966_s24 + $0xb84] ss:$16 sps:$4 sm:$0xff]   ;;  %v5284_v31 = vld [vmem:[%s5966_s24 + $0x980] ss:$16 sps:$4 sm:$0xff]  }
  0xb1   : > { %3610 = vmatprep.subr.bf16.mxu1 %v5217_v32  ;;  %v5287_v32 = vld [vmem:[%s5966_s24 + $0xb80] ss:$16 sps:$4 sm:$0xff]  }
  0xb3   : > { %3568 = vmatpush2.bf16.msra.mxu0 %v5212_v33  ;;  %v5292_v33 = vld [vmem:[%s5966_s24 + $0x964] ss:$16 sps:$4 sm:$0xff]  }
  0xb4   : > { %3611 = vmatpush2.bf16.msra.mxu1 %v5215_v34  ;;  %3623 = vmatprep.subr.bf16.mxu0 %v5220_v35  ;;  %v5295_v34 = vld [vmem:[%s5966_s24 + $0xb64] ss:$16 sps:$4 sm:$0xff]   ;;  %v5290_v35 = vld [vmem:[%s5966_s24 + $0x960] ss:$16 sps:$4 sm:$0xff]  }
  0xb5   : > { %3666 = vmatprep.subr.bf16.mxu1 %v5223_v36  ;;  %v5293_v36 = vld [vmem:[%s5966_s24 + $0xb60] ss:$16 sps:$4 sm:$0xff]  }
  0xb6   : > { %3570 = vmatmul.mubr.bf16.vlgmr.msra.gmra.mxu0 %v6146_v37 }
  0xb7   : > { %3613 = vmatmul.mubr.bf16.vlgmr.msra.gmra.mxu1 %v6150_v38  ;;  %3624 = vmatpush1.bf16.msra.mxu0 %v5218_v39  ;;  %v5298_v39 = vld [vmem:[%s5966_s24 + $0x944] ss:$16 sps:$4 sm:$0xff]  }
  0xb8   : > { %3667 = vmatpush1.bf16.msra.mxu1 %v5221_v40  ;;  %3625 = vmatprep.subr.bf16.mxu0 %v5226_v41  ;;  %v5301_v40 = vld [vmem:[%s5966_s24 + $0xb44] ss:$16 sps:$4 sm:$0xff]   ;;  %v5296_v41 = vld [vmem:[%s5966_s24 + $0x940] ss:$16 sps:$4 sm:$0xff]  }
  0xb9   : > { %3668 = vmatprep.subr.bf16.mxu1 %v5229_v42  ;;  %3655 = vmatprep.mubr.bf16.mxu0 %v6175_v50  ;;  %v5299_v42 = vld [vmem:[%s5966_s24 + $0xb40] ss:$16 sps:$4 sm:$0xff]  }
  0xba   : > { %3698 = vmatprep.mubr.bf16.mxu1 %v6180_v52 }
  0xbb   : > { %3626 = vmatpush1.bf16.msra.mxu0 %v5224_v43  ;;  %v5304_v43 = vld [vmem:[%s5966_s24 + $0x924] ss:$16 sps:$4 sm:$0xff]  }
  0xbc   : > { %3669 = vmatpush1.bf16.msra.mxu1 %v5227_v44  ;;  %3627 = vmatprep.subr.bf16.mxu0 %v5232_v49  ;;  %v5307_v44 = vld [vmem:[%s5966_s24 + $0xb24] ss:$16 sps:$4 sm:$0xff]   ;;  %v5302_v49 = vld [vmem:[%s5966_s24 + $0x920] ss:$16 sps:$4 sm:$0xff]  }
  0xbd   : > { %3670 = vmatprep.subr.bf16.mxu1 %v5235_v51  ;;  %v5305_v51 = vld [vmem:[%s5966_s24 + $0xb20] ss:$16 sps:$4 sm:$0xff]  }
  0xbf   : > { %3628 = vmatpush1.bf16.msra.mxu0 %v5230_v53  ;;  %v5310_v53 = vld [vmem:[%s5966_s24 + $0x904] ss:$16 sps:$4 sm:$0xff]  }
  0xc0   : > { %3671 = vmatpush1.bf16.msra.mxu1 %v5233_v54  ;;  %3629 = vmatprep.subr.bf16.mxu0 %v5238_v55  ;;  %v5313_v54 = vld [vmem:[%s5966_s24 + $0xb04] ss:$16 sps:$4 sm:$0xff]   ;;  %v5308_v55 = vld [vmem:[%s5966_s24 + $0x900] ss:$16 sps:$4 sm:$0xff]  }
  0xc1   : > { %3672 = vmatprep.subr.bf16.mxu1 %v5241_v56  ;;  %v5311_v56 = vld [vmem:[%s5966_s24 + $0xb00] ss:$16 sps:$4 sm:$0xff]  }
  0xc3   : > { %3630 = vmatpush1.bf16.msra.mxu0 %v5236_v57  ;;  %v5316_v57 = vld [vmem:[%s5966_s24 + $0xce4] ss:$16 sps:$4 sm:$0xff]  }
  0xc4   : > { %3673 = vmatpush1.bf16.msra.mxu1 %v5239_v59  ;;  %3631 = vmatprep.subr.bf16.mxu0 %v5244_v61  ;;  %v5319_v59 = vld [vmem:[%s5966_s24 + $0xee4] ss:$16 sps:$4 sm:$0xff]   ;;  %v5314_v61 = vld [vmem:[%s5966_s24 + $0xce0] ss:$16 sps:$4 sm:$0xff]  }
  0xc5   : > { %3674 = vmatprep.subr.bf16.mxu1 %v5247_v62  ;;  %v5317_v62 = vld [vmem:[%s5966_s24 + $0xee0] ss:$16 sps:$4 sm:$0xff]  }
  0xc7   : > { %3632 = vmatpush1.bf16.msra.mxu0 %v5242_v63  ;;  %v6243_v63 = vld [vmem:[%s5973_s30 + $0x30] sm:$0xff] }
  0xc8   : > { %3675 = vmatpush1.bf16.msra.mxu1 %v5245_v0  ;;  %3633 = vmatprep.subr.bf16.mxu0 %v5250_v1  ;;  %v6246_v0 = vld [vmem:[%s5973_s30 + $0x70] sm:$0xff]  ;;  %v6250_v1 = vcombine.low %v6159_v45, %v6164_v46 }
  0xc9   : > { %3676 = vmatprep.subr.bf16.mxu1 %v5253_v2  ;;  %v6254_v2 = vcombine.low %v6167_v47, %v6170_v48  ;;  %v6266_v45 = vcombine.high %v6243_v63, %v6246_v0  ;;  %v5320_v47 = vld [vmem:[%s5966_s24 + $0xcc0] ss:$16 sps:$4 sm:$0xff]  }
  0xca   : > { %v5323_v48 = vld [vmem:[%s5966_s24 + $0xec0] ss:$16 sps:$4 sm:$0xff]  }
  0xcb   : > { %3634 = vmatpush1.bf16.msra.mxu0 %v5248_v3  ;;  %v6257_v3 = vld [vmem:[%s5973_s30 + $0x38] sm:$0xff] }
  0xcc   : > { %3677 = vmatpush1.bf16.msra.mxu1 %v5251_v4  ;;  %3635 = vmatprep.subr.bf16.mxu0 %v5256_v5  ;;  %v6260_v4 = vld [vmem:[%s5973_s30 + $0x78] sm:$0xff]  ;;  %v5322_v5 = vld [vmem:[%s5966_s24 + $0xcc4] ss:$16 sps:$4 sm:$0xff]  }
  0xcd   : > { %3678 = vmatprep.subr.bf16.mxu1 %v5259_v7  ;;  %v5325_v7 = vld [vmem:[%s5966_s24 + $0xec4] ss:$16 sps:$4 sm:$0xff]   ;;  %v6270_v46 = vcombine.high %v6257_v3, %v6260_v4 }
  0xcf   : > { %3636 = vmatpush1.bf16.msra.mxu0 %v5254_v9  ;;  %v5328_v9 = vld [vmem:[%s5966_s24 + $0xca4] ss:$16 sps:$4 sm:$0xff]  }
  0xd0   : > { %3679 = vmatpush1.bf16.msra.mxu1 %v5257_v10  ;;  %3637 = vmatprep.subr.bf16.mxu0 %v5262_v11  ;;  %v5331_v10 = vld [vmem:[%s5966_s24 + $0xea4] ss:$16 sps:$4 sm:$0xff]   ;;  %v5326_v11 = vld [vmem:[%s5966_s24 + $0xca0] ss:$16 sps:$4 sm:$0xff]  }
  0xd1   : > { %3680 = vmatprep.subr.bf16.mxu1 %v5265_v12  ;;  %v5329_v12 = vld [vmem:[%s5966_s24 + $0xea0] ss:$16 sps:$4 sm:$0xff]  }
  0xd3   : > { %3638 = vmatpush1.bf16.msra.mxu0 %v5260_v13  ;;  %v5334_v13 = vld [vmem:[%s5966_s24 + $0xc84] ss:$16 sps:$4 sm:$0xff]  }
  0xd4   : > { %3681 = vmatpush1.bf16.msra.mxu1 %v5263_v14  ;;  %3639 = vmatprep.subr.bf16.mxu0 %v5268_v15  ;;  %v5337_v14 = vld [vmem:[%s5966_s24 + $0xe84] ss:$16 sps:$4 sm:$0xff]   ;;  %v5332_v15 = vld [vmem:[%s5966_s24 + $0xc80] ss:$16 sps:$4 sm:$0xff]  }
  0xd5   : > { %3682 = vmatprep.subr.bf16.mxu1 %v5271_v16  ;;  %v5335_v16 = vld [vmem:[%s5966_s24 + $0xe80] ss:$16 sps:$4 sm:$0xff]  }
  0xd7   : > { %3640 = vmatpush2.bf16.msra.mxu0 %v5266_v17  ;;  %v5340_v17 = vld [vmem:[%s5966_s24 + $0xc64] ss:$16 sps:$4 sm:$0xff]  }
  0xd8   : > { %3683 = vmatpush2.bf16.msra.mxu1 %v5269_v18  ;;  %3641 = vmatprep.subr.bf16.mxu0 %v5274_v19  ;;  %v5343_v18 = vld [vmem:[%s5966_s24 + $0xe64] ss:$16 sps:$4 sm:$0xff]   ;;  %v5338_v19 = vld [vmem:[%s5966_s24 + $0xc60] ss:$16 sps:$4 sm:$0xff]  }
  0xd9   : > { %3684 = vmatprep.subr.bf16.mxu1 %v5277_v20  ;;  %v5341_v20 = vld [vmem:[%s5966_s24 + $0xe60] ss:$16 sps:$4 sm:$0xff]  }
  0xdb   : > { %3642 = vmatpush2.bf16.msra.mxu0 %v5272_v21  ;;  %v5346_v21 = vld [vmem:[%s5966_s24 + $0xc44] ss:$16 sps:$4 sm:$0xff]  }
  0xdc   : > { %3685 = vmatpush2.bf16.msra.mxu1 %v5275_v22  ;;  %3643 = vmatprep.subr.bf16.mxu0 %v5280_v23  ;;  %v5349_v22 = vld [vmem:[%s5966_s24 + $0xe44] ss:$16 sps:$4 sm:$0xff]   ;;  %v5344_v23 = vld [vmem:[%s5966_s24 + $0xc40] ss:$16 sps:$4 sm:$0xff]  }
  0xdd   : > { %3686 = vmatprep.subr.bf16.mxu1 %v5283_v24  ;;  %v5347_v24 = vld [vmem:[%s5966_s24 + $0xe40] ss:$16 sps:$4 sm:$0xff]  }
  0xdf   : > { %3644 = vmatpush2.bf16.msra.mxu0 %v5278_v27  ;;  %v5352_v27 = vld [vmem:[%s5966_s24 + $0xc24] ss:$16 sps:$4 sm:$0xff]  }
  0xe0   : > { %3687 = vmatpush2.bf16.msra.mxu1 %v5281_v28  ;;  %3645 = vmatprep.subr.bf16.mxu0 %v5286_v29  ;;  %v5355_v28 = vld [vmem:[%s5966_s24 + $0xe24] ss:$16 sps:$4 sm:$0xff]   ;;  %v5350_v29 = vld [vmem:[%s5966_s24 + $0xc20] ss:$16 sps:$4 sm:$0xff]  }
  0xe1   : > { %3688 = vmatprep.subr.bf16.mxu1 %v5289_v30  ;;  %v5353_v30 = vld [vmem:[%s5966_s24 + $0xe20] ss:$16 sps:$4 sm:$0xff]  }
  0xe3   : > { %3646 = vmatpush2.bf16.msra.mxu0 %v5284_v31  ;;  %v5358_v31 = vld [vmem:[%s5966_s24 + $0xc04] ss:$16 sps:$4 sm:$0xff]  }
  0xe4   : > { %3689 = vmatpush2.bf16.msra.mxu1 %v5287_v32  ;;  %3647 = vmatprep.subr.bf16.mxu0 %v5292_v33  ;;  %v5361_v32 = vld [vmem:[%s5966_s24 + $0xe04] ss:$16 sps:$4 sm:$0xff]   ;;  %v5356_v33 = vld [vmem:[%s5966_s24 + $0xc00] ss:$16 sps:$4 sm:$0xff]  }
  0xe5   : > { %3690 = vmatprep.subr.bf16.mxu1 %v5295_v34  ;;  %v5359_v34 = vld [vmem:[%s5966_s24 + $0xe00] ss:$16 sps:$4 sm:$0xff]  }
  0xe7   : > { %3648 = vmatpush2.bf16.msra.mxu0 %v5290_v35  ;;  %v5364_v35 = vld [vmem:[%s5966_s24 + $0xde4] ss:$16 sps:$4 sm:$0xff]  }
  0xe8   : > { %3691 = vmatpush2.bf16.msra.mxu1 %v5293_v36  ;;  %3649 = vmatprep.subr.bf16.mxu0 %v5298_v39  ;;  %v5367_v36 = vld [vmem:[%s5966_s24 + $0xfe4] ss:$16 sps:$4 sm:$0xff]   ;;  %v5362_v39 = vld [vmem:[%s5966_s24 + $0xde0] ss:$16 sps:$4 sm:$0xff]  }
  0xe9   : > { %3692 = vmatprep.subr.bf16.mxu1 %v5301_v40  ;;  %v5365_v40 = vld [vmem:[%s5966_s24 + $0xfe0] ss:$16 sps:$4 sm:$0xff]  }
  0xeb   : > { %3650 = vmatpush2.bf16.msra.mxu0 %v5296_v41  ;;  %v5370_v41 = vld [vmem:[%s5966_s24 + $0xdc4] ss:$16 sps:$4 sm:$0xff]  }
  0xec   : > { %3693 = vmatpush2.bf16.msra.mxu1 %v5299_v42  ;;  %3651 = vmatprep.subr.bf16.mxu0 %v5304_v43  ;;  %v5373_v42 = vld [vmem:[%s5966_s24 + $0xfc4] ss:$16 sps:$4 sm:$0xff]   ;;  %v5368_v43 = vld [vmem:[%s5966_s24 + $0xdc0] ss:$16 sps:$4 sm:$0xff]  }
  0xed   : > { %3694 = vmatprep.subr.bf16.mxu1 %v5307_v44  ;;  %v5371_v44 = vld [vmem:[%s5966_s24 + $0xfc0] ss:$16 sps:$4 sm:$0xff]  }
  0xef   : > { %3652 = vmatpush2.bf16.msra.mxu0 %v5302_v49  ;;  %v5376_v49 = vld [vmem:[%s5966_s24 + $0xda4] ss:$16 sps:$4 sm:$0xff]  }
  0xf0   : > { %3695 = vmatpush2.bf16.msra.mxu1 %v5305_v51  ;;  %3653 = vmatprep.subr.bf16.mxu0 %v5310_v53  ;;  %v5379_v51 = vld [vmem:[%s5966_s24 + $0xfa4] ss:$16 sps:$4 sm:$0xff]   ;;  %v5374_v53 = vld [vmem:[%s5966_s24 + $0xda0] ss:$16 sps:$4 sm:$0xff]  }
  0xf1   : > { %3696 = vmatprep.subr.bf16.mxu1 %v5313_v54  ;;  %v5377_v54 = vld [vmem:[%s5966_s24 + $0xfa0] ss:$16 sps:$4 sm:$0xff]  }
  0xf3   : > { %3654 = vmatpush2.bf16.msra.mxu0 %v5308_v55  ;;  %v5382_v55 = vld [vmem:[%s5966_s24 + $0xd84] ss:$16 sps:$4 sm:$0xff]  }
  0xf4   : > { %3697 = vmatpush2.bf16.msra.mxu1 %v5311_v56  ;;  %3709 = vmatprep.subr.bf16.mxu0 %v5316_v57  ;;  %v5385_v56 = vld [vmem:[%s5966_s24 + $0xf84] ss:$16 sps:$4 sm:$0xff]   ;;  %v5380_v57 = vld [vmem:[%s5966_s24 + $0xd80] ss:$16 sps:$4 sm:$0xff]  }
  0xf5   : > { %3752 = vmatprep.subr.bf16.mxu1 %v5319_v59  ;;  %v5383_v59 = vld [vmem:[%s5966_s24 + $0xf80] ss:$16 sps:$4 sm:$0xff]  }
  0xf6   : > { %3656 = vmatmul.mubr.bf16.vlgmr.msra.gmra.mxu0 %v6250_v1 }
  0xf7   : > { %3699 = vmatmul.mubr.bf16.vlgmr.msra.gmra.mxu1 %v6254_v2  ;;  %3710 = vmatpush1.bf16.msra.mxu0 %v5314_v61  ;;  %v5388_v61 = vld [vmem:[%s5966_s24 + $0xd64] ss:$16 sps:$4 sm:$0xff]  }
  0xf8   : > { %3753 = vmatpush1.bf16.msra.mxu1 %v5317_v62  ;;  %3711 = vmatprep.subr.bf16.mxu0 %v5322_v5  ;;  %v5391_v62 = vld [vmem:[%s5966_s24 + $0xf64] ss:$16 sps:$4 sm:$0xff]   ;;  %v5386_v5 = vld [vmem:[%s5966_s24 + $0xd60] ss:$16 sps:$4 sm:$0xff]  }
  0xf9   : > { %3754 = vmatprep.subr.bf16.mxu1 %v5325_v7  ;;  %3741 = vmatprep.mubr.bf16.mxu0 %v6266_v45  ;;  %v5389_v7 = vld [vmem:[%s5966_s24 + $0xf60] ss:$16 sps:$4 sm:$0xff]  }
  0xfa   : > { %3784 = vmatprep.mubr.bf16.mxu1 %v6270_v46 }
  0xfb   : > { %3712 = vmatpush1.bf16.msra.mxu0 %v5320_v47  ;;  %v5394_v47 = vld [vmem:[%s5966_s24 + $0xd44] ss:$16 sps:$4 sm:$0xff]  }
  0xfc   : > { %3755 = vmatpush1.bf16.msra.mxu1 %v5323_v48  ;;  %3713 = vmatprep.subr.bf16.mxu0 %v5328_v9  ;;  %v5397_v48 = vld [vmem:[%s5966_s24 + $0xf44] ss:$16 sps:$4 sm:$0xff]   ;;  %v5392_v9 = vld [vmem:[%s5966_s24 + $0xd40] ss:$16 sps:$4 sm:$0xff]  }
  0xfd   : > { %3756 = vmatprep.subr.bf16.mxu1 %v5331_v10  ;;  %v5395_v10 = vld [vmem:[%s5966_s24 + $0xf40] ss:$16 sps:$4 sm:$0xff]  }
  0xff   : > { %3714 = vmatpush1.bf16.msra.mxu0 %v5326_v11  ;;  %v5400_v11 = vld [vmem:[%s5966_s24 + $0xd24] ss:$16 sps:$4 sm:$0xff]  }
 0x100   : > { %3757 = vmatpush1.bf16.msra.mxu1 %v5329_v12  ;;  %3715 = vmatprep.subr.bf16.mxu0 %v5334_v13  ;;  %v5403_v12 = vld [vmem:[%s5966_s24 + $0xf24] ss:$16 sps:$4 sm:$0xff]   ;;  %v5398_v13 = vld [vmem:[%s5966_s24 + $0xd20] ss:$16 sps:$4 sm:$0xff]  }
 0x101   : > { %3758 = vmatprep.subr.bf16.mxu1 %v5337_v14  ;;  %v5401_v14 = vld [vmem:[%s5966_s24 + $0xf20] ss:$16 sps:$4 sm:$0xff]  }
 0x103   : > { %3716 = vmatpush1.bf16.msra.mxu0 %v5332_v15  ;;  %v5406_v15 = vld [vmem:[%s5966_s24 + $0xd04] ss:$16 sps:$4 sm:$0xff]  }
 0x104   : > { %3759 = vmatpush1.bf16.msra.mxu1 %v5335_v16  ;;  %3717 = vmatprep.subr.bf16.mxu0 %v5340_v17  ;;  %v5409_v16 = vld [vmem:[%s5966_s24 + $0xf04] ss:$16 sps:$4 sm:$0xff]   ;;  %v5404_v17 = vld [vmem:[%s5966_s24 + $0xd00] ss:$16 sps:$4 sm:$0xff]  }
 0x105   : > { %3760 = vmatprep.subr.bf16.mxu1 %v5343_v18  ;;  %v5407_v18 = vld [vmem:[%s5966_s24 + $0xf00] ss:$16 sps:$4 sm:$0xff]  }
 0x107   : > { %3718 = vmatpush1.bf16.msra.mxu0 %v5338_v19  ;;  %v5412_v19 = vld [vmem:[%s5966_s24 + $0xec] ss:$16 sps:$4 sm:$0xff]  }
 0x108   : > { %3761 = vmatpush1.bf16.msra.mxu1 %v5341_v20  ;;  %3719 = vmatprep.subr.bf16.mxu0 %v5346_v21  ;;  %v5415_v20 = vld [vmem:[%s5966_s24 + $0x2ec] ss:$16 sps:$4 sm:$0xff]   ;;  %v6338_v21 = vcombine.low %v6243_v63, %v6246_v0  ;;  %v5416_v63 = vld [vmem:[%s5966_s24 + $0xc8] ss:$16 sps:$4 sm:$0xff]  }
 0x109   : > { %3762 = vmatprep.subr.bf16.mxu1 %v5349_v22  ;;  %v6342_v22 = vcombine.low %v6257_v3, %v6260_v4  ;;  %v5419_v0 = vld [vmem:[%s5966_s24 + $0x2c8] ss:$16 sps:$4 sm:$0xff]   ;;  %v5424_v3 = vld [vmem:[%s5966_s24 + $0xac] ss:$16 sps:$4 sm:$0xff]  }
 0x10a   : > { %v5427_v4 = vld [vmem:[%s5966_s24 + $0x2ac] ss:$16 sps:$4 sm:$0xff]  }
 0x10b   : > { %3720 = vmatpush1.bf16.msra.mxu0 %v5344_v23  ;;  %v5410_v23 = vld [vmem:[%s5966_s24 + $0xe8] ss:$16 sps:$4 sm:$0xff]  }
 0x10c   : > { %3763 = vmatpush1.bf16.msra.mxu1 %v5347_v24  ;;  %3721 = vmatprep.subr.bf16.mxu0 %v5352_v27  ;;  %v5413_v24 = vld [vmem:[%s5966_s24 + $0x2e8] ss:$16 sps:$4 sm:$0xff]   ;;  %v5418_v27 = vld [vmem:[%s5966_s24 + $0xcc] ss:$16 sps:$4 sm:$0xff]  }
 0x10d   : > { %3764 = vmatprep.subr.bf16.mxu1 %v5355_v28  ;;  %v5421_v28 = vld [vmem:[%s5966_s24 + $0x2cc] ss:$16 sps:$4 sm:$0xff]  }
 0x10f   : > { %3722 = vmatpush1.bf16.msra.mxu0 %v5350_v29  ;;  %v5422_v29 = vld [vmem:[%s5966_s24 + $0xa8] ss:$16 sps:$4 sm:$0xff]  }
 0x110   : > { %3765 = vmatpush1.bf16.msra.mxu1 %v5353_v30  ;;  %3723 = vmatprep.subr.bf16.mxu0 %v5358_v31  ;;  %v5425_v30 = vld [vmem:[%s5966_s24 + $0x2a8] ss:$16 sps:$4 sm:$0xff]   ;;  %v5430_v31 = vld [vmem:[%s5966_s24 + $0x8c] ss:$16 sps:$4 sm:$0xff]  }
 0x111   : > { %3766 = vmatprep.subr.bf16.mxu1 %v5361_v32  ;;  %v5433_v32 = vld [vmem:[%s5966_s24 + $0x28c] ss:$16 sps:$4 sm:$0xff]  }
 0x113   : > { %3724 = vmatpush1.bf16.msra.mxu0 %v5356_v33  ;;  %v5428_v33 = vld [vmem:[%s5966_s24 + $0x88] ss:$16 sps:$4 sm:$0xff]  }
 0x114   : > { %3767 = vmatpush1.bf16.msra.mxu1 %v5359_v34  ;;  %3725 = vmatprep.subr.bf16.mxu0 %v5364_v35  ;;  %v5431_v34 = vld [vmem:[%s5966_s24 + $0x288] ss:$16 sps:$4 sm:$0xff]  }
 0x115   : > { %3768 = vmatprep.subr.bf16.mxu1 %v5367_v36  ;;  %v5434_v35 = vld [vmem:[%s5966_s24 + $0x68] ss:$16 sps:$4 sm:$0xff]  }
 0x116   : > { %v5437_v36 = vld [vmem:[%s5966_s24 + $0x268] ss:$16 sps:$4 sm:$0xff]  }
 0x117   : > { %3726 = vmatpush2.bf16.msra.mxu0 %v5362_v39  ;;  %v5442_v39 = vld [vmem:[%s5966_s24 + $0x4c] ss:$16 sps:$4 sm:$0xff]  }
 0x118   : > { %3769 = vmatpush2.bf16.msra.mxu1 %v5365_v40  ;;  %3727 = vmatprep.subr.bf16.mxu0 %v5370_v41  ;;  %v5445_v40 = vld [vmem:[%s5966_s24 + $0x24c] ss:$16 sps:$4 sm:$0xff]   ;;  %v5440_v41 = vld [vmem:[%s5966_s24 + $0x48] ss:$16 sps:$4 sm:$0xff]  }
 0x119   : > { %3770 = vmatprep.subr.bf16.mxu1 %v5373_v42  ;;  %v5443_v42 = vld [vmem:[%s5966_s24 + $0x248] ss:$16 sps:$4 sm:$0xff]  }
 0x11b   : > { %3728 = vmatpush2.bf16.msra.mxu0 %v5368_v43  ;;  %v5448_v43 = vld [vmem:[%s5966_s24 + $0x2c] ss:$16 sps:$4 sm:$0xff]  }
 0x11c   : > { %3771 = vmatpush2.bf16.msra.mxu1 %v5371_v44  ;;  %3729 = vmatprep.subr.bf16.mxu0 %v5376_v49  ;;  %v5451_v44 = vld [vmem:[%s5966_s24 + $0x22c] ss:$16 sps:$4 sm:$0xff]   ;;  %v5446_v49 = vld [vmem:[%s5966_s24 + $0x28] ss:$16 sps:$4 sm:$0xff]  }
 0x11d   : > { %3772 = vmatprep.subr.bf16.mxu1 %v5379_v51  ;;  %v5449_v51 = vld [vmem:[%s5966_s24 + $0x228] ss:$16 sps:$4 sm:$0xff]  }
 0x11f   : > { %3730 = vmatpush2.bf16.msra.mxu0 %v5374_v53  ;;  %v5454_v53 = vld [vmem:[%s5966_s24 + $0xc] ss:$16 sps:$4 sm:$0xff]  }
 0x120   : > { %3773 = vmatpush2.bf16.msra.mxu1 %v5377_v54  ;;  %3731 = vmatprep.subr.bf16.mxu0 %v5382_v55  ;;  %v5457_v54 = vld [vmem:[%s5966_s24 + $0x20c] ss:$16 sps:$4 sm:$0xff]   ;;  %v5452_v55 = vld [vmem:[%s5966_s24 + $0x8] ss:$16 sps:$4 sm:$0xff]  }
 0x121   : > { %3774 = vmatprep.subr.bf16.mxu1 %v5385_v56  ;;  %v5455_v56 = vld [vmem:[%s5966_s24 + $0x208] ss:$16 sps:$4 sm:$0xff]  }
 0x123   : > { %3732 = vmatpush2.bf16.msra.mxu0 %v5380_v57  ;;  %v5460_v57 = vld [vmem:[%s5966_s24 + $0x1ec] ss:$16 sps:$4 sm:$0xff]  }
 0x124   : > { %3775 = vmatpush2.bf16.msra.mxu1 %v5383_v59  ;;  %3733 = vmatprep.subr.bf16.mxu0 %v5388_v61  ;;  %v5463_v59 = vld [vmem:[%s5966_s24 + $0x3ec] ss:$16 sps:$4 sm:$0xff]   ;;  %v5458_v61 = vld [vmem:[%s5966_s24 + $0x1e8] ss:$16 sps:$4 sm:$0xff]  }
 0x125   : > { %3776 = vmatprep.subr.bf16.mxu1 %v5391_v62  ;;  %v5461_v62 = vld [vmem:[%s5966_s24 + $0x3e8] ss:$16 sps:$4 sm:$0xff]  }
 0x127   : > { %3734 = vmatpush2.bf16.msra.mxu0 %v5386_v5  ;;  %v5466_v5 = vld [vmem:[%s5966_s24 + $0x1cc] ss:$16 sps:$4 sm:$0xff]  }
 0x128   : > { %3777 = vmatpush2.bf16.msra.mxu1 %v5389_v7  ;;  %3735 = vmatprep.subr.bf16.mxu0 %v5394_v47  ;;  %v5469_v7 = vld [vmem:[%s5966_s24 + $0x3cc] ss:$16 sps:$4 sm:$0xff]   ;;  %v5464_v47 = vld [vmem:[%s5966_s24 + $0x1c8] ss:$16 sps:$4 sm:$0xff]  }
 0x129   : > { %3778 = vmatprep.subr.bf16.mxu1 %v5397_v48  ;;  %v5467_v48 = vld [vmem:[%s5966_s24 + $0x3c8] ss:$16 sps:$4 sm:$0xff]  }
 0x12b   : > { %3736 = vmatpush2.bf16.msra.mxu0 %v5392_v9  ;;  %v5472_v9 = vld [vmem:[%s5966_s24 + $0x1ac] ss:$16 sps:$4 sm:$0xff]  }
 0x12c   : > { %3779 = vmatpush2.bf16.msra.mxu1 %v5395_v10  ;;  %3737 = vmatprep.subr.bf16.mxu0 %v5400_v11  ;;  %v5475_v10 = vld [vmem:[%s5966_s24 + $0x3ac] ss:$16 sps:$4 sm:$0xff]   ;;  %v5470_v11 = vld [vmem:[%s5966_s24 + $0x1a8] ss:$16 sps:$4 sm:$0xff]  }
 0x12d   : > { %3780 = vmatprep.subr.bf16.mxu1 %v5403_v12  ;;  %v5473_v12 = vld [vmem:[%s5966_s24 + $0x3a8] ss:$16 sps:$4 sm:$0xff]  }
 0x12f   : > { %3738 = vmatpush2.bf16.msra.mxu0 %v5398_v13  ;;  %v5478_v13 = vld [vmem:[%s5966_s24 + $0x18c] ss:$16 sps:$4 sm:$0xff]  }
 0x130   : > { %3781 = vmatpush2.bf16.msra.mxu1 %v5401_v14  ;;  %3739 = vmatprep.subr.bf16.mxu0 %v5406_v15  ;;  %v5481_v14 = vld [vmem:[%s5966_s24 + $0x38c] ss:$16 sps:$4 sm:$0xff]   ;;  %v5476_v15 = vld [vmem:[%s5966_s24 + $0x188] ss:$16 sps:$4 sm:$0xff]  }
 0x131   : > { %3782 = vmatprep.subr.bf16.mxu1 %v5409_v16  ;;  %v5479_v16 = vld [vmem:[%s5966_s24 + $0x388] ss:$16 sps:$4 sm:$0xff]  }
 0x133   : > { %3740 = vmatpush2.bf16.msra.mxu0 %v5404_v17  ;;  %v5484_v17 = vld [vmem:[%s5966_s24 + $0x16c] ss:$16 sps:$4 sm:$0xff]  }
 0x134   : > { %3783 = vmatpush2.bf16.msra.mxu1 %v5407_v18  ;;  %3795 = vmatprep.subr.bf16.mxu0 %v5412_v19  ;;  %v5487_v18 = vld [vmem:[%s5966_s24 + $0x36c] ss:$16 sps:$4 sm:$0xff]   ;;  %v5482_v19 = vld [vmem:[%s5966_s24 + $0x168] ss:$16 sps:$4 sm:$0xff]  }
 0x135   : > { %3838 = vmatprep.subr.bf16.mxu1 %v5415_v20  ;;  %v5485_v20 = vld [vmem:[%s5966_s24 + $0x368] ss:$16 sps:$4 sm:$0xff]  }
 0x136   : > { %3742 = vmatmul.mubr.bf16.vlgmr.msra.gmra.mxu0 %v6338_v21 }
 0x137   : > { %3785 = vmatmul.mubr.bf16.vlgmr.msra.gmra.mxu1 %v6342_v22  ;;  %3796 = vmatpush1.bf16.msra.mxu0 %v5410_v23  ;;  %v5490_v23 = vld [vmem:[%s5966_s24 + $0x14c] ss:$16 sps:$4 sm:$0xff]  }
 0x138   : > { %3839 = vmatpush1.bf16.msra.mxu1 %v5413_v24  ;;  %3797 = vmatprep.subr.bf16.mxu0 %v5418_v27  ;;  %v5493_v24 = vld [vmem:[%s5966_s24 + $0x34c] ss:$16 sps:$4 sm:$0xff]   ;;  %v5488_v27 = vld [vmem:[%s5966_s24 + $0x148] ss:$16 sps:$4 sm:$0xff]  }
 0x139   : > { %3840 = vmatprep.subr.bf16.mxu1 %v5421_v28  ;;  %3827 = vmatprep.mubr.bf16.mxu0 %v6029_v6  ;;  %v5436_v6 = vld [vmem:[%s5966_s24 + $0x6c] ss:$16 sps:$4 sm:$0xff]   ;;  %v5491_v28 = vld [vmem:[%s5966_s24 + $0x348] ss:$16 sps:$4 sm:$0xff]  }
 0x13a   : > { %3870 = vmatprep.mubr.bf16.mxu1 %v6032_v8  ;;  %v5439_v8 = vld [vmem:[%s5966_s24 + $0x26c] ss:$16 sps:$4 sm:$0xff]  }
 0x13b   : > { %3798 = vmatpush1.bf16.msra.mxu0 %v5416_v63  ;;  %v5496_v63 = vld [vmem:[%s5966_s24 + $0x12c] ss:$16 sps:$4 sm:$0xff]  }
 0x13c   : > { %3841 = vmatpush1.bf16.msra.mxu1 %v5419_v0  ;;  %3799 = vmatprep.subr.bf16.mxu0 %v5424_v3  ;;  %v5499_v0 = vld [vmem:[%s5966_s24 + $0x32c] ss:$16 sps:$4 sm:$0xff]   ;;  %v5494_v3 = vld [vmem:[%s5966_s24 + $0x128] ss:$16 sps:$4 sm:$0xff]  }
 0x13d   : > { %3842 = vmatprep.subr.bf16.mxu1 %v5427_v4  ;;  %v5497_v4 = vld [vmem:[%s5966_s24 + $0x328] ss:$16 sps:$4 sm:$0xff]  }
 0x13f   : > { %3800 = vmatpush1.bf16.msra.mxu0 %v5422_v29  ;;  %v5502_v29 = vld [vmem:[%s5966_s24 + $0x10c] ss:$16 sps:$4 sm:$0xff]  }
 0x140   : > { %3843 = vmatpush1.bf16.msra.mxu1 %v5425_v30  ;;  %3801 = vmatprep.subr.bf16.mxu0 %v5430_v31  ;;  %v5505_v30 = vld [vmem:[%s5966_s24 + $0x30c] ss:$16 sps:$4 sm:$0xff]   ;;  %v5500_v31 = vld [vmem:[%s5966_s24 + $0x108] ss:$16 sps:$4 sm:$0xff]  }
 0x141   : > { %3844 = vmatprep.subr.bf16.mxu1 %v5433_v32  ;;  %v5503_v32 = vld [vmem:[%s5966_s24 + $0x308] ss:$16 sps:$4 sm:$0xff]  }
 0x143   : > { %3802 = vmatpush1.bf16.msra.mxu0 %v5428_v33  ;;  %v5508_v33 = vld [vmem:[%s5966_s24 + $0x4ec] ss:$16 sps:$4 sm:$0xff]  }
 0x144   : > { %3845 = vmatpush1.bf16.msra.mxu1 %v5431_v34  ;;  %3803 = vmatprep.subr.bf16.mxu0 %v5436_v6  ;;  %v5511_v34 = vld [vmem:[%s5966_s24 + $0x6ec] ss:$16 sps:$4 sm:$0xff]   ;;  %v5506_v6 = vld [vmem:[%s5966_s24 + $0x4e8] ss:$16 sps:$4 sm:$0xff]  }
 0x145   : > { %3846 = vmatprep.subr.bf16.mxu1 %v5439_v8  ;;  %v5509_v8 = vld [vmem:[%s5966_s24 + $0x6e8] ss:$16 sps:$4 sm:$0xff]  }
 0x147   : > { %3804 = vmatpush1.bf16.msra.mxu0 %v5434_v35  ;;  %v5514_v35 = vld [vmem:[%s5966_s24 + $0x4cc] ss:$16 sps:$4 sm:$0xff]  }
 0x148   : > { %3847 = vmatpush1.bf16.msra.mxu1 %v5437_v36  ;;  %3805 = vmatprep.subr.bf16.mxu0 %v5442_v39  ;;  %v5517_v36 = vld [vmem:[%s5966_s24 + $0x6cc] ss:$16 sps:$4 sm:$0xff]   ;;  %v5512_v39 = vld [vmem:[%s5966_s24 + $0x4c8] ss:$16 sps:$4 sm:$0xff]  }
 0x149   : > { %3848 = vmatprep.subr.bf16.mxu1 %v5445_v40  ;;  %v5515_v40 = vld [vmem:[%s5966_s24 + $0x6c8] ss:$16 sps:$4 sm:$0xff]  }
 0x14b   : > { %3806 = vmatpush1.bf16.msra.mxu0 %v5440_v41  ;;  %v5520_v41 = vld [vmem:[%s5966_s24 + $0x4ac] ss:$16 sps:$4 sm:$0xff]  }
 0x14c   : > { %3849 = vmatpush1.bf16.msra.mxu1 %v5443_v42  ;;  %3807 = vmatprep.subr.bf16.mxu0 %v5448_v43  ;;  %v5523_v42 = vld [vmem:[%s5966_s24 + $0x6ac] ss:$16 sps:$4 sm:$0xff]  }
 0x14d   : > { %3850 = vmatprep.subr.bf16.mxu1 %v5451_v44  ;;  %v5526_v43 = vld [vmem:[%s5966_s24 + $0x48c] ss:$16 sps:$4 sm:$0xff]  }
 0x14e   : > { %v5529_v44 = vld [vmem:[%s5966_s24 + $0x68c] ss:$16 sps:$4 sm:$0xff]  }
 0x14f   : > { %3808 = vmatpush1.bf16.msra.mxu0 %v5446_v49  ;;  %v5524_v49 = vld [vmem:[%s5966_s24 + $0x488] ss:$16 sps:$4 sm:$0xff]  }
 0x150   : > { %3851 = vmatpush1.bf16.msra.mxu1 %v5449_v51  ;;  %3809 = vmatprep.subr.bf16.mxu0 %v5454_v53  ;;  %v5535_v51 = vld [vmem:[%s5966_s24 + $0x66c] ss:$16 sps:$4 sm:$0xff]   ;;  %v5530_v53 = vld [vmem:[%s5966_s24 + $0x468] ss:$16 sps:$4 sm:$0xff]  }
 0x151   : > { %3852 = vmatprep.subr.bf16.mxu1 %v5457_v54  ;;  %v5533_v54 = vld [vmem:[%s5966_s24 + $0x668] ss:$16 sps:$4 sm:$0xff]  }
 0x153   : > { %3810 = vmatpush1.bf16.msra.mxu0 %v5452_v55  ;;  %v5538_v55 = vld [vmem:[%s5966_s24 + $0x44c] ss:$16 sps:$4 sm:$0xff]  }
 0x154   : > { %3853 = vmatpush1.bf16.msra.mxu1 %v5455_v56  ;;  %3811 = vmatprep.subr.bf16.mxu0 %v5460_v57  ;;  %v5541_v56 = vld [vmem:[%s5966_s24 + $0x64c] ss:$16 sps:$4 sm:$0xff]   ;;  %v5536_v57 = vld [vmem:[%s5966_s24 + $0x448] ss:$16 sps:$4 sm:$0xff]  }
 0x155   : > { %3854 = vmatprep.subr.bf16.mxu1 %v5463_v59  ;;  %v5539_v59 = vld [vmem:[%s5966_s24 + $0x648] ss:$16 sps:$4 sm:$0xff]  }
 0x157   : > { %3812 = vmatpush2.bf16.msra.mxu0 %v5458_v61  ;;  %v5544_v61 = vld [vmem:[%s5966_s24 + $0x42c] ss:$16 sps:$4 sm:$0xff]  }
 0x158   : > { %3855 = vmatpush2.bf16.msra.mxu1 %v5461_v62  ;;  %3813 = vmatprep.subr.bf16.mxu0 %v5466_v5  ;;  %v5547_v62 = vld [vmem:[%s5966_s24 + $0x62c] ss:$16 sps:$4 sm:$0xff]   ;;  %v5542_v5 = vld [vmem:[%s5966_s24 + $0x428] ss:$16 sps:$4 sm:$0xff]  }
 0x159   : > { %3856 = vmatprep.subr.bf16.mxu1 %v5469_v7  ;;  %v5545_v7 = vld [vmem:[%s5966_s24 + $0x628] ss:$16 sps:$4 sm:$0xff]  }
 0x15b   : > { %3814 = vmatpush2.bf16.msra.mxu0 %v5464_v47  ;;  %v5550_v47 = vld [vmem:[%s5966_s24 + $0x40c] ss:$16 sps:$4 sm:$0xff]  }
 0x15c   : > { %3857 = vmatpush2.bf16.msra.mxu1 %v5467_v48  ;;  %3815 = vmatprep.subr.bf16.mxu0 %v5472_v9  ;;  %v5553_v48 = vld [vmem:[%s5966_s24 + $0x60c] ss:$16 sps:$4 sm:$0xff]   ;;  %v5548_v9 = vld [vmem:[%s5966_s24 + $0x408] ss:$16 sps:$4 sm:$0xff]  }
 0x15d   : > { %3858 = vmatprep.subr.bf16.mxu1 %v5475_v10  ;;  %v5551_v10 = vld [vmem:[%s5966_s24 + $0x608] ss:$16 sps:$4 sm:$0xff]  }
 0x15f   : > { %3816 = vmatpush2.bf16.msra.mxu0 %v5470_v11  ;;  %v5556_v11 = vld [vmem:[%s5966_s24 + $0x5ec] ss:$16 sps:$4 sm:$0xff]  }
 0x160   : > { %3859 = vmatpush2.bf16.msra.mxu1 %v5473_v12  ;;  %3817 = vmatprep.subr.bf16.mxu0 %v5478_v13  ;;  %v5559_v12 = vld [vmem:[%s5966_s24 + $0x7ec] ss:$16 sps:$4 sm:$0xff]   ;;  %v5554_v13 = vld [vmem:[%s5966_s24 + $0x5e8] ss:$16 sps:$4 sm:$0xff]  }
 0x161   : > { %3860 = vmatprep.subr.bf16.mxu1 %v5481_v14  ;;  %v5557_v14 = vld [vmem:[%s5966_s24 + $0x7e8] ss:$16 sps:$4 sm:$0xff]  }
 0x163   : > { %3818 = vmatpush2.bf16.msra.mxu0 %v5476_v15  ;;  %v5562_v15 = vld [vmem:[%s5966_s24 + $0x5cc] ss:$16 sps:$4 sm:$0xff]  }
 0x164   : > { %3861 = vmatpush2.bf16.msra.mxu1 %v5479_v16  ;;  %3819 = vmatprep.subr.bf16.mxu0 %v5484_v17  ;;  %v5565_v16 = vld [vmem:[%s5966_s24 + $0x7cc] ss:$16 sps:$4 sm:$0xff]   ;;  %v5560_v17 = vld [vmem:[%s5966_s24 + $0x5c8] ss:$16 sps:$4 sm:$0xff]  }
 0x165   : > { %3862 = vmatprep.subr.bf16.mxu1 %v5487_v18  ;;  %v5563_v18 = vld [vmem:[%s5966_s24 + $0x7c8] ss:$16 sps:$4 sm:$0xff]  }
 0x167   : > { %3820 = vmatpush2.bf16.msra.mxu0 %v5482_v19  ;;  %v5568_v19 = vld [vmem:[%s5966_s24 + $0x5ac] ss:$16 sps:$4 sm:$0xff]  }
 0x168   : > { %3863 = vmatpush2.bf16.msra.mxu1 %v5485_v20  ;;  %3821 = vmatprep.subr.bf16.mxu0 %v5490_v23  ;;  %v5571_v20 = vld [vmem:[%s5966_s24 + $0x7ac] ss:$16 sps:$4 sm:$0xff]   ;;  %v5566_v23 = vld [vmem:[%s5966_s24 + $0x5a8] ss:$16 sps:$4 sm:$0xff]  }
 0x169   : > { %3864 = vmatprep.subr.bf16.mxu1 %v5493_v24  ;;  %v5569_v24 = vld [vmem:[%s5966_s24 + $0x7a8] ss:$16 sps:$4 sm:$0xff]  }
 0x16b   : > { %3822 = vmatpush2.bf16.msra.mxu0 %v5488_v27  ;;  %v5574_v27 = vld [vmem:[%s5966_s24 + $0x58c] ss:$16 sps:$4 sm:$0xff]  }
 0x16c   : > { %3865 = vmatpush2.bf16.msra.mxu1 %v5491_v28  ;;  %3823 = vmatprep.subr.bf16.mxu0 %v5496_v63  ;;  %v5577_v28 = vld [vmem:[%s5966_s24 + $0x78c] ss:$16 sps:$4 sm:$0xff]   ;;  %v5572_v63 = vld [vmem:[%s5966_s24 + $0x588] ss:$16 sps:$4 sm:$0xff]  }
 0x16d   : > { %3866 = vmatprep.subr.bf16.mxu1 %v5499_v0  ;;  %v5575_v0 = vld [vmem:[%s5966_s24 + $0x788] ss:$16 sps:$4 sm:$0xff]  }
 0x16f   : > { %3824 = vmatpush2.bf16.msra.mxu0 %v5494_v3  ;;  %v5580_v3 = vld [vmem:[%s5966_s24 + $0x56c] ss:$16 sps:$4 sm:$0xff]  }
 0x170   : > { %3867 = vmatpush2.bf16.msra.mxu1 %v5497_v4  ;;  %3825 = vmatprep.subr.bf16.mxu0 %v5502_v29  ;;  %v5583_v4 = vld [vmem:[%s5966_s24 + $0x76c] ss:$16 sps:$4 sm:$0xff]   ;;  %v5578_v29 = vld [vmem:[%s5966_s24 + $0x568] ss:$16 sps:$4 sm:$0xff]  }
 0x171   : > { %3868 = vmatprep.subr.bf16.mxu1 %v5505_v30  ;;  %v5581_v30 = vld [vmem:[%s5966_s24 + $0x768] ss:$16 sps:$4 sm:$0xff]  }
 0x173   : > { %3826 = vmatpush2.bf16.msra.mxu0 %v5500_v31  ;;  %v5586_v31 = vld [vmem:[%s5966_s24 + $0x54c] ss:$16 sps:$4 sm:$0xff]  }
 0x174   : > { %3869 = vmatpush2.bf16.msra.mxu1 %v5503_v32  ;;  %3881 = vmatprep.subr.bf16.mxu0 %v5508_v33  ;;  %v5589_v32 = vld [vmem:[%s5966_s24 + $0x74c] ss:$16 sps:$4 sm:$0xff]   ;;  %v5584_v33 = vld [vmem:[%s5966_s24 + $0x548] ss:$16 sps:$4 sm:$0xff]  }
 0x175   : > { %3924 = vmatprep.subr.bf16.mxu1 %v5511_v34  ;;  %v5587_v34 = vld [vmem:[%s5966_s24 + $0x748] ss:$16 sps:$4 sm:$0xff]  }
 0x176   : > { %3828 = vmatmul.mubr.bf16.vlgmr.msra.gmra.mxu0 %v6052_v25  ;;  %v5518_v25 = vld [vmem:[%s5966_s24 + $0x4a8] ss:$16 sps:$4 sm:$0xff]  }
 0x177   : > { %3871 = vmatmul.mubr.bf16.vlgmr.msra.gmra.mxu1 %v6054_v26  ;;  %3882 = vmatpush1.bf16.msra.mxu0 %v5506_v6  ;;  %v5521_v26 = vld [vmem:[%s5966_s24 + $0x6a8] ss:$16 sps:$4 sm:$0xff]   ;;  %v5592_v6 = vld [vmem:[%s5966_s24 + $0x52c] ss:$16 sps:$4 sm:$0xff]  }
 0x178   : > { %3925 = vmatpush1.bf16.msra.mxu1 %v5509_v8  ;;  %3883 = vmatprep.subr.bf16.mxu0 %v5514_v35  ;;  %v5595_v8 = vld [vmem:[%s5966_s24 + $0x72c] ss:$16 sps:$4 sm:$0xff]   ;;  %v5590_v35 = vld [vmem:[%s5966_s24 + $0x528] ss:$16 sps:$4 sm:$0xff]  }
 0x179   : > { %3926 = vmatprep.subr.bf16.mxu1 %v5517_v36  ;;  %3913 = vmatprep.mubr.bf16.mxu0 %v6099_v58  ;;  %v5527_v58 = vld [vmem:[%s5966_s24 + $0x688] ss:$16 sps:$4 sm:$0xff]  }
 0x17a   : > { %3956 = vmatprep.mubr.bf16.mxu1 %v6104_v60  ;;  %v5532_v60 = vld [vmem:[%s5966_s24 + $0x46c] ss:$16 sps:$4 sm:$0xff]   ;;  %v5593_v36 = vld [vmem:[%s5966_s24 + $0x728] ss:$16 sps:$4 sm:$0xff]  }
 0x17b   : > { %3884 = vmatpush1.bf16.msra.mxu0 %v5512_v39  ;;  %v5598_v39 = vld [vmem:[%s5966_s24 + $0x50c] ss:$16 sps:$4 sm:$0xff]  }
 0x17c   : > { %3927 = vmatpush1.bf16.msra.mxu1 %v5515_v40  ;;  %3885 = vmatprep.subr.bf16.mxu0 %v5520_v41  ;;  %v5601_v40 = vld [vmem:[%s5966_s24 + $0x70c] ss:$16 sps:$4 sm:$0xff]   ;;  %v5596_v41 = vld [vmem:[%s5966_s24 + $0x508] ss:$16 sps:$4 sm:$0xff]  }
 0x17d   : > { %3928 = vmatprep.subr.bf16.mxu1 %v5523_v42  ;;  %v5599_v42 = vld [vmem:[%s5966_s24 + $0x708] ss:$16 sps:$4 sm:$0xff]  }
 0x17f   : > { %3886 = vmatpush1.bf16.msra.mxu0 %v5518_v25  ;;  %v5604_v25 = vld [vmem:[%s5966_s24 + $0x8ec] ss:$16 sps:$4 sm:$0xff]  }
 0x180   : > { %3929 = vmatpush1.bf16.msra.mxu1 %v5521_v26  ;;  %3887 = vmatprep.subr.bf16.mxu0 %v5526_v43  ;;  %v5607_v26 = vld [vmem:[%s5966_s24 + $0xaec] ss:$16 sps:$4 sm:$0xff]   ;;  %v5602_v43 = vld [vmem:[%s5966_s24 + $0x8e8] ss:$16 sps:$4 sm:$0xff]  }
 0x181   : > { %3930 = vmatprep.subr.bf16.mxu1 %v5529_v44  ;;  %v5605_v44 = vld [vmem:[%s5966_s24 + $0xae8] ss:$16 sps:$4 sm:$0xff]  }
 0x183   : > { %3888 = vmatpush1.bf16.msra.mxu0 %v5524_v49  ;;  %v5610_v49 = vld [vmem:[%s5966_s24 + $0x8cc] ss:$16 sps:$4 sm:$0xff]  }
 0x184   : > { %3931 = vmatpush1.bf16.msra.mxu1 %v5527_v58  ;;  %3889 = vmatprep.subr.bf16.mxu0 %v5532_v60  ;;  %v5613_v58 = vld [vmem:[%s5966_s24 + $0xacc] ss:$16 sps:$4 sm:$0xff]   ;;  %v5608_v60 = vld [vmem:[%s5966_s24 + $0x8c8] ss:$16 sps:$4 sm:$0xff]  }
 0x185   : > { %3932 = vmatprep.subr.bf16.mxu1 %v5535_v51  ;;  %v5611_v51 = vld [vmem:[%s5966_s24 + $0xac8] ss:$16 sps:$4 sm:$0xff]  }
 0x187   : > { %3890 = vmatpush1.bf16.msra.mxu0 %v5530_v53  ;;  %v5616_v53 = vld [vmem:[%s5966_s24 + $0x8ac] ss:$16 sps:$4 sm:$0xff]  }
 0x188   : > { %3933 = vmatpush1.bf16.msra.mxu1 %v5533_v54  ;;  %3891 = vmatprep.subr.bf16.mxu0 %v5538_v55  ;;  %v5619_v54 = vld [vmem:[%s5966_s24 + $0xaac] ss:$16 sps:$4 sm:$0xff]  }
 0x189   : > { %3934 = vmatprep.subr.bf16.mxu1 %v5541_v56  ;;  %v5622_v55 = vld [vmem:[%s5966_s24 + $0x88c] ss:$16 sps:$4 sm:$0xff]  }
 0x18a   : > { %v5625_v56 = vld [vmem:[%s5966_s24 + $0xa8c] ss:$16 sps:$4 sm:$0xff]  }
 0x18b   : > { %3892 = vmatpush1.bf16.msra.mxu0 %v5536_v57  ;;  %v5620_v57 = vld [vmem:[%s5966_s24 + $0x888] ss:$16 sps:$4 sm:$0xff]  }
 0x18c   : > { %3935 = vmatpush1.bf16.msra.mxu1 %v5539_v59  ;;  %3893 = vmatprep.subr.bf16.mxu0 %v5544_v61  ;;  %v5631_v59 = vld [vmem:[%s5966_s24 + $0xa6c] ss:$16 sps:$4 sm:$0xff]   ;;  %v5626_v61 = vld [vmem:[%s5966_s24 + $0x868] ss:$16 sps:$4 sm:$0xff]  }
 0x18d   : > { %3936 = vmatprep.subr.bf16.mxu1 %v5547_v62  ;;  %v5629_v62 = vld [vmem:[%s5966_s24 + $0xa68] ss:$16 sps:$4 sm:$0xff]  }
 0x18f   : > { %3894 = vmatpush1.bf16.msra.mxu0 %v5542_v5  ;;  %v5634_v5 = vld [vmem:[%s5966_s24 + $0x84c] ss:$16 sps:$4 sm:$0xff]  }
 0x190   : > { %3937 = vmatpush1.bf16.msra.mxu1 %v5545_v7  ;;  %3895 = vmatprep.subr.bf16.mxu0 %v5550_v47  ;;  %v5637_v7 = vld [vmem:[%s5966_s24 + $0xa4c] ss:$16 sps:$4 sm:$0xff]   ;;  %v5632_v47 = vld [vmem:[%s5966_s24 + $0x848] ss:$16 sps:$4 sm:$0xff]  }
 0x191   : > { %3938 = vmatprep.subr.bf16.mxu1 %v5553_v48  ;;  %v5635_v48 = vld [vmem:[%s5966_s24 + $0xa48] ss:$16 sps:$4 sm:$0xff]  }
 0x193   : > { %3896 = vmatpush1.bf16.msra.mxu0 %v5548_v9  ;;  %v5640_v9 = vld [vmem:[%s5966_s24 + $0x82c] ss:$16 sps:$4 sm:$0xff]  }
 0x194   : > { %3939 = vmatpush1.bf16.msra.mxu1 %v5551_v10  ;;  %3897 = vmatprep.subr.bf16.mxu0 %v5556_v11  ;;  %v5643_v10 = vld [vmem:[%s5966_s24 + $0xa2c] ss:$16 sps:$4 sm:$0xff]   ;;  %v6508_v11 = vpop.f32.mrf.mxu0 }
 0x195   : > { %3940 = vmatprep.subr.bf16.mxu1 %v5559_v12  ;;  %v5638_v12 = vld [vmem:[%s5966_s24 + $0x828] ss:$16 sps:$4 sm:$0xff]  }
 0x197   : > { %3898 = vmatpush2.bf16.msra.mxu0 %v5554_v13  ;;  %v5641_v13 = vld [vmem:[%s5966_s24 + $0xa28] ss:$16 sps:$4 sm:$0xff]  }
 0x198   : > { %3941 = vmatpush2.bf16.msra.mxu1 %v5557_v14  ;;  %3899 = vmatprep.subr.bf16.mxu0 %v5562_v15  ;;  %v6512_v14 = vpop.f32.mrf.mxu1  ;;  %v5646_v15 = vld [vmem:[%s5966_s24 + $0x80c] ss:$16 sps:$4 sm:$0xff]  }
 0x199   : > { %3942 = vmatprep.subr.bf16.mxu1 %v5565_v16  ;;  %v5649_v16 = vld [vmem:[%s5966_s24 + $0xa0c] ss:$16 sps:$4 sm:$0xff]  }
 0x19b   : > { %3900 = vmatpush2.bf16.msra.mxu0 %v5560_v17  ;;  %v6516_v17 = vpop.f32.mrf.mxu0 }
 0x19c   : > { %3943 = vmatpush2.bf16.msra.mxu1 %v5563_v18  ;;  %3901 = vmatprep.subr.bf16.mxu0 %v5568_v19  ;;  %v5644_v18 = vld [vmem:[%s5966_s24 + $0x808] ss:$16 sps:$4 sm:$0xff]  }
 0x19d   : > { %3944 = vmatprep.subr.bf16.mxu1 %v5571_v20  ;;  %v5647_v19 = vld [vmem:[%s5966_s24 + $0xa08] ss:$16 sps:$4 sm:$0xff]   ;;  %v6520_v20 = vpop.f32.mrf.mxu1 }
 0x19f   : > { %3902 = vmatpush2.bf16.msra.mxu0 %v5566_v23  ;;  %v5652_v23 = vld [vmem:[%s5966_s24 + $0x9ec] ss:$16 sps:$4 sm:$0xff]  }
 0x1a0   : > { %3945 = vmatpush2.bf16.msra.mxu1 %v5569_v24  ;;  %3903 = vmatprep.subr.bf16.mxu0 %v5574_v27  ;;  %v5655_v24 = vld [vmem:[%s5966_s24 + $0xbec] ss:$16 sps:$4 sm:$0xff]   ;;  %v6524_v27 = vpop.f32.mrf.mxu0 }
 0x1a1   : > { %3946 = vmatprep.subr.bf16.mxu1 %v5577_v28  ;;  %v5650_v28 = vld [vmem:[%s5966_s24 + $0x9e8] ss:$16 sps:$4 sm:$0xff]  }
 0x1a3   : > { %3904 = vmatpush2.bf16.msra.mxu0 %v5572_v63  ;;  %v5653_v63 = vld [vmem:[%s5966_s24 + $0xbe8] ss:$16 sps:$4 sm:$0xff]  }
 0x1a4   : > { %3947 = vmatpush2.bf16.msra.mxu1 %v5575_v0  ;;  %3905 = vmatprep.subr.bf16.mxu0 %v5580_v3  ;;  %v6528_v0 = vpop.f32.mrf.mxu1  ;;  %v5658_v3 = vld [vmem:[%s5966_s24 + $0x9cc] ss:$16 sps:$4 sm:$0xff]  }
 0x1a5   : > { %3948 = vmatprep.subr.bf16.mxu1 %v5583_v4  ;;  %v5661_v4 = vld [vmem:[%s5966_s24 + $0xbcc] ss:$16 sps:$4 sm:$0xff]  }
 0x1a7   : > { %3906 = vmatpush2.bf16.msra.mxu0 %v5578_v29  ;;  %v6532_v29 = vpop.f32.mrf.mxu0 }
 0x1a8   : > { %3949 = vmatpush2.bf16.msra.mxu1 %v5581_v30  ;;  %3907 = vmatprep.subr.bf16.mxu0 %v5586_v31  ;;  %v5656_v30 = vld [vmem:[%s5966_s24 + $0x9c8] ss:$16 sps:$4 sm:$0xff]  }
 0x1a9   : > { %3950 = vmatprep.subr.bf16.mxu1 %v5589_v32  ;;  %v5659_v31 = vld [vmem:[%s5966_s24 + $0xbc8] ss:$16 sps:$4 sm:$0xff]   ;;  %v3534_v32 = vpop.f32.mrf.mxu1 }
 0x1ab   : > { %3908 = vmatpush2.bf16.msra.mxu0 %v5584_v33  ;;  %v5664_v33 = vld [vmem:[%s5966_s24 + $0x9ac] ss:$16 sps:$4 sm:$0xff]  }
 0x1ac   : > { %3951 = vmatpush2.bf16.msra.mxu1 %v5587_v34  ;;  %3909 = vmatprep.subr.bf16.mxu0 %v5592_v6  ;;  %v5667_v34 = vld [vmem:[%s5966_s24 + $0xbac] ss:$16 sps:$4 sm:$0xff]   ;;  %v3571_v6 = vpop.f32.mrf.mxu0 }
 0x1ad   : > { %3952 = vmatprep.subr.bf16.mxu1 %v5595_v8  ;;  %v3614_v8 = vpop.f32.mrf.mxu1 }
 0x1af   : > { %3910 = vmatpush2.bf16.msra.mxu0 %v5590_v35  ;;  %v5662_v35 = vld [vmem:[%s5966_s24 + $0x9a8] ss:$16 sps:$4 sm:$0xff]  }
 0x1b0   : > { %3953 = vmatpush2.bf16.msra.mxu1 %v5593_v36  ;;  %3911 = vmatprep.subr.bf16.mxu0 %v5598_v39  ;;  %v5665_v36 = vld [vmem:[%s5966_s24 + $0xba8] ss:$16 sps:$4 sm:$0xff]   ;;  %v5670_v39 = vld [vmem:[%s5966_s24 + $0x98c] ss:$16 sps:$4 sm:$0xff]  }
 0x1b1   : > { %3954 = vmatprep.subr.bf16.mxu1 %v5601_v40  ;;  %v5673_v40 = vld [vmem:[%s5966_s24 + $0xb8c] ss:$16 sps:$4 sm:$0xff]  }
 0x1b3   : > { %3912 = vmatpush2.bf16.msra.mxu0 %v5596_v41  ;;  %v3573_v41 = vpop.f32.mrf.mxu0 }
 0x1b4   : > { %3955 = vmatpush2.bf16.msra.mxu1 %v5599_v42  ;;  %3967 = vmatprep.subr.bf16.mxu0 %v5604_v25  ;;  %v3616_v42 = vpop.f32.mrf.mxu1  ;;  %v5668_v25 = vld [vmem:[%s5966_s24 + $0x988] ss:$16 sps:$4 sm:$0xff]  }
 0x1b5   : > { %4010 = vmatprep.subr.bf16.mxu1 %v5607_v26  ;;  %v5671_v26 = vld [vmem:[%s5966_s24 + $0xb88] ss:$16 sps:$4 sm:$0xff]  }
 0x1b6   : > { %3914 = vmatmul.mubr.bf16.vlgmr.msra.gmra.mxu0 %v6146_v37  ;;  %v5614_v37 = vld [vmem:[%s5966_s24 + $0x8a8] ss:$16 sps:$4 sm:$0xff]  }
 0x1b7   : > { %3957 = vmatmul.mubr.bf16.vlgmr.msra.gmra.mxu1 %v6150_v38  ;;  %3968 = vmatpush1.bf16.msra.mxu0 %v5602_v43  ;;  %v5617_v38 = vld [vmem:[%s5966_s24 + $0xaa8] ss:$16 sps:$4 sm:$0xff]   ;;  %v5676_v43 = vld [vmem:[%s5966_s24 + $0x96c] ss:$16 sps:$4 sm:$0xff]  }
 0x1b8   : > { %4011 = vmatpush1.bf16.msra.mxu1 %v5605_v44  ;;  %3969 = vmatprep.subr.bf16.mxu0 %v5610_v49  ;;  %v5679_v44 = vld [vmem:[%s5966_s24 + $0xb6c] ss:$16 sps:$4 sm:$0xff]   ;;  %v3575_v49 = vpop.f32.mrf.mxu0 }
 0x1b9   : > { %4012 = vmatprep.subr.bf16.mxu1 %v5613_v58  ;;  %3999 = vmatprep.mubr.bf16.mxu0 %v6175_v50  ;;  %v5623_v50 = vld [vmem:[%s5966_s24 + $0xa88] ss:$16 sps:$4 sm:$0xff]   ;;  %v3618_v58 = vpop.f32.mrf.mxu1 }
 0x1ba   : > { %4042 = vmatprep.mubr.bf16.mxu1 %v6180_v52  ;;  %v5628_v52 = vld [vmem:[%s5966_s24 + $0x86c] ss:$16 sps:$4 sm:$0xff]  }
 0x1bb   : > { %3970 = vmatpush1.bf16.msra.mxu0 %v5608_v60  ;;  %v5674_v60 = vld [vmem:[%s5966_s24 + $0x968] ss:$16 sps:$4 sm:$0xff]  }
 0x1bc   : > { %4013 = vmatpush1.bf16.msra.mxu1 %v5611_v51  ;;  %3971 = vmatprep.subr.bf16.mxu0 %v5616_v53  ;;  %v5677_v51 = vld [vmem:[%s5966_s24 + $0xb68] ss:$16 sps:$4 sm:$0xff]   ;;  %v5682_v53 = vld [vmem:[%s5966_s24 + $0x94c] ss:$16 sps:$4 sm:$0xff]  }
 0x1bd   : > { %4014 = vmatprep.subr.bf16.mxu1 %v5619_v54  ;;  %v5685_v54 = vld [vmem:[%s5966_s24 + $0xb4c] ss:$16 sps:$4 sm:$0xff]  }
 0x1bf   : > { %3972 = vmatpush1.bf16.msra.mxu0 %v5614_v37  ;;  %v3577_v37 = vpop.f32.mrf.mxu0 }
 0x1c0   : > { %4015 = vmatpush1.bf16.msra.mxu1 %v5617_v38  ;;  %3973 = vmatprep.subr.bf16.mxu0 %v5622_v55  ;;  %v3620_v38 = vpop.f32.mrf.mxu1 }
 0x1c1   : > { %4016 = vmatprep.subr.bf16.mxu1 %v5625_v56  ;;  %v3657_v55 = vpop.f32.mrf.mxu0  ;;  %v5680_v56 = vld [vmem:[%s5966_s24 + $0x948] ss:$16 sps:$4 sm:$0xff]  }
 0x1c3   : > { %3974 = vmatpush1.bf16.msra.mxu0 %v5620_v57  ;;  %v5683_v57 = vld [vmem:[%s5966_s24 + $0xb48] ss:$16 sps:$4 sm:$0xff]  }
 0x1c4   : > { %4017 = vmatpush1.bf16.msra.mxu1 %v5623_v50  ;;  %3975 = vmatprep.subr.bf16.mxu0 %v5628_v52  ;;  %v3700_v50 = vpop.f32.mrf.mxu1  ;;  %v5688_v52 = vld [vmem:[%s5966_s24 + $0x92c] ss:$16 sps:$4 sm:$0xff]  }
 0x1c5   : > { %4018 = vmatprep.subr.bf16.mxu1 %v5631_v59  ;;  %v5691_v59 = vld [vmem:[%s5966_s24 + $0xb2c] ss:$16 sps:$4 sm:$0xff]  }
 0x1c7   : > { %3976 = vmatpush1.bf16.msra.mxu0 %v5626_v61  ;;  %v3529_v61 = vadd.f32 %v6512_v14, %v6508_v11  ;;  %v3533_v11 = vadd.f32 %v6528_v0, %v6524_v27  ;;  %v3535_v14 = vadd.f32 %v3534_v32, %v6532_v29  ;;  %v5703_v27 = vld [vmem:[%s5966_s24 + $0xeec] ss:$16 sps:$4 sm:$0xff]   ;;  %v5698_v29 = vld [vmem:[%s5966_s24 + $0xce8] ss:$16 sps:$4 sm:$0xff]  }
 0x1c8   : > { %4019 = vmatpush1.bf16.msra.mxu1 %v5629_v62  ;;  %3977 = vmatprep.subr.bf16.mxu0 %v5634_v5  ;;  %v3531_v62 = vadd.f32 %v6520_v20, %v6516_v17 }
 0x1c9   : > { %4020 = vmatprep.subr.bf16.mxu1 %v5637_v7  ;;  %v3572_v5 = vadd.f32 %v3571_v6, %v3529_v61  ;;  %v3659_v7 = vpop.f32.mrf.mxu0  ;;  %v3578_v20 = vadd.f32 %v3577_v37, %v3535_v14 }
 0x1cb   : > { %3978 = vmatpush1.bf16.msra.mxu0 %v5632_v47  ;;  %v5686_v47 = vld [vmem:[%s5966_s24 + $0x928] ss:$16 sps:$4 sm:$0xff]   ;;  %v3661_v17 = vpop.f32.mrf.mxu0 }
 0x1cc   : > { %4021 = vmatpush1.bf16.msra.mxu1 %v5635_v48  ;;  %3979 = vmatprep.subr.bf16.mxu0 %v5640_v9  ;;  %v5689_v48 = vld [vmem:[%s5966_s24 + $0xb28] ss:$16 sps:$4 sm:$0xff]   ;;  %v3702_v9 = vpop.f32.mrf.mxu1 }
 0x1cd   : > { %4022 = vmatprep.subr.bf16.mxu1 %v5643_v10  ;;  %v5694_v10 = vld [vmem:[%s5966_s24 + $0x90c] ss:$16 sps:$4 sm:$0xff]  }
 0x1cf   : > { %3980 = vmatpush1.bf16.msra.mxu0 %v5638_v12  ;;  %v5697_v12 = vld [vmem:[%s5966_s24 + $0xb0c] ss:$16 sps:$4 sm:$0xff]  }
 0x1d0   : > { %4023 = vmatpush1.bf16.msra.mxu1 %v5641_v13  ;;  %3981 = vmatprep.subr.bf16.mxu0 %v5646_v15  ;;  %v3574_v13 = vadd.f32 %v3573_v41, %v3531_v62  ;;  %v3615_v15 = vadd.f32 %v3614_v8, %v3572_v5 }
 0x1d1   : > { %4024 = vmatprep.subr.bf16.mxu1 %v5649_v16  ;;  %v3576_v16 = vadd.f32 %v3575_v49, %v3533_v11  ;;  %v5712_v49 = vld [vmem:[%s5966_s24 + $0xcac] ss:$16 sps:$4 sm:$0xff]  }
 0x1d2   : > { %v5724_v11 = vld [vmem:[%s5966_s24 + $0xc6c] ss:$16 sps:$4 sm:$0xff]  }
 0x1d3   : > { %3982 = vmatpush1.bf16.msra.mxu0 %v5644_v18  ;;  %v5692_v18 = vld [vmem:[%s5966_s24 + $0x908] ss:$16 sps:$4 sm:$0xff]   ;;  %v3619_v0 = vadd.f32 %v3618_v58, %v3576_v16  ;;  %v5715_v58 = vld [vmem:[%s5966_s24 + $0xeac] ss:$16 sps:$4 sm:$0xff]  }
 0x1d4   : > { %4025 = vmatpush1.bf16.msra.mxu1 %v5647_v19  ;;  %3983 = vmatprep.subr.bf16.mxu0 %v5652_v23  ;;  %v5695_v19 = vld [vmem:[%s5966_s24 + $0xb08] ss:$16 sps:$4 sm:$0xff]   ;;  %v3704_v23 = vpop.f32.mrf.mxu1 }
 0x1d5   : > { %4026 = vmatprep.subr.bf16.mxu1 %v5655_v24  ;;  %v5700_v24 = vld [vmem:[%s5966_s24 + $0xcec] ss:$16 sps:$4 sm:$0xff]   ;;  %v3662_v8 = vadd.f32 %v3661_v17, %v3619_v0  ;;  %v5725_v16 = vld [vmem:[%s5966_s24 + $0xe68] ss:$16 sps:$4 sm:$0xff]  }
 0x1d6   : > { %v3706_v32 = vpop.f32.mrf.mxu1  ;;  %v5730_v17 = vld [vmem:[%s5966_s24 + $0xc4c] ss:$16 sps:$4 sm:$0xff]  }
 0x1d7   : > { %3984 = vmatpush2.bf16.msra.mxu0 %v5650_v28  ;;  %v3617_v28 = vadd.f32 %v3616_v42, %v3574_v13  ;;  %v5704_v42 = vld [vmem:[%s5966_s24 + $0xcc8] ss:$16 sps:$4 sm:$0xff]   ;;  %v5727_v13 = vld [vmem:[%s5966_s24 + $0xe6c] ss:$16 sps:$4 sm:$0xff]  }
 0x1d8   : > { %4027 = vmatpush2.bf16.msra.mxu1 %v5653_v63  ;;  %3985 = vmatprep.subr.bf16.mxu0 %v5658_v3  ;;  %v3658_v63 = vadd.f32 %v3657_v55, %v3615_v15  ;;  %v5722_v15 = vld [vmem:[%s5966_s24 + $0xc68] ss:$16 sps:$4 sm:$0xff]   ;;  %v5745_v0 = vld [vmem:[%s5966_s24 + $0xe0c] ss:$16 sps:$4 sm:$0xff]  }
 0x1d9   : > { %4028 = vmatprep.subr.bf16.mxu1 %v5661_v4  ;;  %v3660_v3 = vadd.f32 %v3659_v7, %v3617_v28  ;;  %v3663_v4 = vpop.f32.mrf.mxu0  ;;  %v280_v7 = vld [vmem:[#allocation2 + $0x20] sm:$0xff]  ;;  %v5737_v28 = vld [vmem:[%s5966_s24 + $0xe28] ss:$16 sps:$4 sm:$0xff]  }
 0x1da   : > { %v3701_v6 = vadd.f32 %v3700_v50, %v3658_v63  ;;  %v5713_v50 = vld [vmem:[%s5966_s24 + $0xea8] ss:$16 sps:$4 sm:$0xff]   ;;  %v5742_v63 = vld [vmem:[%s5966_s24 + $0xc0c] ss:$16 sps:$4 sm:$0xff]  }
 0x1db   : > { %3986 = vmatpush2.bf16.msra.mxu0 %v5656_v30  ;;  %v5701_v30 = vld [vmem:[%s5966_s24 + $0xee8] ss:$16 sps:$4 sm:$0xff]  }
 0x1dc   : > { %4029 = vmatpush2.bf16.msra.mxu1 %v5659_v31  ;;  %3987 = vmatprep.subr.bf16.mxu0 %v5664_v33  ;;  %v3621_v31 = vadd.f32 %v3620_v38, %v3578_v20  ;;  %v5706_v33 = vld [vmem:[%s5966_s24 + $0xccc] ss:$16 sps:$4 sm:$0xff]   ;;  %v5731_v20 = vld [vmem:[%s5966_s24 + $0xe48] ss:$16 sps:$4 sm:$0xff]  }
 0x1dd   : > { %4030 = vmatprep.subr.bf16.mxu1 %v5667_v34  ;;  %v5709_v34 = vld [vmem:[%s5966_s24 + $0xecc] ss:$16 sps:$4 sm:$0xff]  }
 0x1df   : > { %3988 = vmatpush2.bf16.msra.mxu0 %v5662_v35  ;;  %v3664_v35 = vadd.f32 %v3663_v4, %v3621_v31  ;;  %v5743_v4 = vld [vmem:[%s5966_s24 + $0xe08] ss:$16 sps:$4 sm:$0xff]  }
 0x1e0   : > { %4031 = vmatpush2.bf16.msra.mxu1 %v5665_v36  ;;  %3989 = vmatprep.subr.bf16.mxu0 %v5670_v39  ;;  %v5746_v31 = vld [vmem:[%s5966_s24 + $0xde8] ss:$16 sps:$4 sm:$0xff]  }
 0x1e1   : > { %4032 = vmatprep.subr.bf16.mxu1 %v5673_v40  ;;  %v3703_v40 = vadd.f32 %v3702_v9, %v3660_v3  ;;  %v5740_v3 = vld [vmem:[%s5966_s24 + $0xc08] ss:$16 sps:$4 sm:$0xff]  }
 0x1e3   : > { %3990 = vmatpush2.bf16.msra.mxu0 %v5668_v25  ;;  %v5707_v25 = vld [vmem:[%s5966_s24 + $0xec8] ss:$16 sps:$4 sm:$0xff]  }
 0x1e4   : > { %4033 = vmatpush2.bf16.msra.mxu1 %v5671_v26  ;;  %3991 = vmatprep.subr.bf16.mxu0 %v5676_v43  ;;  %v275_v26 = vld [vmem:[#allocation2 + $0x30] sm:$0xff] }
 0x1e5   : > { %4034 = vmatprep.subr.bf16.mxu1 %v5679_v44 }
 0x1e7   : > { %3992 = vmatpush2.bf16.msra.mxu0 %v5674_v60  ;;  %v3705_v60 = vadd.f32 %v3704_v23, %v3662_v8  ;;  %v5736_v23 = vld [vmem:[%s5966_s24 + $0xc2c] ss:$16 sps:$4 sm:$0xff]   ;;  %v5755_v8 = vld [vmem:[%s5966_s24 + $0xfc8] ss:$16 sps:$4 sm:$0xff]  }
 0x1e8   : > { %4035 = vmatpush2.bf16.msra.mxu1 %v5677_v51  ;;  %3993 = vmatprep.subr.bf16.mxu0 %v5682_v53  ;;  %v276_v53 = vld [vmem:[#allocation2] sm:$0xff] }
 0x1e9   : > { %4036 = vmatprep.subr.bf16.mxu1 %v5685_v54 }
 0x1eb   : > { %3994 = vmatpush2.bf16.msra.mxu0 %v5680_v56 }
 0x1ec   : > { %4037 = vmatpush2.bf16.msra.mxu1 %v5683_v57  ;;  %3995 = vmatprep.subr.bf16.mxu0 %v5688_v52  ;;  %v5710_v57 = vld [vmem:[%s5966_s24 + $0xca8] ss:$16 sps:$4 sm:$0xff]  }
 0x1ed   : > { %4038 = vmatprep.subr.bf16.mxu1 %v5691_v59  ;;  %v279_v52 = vld [vmem:[#allocation2 + $0x8] sm:$0xff] }
 0x1ef   : > { %3996 = vmatpush2.bf16.msra.mxu0 %v5686_v47 }
 0x1f0   : > { %4039 = vmatpush2.bf16.msra.mxu1 %v5689_v48  ;;  %3997 = vmatprep.subr.bf16.mxu0 %v5694_v10  ;;  %v5716_v10 = vld [vmem:[%s5966_s24 + $0xc88] ss:$16 sps:$4 sm:$0xff]  }
 0x1f1   : > { %4040 = vmatprep.subr.bf16.mxu1 %v5697_v12  ;;  %v5719_v12 = vld [vmem:[%s5966_s24 + $0xe88] ss:$16 sps:$4 sm:$0xff]  }
 0x1f3   : > { %3998 = vmatpush2.bf16.msra.mxu0 %v5692_v18  ;;  %v5733_v18 = vld [vmem:[%s5966_s24 + $0xe4c] ss:$16 sps:$4 sm:$0xff]  }
 0x1f4   : > { %4041 = vmatpush2.bf16.msra.mxu1 %v5695_v19  ;;  %4053 = vmatprep.subr.bf16.mxu0 %v5700_v24  ;;  %v5728_v19 = vld [vmem:[%s5966_s24 + $0xc48] ss:$16 sps:$4 sm:$0xff]   ;;  %v5739_v24 = vld [vmem:[%s5966_s24 + $0xe2c] ss:$16 sps:$4 sm:$0xff]  }
 0x1f5   : > { %4096 = vmatprep.subr.bf16.mxu1 %v5703_v27  ;;  %v5734_v27 = vld [vmem:[%s5966_s24 + $0xc28] ss:$16 sps:$4 sm:$0xff]  }
 0x1f6   : > { %v3743_v36 = vpop.f32.mrf.mxu0  ;;  %4000 = vmatmul.mubr.bf16.vlgmr.msra.gmra.mxu0 %v6250_v1 }
 0x1f7   : > { %v3786_v39 = vpop.f32.mrf.mxu1  ;;  %4043 = vmatmul.mubr.bf16.vlgmr.msra.gmra.mxu1 %v6254_v2  ;;  %v3744_v41 = vadd.f32 %v3743_v36, %v3701_v6  ;;  %4054 = vmatpush1.bf16.msra.mxu0 %v5698_v29  ;;  %v3707_v2 = vadd.f32 %v3706_v32, %v3664_v35  ;;  %v5748_v29 = vld [vmem:[%s5966_s24 + $0xdec] ss:$16 sps:$4 sm:$0xff]   ;;  %v5749_v32 = vld [vmem:[%s5966_s24 + $0xfe8] ss:$16 sps:$4 sm:$0xff]  }
 0x1f8   : > { %4097 = vmatpush1.bf16.msra.mxu1 %v5701_v30  ;;  %v3745_v43 = vpop.f32.mrf.mxu0  ;;  %4055 = vmatprep.subr.bf16.mxu0 %v5706_v33  ;;  %v5751_v30 = vld [vmem:[%s5966_s24 + $0xfec] ss:$16 sps:$4 sm:$0xff]   ;;  %v5752_v6 = vld [vmem:[%s5966_s24 + $0xdc8] ss:$16 sps:$4 sm:$0xff]  }
 0x1f9   : > { %v3788_v44 = vpop.f32.mrf.mxu1  ;;  %4098 = vmatprep.subr.bf16.mxu1 %v5709_v34  ;;  %v3787_v51 = vadd.f32 %v3786_v39, %v3744_v41  ;;  %v3746_v1 = vadd.f32 %v3745_v43, %v3703_v40  ;;  %4085 = vmatprep.mubr.bf16.mxu0 %v6266_v45  ;;  %v5718_v45 = vld [vmem:[%s5966_s24 + $0xc8c] ss:$16 sps:$4 sm:$0xff]   ;;  %v5758_v39 = vld [vmem:[%s5966_s24 + $0xda8] ss:$16 sps:$4 sm:$0xff]  }
 0x1fa   : > { %4128 = vmatprep.mubr.bf16.mxu1 %v6270_v46  ;;  %v3747_v54 = vpop.f32.mrf.mxu0  ;;  %v5721_v46 = vld [vmem:[%s5966_s24 + $0xe8c] ss:$16 sps:$4 sm:$0xff]   ;;  %v5761_v40 = vld [vmem:[%s5966_s24 + $0xfa8] ss:$16 sps:$4 sm:$0xff]  }
 0x1fb   : > { %v3790_v37 = vpop.f32.mrf.mxu1  ;;  %v4139_v38 = vadd.f32 %v3787_v51, %v275_v26  ;;  %v3789_v55 = vadd.f32 %v3788_v44, %v3746_v1  ;;  %v3748_v56 = vadd.f32 %v3747_v54, %v3705_v60  ;;  %4056 = vmatpush1.bf16.msra.mxu0 %v5704_v42  ;;  %v5754_v33 = vld [vmem:[%s5966_s24 + $0xdcc] ss:$16 sps:$4 sm:$0xff]   ;;  %v5767_v26 = vld [vmem:[%s5966_s24 + $0xf88] ss:$16 sps:$4 sm:$0xff]  }
 0x1fc   : > { %4099 = vmatpush1.bf16.msra.mxu1 %v5707_v25  ;;  %v3749_v59 = vpop.f32.mrf.mxu0  ;;  %4057 = vmatprep.subr.bf16.mxu0 %v5712_v49  ;;  %v5757_v34 = vld [vmem:[%s5966_s24 + $0xfcc] ss:$16 sps:$4 sm:$0xff]   ;;  %v5764_v25 = vld [vmem:[%s5966_s24 + $0xd88] ss:$16 sps:$4 sm:$0xff]  }
 0x1fd   : > { %4100 = vmatprep.subr.bf16.mxu1 %v5715_v58  ;;  %4147 = vst [vmem:[#allocation2 + $0x30] sm:$0xff] %v4139_v38  ;;  %v4140_v61 = vadd.f32 %v3789_v55, %v276_v53  ;;  %v3791_v62 = vadd.f32 %v3790_v37, %v3748_v56  ;;  %v3750_v5 = vadd.f32 %v3749_v59, %v3707_v2  ;;  %v3792_v47 = vpop.f32.mrf.mxu1  ;;  %v5760_v35 = vld [vmem:[%s5966_s24 + $0xdac] ss:$16 sps:$4 sm:$0xff]   ;;  %v5770_v49 = vld [vmem:[%s5966_s24 + $0xd68] ss:$16 sps:$4 sm:$0xff]  }
 0x1fe   : > { %v5763_v36 = vld [vmem:[%s5966_s24 + $0xfac] ss:$16 sps:$4 sm:$0xff]   ;;  %v5773_v58 = vld [vmem:[%s5966_s24 + $0xf68] ss:$16 sps:$4 sm:$0xff]  }
 0x1ff   : > { %4148 = vst [vmem:[#allocation2] sm:$0xff] %v4140_v61  ;;  %v4143_v48 = vadd.f32 %v3791_v62, %v279_v52  ;;  %v3793_v9 = vadd.f32 %v3792_v47, %v3750_v5  ;;  %4058 = vmatpush1.bf16.msra.mxu0 %v5710_v57  ;;  %v5766_v41 = vld [vmem:[%s5966_s24 + $0xd8c] ss:$16 sps:$4 sm:$0xff]   ;;  %v5776_v1 = vld [vmem:[%s5966_s24 + $0xd48] ss:$16 sps:$4 sm:$0xff]  }
 0x200   : > { %4101 = vmatpush1.bf16.msra.mxu1 %v5713_v50  ;;  %4059 = vmatprep.subr.bf16.mxu0 %v5718_v45  ;;  %v5769_v42 = vld [vmem:[%s5966_s24 + $0xf8c] ss:$16 sps:$4 sm:$0xff]   ;;  %v5779_v2 = vld [vmem:[%s5966_s24 + $0xf48] ss:$16 sps:$4 sm:$0xff]  }
 0x201   : > { %4102 = vmatprep.subr.bf16.mxu1 %v5721_v46  ;;  %4151 = vst [vmem:[#allocation2 + $0x8] sm:$0xff] %v4143_v48  ;;  %v4144_v14 = vadd.f32 %v3793_v9, %v280_v7  ;;  %v5772_v43 = vld [vmem:[%s5966_s24 + $0xd6c] ss:$16 sps:$4 sm:$0xff]   ;;  %v5782_v37 = vld [vmem:[%s5966_s24 + $0xd28] ss:$16 sps:$4 sm:$0xff]  }
 0x202   : > { %v5775_v44 = vld [vmem:[%s5966_s24 + $0xf6c] ss:$16 sps:$4 sm:$0xff]   ;;  %v5785_v38 = vld [vmem:[%s5966_s24 + $0xf28] ss:$16 sps:$4 sm:$0xff]  }
 0x203   : > { %4152 = vst [vmem:[#allocation2 + $0x20] sm:$0xff] %v4144_v14  ;;  %4060 = vmatpush1.bf16.msra.mxu0 %v5716_v10  ;;  %v5778_v60 = vld [vmem:[%s5966_s24 + $0xd4c] ss:$16 sps:$4 sm:$0xff]   ;;  %v5788_v57 = vld [vmem:[%s5966_s24 + $0xd08] ss:$16 sps:$4 sm:$0xff]  }
 0x204   : > { %4103 = vmatpush1.bf16.msra.mxu1 %v5719_v12  ;;  %4061 = vmatprep.subr.bf16.mxu0 %v5724_v11  ;;  %v5781_v51 = vld [vmem:[%s5966_s24 + $0xf4c] ss:$16 sps:$4 sm:$0xff]   ;;  %v5791_v50 = vld [vmem:[%s5966_s24 + $0xf08] ss:$16 sps:$4 sm:$0xff]  }
 0x205   : > { %4104 = vmatprep.subr.bf16.mxu1 %v5727_v13  ;;  %v5784_v53 = vld [vmem:[%s5966_s24 + $0xd2c] ss:$16 sps:$4 sm:$0xff]  }
 0x206   : > { %v5787_v54 = vld [vmem:[%s5966_s24 + $0xf2c] ss:$16 sps:$4 sm:$0xff]  }
 0x207   : > { %4062 = vmatpush1.bf16.msra.mxu0 %v5722_v15  ;;  %v5790_v55 = vld [vmem:[%s5966_s24 + $0xd0c] ss:$16 sps:$4 sm:$0xff]  }
 0x208   : > { %4105 = vmatpush1.bf16.msra.mxu1 %v5725_v16  ;;  %4063 = vmatprep.subr.bf16.mxu0 %v5730_v17  ;;  %v5793_v56 = vld [vmem:[%s5966_s24 + $0xf0c] ss:$16 sps:$4 sm:$0xff]  }
 0x209   : > { %4106 = vmatprep.subr.bf16.mxu1 %v5733_v18 }
 0x20b   : > { %4064 = vmatpush1.bf16.msra.mxu0 %v5728_v19 }
 0x20c   : > { %4107 = vmatpush1.bf16.msra.mxu1 %v5731_v20  ;;  %4065 = vmatprep.subr.bf16.mxu0 %v5736_v23 }
 0x20d   : > { %4108 = vmatprep.subr.bf16.mxu1 %v5739_v24 }
 0x20f   : > { %4066 = vmatpush1.bf16.msra.mxu0 %v5734_v27 }
 0x210   : > { %4109 = vmatpush1.bf16.msra.mxu1 %v5737_v28  ;;  %4067 = vmatprep.subr.bf16.mxu0 %v5742_v63 }
 0x211   : > { %4110 = vmatprep.subr.bf16.mxu1 %v5745_v0 }
 0x213   : > { %4068 = vmatpush1.bf16.msra.mxu0 %v5740_v3 }
 0x214   : > { %4111 = vmatpush1.bf16.msra.mxu1 %v5743_v4  ;;  %4069 = vmatprep.subr.bf16.mxu0 %v5748_v29 }
 0x215   : > { %4112 = vmatprep.subr.bf16.mxu1 %v5751_v30 }
 0x217   : > { %4070 = vmatpush2.bf16.msra.mxu0 %v5746_v31 }
 0x218   : > { %4113 = vmatpush2.bf16.msra.mxu1 %v5749_v32  ;;  %4071 = vmatprep.subr.bf16.mxu0 %v5754_v33 }
 0x219   : > { %4114 = vmatprep.subr.bf16.mxu1 %v5757_v34 }
 0x21b   : > { %4072 = vmatpush2.bf16.msra.mxu0 %v5752_v6 }
 0x21c   : > { %4115 = vmatpush2.bf16.msra.mxu1 %v5755_v8  ;;  %4073 = vmatprep.subr.bf16.mxu0 %v5760_v35 }
 0x21d   : > { %4116 = vmatprep.subr.bf16.mxu1 %v5763_v36 }
 0x21f   : > { %4074 = vmatpush2.bf16.msra.mxu0 %v5758_v39 }
 0x220   : > { %4117 = vmatpush2.bf16.msra.mxu1 %v5761_v40  ;;  %4075 = vmatprep.subr.bf16.mxu0 %v5766_v41 }
 0x221   : > { %4118 = vmatprep.subr.bf16.mxu1 %v5769_v42  ;;  %v277_v42 = vld [vmem:[#allocation2 + $0x18] sm:$0xff] }
 0x223   : > { %4076 = vmatpush2.bf16.msra.mxu0 %v5764_v25 }
 0x224   : > { %4119 = vmatpush2.bf16.msra.mxu1 %v5767_v26  ;;  %4077 = vmatprep.subr.bf16.mxu0 %v5772_v43 }
 0x225   : > { %4120 = vmatprep.subr.bf16.mxu1 %v5775_v44 }
 0x227   : > { %4078 = vmatpush2.bf16.msra.mxu0 %v5770_v49 }
 0x228   : > { %4121 = vmatpush2.bf16.msra.mxu1 %v5773_v58  ;;  %4079 = vmatprep.subr.bf16.mxu0 %v5778_v60  ;;  %v278_v58 = vld [vmem:[#allocation2 + $0x10] sm:$0xff] }
 0x229   : > { %4122 = vmatprep.subr.bf16.mxu1 %v5781_v51 }
 0x22b   : > { %4080 = vmatpush2.bf16.msra.mxu0 %v5776_v1 }
 0x22c   : > { %4123 = vmatpush2.bf16.msra.mxu1 %v5779_v2  ;;  %4081 = vmatprep.subr.bf16.mxu0 %v5784_v53 }
 0x22d   : > { %4124 = vmatprep.subr.bf16.mxu1 %v5787_v54 }
 0x22f   : > { %4082 = vmatpush2.bf16.msra.mxu0 %v5782_v37  ;;  %v281_v37 = vld [vmem:[#allocation2 + $0x28] sm:$0xff] }
 0x230   : > { %4125 = vmatpush2.bf16.msra.mxu1 %v5785_v38  ;;  %4083 = vmatprep.subr.bf16.mxu0 %v5790_v55 }
 0x231   : > { %4126 = vmatprep.subr.bf16.mxu1 %v5793_v56 }
 0x233   : > { %4084 = vmatpush2.bf16.msra.mxu0 %v5788_v57 }
 0x234   : > { %4127 = vmatpush2.bf16.msra.mxu1 %v5791_v50  ;;  %v282_v50 = vld [vmem:[#allocation2 + $0x38] sm:$0xff] }
 0x236   : > { %4086 = vmatmul.mubr.bf16.vlgmr.msra.gmra.mxu0 %v6338_v21  ;;  %v3829_v52 = vpop.f32.mrf.mxu0 }
 0x237   : > { %4129 = vmatmul.mubr.bf16.vlgmr.msra.gmra.mxu1 %v6342_v22  ;;  %v3872_v59 = vpop.f32.mrf.mxu1 }
 0x238   : > { %v3831_v45 = vpop.f32.mrf.mxu0  ;;  %v3873_v16 = vadd.f32 %v3872_v59, %v3829_v52 }
 0x239   : > { %v3874_v46 = vpop.f32.mrf.mxu1 }
 0x23a   : > { %v3833_v61 = vpop.f32.mrf.mxu0  ;;  %v3875_v22 = vadd.f32 %v3874_v46, %v3831_v45 }
 0x23b   : > { %v3876_v62 = vpop.f32.mrf.mxu1 }
 0x23c   : > { %v3835_v5 = vpop.f32.mrf.mxu0  ;;  %v3877_v20 = vadd.f32 %v3876_v62, %v3833_v61 }
 0x23d   : > { %v3878_v7 = vpop.f32.mrf.mxu1 }
 0x23e   : > { %v3879_v24 = vadd.f32 %v3878_v7, %v3835_v5 }
 0x276   : > { %v3915_v47 = vpop.f32.mrf.mxu0 }
 0x277   : > { %v3958_v48 = vpop.f32.mrf.mxu1  ;;  %v3916_v17 = vadd.f32 %v3915_v47, %v3873_v16 }
 0x278   : > { %v3917_v9 = vpop.f32.mrf.mxu0 }
 0x279   : > { %v3960_v10 = vpop.f32.mrf.mxu1  ;;  %v3918_v23 = vadd.f32 %v3917_v9, %v3875_v22  ;;  %v3959_v27 = vadd.f32 %v3958_v48, %v3916_v17 }
 0x27a   : > { %v3919_v12 = vpop.f32.mrf.mxu0 }
 0x27b   : > { %v3962_v11 = vpop.f32.mrf.mxu1  ;;  %v3920_v28 = vadd.f32 %v3919_v12, %v3877_v20  ;;  %v3961_v3 = vadd.f32 %v3960_v10, %v3918_v23 }
 0x27c   : > { %v3921_v13 = vpop.f32.mrf.mxu0 }
 0x27d   : > { %v3964_v14 = vpop.f32.mrf.mxu1  ;;  %v3922_v4 = vadd.f32 %v3921_v13, %v3879_v24  ;;  %v3963_v30 = vadd.f32 %v3962_v11, %v3920_v28 }
 0x27f   : > { %v3965_v34 = vadd.f32 %v3964_v14, %v3922_v4 }
 0x2b6   : > { %v4001_v15 = vpop.f32.mrf.mxu0 }
 0x2b7   : > { %v4044_v21 = vpop.f32.mrf.mxu1  ;;  %v4002_v29 = vadd.f32 %v4001_v15, %v3959_v27 }
 0x2b8   : > { %v4003_v18 = vpop.f32.mrf.mxu0 }
 0x2b9   : > { %v4046_v19 = vpop.f32.mrf.mxu1  ;;  %v4004_v31 = vadd.f32 %v4003_v18, %v3961_v3  ;;  %v4045_v6 = vadd.f32 %v4044_v21, %v4002_v29 }
 0x2ba   : > { %v4005_v63 = vpop.f32.mrf.mxu0 }
 0x2bb   : > { %v4048_v0 = vpop.f32.mrf.mxu1  ;;  %v4006_v8 = vadd.f32 %v4005_v63, %v3963_v30  ;;  %v4047_v39 = vadd.f32 %v4046_v19, %v4004_v31 }
 0x2bc   : > { %v4007_v32 = vpop.f32.mrf.mxu0 }
 0x2bd   : > { %v4050_v33 = vpop.f32.mrf.mxu1  ;;  %v4008_v40 = vadd.f32 %v4007_v32, %v3965_v34  ;;  %v4049_v43 = vadd.f32 %v4048_v0, %v4006_v8 }
 0x2bf   : > { %v4051_v1 = vadd.f32 %v4050_v33, %v4008_v40 }
 0x2f6   : > { %v4087_v35 = vpop.f32.mrf.mxu0 }
 0x2f7   : > { %v4130_v36 = vpop.f32.mrf.mxu1  ;;  %v4088_v41 = vadd.f32 %v4087_v35, %v4045_v6 }
 0x2f8   : > { %v4089_v25 = vpop.f32.mrf.mxu0 }
 0x2f9   : > { %v4132_v26 = vpop.f32.mrf.mxu1  ;;  %v4131_v44 = vadd.f32 %v4130_v36, %v4088_v41  ;;  %v4090_v49 = vadd.f32 %v4089_v25, %v4047_v39 }
 0x2fa   : > { %v4091_v60 = vpop.f32.mrf.mxu0 }
 0x2fb   : > { %v4134_v51 = vpop.f32.mrf.mxu1  ;;  %v4141_v2 = vadd.f32 %v4131_v44, %v277_v42  ;;  %v4133_v53 = vadd.f32 %v4132_v26, %v4090_v49  ;;  %v4092_v54 = vadd.f32 %v4091_v60, %v4049_v43 }
 0x2fc   : > { %v4093_v38 = vpop.f32.mrf.mxu0 }
 0x2fd   : > { %4149 = vst [vmem:[#allocation2 + $0x18] sm:$0xff] %v4141_v2  ;;  %v4142_v55 = vadd.f32 %v4133_v53, %v278_v58  ;;  %v4135_v56 = vadd.f32 %v4134_v51, %v4092_v54  ;;  %v4094_v57 = vadd.f32 %v4093_v38, %v4051_v1  ;;  %v4136_v52 = vpop.f32.mrf.mxu1 }
 0x2ff   : > { %4150 = vst [vmem:[#allocation2 + $0x10] sm:$0xff] %v4142_v55  ;;  %v4145_v59 = vadd.f32 %v4135_v56, %v281_v37  ;;  %v4137_v45 = vadd.f32 %v4136_v52, %v4094_v57  ;;  %4158 = sbr.rel (%p4964_p13) target bundleno = 830 (0x33e), region = 63 }
 0x301   : > { %4153 = vst [vmem:[#allocation2 + $0x28] sm:$0xff] %v4145_v59  ;;  %v4146_v46 = vadd.f32 %v4137_v45, %v282_v50 }
 0x303   : > { %4154 = vst [vmem:[#allocation2 + $0x38] sm:$0xff] %v4146_v46 }
 0x304   : > { %v4169_v61 = vlaneseq  ;;  %v4167_v5 = vld [vmem:[%s6720_s2] sm:$0xf]  ;;  %v4159_v7 = vld [vmem:[#allocation2 + $0x30] sm:$0xff]  ;;  %v4163_v47 = vld [vmem:[#allocation2 + $0x8] sm:$0xff] }
 0x305   : > { %v4160_v11 = vld [vmem:[#allocation2] sm:$0xff]  ;;  %v4161_v14 = vld [vmem:[#allocation2 + $0x18] sm:$0xff] }
 0x306   : > { %v4170_v62 = vshrl.u32 %v4169_v61, 7  ;;  %v4164_v13 = vld [vmem:[#allocation2 + $0x20] sm:$0xff]  ;;  %v4162_v17 = vld [vmem:[#allocation2 + $0x10] sm:$0xff] }
 0x308   : > { %v4171_v48 = vsub.s32 0, %v4170_v62  ;;  %v4175_v9 = vsub.s32 1, %v4170_v62  ;;  %v4179_v10 = vsub.s32 2, %v4170_v62  ;;  %v4183_v12 = vsub.s32 3, %v4170_v62  ;;  %v4165_v16 = vld [vmem:[#allocation2 + $0x28] sm:$0xff] }
 0x30a   : > { %v4172_v15 = vrot.slane %v4167_v5, %v4171_v48  ;;  %v4176_v21 = vrot.slane %v4167_v5, %v4175_v9  ;;  %v4180_v22 = vrot.slane %v4167_v5, %v4179_v10  ;;  %v4166_v18 = vld [vmem:[#allocation2 + $0x38] sm:$0xff]  ;;  %v4184_v19 = vrot.slane %v4167_v5, %v4183_v12 }
 0x30c   : > { %v6641_v20 = vadd.f32 %v4172_v15, %v4159_v7  ;;  %v6643_v23 = vadd.f32 %v4172_v15, %v4163_v47  ;;  %v6645_v24 = vadd.f32 %v4176_v21, %v4160_v11  ;;  %v6647_v27 = vadd.f32 %v4176_v21, %v4164_v13 }
 0x30d   : > { %v6649_v28 = vadd.f32 %v4180_v22, %v4161_v14  ;;  %v6651_v63 = vadd.f32 %v4180_v22, %v4165_v16  ;;  %v6653_v0 = vadd.f32 %v4184_v19, %v4162_v17  ;;  %v6655_v3 = vadd.f32 %v4184_v19, %v4166_v18 }
 0x30e   : > { %v4197_v4 = vadd.f32 %v6643_v23, %v6641_v20  ;;  %v4225_v29 = vmul.f32 %v6641_v20, %v6641_v20  ;;  %v4229_v30 = vmul.f32 %v6643_v23, %v6643_v23  ;;  %v4204_v31 = vadd.f32 %v6647_v27, %v6645_v24 }
 0x30f   : > { %v4226_v32 = vmul.f32 %v6645_v24, %v6645_v24  ;;  %v4230_v33 = vmul.f32 %v6647_v27, %v6647_v27  ;;  %v4211_v34 = vadd.f32 %v6651_v63, %v6649_v28  ;;  %v4227_v6 = vmul.f32 %v6649_v28, %v6649_v28 }
 0x310   : > { %v4198_v8 = vrot.slane %v4197_v4, 4  ;;  %v4233_v35 = vadd.f32 %v4229_v30, %v4225_v29  ;;  %v4205_v36 = vrot.slane %v4204_v31, 4  ;;  %v4231_v39 = vmul.f32 %v6651_v63, %v6651_v63 }
 0x311   : > { %v4240_v40 = vadd.f32 %v4230_v33, %v4226_v32  ;;  %v4212_v41 = vrot.slane %v4211_v34, 4  ;;  %v4218_v42 = vadd.f32 %v6655_v3, %v6653_v0  ;;  %v4228_v25 = vmul.f32 %v6653_v0, %v6653_v0 }
 0x312   : > { %v4199_v26 = vadd.f32 %v4198_v8, %v4197_v4  ;;  %v4234_v43 = vrot.slane %v4233_v35, 4  ;;  %v4206_v44 = vadd.f32 %v4205_v36, %v4204_v31  ;;  %v4247_v49 = vadd.f32 %v4231_v39, %v4227_v6 }
 0x313   : > { %v4241_v58 = vrot.slane %v4240_v40, 4  ;;  %v4213_v60 = vadd.f32 %v4212_v41, %v4211_v34  ;;  %v4219_v51 = vrot.slane %v4218_v42, 4  ;;  %v4232_v1 = vmul.f32 %v6655_v3, %v6655_v3 }
 0x314   : > { %v4200_v2 = vrot.slane %v4199_v26, 2  ;;  %v4235_v53 = vadd.f32 %v4234_v43, %v4233_v35  ;;  %v4207_v54 = vrot.slane %v4206_v44, 2  ;;  %v4248_v37 = vrot.slane %v4247_v49, 4 }
 0x315   : > { %v4242_v38 = vadd.f32 %v4241_v58, %v4240_v40  ;;  %v4214_v55 = vrot.slane %v4213_v60, 2  ;;  %v4220_v56 = vadd.f32 %v4219_v51, %v4218_v42  ;;  %v4254_v57 = vadd.f32 %v4232_v1, %v4228_v25 }
 0x316   : > { %v4201_v50 = vadd.f32 %v4200_v2, %v4199_v26  ;;  %v4236_v52 = vrot.slane %v4235_v53, 2  ;;  %v4208_v59 = vadd.f32 %v4207_v54, %v4206_v44  ;;  %v4249_v45 = vadd.f32 %v4248_v37, %v4247_v49 }
 0x317   : > { %v4243_v46 = vrot.slane %v4242_v38, 2  ;;  %v4215_v61 = vadd.f32 %v4214_v55, %v4213_v60  ;;  %v4221_v62 = vrot.slane %v4220_v56, 2  ;;  %v4255_v5 = vrot.slane %v4254_v57, 4 }
 0x318   : > { %v4202_v7 = vrot.slane %v4201_v50, 1  ;;  %v4237_v47 = vadd.f32 %v4236_v52, %v4235_v53  ;;  %v4209_v48 = vrot.slane %v4208_v59, 1  ;;  %v4250_v9 = vrot.slane %v4249_v45, 2 }
 0x319   : > { %v4244_v10 = vadd.f32 %v4243_v46, %v4242_v38  ;;  %v4216_v12 = vrot.slane %v4215_v61, 1  ;;  %v4222_v11 = vadd.f32 %v4221_v62, %v4220_v56  ;;  %v4256_v13 = vadd.f32 %v4255_v5, %v4254_v57 }
 0x31a   : > { %v4203_v14 = vadd.f32 %v4202_v7, %v4201_v50  ;;  %v4238_v15 = vrot.slane %v4237_v47, 1  ;;  %v4210_v21 = vadd.f32 %v4209_v48, %v4208_v59  ;;  %v4251_v16 = vadd.f32 %v4250_v9, %v4249_v45 }
 0x31b   : > { %v4245_v22 = vrot.slane %v4244_v10, 1  ;;  %v4217_v17 = vadd.f32 %v4216_v12, %v4215_v61  ;;  %v4223_v18 = vrot.slane %v4222_v11, 1  ;;  %v4257_v19 = vrot.slane %v4256_v13, 2 }
 0x31c   : > { %v4239_v4 = vadd.f32 %v4238_v15, %v4237_v47  ;;  %v4261_v29 = vmul.f32 0.0625, %v4203_v14  ;;  %v4262_v30 = vmul.f32 0.0625, %v4210_v21  ;;  %v4252_v31 = vrot.slane %v4251_v16, 1 }
 0x31d   : > { %v4246_v32 = vadd.f32 %v4245_v22, %v4244_v10  ;;  %v4263_v33 = vmul.f32 0.0625, %v4217_v17  ;;  %v4224_v34 = vadd.f32 %v4223_v18, %v4222_v11  ;;  %v4258_v6 = vadd.f32 %v4257_v19, %v4256_v13 }
 0x31e   : > { %v4265_v8 = vmul.f32 0.0625, %v4239_v4  ;;  %v4269_v35 = vmul.f32 %v4261_v29, %v4261_v29  ;;  %v4270_v36 = vmul.f32 %v4262_v30, %v4262_v30  ;;  %v4253_v40 = vadd.f32 %v4252_v31, %v4251_v16 }
 0x31f   : > { %v4266_v39 = vmul.f32 0.0625, %v4246_v32  ;;  %v4271_v41 = vmul.f32 %v4263_v33, %v4263_v33  ;;  %v4259_v25 = vrot.slane %v4258_v6, 1  ;;  %v4264_v26 = vmul.f32 0.0625, %v4224_v34 }
 0x320   : > { %v4273_v42 = vsub.f32 %v4265_v8, %v4269_v35  ;;  %v4267_v44 = vmul.f32 0.0625, %v4253_v40  ;;  %v4277_v38 = vsub.f32 %v6641_v20, %v4261_v29  ;;  %v4281_v55 = vsub.f32 %v6643_v23, %v4261_v29 }
 0x321   : > { %v4274_v43 = vsub.f32 %v4266_v39, %v4270_v36  ;;  %v4260_v58 = vadd.f32 %v4259_v25, %v4258_v6  ;;  %v4272_v60 = vmul.f32 %v4264_v26, %v4264_v26  ;;  %v4278_v56 = vsub.f32 %v6645_v24, %v4262_v30 }
 0x322   : > { %v4285_v49 = vadd.f32 1e-05, %v4273_v42  ;;  %v4275_v1 = vsub.f32 %v4267_v44, %v4271_v41  ;;  %v4282_v57 = vsub.f32 %v6647_v27, %v4262_v30  ;;  %v4279_v52 = vsub.f32 %v6649_v28, %v4263_v33 }
 0x323   : > { %v4286_v51 = vadd.f32 1e-05, %v4274_v43  ;;  %v4268_v2 = vmul.f32 0.0625, %v4260_v58  ;;  %v4283_v61 = vsub.f32 %v6651_v63, %v4263_v33  ;;  %v4280_v5 = vsub.f32 %v6653_v0, %v4264_v26 }
 0x324   : > { %5794 = vrsqrt.f32 %v4285_v49  ;;  %v4287_v53 = vadd.f32 1e-05, %v4275_v1  ;;  %v4284_v20 = vsub.f32 %v6655_v3, %v4264_v26 }
 0x325   : > { %5796 = vrsqrt.f32 %v4286_v51  ;;  %v4276_v54 = vsub.f32 %v4268_v2, %v4272_v60 }
 0x326   : > { %5798 = vrsqrt.f32 %v4287_v53 }
 0x327   : > { %v4288_v37 = vadd.f32 1e-05, %v4276_v54 }
 0x329   : > { %5800 = vrsqrt.f32 %v4288_v37 }
 0x331   : > { %v5795_v50 = vpop.eup %5794 }
 0x332   : > { %v5797_v59 = vpop.eup %5796  ;;  %v4293_v45 = vmul.f32 %v5795_v50, %v4277_v38  ;;  %v4297_v46 = vmul.f32 %v5795_v50, %v4281_v55 }
 0x333   : > { %v4294_v62 = vmul.f32 %v5797_v59, %v4278_v56  ;;  %v4298_v7 = vmul.f32 %v5797_v59, %v4282_v57  ;;  %v5799_v23 = vpop.eup %5798 }
 0x334   : > { %vm4301_vm0 = vcmp.ge.f32.partialorder %v4293_v45, 0.0  ;;  %v4309_v24 = vmul.f32 0.2, %v4293_v45  ;;  %vm4305_vm1 = vcmp.ge.f32.partialorder %v4297_v46, 0.0  ;;  %v4313_v27 = vmul.f32 0.2, %v4297_v46 }
 0x335   : > { %vm4302_vm2 = vcmp.ge.f32.partialorder %v4294_v62, 0.0  ;;  %v4310_v28 = vmul.f32 0.2, %v4294_v62  ;;  %v4295_v47 = vmul.f32 %v5799_v23, %v4279_v52  ;;  %vm4306_vm3 = vcmp.ge.f32.partialorder %v4298_v7, 0.0 }
 0x336   : > { %v4317_v48 = vsel %vm4301_vm0, %v4293_v45, %v4309_v24  ;;  %v4321_v63 = vsel %vm4305_vm1, %v4297_v46, %v4313_v27  ;;  %v4314_v9 = vmul.f32 0.2, %v4298_v7  ;;  %v4299_v0 = vmul.f32 %v5799_v23, %v4283_v61  ;;  %v5801_v10 = vpop.eup %5800 }
 0x337   : > { %4325 = vst [vmem:[%s5971_s29] sm:$0xff] %v4317_v48  ;;  %v4318_v3 = vsel %vm4302_vm2, %v4294_v62, %v4310_v28  ;;  %vm4303_vm4 = vcmp.ge.f32.partialorder %v4295_v47, 0.0  ;;  %v4311_v12 = vmul.f32 0.2, %v4295_v47  ;;  %4329 = vst [vmem:[%s5971_s29 + $0x20] sm:$0xff] %v4321_v63  ;;  %v4296_v11 = vmul.f32 %v5801_v10, %v4280_v5 }
 0x338   : > { %4326 = vst [vmem:[%s5971_s29 + $0x8] sm:$0xff] %v4318_v3  ;;  %v4322_v13 = vsel %vm4306_vm3, %v4298_v7, %v4314_v9  ;;  %vm4307_vm5 = vcmp.ge.f32.partialorder %v4299_v0, 0.0  ;;  %v4315_v14 = vmul.f32 0.2, %v4299_v0  ;;  %v4300_v21 = vmul.f32 %v5801_v10, %v4284_v20 }
 0x339   : > { %v4319_v15 = vsel %vm4303_vm4, %v4295_v47, %v4311_v12  ;;  %4330 = vst [vmem:[%s5971_s29 + $0x28] sm:$0xff] %v4322_v13  ;;  %vm4304_vm6 = vcmp.ge.f32.partialorder %v4296_v11, 0.0  ;;  %v4312_v16 = vmul.f32 0.2, %v4296_v11 }
 0x33a   : > { %4327 = vst [vmem:[%s5971_s29 + $0x10] sm:$0xff] %v4319_v15  ;;  %v4323_v22 = vsel %vm4307_vm5, %v4299_v0, %v4315_v14  ;;  %vm4308_vm7 = vcmp.ge.f32.partialorder %v4300_v21, 0.0  ;;  %v4316_v17 = vmul.f32 0.2, %v4300_v21 }
 0x33b   : > { %4331 = vst [vmem:[%s5971_s29 + $0x30] sm:$0xff] %v4323_v22  ;;  %v4320_v18 = vsel %vm4304_vm6, %v4296_v11, %v4312_v16 }
 0x33c   : > { %4328 = vst [vmem:[%s5971_s29 + $0x18] sm:$0xff] %v4320_v18  ;;  %v4324_v19 = vsel %vm4308_vm7, %v4300_v21, %v4316_v17 }
 0x33d   : > { %4332 = vst [vmem:[%s5971_s29 + $0x38] sm:$0xff] %v4324_v19 }
 0x33e PF: > { %s13_s18 = sadd.s32 1, %s5856_s18   ;;  %s6722_s12 = smov %s5836_s13 }
 0x33f   : > { %p10_p0 = scmp.ge.s32.totalorder %s13_s18, 6   ;;  %s6723_s13 = smov %s5930_s25 }
 0x340   : > { %s6724_s14 = smov %s5848_s16  ;;  %s6725_s15 = smov %s5852_s17 }
 0x341   : > { %s6726_s16 = smov %s6729_s19  ;;  %s6727_s17 = smov %s6733_s20 }
 0x342   :  { %12 = sbr.rel (!%p10_p0) target bundleno = 4 (0x4), region = 101 }

// kernel: discriminator_forward.9
= control target key start
LH: loop header
LB: loop body
LE: loop exit
PB: predicated region body
PF: predicated region fallthrough
CT: control target
= control target key end

     0   :  { %s2427_s12 = smov 0   ;;  %s2429_s13 = smov 0   ;;  %s2695_s0 = inlined_call_operand.vmem [shape: bf16[2,9,8192], index: 0, kind: input, shape index: {}]   ;;  %s2696_s1 = inlined_call_operand.vmem [shape: bf16[8192,128], index: 1, kind: input, shape index: {}]   ;;  %s2697_s2 = inlined_call_operand.vmem [shape: f32[1,128], index: 2, kind: input, shape index: {}]   ;;  %s2698_s3 = inlined_call_operand.vmem [shape: f32[2,9,128], index: 3, kind: output, shape index: {}]  }
   0x1   :  { %s2431_s14 = smov 0   ;;  %s2433_s15 = smov 0  }
   0x2   :  { %s2435_s16 = smov 0   ;;  %s2437_s17 = smov 0  }
   0x3   :  { %s2439_s18 = smov 0  }
   0x4 LB: > { %s22_s19 = sadd.s32 1, %s2396_s16  ;;  %s25_s20 = sadd.s32 1, %s2400_s17  ;;  %s2404_s18 = sphi %s2439_s18, %s13_s18   ;;  %s2400_s17 = sphi %s2437_s17, %s2704_s17   ;;  %s2396_s16 = sphi %s2435_s16, %s2703_s16   ;;  %s2392_s15 = sphi %s2433_s15, %s2702_s15   ;;  %s2388_s14 = sphi %s2431_s14, %s2701_s14   ;;  %s2384_s13 = sphi %s2429_s13, %s2700_s13   ;;  %s2380_s12 = sphi %s2427_s12, %s2699_s12  }
   0x5   : > { %p23_p0 = scmp.ge.s32.totalorder %s22_s19, 4  ;;  %p41_p1 = scmp.ne.s32.totalorder %s2384_s13, %s2380_s12 }
   0x6   : > { %p42_p2 = scmp.eq.s32.totalorder %s2404_s18, 0  ;;  %s34_s24 = sadd.s32 1, %s2384_s13 }
   0x7   : > { %s2706_s19 = smov (%p23_p0, %s22_s19), 0  ;;  %s2708_s20 = smov (!%p23_p0, %s25_s20), %s2400_s17 }
   0x8   : > { %p43_p3 = por %p42_p2, %p41_p1  ;;  %p27_p4 = scmp.ge.s32.totalorder %s2708_s20, 2 }
   0x9   : > { %s30_s21 = ssub.s32 %s2396_s16, %s2706_s19  ;;  %p1828_p6 = scmp.ge.s32.totalorder %s2404_s18, 8 }
   0xa   : > { %s2710_s20 = smov (%p27_p4, %s2708_s20), 0 }
   0xb   : > { %s29_s22 = ssub.s32 %s2400_s17, %s2710_s20  ;;  %143 = sbr.rel (%p1828_p6) target bundleno = 31 (0x1f), region = 20 }
   0xc   : > { %s31_s23 = sor.u32 %s30_s21, %s29_s22 }
   0xd   : > { %p32_p5 = scmp.eq.s32.totalorder %s31_s23, 0 }
   0xf   : > { %s2478_s25 = scalar_select %p32_p5, %s2384_s13, %s34_s24  }
  0x10   : > { %146 = sbr.rel (!%p43_p3) target bundleno = 31 (0x1f), region = 24  ;;  %s148_s26 = sand.u32 (%p43_p3), 1, %s2384_s13  }
  0x11   : > { %s1830_s27 = sshll.u32 (%p43_p3), %s2396_s16, 4  ;;  %s1829_s28 = sshll.u32 (%p43_p3), %s148_s26, 7 }
  0x12   : > { %s1831_s29 = sshll.u32 (%p43_p3), %s2400_s17, 7  ;;  %s150_s8 = scalar_lea.vmem (%p43_p3), [#allocation3], %s1829_s28 }
  0x13   : > { %s153_s30 = sadd.s32 (%p43_p3), %s1831_s29, %s1830_s27 }
  0x14   : > { %s1832_s4 = sshll.u32 (%p43_p3), %s153_s30, 2 }
  0x15   : > { %s2487_s7 = scalar_lea.vmem %s2695_s0, %s1832_s4 }
  0x16   : > { %v168_v0 = vld [vmem:[%s2487_s7] sm:$0xff]  ;;  %v170_v1 = vld [vmem:[%s2487_s7 + $0x8] sm:$0xff]  ;;  %v172_v2 = vld [vmem:[%s2487_s7 + $0x10] sm:$0xff] }
  0x17   : > { %169 = vst [vmem:[%s150_s8] sm:$0xff] %v168_v0  ;;  %171 = vst [vmem:[%s150_s8 + $0x8] sm:$0xff] %v170_v1  ;;  %v174_v3 = vld [vmem:[%s2487_s7 + $0x18] sm:$0xff]  ;;  %v176_v4 = vld [vmem:[%s2487_s7 + $0x20] sm:$0xff] }
  0x18   : > { %173 = vst [vmem:[%s150_s8 + $0x10] sm:$0xff] %v172_v2  ;;  %v178_v5 = vld [vmem:[%s2487_s7 + $0x28] sm:$0xff]  ;;  %175 = vst [vmem:[%s150_s8 + $0x18] sm:$0xff] %v174_v3  ;;  %v180_v6 = vld [vmem:[%s2487_s7 + $0x30] sm:$0xff] }
  0x19   : > { %177 = vst [vmem:[%s150_s8 + $0x20] sm:$0xff] %v176_v4  ;;  %179 = vst [vmem:[%s150_s8 + $0x28] sm:$0xff] %v178_v5  ;;  %v182_v7 = vld [vmem:[%s2487_s7 + $0x38] sm:$0xff]  ;;  %v184_v8 = vld [vmem:[%s2487_s7 + $0x100] sm:$0xff] }
  0x1a   : > { %181 = vst [vmem:[%s150_s8 + $0x30] sm:$0xff] %v180_v6  ;;  %183 = vst [vmem:[%s150_s8 + $0x38] sm:$0xff] %v182_v7  ;;  %v186_v9 = vld [vmem:[%s2487_s7 + $0x108] sm:$0xff]  ;;  %v188_v10 = vld [vmem:[%s2487_s7 + $0x110] sm:$0xff] }
  0x1b   : > { %185 = vst [vmem:[%s150_s8 + $0x40] sm:$0xff] %v184_v8  ;;  %v190_v11 = vld [vmem:[%s2487_s7 + $0x118] sm:$0xff]  ;;  %187 = vst [vmem:[%s150_s8 + $0x48] sm:$0xff] %v186_v9  ;;  %v192_v12 = vld [vmem:[%s2487_s7 + $0x120] sm:$0xff] }
  0x1c   : > { %189 = vst [vmem:[%s150_s8 + $0x50] sm:$0xff] %v188_v10  ;;  %191 = vst [vmem:[%s150_s8 + $0x58] sm:$0xff] %v190_v11  ;;  %v194_v13 = vld [vmem:[%s2487_s7 + $0x128] sm:$0xff]  ;;  %v196_v14 = vld [vmem:[%s2487_s7 + $0x130] sm:$0xff] }
  0x1d   : > { %193 = vst [vmem:[%s150_s8 + $0x60] sm:$0xff] %v192_v12  ;;  %195 = vst [vmem:[%s150_s8 + $0x68] sm:$0xff] %v194_v13  ;;  %v198_v15 = vld [vmem:[%s2487_s7 + $0x138] sm:$0xff] }
  0x1e   : > { %197 = vst [vmem:[%s150_s8 + $0x70] sm:$0xff] %v196_v14  ;;  %199 = vst [vmem:[%s150_s8 + $0x78] sm:$0xff] %v198_v15 }
  0x1f PF: > { %p1833_p7 = scmp.ge.s32.totalorder %s2404_s18, 1  ;;  %p213_p8 = scmp.lt.s32.totalorder %s2404_s18, 9 }
  0x21   : > { %p214_p9 = pnand %p1833_p7, %p213_p8 }
  0x22   : > { %s220_s9 = sand.u32 (!%p214_p9), 1, %s2380_s12   ;;  %s1835_s10 = sshll.u32 (!%p214_p9), %s2388_s14, 8 }
  0x23   : > { %217 = sbr.rel (%p214_p9) target bundleno = 398 (0x18e), region = 51  ;;  %s1834_s11 = sshll.u32 (!%p214_p9), %s220_s9, 7 }
  0x24   : > { %p250_p10 = scmp.lt.s32.totalorder (!%p214_p9), %s1835_s10, 1023  ;;  %p255_p11 = scmp.lt.s32.totalorder (!%p214_p9), %s2392_s15, 1 }
  0x25   : > { %s2521_s30 = scalar_lea.vmem (!%p214_p9), [#allocation3], %s1834_s11  ;;  %p1839_p12 = scmp.ne.s32.totalorder (!%p214_p9), %s2388_s14, 0 }
  0x28   : > { %s2712_s10 = smov (!%p250_p10, %s1835_s10), 1023  ;;  %s2714_s15 = smov (!%p255_p11, %s2392_s15), 1 }
  0x29   : > { %s1836_s21 = sshll.u32 %s2712_s10, 2  ;;  %s1988_s26 = sshll.u32 %s2714_s15, 4 }
  0x2a   : > { %s2514_s24 = scalar_lea.vmem %s2696_s1, %s1836_s21  ;;  %s2519_s29 = scalar_lea.vmem %s2698_s3, %s1988_s26 }
  0x2b   : > { %264 = sbr.rel (%p1839_p12) target bundleno = 50 (0x32), region = 59 }
  0x30   : > { %v2406_v16 = vmov 0.0  }
  0x31   : > { %265 = vst [vmem:[#allocation2] sm:$0xff] %v2406_v16  ;;  %266 = vst [vmem:[#allocation2 + $0x8] sm:$0x1] %v2406_v16 }
  0x32 PF: > { %v2222_v17 = vld [vmem:[%s2514_s24 + $0x78] sm:$0xff]   ;;  %v2226_v21 = vld [vmem:[%s2514_s24 + $0x70] sm:$0xff]   ;;  %v2230_v25 = vld [vmem:[%s2514_s24 + $0x68] sm:$0xff]   ;;  %p1984_p13 = scmp.ne.s32.totalorder %s2388_s14, 3 }
  0x33   : > { %v2223_v18 = vld [vmem:[%s2514_s24 + $0xf8] sm:$0xff]   ;;  %1989 = vmatprep.subr.bf16.mxu0 %v2222_v17  ;;  %v2227_v22 = vld [vmem:[%s2514_s24 + $0xf0] sm:$0xff]   ;;  %v2231_v26 = vld [vmem:[%s2514_s24 + $0xe8] sm:$0xff]  }
  0x34   : > { %v2224_v19 = vld [vmem:[%s2514_s24 + $0x38] sm:$0xff]   ;;  %2011 = vmatprep.subr.bf16.mxu1 %v2223_v18  ;;  %v2228_v23 = vld [vmem:[%s2514_s24 + $0x30] sm:$0xff]   ;;  %v2232_v27 = vld [vmem:[%s2514_s24 + $0x28] sm:$0xff]  }
  0x35   : > { %v2225_v20 = vld [vmem:[%s2514_s24 + $0xb8] sm:$0xff]   ;;  %1990 = vmatpush3.bf16.msra.mxu0 %v2224_v19  ;;  %v2229_v24 = vld [vmem:[%s2514_s24 + $0xb0] sm:$0xff]   ;;  %v2233_v28 = vld [vmem:[%s2514_s24 + $0xa8] sm:$0xff]  }
  0x36   : > { %2012 = vmatpush3.bf16.msra.mxu1 %v2225_v20  ;;  %1991 = vmatprep.subr.bf16.mxu0 %v2226_v21  ;;  %v2234_v29 = vld [vmem:[%s2514_s24 + $0x60] sm:$0xff]   ;;  %v2238_v33 = vld [vmem:[%s2514_s24 + $0x58] sm:$0xff]   ;;  %v2242_v37 = vld [vmem:[%s2514_s24 + $0x50] sm:$0xff]  }
  0x37   : > { %2013 = vmatprep.subr.bf16.mxu1 %v2227_v22  ;;  %v2235_v30 = vld [vmem:[%s2514_s24 + $0xe0] sm:$0xff]   ;;  %v2239_v34 = vld [vmem:[%s2514_s24 + $0xd8] sm:$0xff]   ;;  %v2243_v38 = vld [vmem:[%s2514_s24 + $0xd0] sm:$0xff]  }
  0x38   : > { %v2236_v31 = vld [vmem:[%s2514_s24 + $0x20] sm:$0xff]   ;;  %v2240_v35 = vld [vmem:[%s2514_s24 + $0x18] sm:$0xff]   ;;  %v2244_v39 = vld [vmem:[%s2514_s24 + $0x10] sm:$0xff]  }
  0x39   : > { %1992 = vmatpush3.bf16.msra.mxu0 %v2228_v23  ;;  %v2237_v32 = vld [vmem:[%s2514_s24 + $0xa0] sm:$0xff]   ;;  %v2241_v36 = vld [vmem:[%s2514_s24 + $0x98] sm:$0xff]   ;;  %v2245_v40 = vld [vmem:[%s2514_s24 + $0x90] sm:$0xff]  }
  0x3a   : > { %2014 = vmatpush3.bf16.msra.mxu1 %v2229_v24  ;;  %1993 = vmatprep.subr.bf16.mxu0 %v2230_v25  ;;  %v2246_v41 = vld [vmem:[%s2514_s24 + $0x48] sm:$0xff]   ;;  %v2250_v45 = vld [vmem:[%s2514_s24 + $0x40] sm:$0xff]   ;;  %v269_v49 = vld [vmem:[%s2521_s30] sm:$0xff] }
  0x3b   : > { %2015 = vmatprep.subr.bf16.mxu1 %v2231_v26  ;;  %v2247_v42 = vld [vmem:[%s2514_s24 + $0xc8] sm:$0xff]   ;;  %v2251_v46 = vld [vmem:[%s2514_s24 + $0xc0] sm:$0xff]   ;;  %v277_v50 = vld [vmem:[%s2521_s30 + $0x40] sm:$0x11] }
  0x3c   : > { %v2248_v43 = vld [vmem:[%s2514_s24 + $0x8] sm:$0xff]   ;;  %v2252_v47 = vld [vmem:[%s2514_s24] sm:$0xff]   ;;  %v270_v51 = vld [vmem:[%s2521_s30 + $0x8] sm:$0xff]  ;;  %v1840_v52 = vcombine.low %v269_v49, %v277_v50  ;;  %v1841_v53 = vcombine.high %v269_v49, %v277_v50 }
  0x3d   : > { %1994 = vmatpush3.bf16.msra.mxu0 %v2232_v27  ;;  %v2249_v44 = vld [vmem:[%s2514_s24 + $0x88] sm:$0xff]   ;;  %v2253_v48 = vld [vmem:[%s2514_s24 + $0x80] sm:$0xff]   ;;  %v278_v54 = vld [vmem:[%s2521_s30 + $0x48] sm:$0x11] }
  0x3e   : > { %2016 = vmatpush3.bf16.msra.mxu1 %v2233_v28  ;;  %1995 = vmatprep.subr.bf16.mxu0 %v2234_v29  ;;  %v1842_v55 = vcombine.low %v270_v51, %v278_v54  ;;  %v1843_v56 = vcombine.high %v270_v51, %v278_v54  ;;  %v2254_v57 = vld [vmem:[%s2514_s24 + $0x178] sm:$0xff]   ;;  %v2258_v61 = vld [vmem:[%s2514_s24 + $0x170] sm:$0xff]   ;;  %v2262_v1 = vld [vmem:[%s2514_s24 + $0x168] sm:$0xff]  }
  0x3f   : > { %2017 = vmatprep.subr.bf16.mxu1 %v2235_v30  ;;  %1421 = vmatprep.mubr.bf16.mxu0 %v1841_v53  ;;  %v2255_v58 = vld [vmem:[%s2514_s24 + $0x1f8] sm:$0xff]   ;;  %v2259_v62 = vld [vmem:[%s2514_s24 + $0x1f0] sm:$0xff]   ;;  %v2263_v2 = vld [vmem:[%s2514_s24 + $0x1e8] sm:$0xff]  }
  0x40   : > { %1462 = vmatprep.mubr.bf16.mxu1 %v1843_v56  ;;  %v2256_v59 = vld [vmem:[%s2514_s24 + $0x138] sm:$0xff]   ;;  %v2260_v63 = vld [vmem:[%s2514_s24 + $0x130] sm:$0xff]   ;;  %v2264_v3 = vld [vmem:[%s2514_s24 + $0x128] sm:$0xff]  }
  0x41   : > { %1996 = vmatpush3.bf16.msra.mxu0 %v2236_v31  ;;  %v2257_v60 = vld [vmem:[%s2514_s24 + $0x1b8] sm:$0xff]   ;;  %v2261_v0 = vld [vmem:[%s2514_s24 + $0x1b0] sm:$0xff]   ;;  %v2265_v4 = vld [vmem:[%s2514_s24 + $0x1a8] sm:$0xff]  }
  0x42   : > { %2018 = vmatpush3.bf16.msra.mxu1 %v2237_v32  ;;  %1997 = vmatprep.subr.bf16.mxu0 %v2238_v33  ;;  %v2266_v5 = vld [vmem:[%s2514_s24 + $0x160] sm:$0xff]   ;;  %v2270_v9 = vld [vmem:[%s2514_s24 + $0x158] sm:$0xff]   ;;  %v2274_v13 = vld [vmem:[%s2514_s24 + $0x150] sm:$0xff]  }
  0x43   : > { %2019 = vmatprep.subr.bf16.mxu1 %v2239_v34  ;;  %v2267_v6 = vld [vmem:[%s2514_s24 + $0x1e0] sm:$0xff]   ;;  %v2271_v10 = vld [vmem:[%s2514_s24 + $0x1d8] sm:$0xff]   ;;  %v2275_v14 = vld [vmem:[%s2514_s24 + $0x1d0] sm:$0xff]  }
  0x44   : > { %v2268_v7 = vld [vmem:[%s2514_s24 + $0x120] sm:$0xff]   ;;  %v2272_v11 = vld [vmem:[%s2514_s24 + $0x118] sm:$0xff]   ;;  %v2276_v15 = vld [vmem:[%s2514_s24 + $0x110] sm:$0xff]  }
  0x45   : > { %1998 = vmatpush3.bf16.msra.mxu0 %v2240_v35  ;;  %v2269_v8 = vld [vmem:[%s2514_s24 + $0x1a0] sm:$0xff]   ;;  %v2273_v12 = vld [vmem:[%s2514_s24 + $0x198] sm:$0xff]   ;;  %v2277_v16 = vld [vmem:[%s2514_s24 + $0x190] sm:$0xff]  }
  0x46   : > { %2020 = vmatpush3.bf16.msra.mxu1 %v2241_v36  ;;  %1999 = vmatprep.subr.bf16.mxu0 %v2242_v37  ;;  %v2278_v17 = vld [vmem:[%s2514_s24 + $0x148] sm:$0xff]   ;;  %v2282_v21 = vld [vmem:[%s2514_s24 + $0x140] sm:$0xff]   ;;  %v2286_v33 = vld [vmem:[%s2514_s24 + $0x278] sm:$0xff]  }
  0x47   : > { %2021 = vmatprep.subr.bf16.mxu1 %v2243_v38  ;;  %v2279_v18 = vld [vmem:[%s2514_s24 + $0x1c8] sm:$0xff]   ;;  %v2283_v22 = vld [vmem:[%s2514_s24 + $0x1c0] sm:$0xff]   ;;  %v2287_v34 = vld [vmem:[%s2514_s24 + $0x2f8] sm:$0xff]  }
  0x48   : > { %v2280_v19 = vld [vmem:[%s2514_s24 + $0x108] sm:$0xff]   ;;  %v2284_v23 = vld [vmem:[%s2514_s24 + $0x100] sm:$0xff]   ;;  %v2288_v35 = vld [vmem:[%s2514_s24 + $0x238] sm:$0xff]  }
  0x49   : > { %2000 = vmatpush3.bf16.msra.mxu0 %v2244_v39  ;;  %v2281_v20 = vld [vmem:[%s2514_s24 + $0x188] sm:$0xff]   ;;  %v2285_v24 = vld [vmem:[%s2514_s24 + $0x180] sm:$0xff]   ;;  %v2289_v36 = vld [vmem:[%s2514_s24 + $0x2b8] sm:$0xff]  }
  0x4a   : > { %2022 = vmatpush3.bf16.msra.mxu1 %v2245_v40  ;;  %2001 = vmatprep.subr.bf16.mxu0 %v2246_v41  ;;  %v271_v25 = vld [vmem:[%s2521_s30 + $0x10] sm:$0xff]  ;;  %v272_v29 = vld [vmem:[%s2521_s30 + $0x18] sm:$0xff]  ;;  %v2290_v37 = vld [vmem:[%s2514_s24 + $0x270] sm:$0xff]  }
  0x4b   : > { %2023 = vmatprep.subr.bf16.mxu1 %v2247_v42  ;;  %v279_v26 = vld [vmem:[%s2521_s30 + $0x50] sm:$0x11]  ;;  %v280_v30 = vld [vmem:[%s2521_s30 + $0x58] sm:$0x11]  ;;  %v2291_v38 = vld [vmem:[%s2514_s24 + $0x2f0] sm:$0xff]  }
  0x4c   : > { %v1844_v27 = vcombine.low %v271_v25, %v279_v26  ;;  %v1845_v28 = vcombine.high %v271_v25, %v279_v26  ;;  %v1846_v31 = vcombine.low %v272_v29, %v280_v30  ;;  %v1847_v32 = vcombine.high %v272_v29, %v280_v30  ;;  %v2292_v39 = vld [vmem:[%s2514_s24 + $0x230] sm:$0xff]   ;;  %v2294_v41 = vld [vmem:[%s2514_s24 + $0x268] sm:$0xff]   ;;  %v2302_v49 = vld [vmem:[%s2514_s24 + $0x258] sm:$0xff]  }
  0x4d   : > { %2002 = vmatpush3.bf16.msra.mxu0 %v2248_v43  ;;  %v2293_v40 = vld [vmem:[%s2514_s24 + $0x2b0] sm:$0xff]   ;;  %v2295_v42 = vld [vmem:[%s2514_s24 + $0x2e8] sm:$0xff]   ;;  %v2303_v50 = vld [vmem:[%s2514_s24 + $0x2d8] sm:$0xff]  }
  0x4e   : > { %2024 = vmatpush3.bf16.msra.mxu1 %v2249_v44  ;;  %2003 = vmatprep.subr.bf16.mxu0 %v2250_v45  ;;  %v2296_v43 = vld [vmem:[%s2514_s24 + $0x228] sm:$0xff]   ;;  %v2298_v45 = vld [vmem:[%s2514_s24 + $0x260] sm:$0xff]   ;;  %v2304_v51 = vld [vmem:[%s2514_s24 + $0x218] sm:$0xff]  }
  0x4f   : > { %2025 = vmatprep.subr.bf16.mxu1 %v2251_v46  ;;  %v2297_v44 = vld [vmem:[%s2514_s24 + $0x2a8] sm:$0xff]   ;;  %v2299_v46 = vld [vmem:[%s2514_s24 + $0x2e0] sm:$0xff]   ;;  %v2306_v53 = vld [vmem:[%s2514_s24 + $0x250] sm:$0xff]  }
  0x50   : > { %v2307_v54 = vld [vmem:[%s2514_s24 + $0x2d0] sm:$0xff]   ;;  %v2334_v25 = vld [vmem:[%s2514_s24 + $0x358] sm:$0xff]  }
  0x51   : > { %2004 = vmatpush3.bf16.msra.mxu0 %v2252_v47  ;;  %v2300_v47 = vld [vmem:[%s2514_s24 + $0x220] sm:$0xff]   ;;  %v2309_v56 = vld [vmem:[%s2514_s24 + $0x290] sm:$0xff]   ;;  %v2335_v26 = vld [vmem:[%s2514_s24 + $0x3d8] sm:$0xff]  }
  0x52   : > { %2026 = vmatpush3.bf16.msra.mxu1 %v2253_v48  ;;  %2033 = vmatprep.subr.bf16.mxu0 %v2254_v57  ;;  %v2301_v48 = vld [vmem:[%s2514_s24 + $0x2a0] sm:$0xff]   ;;  %v2310_v57 = vld [vmem:[%s2514_s24 + $0x248] sm:$0xff]   ;;  %v2338_v29 = vld [vmem:[%s2514_s24 + $0x350] sm:$0xff]  }
  0x53   : > { %2055 = vmatprep.subr.bf16.mxu1 %v2255_v58  ;;  %v2311_v58 = vld [vmem:[%s2514_s24 + $0x2c8] sm:$0xff]   ;;  %v2339_v30 = vld [vmem:[%s2514_s24 + $0x3d0] sm:$0xff]  }
  0x54   : > { %1422 = vmatmul.mubr.bf16.vlgmr.msra.gmra.mxu0 %v1840_v52  ;;  %v2305_v52 = vld [vmem:[%s2514_s24 + $0x298] sm:$0xff]  }
  0x55   : > { %1463 = vmatmul.mubr.bf16.vlgmr.msra.gmra.mxu1 %v1842_v55  ;;  %2034 = vmatpush3.bf16.msra.mxu0 %v2256_v59  ;;  %v2308_v55 = vld [vmem:[%s2514_s24 + $0x210] sm:$0xff]   ;;  %v2312_v59 = vld [vmem:[%s2514_s24 + $0x208] sm:$0xff]  }
  0x56   : > { %2056 = vmatpush3.bf16.msra.mxu1 %v2257_v60  ;;  %2035 = vmatprep.subr.bf16.mxu0 %v2258_v61  ;;  %v2313_v60 = vld [vmem:[%s2514_s24 + $0x288] sm:$0xff]   ;;  %v2314_v61 = vld [vmem:[%s2514_s24 + $0x240] sm:$0xff]  }
  0x57   : > { %2057 = vmatprep.subr.bf16.mxu1 %v2259_v62  ;;  %1503 = vmatprep.mubr.bf16.mxu0 %v1845_v28  ;;  %v2315_v62 = vld [vmem:[%s2514_s24 + $0x2c0] sm:$0xff]   ;;  %v2337_v28 = vld [vmem:[%s2514_s24 + $0x398] sm:$0xff]  }
  0x58   : > { %1544 = vmatprep.mubr.bf16.mxu1 %v1847_v32  ;;  %v2341_v32 = vld [vmem:[%s2514_s24 + $0x390] sm:$0xff]  }
  0x59   : > { %2036 = vmatpush3.bf16.msra.mxu0 %v2260_v63  ;;  %v2316_v63 = vld [vmem:[%s2514_s24 + $0x200] sm:$0xff]  }
  0x5a   : > { %2058 = vmatpush3.bf16.msra.mxu1 %v2261_v0  ;;  %2037 = vmatprep.subr.bf16.mxu0 %v2262_v1  ;;  %v2317_v0 = vld [vmem:[%s2514_s24 + $0x280] sm:$0xff]   ;;  %v273_v1 = vld [vmem:[%s2521_s30 + $0x20] sm:$0xff] }
  0x5b   : > { %2059 = vmatprep.subr.bf16.mxu1 %v2263_v2  ;;  %v281_v2 = vld [vmem:[%s2521_s30 + $0x60] sm:$0x11] }
  0x5d   : > { %2038 = vmatpush3.bf16.msra.mxu0 %v2264_v3  ;;  %v274_v3 = vld [vmem:[%s2521_s30 + $0x28] sm:$0xff] }
  0x5e   : > { %2060 = vmatpush3.bf16.msra.mxu1 %v2265_v4  ;;  %2039 = vmatprep.subr.bf16.mxu0 %v2266_v5  ;;  %v282_v4 = vld [vmem:[%s2521_s30 + $0x68] sm:$0x11]  ;;  %v1848_v5 = vcombine.low %v273_v1, %v281_v2 }
  0x5f   : > { %2061 = vmatprep.subr.bf16.mxu1 %v2267_v6  ;;  %v1849_v6 = vcombine.high %v273_v1, %v281_v2 }
  0x61   : > { %2040 = vmatpush3.bf16.msra.mxu0 %v2268_v7  ;;  %v1850_v7 = vcombine.low %v274_v3, %v282_v4 }
  0x62   : > { %2062 = vmatpush3.bf16.msra.mxu1 %v2269_v8  ;;  %2041 = vmatprep.subr.bf16.mxu0 %v2270_v9  ;;  %v1851_v8 = vcombine.high %v274_v3, %v282_v4  ;;  %v2318_v9 = vld [vmem:[%s2514_s24 + $0x378] sm:$0xff]  }
  0x63   : > { %2063 = vmatprep.subr.bf16.mxu1 %v2271_v10  ;;  %v2319_v10 = vld [vmem:[%s2514_s24 + $0x3f8] sm:$0xff]  }
  0x65   : > { %2042 = vmatpush3.bf16.msra.mxu0 %v2272_v11  ;;  %v2320_v11 = vld [vmem:[%s2514_s24 + $0x338] sm:$0xff]  }
  0x66   : > { %2064 = vmatpush3.bf16.msra.mxu1 %v2273_v12  ;;  %2043 = vmatprep.subr.bf16.mxu0 %v2274_v13  ;;  %v2321_v12 = vld [vmem:[%s2514_s24 + $0x3b8] sm:$0xff]   ;;  %v2322_v13 = vld [vmem:[%s2514_s24 + $0x370] sm:$0xff]  }
  0x67   : > { %2065 = vmatprep.subr.bf16.mxu1 %v2275_v14  ;;  %v2323_v14 = vld [vmem:[%s2514_s24 + $0x3f0] sm:$0xff]  }
  0x69   : > { %2044 = vmatpush3.bf16.msra.mxu0 %v2276_v15  ;;  %v2324_v15 = vld [vmem:[%s2514_s24 + $0x330] sm:$0xff]  }
  0x6a   : > { %2066 = vmatpush3.bf16.msra.mxu1 %v2277_v16  ;;  %2045 = vmatprep.subr.bf16.mxu0 %v2278_v17  ;;  %v2325_v16 = vld [vmem:[%s2514_s24 + $0x3b0] sm:$0xff]   ;;  %v2326_v17 = vld [vmem:[%s2514_s24 + $0x368] sm:$0xff]  }
  0x6b   : > { %2067 = vmatprep.subr.bf16.mxu1 %v2279_v18  ;;  %v2327_v18 = vld [vmem:[%s2514_s24 + $0x3e8] sm:$0xff]  }
  0x6d   : > { %2046 = vmatpush3.bf16.msra.mxu0 %v2280_v19  ;;  %v2328_v19 = vld [vmem:[%s2514_s24 + $0x328] sm:$0xff]  }
  0x6e   : > { %2068 = vmatpush3.bf16.msra.mxu1 %v2281_v20  ;;  %2047 = vmatprep.subr.bf16.mxu0 %v2282_v21  ;;  %v2329_v20 = vld [vmem:[%s2514_s24 + $0x3a8] sm:$0xff]   ;;  %v2330_v21 = vld [vmem:[%s2514_s24 + $0x360] sm:$0xff]  }
  0x6f   : > { %2069 = vmatprep.subr.bf16.mxu1 %v2283_v22  ;;  %v2331_v22 = vld [vmem:[%s2514_s24 + $0x3e0] sm:$0xff]  }
  0x71   : > { %2048 = vmatpush3.bf16.msra.mxu0 %v2284_v23  ;;  %v2332_v23 = vld [vmem:[%s2514_s24 + $0x320] sm:$0xff]  }
  0x72   : > { %2070 = vmatpush3.bf16.msra.mxu1 %v2285_v24  ;;  %2077 = vmatprep.subr.bf16.mxu0 %v2286_v33  ;;  %v2333_v24 = vld [vmem:[%s2514_s24 + $0x3a0] sm:$0xff]   ;;  %v2342_v33 = vld [vmem:[%s2514_s24 + $0x348] sm:$0xff]  }
  0x73   : > { %2099 = vmatprep.subr.bf16.mxu1 %v2287_v34  ;;  %v2343_v34 = vld [vmem:[%s2514_s24 + $0x3c8] sm:$0xff]  }
  0x74   : > { %1504 = vmatmul.mubr.bf16.vlgmr.msra.gmra.mxu0 %v1844_v27  ;;  %v2336_v27 = vld [vmem:[%s2514_s24 + $0x318] sm:$0xff]  }
  0x75   : > { %1545 = vmatmul.mubr.bf16.vlgmr.msra.gmra.mxu1 %v1846_v31  ;;  %2078 = vmatpush3.bf16.msra.mxu0 %v2288_v35  ;;  %v2340_v31 = vld [vmem:[%s2514_s24 + $0x310] sm:$0xff]   ;;  %v2344_v35 = vld [vmem:[%s2514_s24 + $0x308] sm:$0xff]  }
  0x76   : > { %2100 = vmatpush3.bf16.msra.mxu1 %v2289_v36  ;;  %2079 = vmatprep.subr.bf16.mxu0 %v2290_v37  ;;  %v2345_v36 = vld [vmem:[%s2514_s24 + $0x388] sm:$0xff]   ;;  %v2346_v37 = vld [vmem:[%s2514_s24 + $0x340] sm:$0xff]  }
  0x77   : > { %2101 = vmatprep.subr.bf16.mxu1 %v2291_v38  ;;  %1585 = vmatprep.mubr.bf16.mxu0 %v1849_v6  ;;  %v2347_v38 = vld [vmem:[%s2514_s24 + $0x3c0] sm:$0xff]  }
  0x78   : > { %1626 = vmatprep.mubr.bf16.mxu1 %v1851_v8 }
  0x79   : > { %2080 = vmatpush3.bf16.msra.mxu0 %v2292_v39  ;;  %v2348_v39 = vld [vmem:[%s2514_s24 + $0x300] sm:$0xff]  }
  0x7a   : > { %2102 = vmatpush3.bf16.msra.mxu1 %v2293_v40  ;;  %2081 = vmatprep.subr.bf16.mxu0 %v2294_v41  ;;  %v2349_v40 = vld [vmem:[%s2514_s24 + $0x380] sm:$0xff]  }
  0x7b   : > { %2103 = vmatprep.subr.bf16.mxu1 %v2295_v42  ;;  %v275_v41 = vld [vmem:[%s2521_s30 + $0x30] sm:$0xff] }
  0x7c   : > { %v283_v42 = vld [vmem:[%s2521_s30 + $0x70] sm:$0x11] }
  0x7d   : > { %2082 = vmatpush3.bf16.msra.mxu0 %v2296_v43  ;;  %v276_v43 = vld [vmem:[%s2521_s30 + $0x38] sm:$0xff] }
  0x7e   : > { %2104 = vmatpush3.bf16.msra.mxu1 %v2297_v44  ;;  %2083 = vmatprep.subr.bf16.mxu0 %v2298_v45  ;;  %v1852_v44 = vcombine.low %v275_v41, %v283_v42  ;;  %v1853_v45 = vcombine.high %v275_v41, %v283_v42 }
  0x7f   : > { %2105 = vmatprep.subr.bf16.mxu1 %v2299_v46  ;;  %v284_v46 = vld [vmem:[%s2521_s30 + $0x78] sm:$0x11] }
  0x81   : > { %2084 = vmatpush3.bf16.msra.mxu0 %v2300_v47  ;;  %v1854_v47 = vcombine.low %v276_v43, %v284_v46 }
  0x82   : > { %2106 = vmatpush3.bf16.msra.mxu1 %v2301_v48  ;;  %2085 = vmatprep.subr.bf16.mxu0 %v2302_v49  ;;  %v1855_v48 = vcombine.high %v276_v43, %v284_v46 }
  0x83   : > { %2107 = vmatprep.subr.bf16.mxu1 %v2303_v50 }
  0x85   : > { %2086 = vmatpush3.bf16.msra.mxu0 %v2304_v51 }
  0x86   : > { %2108 = vmatpush3.bf16.msra.mxu1 %v2305_v52  ;;  %2087 = vmatprep.subr.bf16.mxu0 %v2306_v53 }
  0x87   : > { %2109 = vmatprep.subr.bf16.mxu1 %v2307_v54 }
  0x89   : > { %2088 = vmatpush3.bf16.msra.mxu0 %v2308_v55 }
  0x8a   : > { %2110 = vmatpush3.bf16.msra.mxu1 %v2309_v56  ;;  %2089 = vmatprep.subr.bf16.mxu0 %v2310_v57 }
  0x8b   : > { %2111 = vmatprep.subr.bf16.mxu1 %v2311_v58 }
  0x8d   : > { %2090 = vmatpush3.bf16.msra.mxu0 %v2312_v59 }
  0x8e   : > { %2112 = vmatpush3.bf16.msra.mxu1 %v2313_v60  ;;  %2091 = vmatprep.subr.bf16.mxu0 %v2314_v61 }
  0x8f   : > { %2113 = vmatprep.subr.bf16.mxu1 %v2315_v62 }
  0x91   : > { %2092 = vmatpush3.bf16.msra.mxu0 %v2316_v63 }
  0x92   : > { %2114 = vmatpush3.bf16.msra.mxu1 %v2317_v0  ;;  %2121 = vmatprep.subr.bf16.mxu0 %v2318_v9 }
  0x93   : > { %2143 = vmatprep.subr.bf16.mxu1 %v2319_v10 }
  0x94   : > { %1586 = vmatmul.mubr.bf16.vlgmr.msra.gmra.mxu0 %v1848_v5 }
  0x95   : > { %1627 = vmatmul.mubr.bf16.vlgmr.msra.gmra.mxu1 %v1850_v7  ;;  %2122 = vmatpush3.bf16.msra.mxu0 %v2320_v11 }
  0x96   : > { %2144 = vmatpush3.bf16.msra.mxu1 %v2321_v12  ;;  %2123 = vmatprep.subr.bf16.mxu0 %v2322_v13 }
  0x97   : > { %2145 = vmatprep.subr.bf16.mxu1 %v2323_v14  ;;  %1667 = vmatprep.mubr.bf16.mxu0 %v1853_v45 }
  0x98   : > { %1708 = vmatprep.mubr.bf16.mxu1 %v1855_v48  ;;  %v268_v48 = vld [vmem:[#allocation2 + $0x8] sm:$0x1] }
  0x99   : > { %2124 = vmatpush3.bf16.msra.mxu0 %v2324_v15 }
  0x9a   : > { %2146 = vmatpush3.bf16.msra.mxu1 %v2325_v16  ;;  %2125 = vmatprep.subr.bf16.mxu0 %v2326_v17 }
  0x9b   : > { %2147 = vmatprep.subr.bf16.mxu1 %v2327_v18 }
  0x9d   : > { %2126 = vmatpush3.bf16.msra.mxu0 %v2328_v19 }
  0x9e   : > { %2148 = vmatpush3.bf16.msra.mxu1 %v2329_v20  ;;  %2127 = vmatprep.subr.bf16.mxu0 %v2330_v21 }
  0x9f   : > { %2149 = vmatprep.subr.bf16.mxu1 %v2331_v22 }
  0xa1   : > { %2128 = vmatpush3.bf16.msra.mxu0 %v2332_v23 }
  0xa2   : > { %2150 = vmatpush3.bf16.msra.mxu1 %v2333_v24  ;;  %2129 = vmatprep.subr.bf16.mxu0 %v2334_v25 }
  0xa3   : > { %2151 = vmatprep.subr.bf16.mxu1 %v2335_v26 }
  0xa5   : > { %2130 = vmatpush3.bf16.msra.mxu0 %v2336_v27 }
  0xa6   : > { %2152 = vmatpush3.bf16.msra.mxu1 %v2337_v28  ;;  %2131 = vmatprep.subr.bf16.mxu0 %v2338_v29 }
  0xa7   : > { %2153 = vmatprep.subr.bf16.mxu1 %v2339_v30 }
  0xa9   : > { %2132 = vmatpush3.bf16.msra.mxu0 %v2340_v31 }
  0xaa   : > { %2154 = vmatpush3.bf16.msra.mxu1 %v2341_v32  ;;  %2133 = vmatprep.subr.bf16.mxu0 %v2342_v33 }
  0xab   : > { %2155 = vmatprep.subr.bf16.mxu1 %v2343_v34 }
  0xad   : > { %2134 = vmatpush3.bf16.msra.mxu0 %v2344_v35 }
  0xae   : > { %2156 = vmatpush3.bf16.msra.mxu1 %v2345_v36  ;;  %2135 = vmatprep.subr.bf16.mxu0 %v2346_v37 }
  0xaf   : > { %2157 = vmatprep.subr.bf16.mxu1 %v2347_v38 }
  0xb1   : > { %2136 = vmatpush3.bf16.msra.mxu0 %v2348_v39  ;;  %v267_v39 = vld [vmem:[#allocation2] sm:$0xff] }
  0xb2   : > { %2158 = vmatpush3.bf16.msra.mxu1 %v2349_v40 }
  0xb4   : > { %1668 = vmatmul.mubr.bf16.vlgmr.msra.gmra.mxu0 %v1852_v44 }
  0xb5   : > { %1709 = vmatmul.mubr.bf16.vlgmr.msra.gmra.mxu1 %v1854_v47 }
 0x114   : > { %v2005_v49 = vpop.f32.mrf.mxu0 }
 0x115   : > { %v2027_v50 = vpop.f32.mrf.mxu1 }
 0x116   : > { %v2006_v51 = vpop.f32.mrf.mxu0 }
 0x117   : > { %v2028_v52 = vpop.f32.mrf.mxu1  ;;  %v2007_v2 = vadd.f32 %v2006_v51, %v2005_v49 }
 0x118   : > { %v2008_v53 = vpop.f32.mrf.mxu0  ;;  %v2029_v3 = vadd.f32 %v2028_v52, %v2027_v50 }
 0x119   : > { %v2030_v54 = vpop.f32.mrf.mxu1 }
 0x11a   : > { %v2009_v55 = vpop.f32.mrf.mxu0  ;;  %v1465_v7 = vadd.f32 %v2029_v3, %v2007_v2 }
 0x11b   : > { %v2031_v57 = vpop.f32.mrf.mxu1  ;;  %v2010_v8 = vadd.f32 %v2009_v55, %v2008_v53 }
 0x11c   : > { %v2032_v9 = vadd.f32 %v2031_v57, %v2030_v54 }
 0x11e   : > { %v1468_v15 = vadd.f32 %v2032_v9, %v2010_v8 }
 0x134   : > { %v2049_v56 = vpop.f32.mrf.mxu0 }
 0x135   : > { %v2071_v58 = vpop.f32.mrf.mxu1 }
 0x136   : > { %v2050_v59 = vpop.f32.mrf.mxu0 }
 0x137   : > { %v2072_v60 = vpop.f32.mrf.mxu1  ;;  %v2051_v6 = vadd.f32 %v2050_v59, %v2049_v56 }
 0x138   : > { %v2052_v61 = vpop.f32.mrf.mxu0  ;;  %v2073_v13 = vadd.f32 %v2072_v60, %v2071_v58 }
 0x139   : > { %v2074_v62 = vpop.f32.mrf.mxu1  ;;  %v1506_v12 = vadd.f32 %v2051_v6, %v1465_v7 }
 0x13a   : > { %v2053_v63 = vpop.f32.mrf.mxu0 }
 0x13b   : > { %v2075_v1 = vpop.f32.mrf.mxu1  ;;  %v2054_v14 = vadd.f32 %v2053_v63, %v2052_v61  ;;  %v1547_v19 = vadd.f32 %v2073_v13, %v1506_v12 }
 0x13c   : > { %v2076_v21 = vadd.f32 %v2075_v1, %v2074_v62 }
 0x13d   : > { %v1509_v20 = vadd.f32 %v2054_v14, %v1468_v15 }
 0x13f   : > { %v1550_v27 = vadd.f32 %v2076_v21, %v1509_v20 }
 0x154   : > { %v2093_v0 = vpop.f32.mrf.mxu0 }
 0x155   : > { %v2115_v4 = vpop.f32.mrf.mxu1 }
 0x156   : > { %v2094_v5 = vpop.f32.mrf.mxu0 }
 0x157   : > { %v2116_v10 = vpop.f32.mrf.mxu1  ;;  %v2095_v16 = vadd.f32 %v2094_v5, %v2093_v0 }
 0x158   : > { %v2096_v11 = vpop.f32.mrf.mxu0  ;;  %v2117_v23 = vadd.f32 %v2116_v10, %v2115_v4 }
 0x159   : > { %v2118_v17 = vpop.f32.mrf.mxu1  ;;  %v1588_v22 = vadd.f32 %v2095_v16, %v1547_v19 }
 0x15a   : > { %v2097_v18 = vpop.f32.mrf.mxu0 }
 0x15b   : > { %v2098_v24 = vadd.f32 %v2097_v18, %v2096_v11  ;;  %v2119_v25 = vpop.f32.mrf.mxu1  ;;  %v1629_v30 = vadd.f32 %v2117_v23, %v1588_v22 }
 0x15c   : > { %v2120_v35 = vadd.f32 %v2119_v25, %v2118_v17 }
 0x15d   : > { %v1591_v31 = vadd.f32 %v2098_v24, %v1550_v27 }
 0x15f   : > { %v1632_v41 = vadd.f32 %v2120_v35, %v1591_v31 }
 0x174   : > { %v2137_v26 = vpop.f32.mrf.mxu0 }
 0x175   : > { %v2159_v28 = vpop.f32.mrf.mxu1 }
 0x176   : > { %v2138_v29 = vpop.f32.mrf.mxu0 }
 0x177   : > { %v2139_v32 = vadd.f32 %v2138_v29, %v2137_v26  ;;  %v2160_v33 = vpop.f32.mrf.mxu1 }
 0x178   : > { %v2140_v34 = vpop.f32.mrf.mxu0  ;;  %v2161_v37 = vadd.f32 %v2160_v33, %v2159_v28 }
 0x179   : > { %v1670_v36 = vadd.f32 %v2139_v32, %v1629_v30  ;;  %v2162_v38 = vpop.f32.mrf.mxu1 }
 0x17a   : > { %v2141_v40 = vpop.f32.mrf.mxu0 }
 0x17b   : > { %v1711_v42 = vadd.f32 %v2161_v37, %v1670_v36  ;;  %v2142_v43 = vadd.f32 %v2141_v40, %v2140_v34  ;;  %v2163_v44 = vpop.f32.mrf.mxu1 }
 0x17c   : > { %v2164_v47 = vadd.f32 %v2163_v44, %v2162_v38 }
 0x17d   : > { %v1717_v45 = vadd.f32 %v1711_v42, %v267_v39  ;;  %v1673_v46 = vadd.f32 %v2142_v43, %v1632_v41 }
 0x17f   : > { %1719 = vst [vmem:[#allocation2] sm:$0xff] %v1717_v45  ;;  %v1714_v49 = vadd.f32 %v2164_v47, %v1673_v46  ;;  %1724 = sbr.rel (%p1984_p13) target bundleno = 398 (0x18e), region = 63 }
 0x181   : > { %v1718_v50 = vadd.f32 %v1714_v49, %v268_v48 }
 0x183   : > { %1720 = vst [vmem:[#allocation2 + $0x8] sm:$0x1] %v1718_v50 }
 0x184   : > { %v1985_v52 = vld [vmem:[%s2697_s2] ss:$0 sm:$0xff] }
 0x186   : > { %v1725_v51 = vld [vmem:[#allocation2] sm:$0xff] }
 0x187   : > { %v1734_v54 = vadd.f32 %v1985_v52, %v1725_v51 }
 0x189   : > { %1736 = vst [vmem:[%s2519_s29] sm:$0xff] %v1734_v54 }
 0x18a   : > { %v1726_v53 = vld [vmem:[#allocation2 + $0x8] sm:$0x1] }
 0x18b   : > { %v1735_v55 = vadd.f32 %v1985_v52, %v1726_v53 }
 0x18d   : > { %1737 = vst [vmem:[%s2519_s29 + $0x8] sm:$0x1] %v1735_v55 }
 0x18e PF: > { %s13_s18 = sadd.s32 1, %s2404_s18   ;;  %s2699_s12 = smov %s2384_s13 }
 0x18f   : > { %p10_p0 = scmp.ge.s32.totalorder %s13_s18, 10   ;;  %s2700_s13 = smov %s2478_s25 }
 0x190   : > { %s2701_s14 = smov %s2396_s16  ;;  %s2702_s15 = smov %s2400_s17 }
 0x191   : > { %s2703_s16 = smov %s2706_s19  ;;  %s2704_s17 = smov %s2710_s20 }
 0x192   :  { %12 = sbr.rel (!%p10_p0) target bundleno = 4 (0x4), region = 101 }

</bundles_post_ra>
